<compile_context>
chip_gen: v7x
topology: tpu7x:2x2x1
jax: 0.10.0
libtpu: 0.0.40
codegen_flags: <defaults>
</compile_context>

<pallas_src>
import functools
import math

import jax
import jax.numpy as jnp
from jax.experimental import pallas as pl
from jax.experimental.pallas import tpu as pltpu

F32 = jnp.float32
NEG_INF = float(-(2 ** 32) + 1)  # same masking constant as the PyTorch module


def _full_spec(shape):
    """Whole-array block (constant index map) for a 1-D grid."""
    n = len(shape)
    return pl.BlockSpec(shape, lambda *_: (0,) * n)


# ----------------------------------------------------------------------------
# Fused encoder-block kernel (MHA + LN1 + FFN + LN2), one grid step per batch elem
# ----------------------------------------------------------------------------
def _encoder_kernel(q_ref, k_ref, v_ref,
                    wq_ref, bq_ref, wk_ref, bk_ref, wv_ref, bv_ref,
                    wo_ref, bo_ref, ln1g_ref, ln1b_ref,
                    w1_ref, b1_ref, w2_ref, b2_ref, ln2g_ref, ln2b_ref,
                    x_out_ref, *score_refs, h, masked):
    q_in = q_ref[0]          # (Lq, D)
    k_in = k_ref[0]          # (Lk, D)
    v_in = v_ref[0]          # (Lk, D)

    mha = None
    for hi in range(h):      # static unroll over heads; per-head weights are leading-indexed
        q_h = jnp.dot(q_in, wq_ref[hi], preferred_element_type=jnp.float32) + bq_ref[hi]
        k_h = jnp.dot(k_in, wk_ref[hi], preferred_element_type=jnp.float32) + bk_ref[hi]
        v_h = jnp.dot(v_in, wv_ref[hi], preferred_element_type=jnp.float32) + bv_ref[hi]
        # score = Q @ K^T  (the reference module applies NO 1/sqrt(d) scaling)
        s = jax.lax.dot_general(q_h, k_h, dimension_numbers=(((1,), (1,)), ((), ())),
                                preferred_element_type=jnp.float32)      # (Lq, Lk)
        if masked:
            # torch: tril(ones_like(score[0])) -- applied even when Lq != Lk (faithful)
            row = jax.lax.broadcasted_iota(jnp.int32, s.shape, 0)
            col = jax.lax.broadcasted_iota(jnp.int32, s.shape, 1)
            s = jnp.where(col <= row, s, jnp.full_like(s, NEG_INF))
        m = jnp.max(s, axis=-1, keepdims=True)
        e = jnp.exp(s - m)
        p = e / jnp.sum(e, axis=-1, keepdims=True)                        # softmax score
        if score_refs:                                                    # only last layer writes
            score_refs[0][hi, 0] = p.astype(score_refs[0].dtype)
        a_h = jnp.dot(p, v_h, preferred_element_type=jnp.float32)         # (Lq, dv)
        # out_linear applied per head-chunk and summed == concat(heads) @ Wo
        contrib = jnp.dot(a_h, wo_ref[hi], preferred_element_type=jnp.float32)  # (Lq, D)
        mha = contrib if mha is None else mha + contrib

    # residual + LayerNorm1
    x = mha + bo_ref[...] + q_in
    mu = jnp.mean(x, axis=-1, keepdims=True)
    var = jnp.mean(jnp.square(x - mu), axis=-1, keepdims=True)
    x = (x - mu) * jax.lax.rsqrt(var + 1e-5) * ln1g_ref[...] + ln1b_ref[...]

    # FFN: Conv1d(k=1) -> ReLU -> Conv1d(k=1)  (== per-position linears)
    y = jnp.dot(x, w1_ref[...], preferred_element_type=jnp.float32) + b1_ref[...]
    y = jnp.maximum(y, 0.0)
    y = jnp.dot(y, w2_ref[...], preferred_element_type=jnp.float32) + b2_ref[...]

    # residual + LayerNorm2
    z = x + y
    mu2 = jnp.mean(z, axis=-1, keepdims=True)
    var2 = jnp.mean(jnp.square(z - mu2), axis=-1, keepdims=True)
    z = (z - mu2) * jax.lax.rsqrt(var2 + 1e-5) * ln2g_ref[...] + ln2b_ref[...]
    x_out_ref[0] = z.astype(x_out_ref.dtype)


def encoder_layer(p, query, key_, value, h, masked, want_score=True):
    B, Lq, D = query.shape
    Lk = key_.shape[1]
    dq = p["Wq"].shape[1] // h
    dk = p["Wk"].shape[1] // h
    dv = p["Wv"].shape[1] // h
    dh = p["W1"].shape[1]

    # Per-head weight split matching torch.chunk(dim=-1): head hi <-> cols [hi*d:(hi+1)*d].
    wq = jnp.transpose(p["Wq"].reshape(D, h, dq), (1, 0, 2))   # (h, D, dq)
    wk = jnp.transpose(p["Wk"].reshape(D, h, dk), (1, 0, 2))
    wv = jnp.transpose(p["Wv"].reshape(D, h, dv), (1, 0, 2))
    bq = p["bq"].reshape(h, 1, dq)
    bk = p["bk"].reshape(h, 1, dk)
    bv = p["bv"].reshape(h, 1, dv)
    # out_linear rows [hi*v:(hi+1)*v] consume head hi (torch cat(chunk(.., dim=0), dim=-1)).
    wo = p["Wo"].reshape(h, dv, D)

    in_specs = [
        pl.BlockSpec((1, Lq, D), lambda b: (b, 0, 0)),
        pl.BlockSpec((1, Lk, D), lambda b: (b, 0, 0)),
        pl.BlockSpec((1, Lk, D), lambda b: (b, 0, 0)),
        _full_spec((h, D, dq)), _full_spec((h, 1, dq)),
        _full_spec((h, D, dk)), _full_spec((h, 1, dk)),
        _full_spec((h, D, dv)), _full_spec((h, 1, dv)),
        _full_spec((h, dv, D)), _full_spec((1, D)),
        _full_spec((1, D)), _full_spec((1, D)),
        _full_spec((D, dh)), _full_spec((1, dh)),
        _full_spec((dh, D)), _full_spec((1, D)),
        _full_spec((1, D)), _full_spec((1, D)),
    ]
    x_spec = pl.BlockSpec((1, Lq, D), lambda b: (b, 0, 0))
    x_shape = jax.ShapeDtypeStruct((B, Lq, D), F32)
    if want_score:
        out_specs = (x_spec, pl.BlockSpec((h, 1, Lq, Lk), lambda b: (0, b, 0, 0)))
        out_shape = (x_shape, jax.ShapeDtypeStruct((h, B, Lq, Lk), F32))
    else:
        out_specs = x_spec
        out_shape = x_shape

    res = pl.pallas_call(
        functools.partial(_encoder_kernel, h=h, masked=masked),
        grid=(B,),
        in_specs=in_specs,
        out_specs=out_specs,
        out_shape=out_shape,
        compiler_params=pltpu.CompilerParams(dimension_semantics=("parallel",)),
    )(query.astype(F32), key_.astype(F32), value.astype(F32),
      wq, bq, wk, bk, wv, bv, wo,
      p["bo"].reshape(1, D), p["ln1_g"].reshape(1, D), p["ln1_b"].reshape(1, D),
      p["W1"], p["b1"].reshape(1, dh), p["W2"], p["b2"].reshape(1, D),
      p["ln2_g"].reshape(1, D), p["ln2_b"].reshape(1, D))

    if want_score:
        x_out, score = res
        # (h, B, Lq, Lk) -> (h*B, Lq, Lk) matches torch index hi*B + b
        return x_out, score.reshape(h * B, Lq, Lk)
    return res, None


# ----------------------------------------------------------------------------
# Fused token-embedding kernel: Conv1d(k=1) + bias + (positional [+ temporal]) add
# ----------------------------------------------------------------------------
def _embed_kernel(x_ref, w_ref, b_ref, add_ref, o_ref):
    y = jnp.dot(x_ref[0], w_ref[...], preferred_element_type=jnp.float32)
    o_ref[0] = (y + b_ref[...] + add_ref[0]).astype(o_ref.dtype)


def token_embed(x, w, b, add):
    """x: (B, L, Cin), w: (Cin, D), b: (D,), add: (Ba, L, D) with Ba in {1, B}."""
    B, L, Cin = x.shape
    D = w.shape[1]
    if add.shape[0] == B:
        add_map = lambda i: (i, 0, 0)
    else:
        add_map = lambda i: (0, 0, 0)
    return pl.pallas_call(
        _embed_kernel,
        grid=(B,),
        in_specs=[
            pl.BlockSpec((1, L, Cin), lambda i: (i, 0, 0)),
            pl.BlockSpec((Cin, D), lambda i: (0, 0)),
            pl.BlockSpec((1, D), lambda i: (0, 0)),
            pl.BlockSpec((1, L, D), add_map),
        ],
        out_specs=pl.BlockSpec((1, L, D), lambda i: (i, 0, 0)),
        out_shape=jax.ShapeDtypeStruct((B, L, D), F32),
        compiler_params=pltpu.CompilerParams(dimension_semantics=("parallel",)),
    )(x.astype(F32), w.astype(F32), b.reshape(1, D).astype(F32), add.astype(F32))


# ----------------------------------------------------------------------------
# Fused output head: two linears + learned weighted combine (+ mean term)
# ----------------------------------------------------------------------------
def _output_kernel(xt_ref, xf_ref, wt_ref, bt_ref, wtf_ref, btf_ref, mean_ref, wgt_ref, o_ref):
    x_time = jnp.dot(xt_ref[...], wt_ref[...], preferred_element_type=jnp.float32) + bt_ref[...]
    x_tf = jnp.dot(xf_ref[...], wtf_ref[...], preferred_element_type=jnp.float32) + btf_ref[...]
    w0 = wgt_ref[0]
    w1 = wgt_ref[1]
    w2 = wgt_ref[2]
    w3 = wgt_ref[3]
    o_ref[...] = (x_tf * w0 + x_time * w1 + w3 + mean_ref[...] * w2).astype(o_ref.dtype)


def output_head(xt_flat, xf_flat, Wt, bt, Wtf, btf, mean, weight):
    B, Kt = xt_flat.shape
    Kf = xf_flat.shape[1]
    P = Wt.shape[1]
    return pl.pallas_call(
        _output_kernel,
        grid=(1,),
        in_specs=[
            pl.BlockSpec((B, Kt), lambda i: (0, 0)),
            pl.BlockSpec((B, Kf), lambda i: (0, 0)),
            pl.BlockSpec((Kt, P), lambda i: (0, 0)),
            pl.BlockSpec((1, P), lambda i: (0, 0)),
            pl.BlockSpec((Kf, P), lambda i: (0, 0)),
            pl.BlockSpec((1, P), lambda i: (0, 0)),
            pl.BlockSpec((B, 1), lambda i: (0, 0)),
            pl.BlockSpec(memory_space=pltpu.MemorySpace.SMEM),   # (4,) scalar weights
        ],
        out_specs=pl.BlockSpec((B, P), lambda i: (0, 0)),
        out_shape=jax.ShapeDtypeStruct((B, P), F32),
    )(xt_flat.astype(F32), xf_flat.astype(F32), Wt, bt.reshape(1, P), Wtf,
      btf.reshape(1, P), mean.astype(F32), weight.astype(F32))


# ----------------------------------------------------------------------------
# Model glue (plain JAX around the Pallas kernels; fused by XLA under jit)
# ----------------------------------------------------------------------------
def position_encode(L, D):
    pos = jnp.arange(L, dtype=F32).reshape(L, 1)
    temp = jnp.exp(jnp.arange(0, D, 2, dtype=F32) * (-(math.log(10000.0) / D))).reshape(1, -1)
    ang = pos @ temp                                   # (L, D//2)
    pe = jnp.ones((L, D), F32)
    pe = pe.at[:, 0::2].set(jnp.sin(ang))
    pe = pe.at[:, 1::2].set(jnp.cos(ang))
    return pe                                          # constant-folded under jit


def temporal_embedding(tparams, stamp):
    # stamp: (B, L, >=4) int32; columns: 0=month, 1=day, 2=weekday, 3=hour (XLA gathers)
    out = (jnp.take(tparams["hour"], stamp[:, :, 3], axis=0)
           + jnp.take(tparams["weekday"], stamp[:, :, 2], axis=0)
           + jnp.take(tparams["day"], stamp[:, :, 1], axis=0)
           + jnp.take(tparams["month"], stamp[:, :, 0], axis=0))
    return out


def ours_forward(params, enc_in, enc_stamp, dec_in, dec_stamp, pred_target, cfg):
    B = enc_in.shape[0]
    d_time, d_feature, D, h = cfg["d_time"], cfg["d_feature"], cfg["d_embedding"], cfg["h"]
    masked = cfg["mask"]

    # Faithful to the reference: mean of the ORIGINAL enc_in, then enc_in/enc_stamp
    # are overwritten by dec_in/dec_stamp.
    mean = jnp.mean(enc_in[:, :, pred_target], axis=-1).reshape(B, 1)
    enc_in = dec_in
    enc_stamp = dec_stamp

    # BatchNorm1d over channels = d_feature (eval semantics, running stats)
    bn = params["bn"]
    x = (enc_in - bn["mean"]) / jnp.sqrt(bn["var"] + 1e-5) * bn["gamma"] + bn["beta"]

    # input_time: TokenEmbedding (Conv1d k=1 over d_feature) + positional + temporal
    it = params["input_time"]
    temporal = temporal_embedding(it["temporal"], enc_stamp)          # (B, d_time, D)
    xt = token_embed(x, it["W"], it["b"], position_encode(d_time, D)[None] + temporal)

    # input_feature: TokenEmbedding (Conv1d k=1 over d_time) + positional
    ifp = params["input_feature"]
    xf = token_embed(jnp.transpose(x, (0, 2, 1)), ifp["W"], ifp["b"],
                     position_encode(d_feature, D)[None])

    t_score = f_score = tf_score = ft_score = None
    n_t = len(params["encoder_time"])
    for li, p in enumerate(params["encoder_time"]):
        xt, sc = encoder_layer(p, xt, xt, xt, h, masked, want_score=(li == n_t - 1))
        if sc is not None:
            t_score = sc
    n_f = len(params["encoder_feature"])
    for li, p in enumerate(params["encoder_feature"]):
        xf, sc = encoder_layer(p, xf, xf, xf, h, masked, want_score=(li == n_f - 1))
        if sc is not None:
            f_score = sc
    n_tf = len(params["encoder_TF"])
    for li, p in enumerate(params["encoder_TF"]):
        # reference re-uses (xt, xf) each iteration (no chaining) -- kept as-is
        x_tf, sc = encoder_layer(p, xt, xf, xf, h, masked, want_score=(li == n_tf - 1))
        if sc is not None:
            tf_score = sc
    n_ft = len(params["encoder_FT"])
    for li, p in enumerate(params["encoder_FT"]):
        x_ft, sc = encoder_layer(p, xf, xt, xt, h, masked, want_score=(li == n_ft - 1))
        if sc is not None:
            ft_score = sc

    op = params["output"]
    out = output_head(x_tf.reshape(B, -1), x_ft.reshape(B, -1),
                      op["Wt"], op["bt"], op["Wtf"], op["btf"], mean, op["weight"])
    return out, (t_score, f_score, tf_score, ft_score)


# ----------------------------------------------------------------------------
# Deterministic parameter initialization (shapes per the PyTorch __init__)
# ----------------------------------------------------------------------------
def init_model(key, *, seq_len, d_feature, d_embedding, d_hidden, pred_len, q, k, v, h, N):
    d_time = seq_len + pred_len
    keys = iter(jax.random.split(key, 256))

    def lin(fan_in, fan_out):
        bound = 1.0 / math.sqrt(fan_in)
        W = jax.random.uniform(next(keys), (fan_in, fan_out), F32, -bound, bound)
        b = jax.random.uniform(next(keys), (fan_out,), F32, -bound, bound)
        return W, b

    def make_encoder():
        p = {}
        p["Wq"], p["bq"] = lin(d_embedding, h * q)
        p["Wk"], p["bk"] = lin(d_embedding, h * k)
        p["Wv"], p["bv"] = lin(d_embedding, h * v)
        p["Wo"], p["bo"] = lin(h * v, d_embedding)
        p["ln1_g"] = jnp.ones((d_embedding,), F32); p["ln1_b"] = jnp.zeros((d_embedding,), F32)
        p["ln2_g"] = jnp.ones((d_embedding,), F32); p["ln2_b"] = jnp.zeros((d_embedding,), F32)
        p["W1"], p["b1"] = lin(d_embedding, d_hidden)
        p["W2"], p["b2"] = lin(d_hidden, d_embedding)
        return p

    params = {}
    params["bn"] = dict(mean=jnp.zeros((d_feature,), F32), var=jnp.ones((d_feature,), F32),
                        gamma=jnp.ones((d_feature,), F32), beta=jnp.zeros((d_feature,), F32))
    Wt, bt = lin(d_feature, d_embedding)
    params["input_time"] = dict(
        W=Wt, b=bt,
        temporal=dict(
            hour=jax.random.normal(next(keys), (24, d_embedding), F32),
            weekday=jax.random.normal(next(keys), (7, d_embedding), F32),
            day=jax.random.normal(next(keys), (32, d_embedding), F32),
            month=jax.random.normal(next(keys), (13, d_embedding), F32),
        ),
    )
    Wf, bf = lin(d_time, d_embedding)
    params["input_feature"] = dict(W=Wf, b=bf)
    params["encoder_time"] = [make_encoder() for _ in range(N[0])]
    params["encoder_feature"] = [make_encoder() for _ in range(N[0])]
    params["encoder_TF"] = [make_encoder() for _ in range(N[1])]
    params["encoder_FT"] = [make_encoder() for _ in range(N[1])]
    Wot, bot = lin(d_embedding * d_time, pred_len)
    Wotf, botf = lin(d_embedding * d_feature, pred_len)
    params["output"] = dict(Wt=Wot, bt=bot, Wtf=Wotf, btf=botf,
                            weight=jnp.array([0.33, 0.33, 0.33, 0.0], F32))
    return params


# ----------------------------------------------------------------------------
# Main
# ----------------------------------------------------------------------------
if __name__ == "__main__":
    key = jax.random.PRNGKey(0)
    B, seq_len, pred_len = 2, 8, 4
    d_feature, d_embedding, d_hidden = 4, 32, 64
    q = k = v = 8
    h = 4
    N = (1, 1)
    pred_target = 0
    d_time = seq_len + pred_len

    cfg = dict(d_time=d_time, d_feature=d_feature, d_embedding=d_embedding, h=h, mask=True)

    kp, k1, k2, k3, k4, k5, k6 = jax.random.split(key, 7)
    params = init_model(kp, seq_len=seq_len, d_feature=d_feature, d_embedding=d_embedding,
                        d_hidden=d_hidden, pred_len=pred_len, q=q, k=k, v=v, h=h, N=N)

    enc_in = jax.random.normal(k1, (B, seq_len, d_feature), F32)
    dec_in = jax.random.normal(k2, (B, d_time, d_feature), F32)
    # time-stamp columns: [month, day, weekday, hour]
    enc_stamp = jnp.stack([
        jax.random.randint(k3, (B, seq_len), 0, 13),
        jax.random.randint(k4, (B, seq_len), 0, 32),
        jax.random.randint(k5, (B, seq_len), 0, 7),
        jax.random.randint(k6, (B, seq_len), 0, 24),
    ], axis=-1).astype(jnp.int32)
    k7, k8, k9, k10 = jax.random.split(k3, 4)
    dec_stamp = jnp.stack([
        jax.random.randint(k7, (B, d_time), 0, 13),
        jax.random.randint(k8, (B, d_time), 0, 32),
        jax.random.randint(k9, (B, d_time), 0, 7),
        jax.random.randint(k10, (B, d_time), 0, 24),
    ], axis=-1).astype(jnp.int32)

    # Whole forward jitted: cfg / pred_target are closed over (static), tensors are traced.
    fwd = jax.jit(functools.partial(ours_forward, pred_target=pred_target, cfg=cfg))

    out, scores = fwd(params, enc_in, enc_stamp, dec_in, dec_stamp)
    jax.block_until_ready(out)
    jax.block_until_ready(scores)

    assert out.shape == (B, pred_len)
    assert scores[0].shape == (h * B, d_time, d_time)        # t_score
    assert scores[1].shape == (h * B, d_feature, d_feature)  # f_score
    assert scores[2].shape == (h * B, d_time, d_feature)     # tf_score
    assert scores[3].shape == (h * B, d_feature, d_time)     # ft_score
    print("KERNEL_OK")
</pallas_src>

<mosaic_0001>
module attributes {stable_mosaic.version = 11 : i64} {
  func.func @_encoder_kernel(%arg0: i32, %arg1: memref<1x12x32xf32, #tpu.memory_space<vmem>>, %arg2: memref<1x12x32xf32, #tpu.memory_space<vmem>>, %arg3: memref<1x12x32xf32, #tpu.memory_space<vmem>>, %arg4: memref<4x32x8xf32, #tpu.memory_space<vmem>>, %arg5: memref<4x1x8xf32, #tpu.memory_space<vmem>>, %arg6: memref<4x32x8xf32, #tpu.memory_space<vmem>>, %arg7: memref<4x1x8xf32, #tpu.memory_space<vmem>>, %arg8: memref<4x32x8xf32, #tpu.memory_space<vmem>>, %arg9: memref<4x1x8xf32, #tpu.memory_space<vmem>>, %arg10: memref<4x8x32xf32, #tpu.memory_space<vmem>>, %arg11: memref<1x32xf32, #tpu.memory_space<vmem>>, %arg12: memref<1x32xf32, #tpu.memory_space<vmem>>, %arg13: memref<1x32xf32, #tpu.memory_space<vmem>>, %arg14: memref<32x64xf32, #tpu.memory_space<vmem>>, %arg15: memref<1x64xf32, #tpu.memory_space<vmem>>, %arg16: memref<64x32xf32, #tpu.memory_space<vmem>>, %arg17: memref<1x32xf32, #tpu.memory_space<vmem>>, %arg18: memref<1x32xf32, #tpu.memory_space<vmem>>, %arg19: memref<1x32xf32, #tpu.memory_space<vmem>>, %arg20: memref<1x12x32xf32, #tpu.memory_space<vmem>>, %arg21: memref<4x1x12x12xf32, #tpu.memory_space<vmem>>) attributes {dimension_semantics = [#tpu.dimension_semantics<parallel>], iteration_bounds = array<i64: 2>, scalar_prefetch = 0 : i64, scratch_operands = 0 : i64, tpu.core_type = #tpu.core_type<tc>, window_params = [{transform_indices = @transform_0, window_bounds = array<i64: 1, 12, 32>}, {transform_indices = @transform_1, window_bounds = array<i64: 1, 12, 32>}, {transform_indices = @transform_2, window_bounds = array<i64: 1, 12, 32>}, {pipeline_mode = #tpu.pipeline_mode<synchronous>, transform_indices = @transform_3, window_bounds = array<i64: 4, 32, 8>}, {pipeline_mode = #tpu.pipeline_mode<synchronous>, transform_indices = @transform_4, window_bounds = array<i64: 4, 1, 8>}, {pipeline_mode = #tpu.pipeline_mode<synchronous>, transform_indices = @transform_5, window_bounds = array<i64: 4, 32, 8>}, {pipeline_mode = #tpu.pipeline_mode<synchronous>, transform_indices = @transform_6, window_bounds = array<i64: 4, 1, 8>}, {pipeline_mode = #tpu.pipeline_mode<synchronous>, transform_indices = @transform_7, window_bounds = array<i64: 4, 32, 8>}, {pipeline_mode = #tpu.pipeline_mode<synchronous>, transform_indices = @transform_8, window_bounds = array<i64: 4, 1, 8>}, {pipeline_mode = #tpu.pipeline_mode<synchronous>, transform_indices = @transform_9, window_bounds = array<i64: 4, 8, 32>}, {pipeline_mode = #tpu.pipeline_mode<synchronous>, transform_indices = @transform_10, window_bounds = array<i64: 1, 32>}, {pipeline_mode = #tpu.pipeline_mode<synchronous>, transform_indices = @transform_11, window_bounds = array<i64: 1, 32>}, {pipeline_mode = #tpu.pipeline_mode<synchronous>, transform_indices = @transform_12, window_bounds = array<i64: 1, 32>}, {pipeline_mode = #tpu.pipeline_mode<synchronous>, transform_indices = @transform_13, window_bounds = array<i64: 32, 64>}, {pipeline_mode = #tpu.pipeline_mode<synchronous>, transform_indices = @transform_14, window_bounds = array<i64: 1, 64>}, {pipeline_mode = #tpu.pipeline_mode<synchronous>, transform_indices = @transform_15, window_bounds = array<i64: 64, 32>}, {pipeline_mode = #tpu.pipeline_mode<synchronous>, transform_indices = @transform_16, window_bounds = array<i64: 1, 32>}, {pipeline_mode = #tpu.pipeline_mode<synchronous>, transform_indices = @transform_17, window_bounds = array<i64: 1, 32>}, {pipeline_mode = #tpu.pipeline_mode<synchronous>, transform_indices = @transform_18, window_bounds = array<i64: 1, 32>}, {transform_indices = @transform_19, window_bounds = array<i64: 1, 12, 32>}, {transform_indices = @transform_20, window_bounds = array<i64: 4, 1, 12, 12>}]} {
    %c0 = arith.constant 0 : index
    %c0_0 = arith.constant 0 : index
    %c0_1 = arith.constant 0 : index
    %0 = vector.load %arg1[%c0, %c0_0, %c0_1] : memref<1x12x32xf32, #tpu.memory_space<vmem>>, vector<1x12x32xf32>
    %1 = vector.shape_cast %0 : vector<1x12x32xf32> to vector<12x32xf32>
    %c0_2 = arith.constant 0 : index
    %c0_3 = arith.constant 0 : index
    %c0_4 = arith.constant 0 : index
    %2 = vector.load %arg2[%c0_2, %c0_3, %c0_4] : memref<1x12x32xf32, #tpu.memory_space<vmem>>, vector<1x12x32xf32>
    %3 = vector.shape_cast %2 : vector<1x12x32xf32> to vector<12x32xf32>
    %c0_5 = arith.constant 0 : index
    %c0_6 = arith.constant 0 : index
    %c0_7 = arith.constant 0 : index
    %4 = vector.load %arg3[%c0_5, %c0_6, %c0_7] : memref<1x12x32xf32, #tpu.memory_space<vmem>>, vector<1x12x32xf32>
    %5 = vector.shape_cast %4 : vector<1x12x32xf32> to vector<12x32xf32>
    %c0_8 = arith.constant 0 : index
    %c0_9 = arith.constant 0 : index
    %c0_10 = arith.constant 0 : index
    %6 = vector.load %arg4[%c0_8, %c0_9, %c0_10] : memref<4x32x8xf32, #tpu.memory_space<vmem>>, vector<1x32x8xf32>
    %7 = vector.shape_cast %6 : vector<1x32x8xf32> to vector<32x8xf32>
    %cst = arith.constant dense<0.000000e+00> : vector<12x8xf32>
    %8 = tpu.matmul %1, %7, %cst {dimension_numbers = #tpu.dot_dimension_numbers<[1], [0], [0], [1], [0, 0, 1, 1], [], []>} : vector<12x32xf32>, vector<32x8xf32>, vector<12x8xf32> -> vector<12x8xf32>
    %c0_11 = arith.constant 0 : index
    %c0_12 = arith.constant 0 : index
    %c0_13 = arith.constant 0 : index
    %9 = vector.load %arg5[%c0_11, %c0_12, %c0_13] : memref<4x1x8xf32, #tpu.memory_space<vmem>>, vector<1x1x8xf32>
    %10 = vector.shape_cast %9 : vector<1x1x8xf32> to vector<1x8xf32>
    %11 = vector.broadcast %10 : vector<1x8xf32> to vector<12x8xf32>
    %12 = arith.addf %8, %11 : vector<12x8xf32>
    %c0_14 = arith.constant 0 : index
    %c0_15 = arith.constant 0 : index
    %c0_16 = arith.constant 0 : index
    %13 = vector.load %arg6[%c0_14, %c0_15, %c0_16] : memref<4x32x8xf32, #tpu.memory_space<vmem>>, vector<1x32x8xf32>
    %14 = vector.shape_cast %13 : vector<1x32x8xf32> to vector<32x8xf32>
    %cst_17 = arith.constant dense<0.000000e+00> : vector<12x8xf32>
    %15 = tpu.matmul %3, %14, %cst_17 {dimension_numbers = #tpu.dot_dimension_numbers<[1], [0], [0], [1], [0, 0, 1, 1], [], []>} : vector<12x32xf32>, vector<32x8xf32>, vector<12x8xf32> -> vector<12x8xf32>
    %c0_18 = arith.constant 0 : index
    %c0_19 = arith.constant 0 : index
    %c0_20 = arith.constant 0 : index
    %16 = vector.load %arg7[%c0_18, %c0_19, %c0_20] : memref<4x1x8xf32, #tpu.memory_space<vmem>>, vector<1x1x8xf32>
    %17 = vector.shape_cast %16 : vector<1x1x8xf32> to vector<1x8xf32>
    %18 = vector.broadcast %17 : vector<1x8xf32> to vector<12x8xf32>
    %19 = arith.addf %15, %18 : vector<12x8xf32>
    %c0_21 = arith.constant 0 : index
    %c0_22 = arith.constant 0 : index
    %c0_23 = arith.constant 0 : index
    %20 = vector.load %arg8[%c0_21, %c0_22, %c0_23] : memref<4x32x8xf32, #tpu.memory_space<vmem>>, vector<1x32x8xf32>
    %21 = vector.shape_cast %20 : vector<1x32x8xf32> to vector<32x8xf32>
    %cst_24 = arith.constant dense<0.000000e+00> : vector<12x8xf32>
    %22 = tpu.matmul %5, %21, %cst_24 {dimension_numbers = #tpu.dot_dimension_numbers<[1], [0], [0], [1], [0, 0, 1, 1], [], []>} : vector<12x32xf32>, vector<32x8xf32>, vector<12x8xf32> -> vector<12x8xf32>
    %c0_25 = arith.constant 0 : index
    %c0_26 = arith.constant 0 : index
    %c0_27 = arith.constant 0 : index
    %23 = vector.load %arg9[%c0_25, %c0_26, %c0_27] : memref<4x1x8xf32, #tpu.memory_space<vmem>>, vector<1x1x8xf32>
    %24 = vector.shape_cast %23 : vector<1x1x8xf32> to vector<1x8xf32>
    %25 = vector.broadcast %24 : vector<1x8xf32> to vector<12x8xf32>
    %26 = arith.addf %22, %25 : vector<12x8xf32>
    %cst_28 = arith.constant dense<0.000000e+00> : vector<12x12xf32>
    %27 = tpu.matmul %12, %19, %cst_28 {dimension_numbers = #tpu.dot_dimension_numbers<[1], [1], [0], [0], [0, 0, 1, 0], [], []>} : vector<12x8xf32>, vector<12x8xf32>, vector<12x12xf32> -> vector<12x12xf32>
    %28 = tpu.iota {dimensions = array<i32: 0>} : vector<12x12xi32>
    %29 = tpu.iota {dimensions = array<i32: 1>} : vector<12x12xi32>
    %30 = arith.cmpi sle, %29, %28 : vector<12x12xi32>
    %cst_29 = arith.constant -4.2949673E+9 : f32
    %31 = vector.broadcast %cst_29 : f32 to vector<12x12xf32>
    %32 = arith.select %30, %27, %31 : vector<12x12xi1>, vector<12x12xf32>
    %cst_30 = arith.constant dense<0xFF800000> : vector<12xf32>
    %33 = vector.multi_reduction <maximumf>, %32, %cst_30 [1] : vector<12x12xf32> to vector<12xf32>
    %34 = vector.shape_cast %33 : vector<12xf32> to vector<12x1xf32>
    %35 = vector.broadcast %34 : vector<12x1xf32> to vector<12x12xf32>
    %36 = arith.subf %32, %35 : vector<12x12xf32>
    %37 = math.exp %36 : vector<12x12xf32>
    %cst_31 = arith.constant dense<0.000000e+00> : vector<12xf32>
    %38 = vector.multi_reduction <add>, %37, %cst_31 [1] : vector<12x12xf32> to vector<12xf32>
    %39 = vector.shape_cast %38 : vector<12xf32> to vector<12x1xf32>
    %40 = vector.broadcast %39 : vector<12x1xf32> to vector<12x12xf32>
    %41 = arith.divf %37, %40 : vector<12x12xf32>
    %c0_32 = arith.constant 0 : index
    %c0_33 = arith.constant 0 : index
    %c0_34 = arith.constant 0 : index
    %c0_35 = arith.constant 0 : index
    %42 = vector.load %arg21[%c0_32, %c0_33, %c0_34, %c0_35] : memref<4x1x12x12xf32, #tpu.memory_space<vmem>>, vector<1x1x12x12xf32>
    %43 = vector.shape_cast %42 : vector<1x1x12x12xf32> to vector<12x12xf32>
    %44 = vector.shape_cast %41 : vector<12x12xf32> to vector<1x1x12x12xf32>
    tpu.vector_store %arg21[%c0_32, %c0_33, %c0_34, %c0_35], %44 {strides = array<i32>} : memref<4x1x12x12xf32, #tpu.memory_space<vmem>>, vector<1x1x12x12xf32>,
    %cst_36 = arith.constant dense<0.000000e+00> : vector<12x8xf32>
    %45 = tpu.matmul %41, %26, %cst_36 {dimension_numbers = #tpu.dot_dimension_numbers<[1], [0], [0], [1], [0, 0, 1, 1], [], []>} : vector<12x12xf32>, vector<12x8xf32>, vector<12x8xf32> -> vector<12x8xf32>
    %c0_37 = arith.constant 0 : index
    %c0_38 = arith.constant 0 : index
    %c0_39 = arith.constant 0 : index
    %46 = vector.load %arg10[%c0_37, %c0_38, %c0_39] : memref<4x8x32xf32, #tpu.memory_space<vmem>>, vector<1x8x32xf32>
    %47 = vector.shape_cast %46 : vector<1x8x32xf32> to vector<8x32xf32>
    %cst_40 = arith.constant dense<0.000000e+00> : vector<12x32xf32>
    %48 = tpu.matmul %45, %47, %cst_40 {dimension_numbers = #tpu.dot_dimension_numbers<[1], [0], [0], [1], [0, 0, 1, 1], [], []>} : vector<12x8xf32>, vector<8x32xf32>, vector<12x32xf32> -> vector<12x32xf32>
    %c1 = arith.constant 1 : index
    %c0_41 = arith.constant 0 : index
    %c0_42 = arith.constant 0 : index
    %49 = vector.load %arg4[%c1, %c0_41, %c0_42] : memref<4x32x8xf32, #tpu.memory_space<vmem>>, vector<1x32x8xf32>
    %50 = vector.shape_cast %49 : vector<1x32x8xf32> to vector<32x8xf32>
    %cst_43 = arith.constant dense<0.000000e+00> : vector<12x8xf32>
    %51 = tpu.matmul %1, %50, %cst_43 {dimension_numbers = #tpu.dot_dimension_numbers<[1], [0], [0], [1], [0, 0, 1, 1], [], []>} : vector<12x32xf32>, vector<32x8xf32>, vector<12x8xf32> -> vector<12x8xf32>
    %c1_44 = arith.constant 1 : index
    %c0_45 = arith.constant 0 : index
    %c0_46 = arith.constant 0 : index
    %52 = vector.load %arg5[%c1_44, %c0_45, %c0_46] : memref<4x1x8xf32, #tpu.memory_space<vmem>>, vector<1x1x8xf32>
    %53 = vector.shape_cast %52 : vector<1x1x8xf32> to vector<1x8xf32>
    %54 = vector.broadcast %53 : vector<1x8xf32> to vector<12x8xf32>
    %55 = arith.addf %51, %54 : vector<12x8xf32>
    %c1_47 = arith.constant 1 : index
    %c0_48 = arith.constant 0 : index
    %c0_49 = arith.constant 0 : index
    %56 = vector.load %arg6[%c1_47, %c0_48, %c0_49] : memref<4x32x8xf32, #tpu.memory_space<vmem>>, vector<1x32x8xf32>
    %57 = vector.shape_cast %56 : vector<1x32x8xf32> to vector<32x8xf32>
    %cst_50 = arith.constant dense<0.000000e+00> : vector<12x8xf32>
    %58 = tpu.matmul %3, %57, %cst_50 {dimension_numbers = #tpu.dot_dimension_numbers<[1], [0], [0], [1], [0, 0, 1, 1], [], []>} : vector<12x32xf32>, vector<32x8xf32>, vector<12x8xf32> -> vector<12x8xf32>
    %c1_51 = arith.constant 1 : index
    %c0_52 = arith.constant 0 : index
    %c0_53 = arith.constant 0 : index
    %59 = vector.load %arg7[%c1_51, %c0_52, %c0_53] : memref<4x1x8xf32, #tpu.memory_space<vmem>>, vector<1x1x8xf32>
    %60 = vector.shape_cast %59 : vector<1x1x8xf32> to vector<1x8xf32>
    %61 = vector.broadcast %60 : vector<1x8xf32> to vector<12x8xf32>
    %62 = arith.addf %58, %61 : vector<12x8xf32>
    %c1_54 = arith.constant 1 : index
    %c0_55 = arith.constant 0 : index
    %c0_56 = arith.constant 0 : index
    %63 = vector.load %arg8[%c1_54, %c0_55, %c0_56] : memref<4x32x8xf32, #tpu.memory_space<vmem>>, vector<1x32x8xf32>
    %64 = vector.shape_cast %63 : vector<1x32x8xf32> to vector<32x8xf32>
    %cst_57 = arith.constant dense<0.000000e+00> : vector<12x8xf32>
    %65 = tpu.matmul %5, %64, %cst_57 {dimension_numbers = #tpu.dot_dimension_numbers<[1], [0], [0], [1], [0, 0, 1, 1], [], []>} : vector<12x32xf32>, vector<32x8xf32>, vector<12x8xf32> -> vector<12x8xf32>
    %c1_58 = arith.constant 1 : index
    %c0_59 = arith.constant 0 : index
    %c0_60 = arith.constant 0 : index
    %66 = vector.load %arg9[%c1_58, %c0_59, %c0_60] : memref<4x1x8xf32, #tpu.memory_space<vmem>>, vector<1x1x8xf32>
    %67 = vector.shape_cast %66 : vector<1x1x8xf32> to vector<1x8xf32>
    %68 = vector.broadcast %67 : vector<1x8xf32> to vector<12x8xf32>
    %69 = arith.addf %65, %68 : vector<12x8xf32>
    %cst_61 = arith.constant dense<0.000000e+00> : vector<12x12xf32>
    %70 = tpu.matmul %55, %62, %cst_61 {dimension_numbers = #tpu.dot_dimension_numbers<[1], [1], [0], [0], [0, 0, 1, 0], [], []>} : vector<12x8xf32>, vector<12x8xf32>, vector<12x12xf32> -> vector<12x12xf32>
    %71 = tpu.iota {dimensions = array<i32: 0>} : vector<12x12xi32>
    %72 = tpu.iota {dimensions = array<i32: 1>} : vector<12x12xi32>
    %73 = arith.cmpi sle, %72, %71 : vector<12x12xi32>
    %cst_62 = arith.constant -4.2949673E+9 : f32
    %74 = vector.broadcast %cst_62 : f32 to vector<12x12xf32>
    %75 = arith.select %73, %70, %74 : vector<12x12xi1>, vector<12x12xf32>
    %cst_63 = arith.constant dense<0xFF800000> : vector<12xf32>
    %76 = vector.multi_reduction <maximumf>, %75, %cst_63 [1] : vector<12x12xf32> to vector<12xf32>
    %77 = vector.shape_cast %76 : vector<12xf32> to vector<12x1xf32>
    %78 = vector.broadcast %77 : vector<12x1xf32> to vector<12x12xf32>
    %79 = arith.subf %75, %78 : vector<12x12xf32>
    %80 = math.exp %79 : vector<12x12xf32>
    %cst_64 = arith.constant dense<0.000000e+00> : vector<12xf32>
    %81 = vector.multi_reduction <add>, %80, %cst_64 [1] : vector<12x12xf32> to vector<12xf32>
    %82 = vector.shape_cast %81 : vector<12xf32> to vector<12x1xf32>
    %83 = vector.broadcast %82 : vector<12x1xf32> to vector<12x12xf32>
    %84 = arith.divf %80, %83 : vector<12x12xf32>
    %c1_65 = arith.constant 1 : index
    %c0_66 = arith.constant 0 : index
    %c0_67 = arith.constant 0 : index
    %c0_68 = arith.constant 0 : index
    %85 = vector.load %arg21[%c1_65, %c0_66, %c0_67, %c0_68] : memref<4x1x12x12xf32, #tpu.memory_space<vmem>>, vector<1x1x12x12xf32>
    %86 = vector.shape_cast %85 : vector<1x1x12x12xf32> to vector<12x12xf32>
    %87 = vector.shape_cast %84 : vector<12x12xf32> to vector<1x1x12x12xf32>
    tpu.vector_store %arg21[%c1_65, %c0_66, %c0_67, %c0_68], %87 {strides = array<i32>} : memref<4x1x12x12xf32, #tpu.memory_space<vmem>>, vector<1x1x12x12xf32>,
    %cst_69 = arith.constant dense<0.000000e+00> : vector<12x8xf32>
    %88 = tpu.matmul %84, %69, %cst_69 {dimension_numbers = #tpu.dot_dimension_numbers<[1], [0], [0], [1], [0, 0, 1, 1], [], []>} : vector<12x12xf32>, vector<12x8xf32>, vector<12x8xf32> -> vector<12x8xf32>
    %c1_70 = arith.constant 1 : index
    %c0_71 = arith.constant 0 : index
    %c0_72 = arith.constant 0 : index
    %89 = vector.load %arg10[%c1_70, %c0_71, %c0_72] : memref<4x8x32xf32, #tpu.memory_space<vmem>>, vector<1x8x32xf32>
    %90 = vector.shape_cast %89 : vector<1x8x32xf32> to vector<8x32xf32>
    %cst_73 = arith.constant dense<0.000000e+00> : vector<12x32xf32>
    %91 = tpu.matmul %88, %90, %cst_73 {dimension_numbers = #tpu.dot_dimension_numbers<[1], [0], [0], [1], [0, 0, 1, 1], [], []>} : vector<12x8xf32>, vector<8x32xf32>, vector<12x32xf32> -> vector<12x32xf32>
    %92 = arith.addf %48, %91 : vector<12x32xf32>
    %c2 = arith.constant 2 : index
    %c0_74 = arith.constant 0 : index
    %c0_75 = arith.constant 0 : index
    %93 = vector.load %arg4[%c2, %c0_74, %c0_75] : memref<4x32x8xf32, #tpu.memory_space<vmem>>, vector<1x32x8xf32>
    %94 = vector.shape_cast %93 : vector<1x32x8xf32> to vector<32x8xf32>
    %cst_76 = arith.constant dense<0.000000e+00> : vector<12x8xf32>
    %95 = tpu.matmul %1, %94, %cst_76 {dimension_numbers = #tpu.dot_dimension_numbers<[1], [0], [0], [1], [0, 0, 1, 1], [], []>} : vector<12x32xf32>, vector<32x8xf32>, vector<12x8xf32> -> vector<12x8xf32>
    %c2_77 = arith.constant 2 : index
    %c0_78 = arith.constant 0 : index
    %c0_79 = arith.constant 0 : index
    %96 = vector.load %arg5[%c2_77, %c0_78, %c0_79] : memref<4x1x8xf32, #tpu.memory_space<vmem>>, vector<1x1x8xf32>
    %97 = vector.shape_cast %96 : vector<1x1x8xf32> to vector<1x8xf32>
    %98 = vector.broadcast %97 : vector<1x8xf32> to vector<12x8xf32>
    %99 = arith.addf %95, %98 : vector<12x8xf32>
    %c2_80 = arith.constant 2 : index
    %c0_81 = arith.constant 0 : index
    %c0_82 = arith.constant 0 : index
    %100 = vector.load %arg6[%c2_80, %c0_81, %c0_82] : memref<4x32x8xf32, #tpu.memory_space<vmem>>, vector<1x32x8xf32>
    %101 = vector.shape_cast %100 : vector<1x32x8xf32> to vector<32x8xf32>
    %cst_83 = arith.constant dense<0.000000e+00> : vector<12x8xf32>
    %102 = tpu.matmul %3, %101, %cst_83 {dimension_numbers = #tpu.dot_dimension_numbers<[1], [0], [0], [1], [0, 0, 1, 1], [], []>} : vector<12x32xf32>, vector<32x8xf32>, vector<12x8xf32> -> vector<12x8xf32>
    %c2_84 = arith.constant 2 : index
    %c0_85 = arith.constant 0 : index
    %c0_86 = arith.constant 0 : index
    %103 = vector.load %arg7[%c2_84, %c0_85, %c0_86] : memref<4x1x8xf32, #tpu.memory_space<vmem>>, vector<1x1x8xf32>
    %104 = vector.shape_cast %103 : vector<1x1x8xf32> to vector<1x8xf32>
    %105 = vector.broadcast %104 : vector<1x8xf32> to vector<12x8xf32>
    %106 = arith.addf %102, %105 : vector<12x8xf32>
    %c2_87 = arith.constant 2 : index
    %c0_88 = arith.constant 0 : index
    %c0_89 = arith.constant 0 : index
    %107 = vector.load %arg8[%c2_87, %c0_88, %c0_89] : memref<4x32x8xf32, #tpu.memory_space<vmem>>, vector<1x32x8xf32>
    %108 = vector.shape_cast %107 : vector<1x32x8xf32> to vector<32x8xf32>
    %cst_90 = arith.constant dense<0.000000e+00> : vector<12x8xf32>
    %109 = tpu.matmul %5, %108, %cst_90 {dimension_numbers = #tpu.dot_dimension_numbers<[1], [0], [0], [1], [0, 0, 1, 1], [], []>} : vector<12x32xf32>, vector<32x8xf32>, vector<12x8xf32> -> vector<12x8xf32>
    %c2_91 = arith.constant 2 : index
    %c0_92 = arith.constant 0 : index
    %c0_93 = arith.constant 0 : index
    %110 = vector.load %arg9[%c2_91, %c0_92, %c0_93] : memref<4x1x8xf32, #tpu.memory_space<vmem>>, vector<1x1x8xf32>
    %111 = vector.shape_cast %110 : vector<1x1x8xf32> to vector<1x8xf32>
    %112 = vector.broadcast %111 : vector<1x8xf32> to vector<12x8xf32>
    %113 = arith.addf %109, %112 : vector<12x8xf32>
    %cst_94 = arith.constant dense<0.000000e+00> : vector<12x12xf32>
    %114 = tpu.matmul %99, %106, %cst_94 {dimension_numbers = #tpu.dot_dimension_numbers<[1], [1], [0], [0], [0, 0, 1, 0], [], []>} : vector<12x8xf32>, vector<12x8xf32>, vector<12x12xf32> -> vector<12x12xf32>
    %115 = tpu.iota {dimensions = array<i32: 0>} : vector<12x12xi32>
    %116 = tpu.iota {dimensions = array<i32: 1>} : vector<12x12xi32>
    %117 = arith.cmpi sle, %116, %115 : vector<12x12xi32>
    %cst_95 = arith.constant -4.2949673E+9 : f32
    %118 = vector.broadcast %cst_95 : f32 to vector<12x12xf32>
    %119 = arith.select %117, %114, %118 : vector<12x12xi1>, vector<12x12xf32>
    %cst_96 = arith.constant dense<0xFF800000> : vector<12xf32>
    %120 = vector.multi_reduction <maximumf>, %119, %cst_96 [1] : vector<12x12xf32> to vector<12xf32>
    %121 = vector.shape_cast %120 : vector<12xf32> to vector<12x1xf32>
    %122 = vector.broadcast %121 : vector<12x1xf32> to vector<12x12xf32>
    %123 = arith.subf %119, %122 : vector<12x12xf32>
    %124 = math.exp %123 : vector<12x12xf32>
    %cst_97 = arith.constant dense<0.000000e+00> : vector<12xf32>
    %125 = vector.multi_reduction <add>, %124, %cst_97 [1] : vector<12x12xf32> to vector<12xf32>
    %126 = vector.shape_cast %125 : vector<12xf32> to vector<12x1xf32>
    %127 = vector.broadcast %126 : vector<12x1xf32> to vector<12x12xf32>
    %128 = arith.divf %124, %127 : vector<12x12xf32>
    %c2_98 = arith.constant 2 : index
    %c0_99 = arith.constant 0 : index
    %c0_100 = arith.constant 0 : index
    %c0_101 = arith.constant 0 : index
    %129 = vector.load %arg21[%c2_98, %c0_99, %c0_100, %c0_101] : memref<4x1x12x12xf32, #tpu.memory_space<vmem>>, vector<1x1x12x12xf32>
    %130 = vector.shape_cast %129 : vector<1x1x12x12xf32> to vector<12x12xf32>
    %131 = vector.shape_cast %128 : vector<12x12xf32> to vector<1x1x12x12xf32>
    tpu.vector_store %arg21[%c2_98, %c0_99, %c0_100, %c0_101], %131 {strides = array<i32>} : memref<4x1x12x12xf32, #tpu.memory_space<vmem>>, vector<1x1x12x12xf32>,
    %cst_102 = arith.constant dense<0.000000e+00> : vector<12x8xf32>
    %132 = tpu.matmul %128, %113, %cst_102 {dimension_numbers = #tpu.dot_dimension_numbers<[1], [0], [0], [1], [0, 0, 1, 1], [], []>} : vector<12x12xf32>, vector<12x8xf32>, vector<12x8xf32> -> vector<12x8xf32>
    %c2_103 = arith.constant 2 : index
    %c0_104 = arith.constant 0 : index
    %c0_105 = arith.constant 0 : index
    %133 = vector.load %arg10[%c2_103, %c0_104, %c0_105] : memref<4x8x32xf32, #tpu.memory_space<vmem>>, vector<1x8x32xf32>
    %134 = vector.shape_cast %133 : vector<1x8x32xf32> to vector<8x32xf32>
    %cst_106 = arith.constant dense<0.000000e+00> : vector<12x32xf32>
    %135 = tpu.matmul %132, %134, %cst_106 {dimension_numbers = #tpu.dot_dimension_numbers<[1], [0], [0], [1], [0, 0, 1, 1], [], []>} : vector<12x8xf32>, vector<8x32xf32>, vector<12x32xf32> -> vector<12x32xf32>
    %136 = arith.addf %92, %135 : vector<12x32xf32>
    %c3 = arith.constant 3 : index
    %c0_107 = arith.constant 0 : index
    %c0_108 = arith.constant 0 : index
    %137 = vector.load %arg4[%c3, %c0_107, %c0_108] : memref<4x32x8xf32, #tpu.memory_space<vmem>>, vector<1x32x8xf32>
    %138 = vector.shape_cast %137 : vector<1x32x8xf32> to vector<32x8xf32>
    %cst_109 = arith.constant dense<0.000000e+00> : vector<12x8xf32>
    %139 = tpu.matmul %1, %138, %cst_109 {dimension_numbers = #tpu.dot_dimension_numbers<[1], [0], [0], [1], [0, 0, 1, 1], [], []>} : vector<12x32xf32>, vector<32x8xf32>, vector<12x8xf32> -> vector<12x8xf32>
    %c3_110 = arith.constant 3 : index
    %c0_111 = arith.constant 0 : index
    %c0_112 = arith.constant 0 : index
    %140 = vector.load %arg5[%c3_110, %c0_111, %c0_112] : memref<4x1x8xf32, #tpu.memory_space<vmem>>, vector<1x1x8xf32>
    %141 = vector.shape_cast %140 : vector<1x1x8xf32> to vector<1x8xf32>
    %142 = vector.broadcast %141 : vector<1x8xf32> to vector<12x8xf32>
    %143 = arith.addf %139, %142 : vector<12x8xf32>
    %c3_113 = arith.constant 3 : index
    %c0_114 = arith.constant 0 : index
    %c0_115 = arith.constant 0 : index
    %144 = vector.load %arg6[%c3_113, %c0_114, %c0_115] : memref<4x32x8xf32, #tpu.memory_space<vmem>>, vector<1x32x8xf32>
    %145 = vector.shape_cast %144 : vector<1x32x8xf32> to vector<32x8xf32>
    %cst_116 = arith.constant dense<0.000000e+00> : vector<12x8xf32>
    %146 = tpu.matmul %3, %145, %cst_116 {dimension_numbers = #tpu.dot_dimension_numbers<[1], [0], [0], [1], [0, 0, 1, 1], [], []>} : vector<12x32xf32>, vector<32x8xf32>, vector<12x8xf32> -> vector<12x8xf32>
    %c3_117 = arith.constant 3 : index
    %c0_118 = arith.constant 0 : index
    %c0_119 = arith.constant 0 : index
    %147 = vector.load %arg7[%c3_117, %c0_118, %c0_119] : memref<4x1x8xf32, #tpu.memory_space<vmem>>, vector<1x1x8xf32>
    %148 = vector.shape_cast %147 : vector<1x1x8xf32> to vector<1x8xf32>
    %149 = vector.broadcast %148 : vector<1x8xf32> to vector<12x8xf32>
    %150 = arith.addf %146, %149 : vector<12x8xf32>
    %c3_120 = arith.constant 3 : index
    %c0_121 = arith.constant 0 : index
    %c0_122 = arith.constant 0 : index
    %151 = vector.load %arg8[%c3_120, %c0_121, %c0_122] : memref<4x32x8xf32, #tpu.memory_space<vmem>>, vector<1x32x8xf32>
    %152 = vector.shape_cast %151 : vector<1x32x8xf32> to vector<32x8xf32>
    %cst_123 = arith.constant dense<0.000000e+00> : vector<12x8xf32>
    %153 = tpu.matmul %5, %152, %cst_123 {dimension_numbers = #tpu.dot_dimension_numbers<[1], [0], [0], [1], [0, 0, 1, 1], [], []>} : vector<12x32xf32>, vector<32x8xf32>, vector<12x8xf32> -> vector<12x8xf32>
    %c3_124 = arith.constant 3 : index
    %c0_125 = arith.constant 0 : index
    %c0_126 = arith.constant 0 : index
    %154 = vector.load %arg9[%c3_124, %c0_125, %c0_126] : memref<4x1x8xf32, #tpu.memory_space<vmem>>, vector<1x1x8xf32>
    %155 = vector.shape_cast %154 : vector<1x1x8xf32> to vector<1x8xf32>
    %156 = vector.broadcast %155 : vector<1x8xf32> to vector<12x8xf32>
    %157 = arith.addf %153, %156 : vector<12x8xf32>
    %cst_127 = arith.constant dense<0.000000e+00> : vector<12x12xf32>
    %158 = tpu.matmul %143, %150, %cst_127 {dimension_numbers = #tpu.dot_dimension_numbers<[1], [1], [0], [0], [0, 0, 1, 0], [], []>} : vector<12x8xf32>, vector<12x8xf32>, vector<12x12xf32> -> vector<12x12xf32>
    %159 = tpu.iota {dimensions = array<i32: 0>} : vector<12x12xi32>
    %160 = tpu.iota {dimensions = array<i32: 1>} : vector<12x12xi32>
    %161 = arith.cmpi sle, %160, %159 : vector<12x12xi32>
    %cst_128 = arith.constant -4.2949673E+9 : f32
    %162 = vector.broadcast %cst_128 : f32 to vector<12x12xf32>
    %163 = arith.select %161, %158, %162 : vector<12x12xi1>, vector<12x12xf32>
    %cst_129 = arith.constant dense<0xFF800000> : vector<12xf32>
    %164 = vector.multi_reduction <maximumf>, %163, %cst_129 [1] : vector<12x12xf32> to vector<12xf32>
    %165 = vector.shape_cast %164 : vector<12xf32> to vector<12x1xf32>
    %166 = vector.broadcast %165 : vector<12x1xf32> to vector<12x12xf32>
    %167 = arith.subf %163, %166 : vector<12x12xf32>
    %168 = math.exp %167 : vector<12x12xf32>
    %cst_130 = arith.constant dense<0.000000e+00> : vector<12xf32>
    %169 = vector.multi_reduction <add>, %168, %cst_130 [1] : vector<12x12xf32> to vector<12xf32>
    %170 = vector.shape_cast %169 : vector<12xf32> to vector<12x1xf32>
    %171 = vector.broadcast %170 : vector<12x1xf32> to vector<12x12xf32>
    %172 = arith.divf %168, %171 : vector<12x12xf32>
    %c3_131 = arith.constant 3 : index
    %c0_132 = arith.constant 0 : index
    %c0_133 = arith.constant 0 : index
    %c0_134 = arith.constant 0 : index
    %173 = vector.load %arg21[%c3_131, %c0_132, %c0_133, %c0_134] : memref<4x1x12x12xf32, #tpu.memory_space<vmem>>, vector<1x1x12x12xf32>
    %174 = vector.shape_cast %173 : vector<1x1x12x12xf32> to vector<12x12xf32>
    %175 = vector.shape_cast %172 : vector<12x12xf32> to vector<1x1x12x12xf32>
    tpu.vector_store %arg21[%c3_131, %c0_132, %c0_133, %c0_134], %175 {strides = array<i32>} : memref<4x1x12x12xf32, #tpu.memory_space<vmem>>, vector<1x1x12x12xf32>,
    %cst_135 = arith.constant dense<0.000000e+00> : vector<12x8xf32>
    %176 = tpu.matmul %172, %157, %cst_135 {dimension_numbers = #tpu.dot_dimension_numbers<[1], [0], [0], [1], [0, 0, 1, 1], [], []>} : vector<12x12xf32>, vector<12x8xf32>, vector<12x8xf32> -> vector<12x8xf32>
    %c3_136 = arith.constant 3 : index
    %c0_137 = arith.constant 0 : index
    %c0_138 = arith.constant 0 : index
    %177 = vector.load %arg10[%c3_136, %c0_137, %c0_138] : memref<4x8x32xf32, #tpu.memory_space<vmem>>, vector<1x8x32xf32>
    %178 = vector.shape_cast %177 : vector<1x8x32xf32> to vector<8x32xf32>
    %cst_139 = arith.constant dense<0.000000e+00> : vector<12x32xf32>
    %179 = tpu.matmul %176, %178, %cst_139 {dimension_numbers = #tpu.dot_dimension_numbers<[1], [0], [0], [1], [0, 0, 1, 1], [], []>} : vector<12x8xf32>, vector<8x32xf32>, vector<12x32xf32> -> vector<12x32xf32>
    %180 = arith.addf %136, %179 : vector<12x32xf32>
    %c0_140 = arith.constant 0 : index
    %c0_141 = arith.constant 0 : index
    %181 = vector.load %arg11[%c0_140, %c0_141] : memref<1x32xf32, #tpu.memory_space<vmem>>, vector<1x32xf32>
    %182 = vector.broadcast %181 : vector<1x32xf32> to vector<12x32xf32>
    %183 = arith.addf %180, %182 : vector<12x32xf32>
    %184 = arith.addf %183, %1 : vector<12x32xf32>
    %cst_142 = arith.constant dense<0.000000e+00> : vector<12xf32>
    %185 = vector.multi_reduction <add>, %184, %cst_142 [1] : vector<12x32xf32> to vector<12xf32>
    %186 = vector.shape_cast %185 : vector<12xf32> to vector<12x1xf32>
    %cst_143 = arith.constant 3.200000e+01 : f32
    %187 = vector.broadcast %cst_143 : f32 to vector<12x1xf32>
    %188 = arith.divf %186, %187 : vector<12x1xf32>
    %189 = vector.broadcast %188 : vector<12x1xf32> to vector<12x32xf32>
    %190 = arith.subf %184, %189 : vector<12x32xf32>
    %191 = arith.mulf %190, %190 : vector<12x32xf32>
    %cst_144 = arith.constant dense<0.000000e+00> : vector<12xf32>
    %192 = vector.multi_reduction <add>, %191, %cst_144 [1] : vector<12x32xf32> to vector<12xf32>
    %193 = vector.shape_cast %192 : vector<12xf32> to vector<12x1xf32>
    %cst_145 = arith.constant 3.200000e+01 : f32
    %194 = vector.broadcast %cst_145 : f32 to vector<12x1xf32>
    %195 = arith.divf %193, %194 : vector<12x1xf32>
    %196 = vector.broadcast %188 : vector<12x1xf32> to vector<12x32xf32>
    %197 = arith.subf %184, %196 : vector<12x32xf32>
    %cst_146 = arith.constant 9.99999974E-6 : f32
    %198 = vector.broadcast %cst_146 : f32 to vector<12x1xf32>
    %199 = arith.addf %195, %198 : vector<12x1xf32>
    %200 = math.rsqrt %199 : vector<12x1xf32>
    %201 = vector.broadcast %200 : vector<12x1xf32> to vector<12x32xf32>
    %202 = arith.mulf %197, %201 : vector<12x32xf32>
    %c0_147 = arith.constant 0 : index
    %c0_148 = arith.constant 0 : index
    %203 = vector.load %arg12[%c0_147, %c0_148] : memref<1x32xf32, #tpu.memory_space<vmem>>, vector<1x32xf32>
    %204 = vector.broadcast %203 : vector<1x32xf32> to vector<12x32xf32>
    %205 = arith.mulf %202, %204 : vector<12x32xf32>
    %c0_149 = arith.constant 0 : index
    %c0_150 = arith.constant 0 : index
    %206 = vector.load %arg13[%c0_149, %c0_150] : memref<1x32xf32, #tpu.memory_space<vmem>>, vector<1x32xf32>
    %207 = vector.broadcast %206 : vector<1x32xf32> to vector<12x32xf32>
    %208 = arith.addf %205, %207 : vector<12x32xf32>
    %c0_151 = arith.constant 0 : index
    %c0_152 = arith.constant 0 : index
    %209 = vector.load %arg14[%c0_151, %c0_152] : memref<32x64xf32, #tpu.memory_space<vmem>>, vector<32x64xf32>
    %cst_153 = arith.constant dense<0.000000e+00> : vector<12x64xf32>
    %210 = tpu.matmul %208, %209, %cst_153 {dimension_numbers = #tpu.dot_dimension_numbers<[1], [0], [0], [1], [0, 0, 1, 1], [], []>} : vector<12x32xf32>, vector<32x64xf32>, vector<12x64xf32> -> vector<12x64xf32>
    %c0_154 = arith.constant 0 : index
    %c0_155 = arith.constant 0 : index
    %211 = vector.load %arg15[%c0_154, %c0_155] : memref<1x64xf32, #tpu.memory_space<vmem>>, vector<1x64xf32>
    %212 = vector.broadcast %211 : vector<1x64xf32> to vector<12x64xf32>
    %213 = arith.addf %210, %212 : vector<12x64xf32>
    %cst_156 = arith.constant 0.000000e+00 : f32
    %214 = vector.broadcast %cst_156 : f32 to vector<12x64xf32>
    %215 = arith.maximumf %213, %214 : vector<12x64xf32>
    %c0_157 = arith.constant 0 : index
    %c0_158 = arith.constant 0 : index
    %216 = vector.load %arg16[%c0_157, %c0_158] : memref<64x32xf32, #tpu.memory_space<vmem>>, vector<64x32xf32>
    %cst_159 = arith.constant dense<0.000000e+00> : vector<12x32xf32>
    %217 = tpu.matmul %215, %216, %cst_159 {dimension_numbers = #tpu.dot_dimension_numbers<[1], [0], [0], [1], [0, 0, 1, 1], [], []>} : vector<12x64xf32>, vector<64x32xf32>, vector<12x32xf32> -> vector<12x32xf32>
    %c0_160 = arith.constant 0 : index
    %c0_161 = arith.constant 0 : index
    %218 = vector.load %arg17[%c0_160, %c0_161] : memref<1x32xf32, #tpu.memory_space<vmem>>, vector<1x32xf32>
    %219 = vector.broadcast %218 : vector<1x32xf32> to vector<12x32xf32>
    %220 = arith.addf %217, %219 : vector<12x32xf32>
    %221 = arith.addf %208, %220 : vector<12x32xf32>
    %cst_162 = arith.constant dense<0.000000e+00> : vector<12xf32>
    %222 = vector.multi_reduction <add>, %221, %cst_162 [1] : vector<12x32xf32> to vector<12xf32>
    %223 = vector.shape_cast %222 : vector<12xf32> to vector<12x1xf32>
    %cst_163 = arith.constant 3.200000e+01 : f32
    %224 = vector.broadcast %cst_163 : f32 to vector<12x1xf32>
    %225 = arith.divf %223, %224 : vector<12x1xf32>
    %226 = vector.broadcast %225 : vector<12x1xf32> to vector<12x32xf32>
    %227 = arith.subf %221, %226 : vector<12x32xf32>
    %228 = arith.mulf %227, %227 : vector<12x32xf32>
    %cst_164 = arith.constant dense<0.000000e+00> : vector<12xf32>
    %229 = vector.multi_reduction <add>, %228, %cst_164 [1] : vector<12x32xf32> to vector<12xf32>
    %230 = vector.shape_cast %229 : vector<12xf32> to vector<12x1xf32>
    %cst_165 = arith.constant 3.200000e+01 : f32
    %231 = vector.broadcast %cst_165 : f32 to vector<12x1xf32>
    %232 = arith.divf %230, %231 : vector<12x1xf32>
    %233 = vector.broadcast %225 : vector<12x1xf32> to vector<12x32xf32>
    %234 = arith.subf %221, %233 : vector<12x32xf32>
    %cst_166 = arith.constant 9.99999974E-6 : f32
    %235 = vector.broadcast %cst_166 : f32 to vector<12x1xf32>
    %236 = arith.addf %232, %235 : vector<12x1xf32>
    %237 = math.rsqrt %236 : vector<12x1xf32>
    %238 = vector.broadcast %237 : vector<12x1xf32> to vector<12x32xf32>
    %239 = arith.mulf %234, %238 : vector<12x32xf32>
    %c0_167 = arith.constant 0 : index
    %c0_168 = arith.constant 0 : index
    %240 = vector.load %arg18[%c0_167, %c0_168] : memref<1x32xf32, #tpu.memory_space<vmem>>, vector<1x32xf32>
    %241 = vector.broadcast %240 : vector<1x32xf32> to vector<12x32xf32>
    %242 = arith.mulf %239, %241 : vector<12x32xf32>
    %c0_169 = arith.constant 0 : index
    %c0_170 = arith.constant 0 : index
    %243 = vector.load %arg19[%c0_169, %c0_170] : memref<1x32xf32, #tpu.memory_space<vmem>>, vector<1x32xf32>
    %244 = vector.broadcast %243 : vector<1x32xf32> to vector<12x32xf32>
    %245 = arith.addf %242, %244 : vector<12x32xf32>
    %c0_171 = arith.constant 0 : index
    %c0_172 = arith.constant 0 : index
    %c0_173 = arith.constant 0 : index
    %246 = vector.load %arg20[%c0_171, %c0_172, %c0_173] : memref<1x12x32xf32, #tpu.memory_space<vmem>>, vector<1x12x32xf32>
    %247 = vector.shape_cast %246 : vector<1x12x32xf32> to vector<12x32xf32>
    %248 = vector.shape_cast %245 : vector<12x32xf32> to vector<1x12x32xf32>
    tpu.vector_store %arg20[%c0_171, %c0_172, %c0_173], %248 {strides = array<i32>} : memref<1x12x32xf32, #tpu.memory_space<vmem>>, vector<1x12x32xf32>,
    return
  }
  func.func @transform_0(%arg0: i32) -> (i32, i32, i32) {
    %c0_i32 = arith.constant 0 : i32
    %c0_i32_0 = arith.constant 0 : i32
    %c0_i32_1 = arith.constant 0 : i32
    return %arg0, %c0_i32, %c0_i32_0 : i32, i32, i32
  }
  func.func @transform_1(%arg0: i32) -> (i32, i32, i32) {
    %c0_i32 = arith.constant 0 : i32
    %c0_i32_0 = arith.constant 0 : i32
    %c0_i32_1 = arith.constant 0 : i32
    return %arg0, %c0_i32, %c0_i32_0 : i32, i32, i32
  }
  func.func @transform_2(%arg0: i32) -> (i32, i32, i32) {
    %c0_i32 = arith.constant 0 : i32
    %c0_i32_0 = arith.constant 0 : i32
    %c0_i32_1 = arith.constant 0 : i32
    return %arg0, %c0_i32, %c0_i32_0 : i32, i32, i32
  }
  func.func @transform_3(%arg0: i32) -> (i32, i32, i32) {
    %c0_i32 = arith.constant 0 : i32
    %c0_i32_0 = arith.constant 0 : i32
    %c0_i32_1 = arith.constant 0 : i32
    %c0_i32_2 = arith.constant 0 : i32
    return %c0_i32, %c0_i32_0, %c0_i32_1 : i32, i32, i32
  }
  func.func @transform_4(%arg0: i32) -> (i32, i32, i32) {
    %c0_i32 = arith.constant 0 : i32
    %c0_i32_0 = arith.constant 0 : i32
    %c0_i32_1 = arith.constant 0 : i32
    %c0_i32_2 = arith.constant 0 : i32
    return %c0_i32, %c0_i32_0, %c0_i32_1 : i32, i32, i32
  }
  func.func @transform_5(%arg0: i32) -> (i32, i32, i32) {
    %c0_i32 = arith.constant 0 : i32
    %c0_i32_0 = arith.constant 0 : i32
    %c0_i32_1 = arith.constant 0 : i32
    %c0_i32_2 = arith.constant 0 : i32
    return %c0_i32, %c0_i32_0, %c0_i32_1 : i32, i32, i32
  }
  func.func @transform_6(%arg0: i32) -> (i32, i32, i32) {
    %c0_i32 = arith.constant 0 : i32
    %c0_i32_0 = arith.constant 0 : i32
    %c0_i32_1 = arith.constant 0 : i32
    %c0_i32_2 = arith.constant 0 : i32
    return %c0_i32, %c0_i32_0, %c0_i32_1 : i32, i32, i32
  }
  func.func @transform_7(%arg0: i32) -> (i32, i32, i32) {
    %c0_i32 = arith.constant 0 : i32
    %c0_i32_0 = arith.constant 0 : i32
    %c0_i32_1 = arith.constant 0 : i32
    %c0_i32_2 = arith.constant 0 : i32
    return %c0_i32, %c0_i32_0, %c0_i32_1 : i32, i32, i32
  }
  func.func @transform_8(%arg0: i32) -> (i32, i32, i32) {
    %c0_i32 = arith.constant 0 : i32
    %c0_i32_0 = arith.constant 0 : i32
    %c0_i32_1 = arith.constant 0 : i32
    %c0_i32_2 = arith.constant 0 : i32
    return %c0_i32, %c0_i32_0, %c0_i32_1 : i32, i32, i32
  }
  func.func @transform_9(%arg0: i32) -> (i32, i32, i32) {
    %c0_i32 = arith.constant 0 : i32
    %c0_i32_0 = arith.constant 0 : i32
    %c0_i32_1 = arith.constant 0 : i32
    %c0_i32_2 = arith.constant 0 : i32
    return %c0_i32, %c0_i32_0, %c0_i32_1 : i32, i32, i32
  }
  func.func @transform_10(%arg0: i32) -> (i32, i32) {
    %c0_i32 = arith.constant 0 : i32
    %c0_i32_0 = arith.constant 0 : i32
    %c0_i32_1 = arith.constant 0 : i32
    return %c0_i32, %c0_i32_0 : i32, i32
  }
  func.func @transform_11(%arg0: i32) -> (i32, i32) {
    %c0_i32 = arith.constant 0 : i32
    %c0_i32_0 = arith.constant 0 : i32
    %c0_i32_1 = arith.constant 0 : i32
    return %c0_i32, %c0_i32_0 : i32, i32
  }
  func.func @transform_12(%arg0: i32) -> (i32, i32) {
    %c0_i32 = arith.constant 0 : i32
    %c0_i32_0 = arith.constant 0 : i32
    %c0_i32_1 = arith.constant 0 : i32
    return %c0_i32, %c0_i32_0 : i32, i32
  }
  func.func @transform_13(%arg0: i32) -> (i32, i32) {
    %c0_i32 = arith.constant 0 : i32
    %c0_i32_0 = arith.constant 0 : i32
    %c0_i32_1 = arith.constant 0 : i32
    return %c0_i32, %c0_i32_0 : i32, i32
  }
  func.func @transform_14(%arg0: i32) -> (i32, i32) {
    %c0_i32 = arith.constant 0 : i32
    %c0_i32_0 = arith.constant 0 : i32
    %c0_i32_1 = arith.constant 0 : i32
    return %c0_i32, %c0_i32_0 : i32, i32
  }
  func.func @transform_15(%arg0: i32) -> (i32, i32) {
    %c0_i32 = arith.constant 0 : i32
    %c0_i32_0 = arith.constant 0 : i32
    %c0_i32_1 = arith.constant 0 : i32
    return %c0_i32, %c0_i32_0 : i32, i32
  }
  func.func @transform_16(%arg0: i32) -> (i32, i32) {
    %c0_i32 = arith.constant 0 : i32
    %c0_i32_0 = arith.constant 0 : i32
    %c0_i32_1 = arith.constant 0 : i32
    return %c0_i32, %c0_i32_0 : i32, i32
  }
  func.func @transform_17(%arg0: i32) -> (i32, i32) {
    %c0_i32 = arith.constant 0 : i32
    %c0_i32_0 = arith.constant 0 : i32
    %c0_i32_1 = arith.constant 0 : i32
    return %c0_i32, %c0_i32_0 : i32, i32
  }
  func.func @transform_18(%arg0: i32) -> (i32, i32) {
    %c0_i32 = arith.constant 0 : i32
    %c0_i32_0 = arith.constant 0 : i32
    %c0_i32_1 = arith.constant 0 : i32
    return %c0_i32, %c0_i32_0 : i32, i32
  }
  func.func @transform_19(%arg0: i32) -> (i32, i32, i32) {
    %c0_i32 = arith.constant 0 : i32
    %c0_i32_0 = arith.constant 0 : i32
    %c0_i32_1 = arith.constant 0 : i32
    return %arg0, %c0_i32, %c0_i32_0 : i32, i32, i32
  }
  func.func @transform_20(%arg0: i32) -> (i32, i32, i32, i32) {
    %c0_i32 = arith.constant 0 : i32
    %c0_i32_0 = arith.constant 0 : i32
    %c0_i32_1 = arith.constant 0 : i32
    %c0_i32_2 = arith.constant 0 : i32
    return %c0_i32, %arg0, %c0_i32_0, %c0_i32_1 : i32, i32, i32, i32
  }
}

module attributes {stable_mosaic.version = 11 : i64} {
  func.func @_embed_kernel(%arg0: i32, %arg1: memref<1x12x4xf32, #tpu.memory_space<vmem>>, %arg2: memref<4x32xf32, #tpu.memory_space<vmem>>, %arg3: memref<1x32xf32, #tpu.memory_space<vmem>>, %arg4: memref<1x12x32xf32, #tpu.memory_space<vmem>>, %arg5: memref<1x12x32xf32, #tpu.memory_space<vmem>>) attributes {dimension_semantics = [#tpu.dimension_semantics<parallel>], iteration_bounds = array<i64: 2>, scalar_prefetch = 0 : i64, scratch_operands = 0 : i64, tpu.core_type = #tpu.core_type<tc>, window_params = [{transform_indices = @transform_0, window_bounds = array<i64: 1, 12, 4>}, {pipeline_mode = #tpu.pipeline_mode<synchronous>, transform_indices = @transform_1, window_bounds = array<i64: 4, 32>}, {pipeline_mode = #tpu.pipeline_mode<synchronous>, transform_indices = @transform_2, window_bounds = array<i64: 1, 32>}, {transform_indices = @transform_3, window_bounds = array<i64: 1, 12, 32>}, {transform_indices = @transform_4, window_bounds = array<i64: 1, 12, 32>}]} {
    %c0 = arith.constant 0 : index
    %c0_0 = arith.constant 0 : index
    %c0_1 = arith.constant 0 : index
    %0 = vector.load %arg1[%c0, %c0_0, %c0_1] : memref<1x12x4xf32, #tpu.memory_space<vmem>>, vector<1x12x4xf32>
    %1 = vector.shape_cast %0 : vector<1x12x4xf32> to vector<12x4xf32>
    %c0_2 = arith.constant 0 : index
    %c0_3 = arith.constant 0 : index
    %2 = vector.load %arg2[%c0_2, %c0_3] : memref<4x32xf32, #tpu.memory_space<vmem>>, vector<4x32xf32>
    %cst = arith.constant dense<0.000000e+00> : vector<12x32xf32>
    %3 = tpu.matmul %1, %2, %cst {dimension_numbers = #tpu.dot_dimension_numbers<[1], [0], [0], [1], [0, 0, 1, 1], [], []>} : vector<12x4xf32>, vector<4x32xf32>, vector<12x32xf32> -> vector<12x32xf32>
    %c0_4 = arith.constant 0 : index
    %c0_5 = arith.constant 0 : index
    %4 = vector.load %arg3[%c0_4, %c0_5] : memref<1x32xf32, #tpu.memory_space<vmem>>, vector<1x32xf32>
    %5 = vector.broadcast %4 : vector<1x32xf32> to vector<12x32xf32>
    %6 = arith.addf %3, %5 : vector<12x32xf32>
    %c0_6 = arith.constant 0 : index
    %c0_7 = arith.constant 0 : index
    %c0_8 = arith.constant 0 : index
    %7 = vector.load %arg4[%c0_6, %c0_7, %c0_8] : memref<1x12x32xf32, #tpu.memory_space<vmem>>, vector<1x12x32xf32>
    %8 = vector.shape_cast %7 : vector<1x12x32xf32> to vector<12x32xf32>
    %9 = arith.addf %6, %8 : vector<12x32xf32>
    %c0_9 = arith.constant 0 : index
    %c0_10 = arith.constant 0 : index
    %c0_11 = arith.constant 0 : index
    %10 = vector.load %arg5[%c0_9, %c0_10, %c0_11] : memref<1x12x32xf32, #tpu.memory_space<vmem>>, vector<1x12x32xf32>
    %11 = vector.shape_cast %10 : vector<1x12x32xf32> to vector<12x32xf32>
    %12 = vector.shape_cast %9 : vector<12x32xf32> to vector<1x12x32xf32>
    tpu.vector_store %arg5[%c0_9, %c0_10, %c0_11], %12 {strides = array<i32>} : memref<1x12x32xf32, #tpu.memory_space<vmem>>, vector<1x12x32xf32>,
    return
  }
  func.func @transform_0(%arg0: i32) -> (i32, i32, i32) {
    %c0_i32 = arith.constant 0 : i32
    %c0_i32_0 = arith.constant 0 : i32
    %c0_i32_1 = arith.constant 0 : i32
    return %arg0, %c0_i32, %c0_i32_0 : i32, i32, i32
  }
  func.func @transform_1(%arg0: i32) -> (i32, i32) {
    %c0_i32 = arith.constant 0 : i32
    %c0_i32_0 = arith.constant 0 : i32
    %c0_i32_1 = arith.constant 0 : i32
    return %c0_i32, %c0_i32_0 : i32, i32
  }
  func.func @transform_2(%arg0: i32) -> (i32, i32) {
    %c0_i32 = arith.constant 0 : i32
    %c0_i32_0 = arith.constant 0 : i32
    %c0_i32_1 = arith.constant 0 : i32
    return %c0_i32, %c0_i32_0 : i32, i32
  }
  func.func @transform_3(%arg0: i32) -> (i32, i32, i32) {
    %c0_i32 = arith.constant 0 : i32
    %c0_i32_0 = arith.constant 0 : i32
    %c0_i32_1 = arith.constant 0 : i32
    return %arg0, %c0_i32, %c0_i32_0 : i32, i32, i32
  }
  func.func @transform_4(%arg0: i32) -> (i32, i32, i32) {
    %c0_i32 = arith.constant 0 : i32
    %c0_i32_0 = arith.constant 0 : i32
    %c0_i32_1 = arith.constant 0 : i32
    return %arg0, %c0_i32, %c0_i32_0 : i32, i32, i32
  }
}

module attributes {stable_mosaic.version = 11 : i64} {
  func.func @_embed_kernel(%arg0: i32, %arg1: memref<1x4x12xf32, #tpu.memory_space<vmem>>, %arg2: memref<12x32xf32, #tpu.memory_space<vmem>>, %arg3: memref<1x32xf32, #tpu.memory_space<vmem>>, %arg4: memref<1x4x32xf32, #tpu.memory_space<vmem>>, %arg5: memref<1x4x32xf32, #tpu.memory_space<vmem>>) attributes {dimension_semantics = [#tpu.dimension_semantics<parallel>], iteration_bounds = array<i64: 2>, scalar_prefetch = 0 : i64, scratch_operands = 0 : i64, tpu.core_type = #tpu.core_type<tc>, window_params = [{transform_indices = @transform_0, window_bounds = array<i64: 1, 4, 12>}, {pipeline_mode = #tpu.pipeline_mode<synchronous>, transform_indices = @transform_1, window_bounds = array<i64: 12, 32>}, {pipeline_mode = #tpu.pipeline_mode<synchronous>, transform_indices = @transform_2, window_bounds = array<i64: 1, 32>}, {pipeline_mode = #tpu.pipeline_mode<synchronous>, transform_indices = @transform_3, window_bounds = array<i64: 1, 4, 32>}, {transform_indices = @transform_4, window_bounds = array<i64: 1, 4, 32>}]} {
    %c0 = arith.constant 0 : index
    %c0_0 = arith.constant 0 : index
    %c0_1 = arith.constant 0 : index
    %0 = vector.load %arg1[%c0, %c0_0, %c0_1] : memref<1x4x12xf32, #tpu.memory_space<vmem>>, vector<1x4x12xf32>
    %1 = vector.shape_cast %0 : vector<1x4x12xf32> to vector<4x12xf32>
    %c0_2 = arith.constant 0 : index
    %c0_3 = arith.constant 0 : index
    %2 = vector.load %arg2[%c0_2, %c0_3] : memref<12x32xf32, #tpu.memory_space<vmem>>, vector<12x32xf32>
    %cst = arith.constant dense<0.000000e+00> : vector<4x32xf32>
    %3 = tpu.matmul %1, %2, %cst {dimension_numbers = #tpu.dot_dimension_numbers<[1], [0], [0], [1], [0, 0, 1, 1], [], []>} : vector<4x12xf32>, vector<12x32xf32>, vector<4x32xf32> -> vector<4x32xf32>
    %c0_4 = arith.constant 0 : index
    %c0_5 = arith.constant 0 : index
    %4 = vector.load %arg3[%c0_4, %c0_5] : memref<1x32xf32, #tpu.memory_space<vmem>>, vector<1x32xf32>
    %5 = vector.broadcast %4 : vector<1x32xf32> to vector<4x32xf32>
    %6 = arith.addf %3, %5 : vector<4x32xf32>
    %c0_6 = arith.constant 0 : index
    %c0_7 = arith.constant 0 : index
    %c0_8 = arith.constant 0 : index
    %7 = vector.load %arg4[%c0_6, %c0_7, %c0_8] : memref<1x4x32xf32, #tpu.memory_space<vmem>>, vector<1x4x32xf32>
    %8 = vector.shape_cast %7 : vector<1x4x32xf32> to vector<4x32xf32>
    %9 = arith.addf %6, %8 : vector<4x32xf32>
    %c0_9 = arith.constant 0 : index
    %c0_10 = arith.constant 0 : index
    %c0_11 = arith.constant 0 : index
    %10 = vector.load %arg5[%c0_9, %c0_10, %c0_11] : memref<1x4x32xf32, #tpu.memory_space<vmem>>, vector<1x4x32xf32>
    %11 = vector.shape_cast %10 : vector<1x4x32xf32> to vector<4x32xf32>
    %12 = vector.shape_cast %9 : vector<4x32xf32> to vector<1x4x32xf32>
    tpu.vector_store %arg5[%c0_9, %c0_10, %c0_11], %12 {strides = array<i32>} : memref<1x4x32xf32, #tpu.memory_space<vmem>>, vector<1x4x32xf32>,
    return
  }
  func.func @transform_0(%arg0: i32) -> (i32, i32, i32) {
    %c0_i32 = arith.constant 0 : i32
    %c0_i32_0 = arith.constant 0 : i32
    %c0_i32_1 = arith.constant 0 : i32
    return %arg0, %c0_i32, %c0_i32_0 : i32, i32, i32
  }
  func.func @transform_1(%arg0: i32) -> (i32, i32) {
    %c0_i32 = arith.constant 0 : i32
    %c0_i32_0 = arith.constant 0 : i32
    %c0_i32_1 = arith.constant 0 : i32
    return %c0_i32, %c0_i32_0 : i32, i32
  }
  func.func @transform_2(%arg0: i32) -> (i32, i32) {
    %c0_i32 = arith.constant 0 : i32
    %c0_i32_0 = arith.constant 0 : i32
    %c0_i32_1 = arith.constant 0 : i32
    return %c0_i32, %c0_i32_0 : i32, i32
  }
  func.func @transform_3(%arg0: i32) -> (i32, i32, i32) {
    %c0_i32 = arith.constant 0 : i32
    %c0_i32_0 = arith.constant 0 : i32
    %c0_i32_1 = arith.constant 0 : i32
    %c0_i32_2 = arith.constant 0 : i32
    return %c0_i32, %c0_i32_0, %c0_i32_1 : i32, i32, i32
  }
  func.func @transform_4(%arg0: i32) -> (i32, i32, i32) {
    %c0_i32 = arith.constant 0 : i32
    %c0_i32_0 = arith.constant 0 : i32
    %c0_i32_1 = arith.constant 0 : i32
    return %arg0, %c0_i32, %c0_i32_0 : i32, i32, i32
  }
}

module attributes {stable_mosaic.version = 11 : i64} {
  func.func @_encoder_kernel(%arg0: i32, %arg1: memref<1x4x32xf32, #tpu.memory_space<vmem>>, %arg2: memref<1x4x32xf32, #tpu.memory_space<vmem>>, %arg3: memref<1x4x32xf32, #tpu.memory_space<vmem>>, %arg4: memref<4x32x8xf32, #tpu.memory_space<vmem>>, %arg5: memref<4x1x8xf32, #tpu.memory_space<vmem>>, %arg6: memref<4x32x8xf32, #tpu.memory_space<vmem>>, %arg7: memref<4x1x8xf32, #tpu.memory_space<vmem>>, %arg8: memref<4x32x8xf32, #tpu.memory_space<vmem>>, %arg9: memref<4x1x8xf32, #tpu.memory_space<vmem>>, %arg10: memref<4x8x32xf32, #tpu.memory_space<vmem>>, %arg11: memref<1x32xf32, #tpu.memory_space<vmem>>, %arg12: memref<1x32xf32, #tpu.memory_space<vmem>>, %arg13: memref<1x32xf32, #tpu.memory_space<vmem>>, %arg14: memref<32x64xf32, #tpu.memory_space<vmem>>, %arg15: memref<1x64xf32, #tpu.memory_space<vmem>>, %arg16: memref<64x32xf32, #tpu.memory_space<vmem>>, %arg17: memref<1x32xf32, #tpu.memory_space<vmem>>, %arg18: memref<1x32xf32, #tpu.memory_space<vmem>>, %arg19: memref<1x32xf32, #tpu.memory_space<vmem>>, %arg20: memref<1x4x32xf32, #tpu.memory_space<vmem>>, %arg21: memref<4x1x4x4xf32, #tpu.memory_space<vmem>>) attributes {dimension_semantics = [#tpu.dimension_semantics<parallel>], iteration_bounds = array<i64: 2>, scalar_prefetch = 0 : i64, scratch_operands = 0 : i64, tpu.core_type = #tpu.core_type<tc>, window_params = [{transform_indices = @transform_0, window_bounds = array<i64: 1, 4, 32>}, {transform_indices = @transform_1, window_bounds = array<i64: 1, 4, 32>}, {transform_indices = @transform_2, window_bounds = array<i64: 1, 4, 32>}, {pipeline_mode = #tpu.pipeline_mode<synchronous>, transform_indices = @transform_3, window_bounds = array<i64: 4, 32, 8>}, {pipeline_mode = #tpu.pipeline_mode<synchronous>, transform_indices = @transform_4, window_bounds = array<i64: 4, 1, 8>}, {pipeline_mode = #tpu.pipeline_mode<synchronous>, transform_indices = @transform_5, window_bounds = array<i64: 4, 32, 8>}, {pipeline_mode = #tpu.pipeline_mode<synchronous>, transform_indices = @transform_6, window_bounds = array<i64: 4, 1, 8>}, {pipeline_mode = #tpu.pipeline_mode<synchronous>, transform_indices = @transform_7, window_bounds = array<i64: 4, 32, 8>}, {pipeline_mode = #tpu.pipeline_mode<synchronous>, transform_indices = @transform_8, window_bounds = array<i64: 4, 1, 8>}, {pipeline_mode = #tpu.pipeline_mode<synchronous>, transform_indices = @transform_9, window_bounds = array<i64: 4, 8, 32>}, {pipeline_mode = #tpu.pipeline_mode<synchronous>, transform_indices = @transform_10, window_bounds = array<i64: 1, 32>}, {pipeline_mode = #tpu.pipeline_mode<synchronous>, transform_indices = @transform_11, window_bounds = array<i64: 1, 32>}, {pipeline_mode = #tpu.pipeline_mode<synchronous>, transform_indices = @transform_12, window_bounds = array<i64: 1, 32>}, {pipeline_mode = #tpu.pipeline_mode<synchronous>, transform_indices = @transform_13, window_bounds = array<i64: 32, 64>}, {pipeline_mode = #tpu.pipeline_mode<synchronous>, transform_indices = @transform_14, window_bounds = array<i64: 1, 64>}, {pipeline_mode = #tpu.pipeline_mode<synchronous>, transform_indices = @transform_15, window_bounds = array<i64: 64, 32>}, {pipeline_mode = #tpu.pipeline_mode<synchronous>, transform_indices = @transform_16, window_bounds = array<i64: 1, 32>}, {pipeline_mode = #tpu.pipeline_mode<synchronous>, transform_indices = @transform_17, window_bounds = array<i64: 1, 32>}, {pipeline_mode = #tpu.pipeline_mode<synchronous>, transform_indices = @transform_18, window_bounds = array<i64: 1, 32>}, {transform_indices = @transform_19, window_bounds = array<i64: 1, 4, 32>}, {transform_indices = @transform_20, window_bounds = array<i64: 4, 1, 4, 4>}]} {
    %c0 = arith.constant 0 : index
    %c0_0 = arith.constant 0 : index
    %c0_1 = arith.constant 0 : index
    %0 = vector.load %arg1[%c0, %c0_0, %c0_1] : memref<1x4x32xf32, #tpu.memory_space<vmem>>, vector<1x4x32xf32>
    %1 = vector.shape_cast %0 : vector<1x4x32xf32> to vector<4x32xf32>
    %c0_2 = arith.constant 0 : index
    %c0_3 = arith.constant 0 : index
    %c0_4 = arith.constant 0 : index
    %2 = vector.load %arg2[%c0_2, %c0_3, %c0_4] : memref<1x4x32xf32, #tpu.memory_space<vmem>>, vector<1x4x32xf32>
    %3 = vector.shape_cast %2 : vector<1x4x32xf32> to vector<4x32xf32>
    %c0_5 = arith.constant 0 : index
    %c0_6 = arith.constant 0 : index
    %c0_7 = arith.constant 0 : index
    %4 = vector.load %arg3[%c0_5, %c0_6, %c0_7] : memref<1x4x32xf32, #tpu.memory_space<vmem>>, vector<1x4x32xf32>
    %5 = vector.shape_cast %4 : vector<1x4x32xf32> to vector<4x32xf32>
    %c0_8 = arith.constant 0 : index
    %c0_9 = arith.constant 0 : index
    %c0_10 = arith.constant 0 : index
    %6 = vector.load %arg4[%c0_8, %c0_9, %c0_10] : memref<4x32x8xf32, #tpu.memory_space<vmem>>, vector<1x32x8xf32>
    %7 = vector.shape_cast %6 : vector<1x32x8xf32> to vector<32x8xf32>
    %cst = arith.constant dense<0.000000e+00> : vector<4x8xf32>
    %8 = tpu.matmul %1, %7, %cst {dimension_numbers = #tpu.dot_dimension_numbers<[1], [0], [0], [1], [0, 0, 1, 1], [], []>} : vector<4x32xf32>, vector<32x8xf32>, vector<4x8xf32> -> vector<4x8xf32>
    %c0_11 = arith.constant 0 : index
    %c0_12 = arith.constant 0 : index
    %c0_13 = arith.constant 0 : index
    %9 = vector.load %arg5[%c0_11, %c0_12, %c0_13] : memref<4x1x8xf32, #tpu.memory_space<vmem>>, vector<1x1x8xf32>
    %10 = vector.shape_cast %9 : vector<1x1x8xf32> to vector<1x8xf32>
    %11 = vector.broadcast %10 : vector<1x8xf32> to vector<4x8xf32>
    %12 = arith.addf %8, %11 : vector<4x8xf32>
    %c0_14 = arith.constant 0 : index
    %c0_15 = arith.constant 0 : index
    %c0_16 = arith.constant 0 : index
    %13 = vector.load %arg6[%c0_14, %c0_15, %c0_16] : memref<4x32x8xf32, #tpu.memory_space<vmem>>, vector<1x32x8xf32>
    %14 = vector.shape_cast %13 : vector<1x32x8xf32> to vector<32x8xf32>
    %cst_17 = arith.constant dense<0.000000e+00> : vector<4x8xf32>
    %15 = tpu.matmul %3, %14, %cst_17 {dimension_numbers = #tpu.dot_dimension_numbers<[1], [0], [0], [1], [0, 0, 1, 1], [], []>} : vector<4x32xf32>, vector<32x8xf32>, vector<4x8xf32> -> vector<4x8xf32>
    %c0_18 = arith.constant 0 : index
    %c0_19 = arith.constant 0 : index
    %c0_20 = arith.constant 0 : index
    %16 = vector.load %arg7[%c0_18, %c0_19, %c0_20] : memref<4x1x8xf32, #tpu.memory_space<vmem>>, vector<1x1x8xf32>
    %17 = vector.shape_cast %16 : vector<1x1x8xf32> to vector<1x8xf32>
    %18 = vector.broadcast %17 : vector<1x8xf32> to vector<4x8xf32>
    %19 = arith.addf %15, %18 : vector<4x8xf32>
    %c0_21 = arith.constant 0 : index
    %c0_22 = arith.constant 0 : index
    %c0_23 = arith.constant 0 : index
    %20 = vector.load %arg8[%c0_21, %c0_22, %c0_23] : memref<4x32x8xf32, #tpu.memory_space<vmem>>, vector<1x32x8xf32>
    %21 = vector.shape_cast %20 : vector<1x32x8xf32> to vector<32x8xf32>
    %cst_24 = arith.constant dense<0.000000e+00> : vector<4x8xf32>
    %22 = tpu.matmul %5, %21, %cst_24 {dimension_numbers = #tpu.dot_dimension_numbers<[1], [0], [0], [1], [0, 0, 1, 1], [], []>} : vector<4x32xf32>, vector<32x8xf32>, vector<4x8xf32> -> vector<4x8xf32>
    %c0_25 = arith.constant 0 : index
    %c0_26 = arith.constant 0 : index
    %c0_27 = arith.constant 0 : index
    %23 = vector.load %arg9[%c0_25, %c0_26, %c0_27] : memref<4x1x8xf32, #tpu.memory_space<vmem>>, vector<1x1x8xf32>
    %24 = vector.shape_cast %23 : vector<1x1x8xf32> to vector<1x8xf32>
    %25 = vector.broadcast %24 : vector<1x8xf32> to vector<4x8xf32>
    %26 = arith.addf %22, %25 : vector<4x8xf32>
    %cst_28 = arith.constant dense<0.000000e+00> : vector<4x4xf32>
    %27 = tpu.matmul %12, %19, %cst_28 {dimension_numbers = #tpu.dot_dimension_numbers<[1], [1], [0], [0], [0, 0, 1, 0], [], []>} : vector<4x8xf32>, vector<4x8xf32>, vector<4x4xf32> -> vector<4x4xf32>
    %28 = tpu.iota {dimensions = array<i32: 0>} : vector<4x4xi32>
    %29 = tpu.iota {dimensions = array<i32: 1>} : vector<4x4xi32>
    %30 = arith.cmpi sle, %29, %28 : vector<4x4xi32>
    %cst_29 = arith.constant -4.2949673E+9 : f32
    %31 = vector.broadcast %cst_29 : f32 to vector<4x4xf32>
    %32 = arith.select %30, %27, %31 : vector<4x4xi1>, vector<4x4xf32>
    %cst_30 = arith.constant dense<0xFF800000> : vector<4xf32>
    %33 = vector.multi_reduction <maximumf>, %32, %cst_30 [1] : vector<4x4xf32> to vector<4xf32>
    %34 = vector.shape_cast %33 : vector<4xf32> to vector<4x1xf32>
    %35 = vector.broadcast %34 : vector<4x1xf32> to vector<4x4xf32>
    %36 = arith.subf %32, %35 : vector<4x4xf32>
    %37 = math.exp %36 : vector<4x4xf32>
    %cst_31 = arith.constant dense<0.000000e+00> : vector<4xf32>
    %38 = vector.multi_reduction <add>, %37, %cst_31 [1] : vector<4x4xf32> to vector<4xf32>
    %39 = vector.shape_cast %38 : vector<4xf32> to vector<4x1xf32>
    %40 = vector.broadcast %39 : vector<4x1xf32> to vector<4x4xf32>
    %41 = arith.divf %37, %40 : vector<4x4xf32>
    %c0_32 = arith.constant 0 : index
    %c0_33 = arith.constant 0 : index
    %c0_34 = arith.constant 0 : index
    %c0_35 = arith.constant 0 : index
    %42 = vector.load %arg21[%c0_32, %c0_33, %c0_34, %c0_35] : memref<4x1x4x4xf32, #tpu.memory_space<vmem>>, vector<1x1x4x4xf32>
    %43 = vector.shape_cast %42 : vector<1x1x4x4xf32> to vector<4x4xf32>
    %44 = vector.shape_cast %41 : vector<4x4xf32> to vector<1x1x4x4xf32>
    tpu.vector_store %arg21[%c0_32, %c0_33, %c0_34, %c0_35], %44 {strides = array<i32>} : memref<4x1x4x4xf32, #tpu.memory_space<vmem>>, vector<1x1x4x4xf32>,
    %cst_36 = arith.constant dense<0.000000e+00> : vector<4x8xf32>
    %45 = tpu.matmul %41, %26, %cst_36 {dimension_numbers = #tpu.dot_dimension_numbers<[1], [0], [0], [1], [0, 0, 1, 1], [], []>} : vector<4x4xf32>, vector<4x8xf32>, vector<4x8xf32> -> vector<4x8xf32>
    %c0_37 = arith.constant 0 : index
    %c0_38 = arith.constant 0 : index
    %c0_39 = arith.constant 0 : index
    %46 = vector.load %arg10[%c0_37, %c0_38, %c0_39] : memref<4x8x32xf32, #tpu.memory_space<vmem>>, vector<1x8x32xf32>
    %47 = vector.shape_cast %46 : vector<1x8x32xf32> to vector<8x32xf32>
    %cst_40 = arith.constant dense<0.000000e+00> : vector<4x32xf32>
    %48 = tpu.matmul %45, %47, %cst_40 {dimension_numbers = #tpu.dot_dimension_numbers<[1], [0], [0], [1], [0, 0, 1, 1], [], []>} : vector<4x8xf32>, vector<8x32xf32>, vector<4x32xf32> -> vector<4x32xf32>
    %c1 = arith.constant 1 : index
    %c0_41 = arith.constant 0 : index
    %c0_42 = arith.constant 0 : index
    %49 = vector.load %arg4[%c1, %c0_41, %c0_42] : memref<4x32x8xf32, #tpu.memory_space<vmem>>, vector<1x32x8xf32>
    %50 = vector.shape_cast %49 : vector<1x32x8xf32> to vector<32x8xf32>
    %cst_43 = arith.constant dense<0.000000e+00> : vector<4x8xf32>
    %51 = tpu.matmul %1, %50, %cst_43 {dimension_numbers = #tpu.dot_dimension_numbers<[1], [0], [0], [1], [0, 0, 1, 1], [], []>} : vector<4x32xf32>, vector<32x8xf32>, vector<4x8xf32> -> vector<4x8xf32>
    %c1_44 = arith.constant 1 : index
    %c0_45 = arith.constant 0 : index
    %c0_46 = arith.constant 0 : index
    %52 = vector.load %arg5[%c1_44, %c0_45, %c0_46] : memref<4x1x8xf32, #tpu.memory_space<vmem>>, vector<1x1x8xf32>
    %53 = vector.shape_cast %52 : vector<1x1x8xf32> to vector<1x8xf32>
    %54 = vector.broadcast %53 : vector<1x8xf32> to vector<4x8xf32>
    %55 = arith.addf %51, %54 : vector<4x8xf32>
    %c1_47 = arith.constant 1 : index
    %c0_48 = arith.constant 0 : index
    %c0_49 = arith.constant 0 : index
    %56 = vector.load %arg6[%c1_47, %c0_48, %c0_49] : memref<4x32x8xf32, #tpu.memory_space<vmem>>, vector<1x32x8xf32>
    %57 = vector.shape_cast %56 : vector<1x32x8xf32> to vector<32x8xf32>
    %cst_50 = arith.constant dense<0.000000e+00> : vector<4x8xf32>
    %58 = tpu.matmul %3, %57, %cst_50 {dimension_numbers = #tpu.dot_dimension_numbers<[1], [0], [0], [1], [0, 0, 1, 1], [], []>} : vector<4x32xf32>, vector<32x8xf32>, vector<4x8xf32> -> vector<4x8xf32>
    %c1_51 = arith.constant 1 : index
    %c0_52 = arith.constant 0 : index
    %c0_53 = arith.constant 0 : index
    %59 = vector.load %arg7[%c1_51, %c0_52, %c0_53] : memref<4x1x8xf32, #tpu.memory_space<vmem>>, vector<1x1x8xf32>
    %60 = vector.shape_cast %59 : vector<1x1x8xf32> to vector<1x8xf32>
    %61 = vector.broadcast %60 : vector<1x8xf32> to vector<4x8xf32>
    %62 = arith.addf %58, %61 : vector<4x8xf32>
    %c1_54 = arith.constant 1 : index
    %c0_55 = arith.constant 0 : index
    %c0_56 = arith.constant 0 : index
    %63 = vector.load %arg8[%c1_54, %c0_55, %c0_56] : memref<4x32x8xf32, #tpu.memory_space<vmem>>, vector<1x32x8xf32>
    %64 = vector.shape_cast %63 : vector<1x32x8xf32> to vector<32x8xf32>
    %cst_57 = arith.constant dense<0.000000e+00> : vector<4x8xf32>
    %65 = tpu.matmul %5, %64, %cst_57 {dimension_numbers = #tpu.dot_dimension_numbers<[1], [0], [0], [1], [0, 0, 1, 1], [], []>} : vector<4x32xf32>, vector<32x8xf32>, vector<4x8xf32> -> vector<4x8xf32>
    %c1_58 = arith.constant 1 : index
    %c0_59 = arith.constant 0 : index
    %c0_60 = arith.constant 0 : index
    %66 = vector.load %arg9[%c1_58, %c0_59, %c0_60] : memref<4x1x8xf32, #tpu.memory_space<vmem>>, vector<1x1x8xf32>
    %67 = vector.shape_cast %66 : vector<1x1x8xf32> to vector<1x8xf32>
    %68 = vector.broadcast %67 : vector<1x8xf32> to vector<4x8xf32>
    %69 = arith.addf %65, %68 : vector<4x8xf32>
    %cst_61 = arith.constant dense<0.000000e+00> : vector<4x4xf32>
    %70 = tpu.matmul %55, %62, %cst_61 {dimension_numbers = #tpu.dot_dimension_numbers<[1], [1], [0], [0], [0, 0, 1, 0], [], []>} : vector<4x8xf32>, vector<4x8xf32>, vector<4x4xf32> -> vector<4x4xf32>
    %71 = tpu.iota {dimensions = array<i32: 0>} : vector<4x4xi32>
    %72 = tpu.iota {dimensions = array<i32: 1>} : vector<4x4xi32>
    %73 = arith.cmpi sle, %72, %71 : vector<4x4xi32>
    %cst_62 = arith.constant -4.2949673E+9 : f32
    %74 = vector.broadcast %cst_62 : f32 to vector<4x4xf32>
    %75 = arith.select %73, %70, %74 : vector<4x4xi1>, vector<4x4xf32>
    %cst_63 = arith.constant dense<0xFF800000> : vector<4xf32>
    %76 = vector.multi_reduction <maximumf>, %75, %cst_63 [1] : vector<4x4xf32> to vector<4xf32>
    %77 = vector.shape_cast %76 : vector<4xf32> to vector<4x1xf32>
    %78 = vector.broadcast %77 : vector<4x1xf32> to vector<4x4xf32>
    %79 = arith.subf %75, %78 : vector<4x4xf32>
    %80 = math.exp %79 : vector<4x4xf32>
    %cst_64 = arith.constant dense<0.000000e+00> : vector<4xf32>
    %81 = vector.multi_reduction <add>, %80, %cst_64 [1] : vector<4x4xf32> to vector<4xf32>
    %82 = vector.shape_cast %81 : vector<4xf32> to vector<4x1xf32>
    %83 = vector.broadcast %82 : vector<4x1xf32> to vector<4x4xf32>
    %84 = arith.divf %80, %83 : vector<4x4xf32>
    %c1_65 = arith.constant 1 : index
    %c0_66 = arith.constant 0 : index
    %c0_67 = arith.constant 0 : index
    %c0_68 = arith.constant 0 : index
    %85 = vector.load %arg21[%c1_65, %c0_66, %c0_67, %c0_68] : memref<4x1x4x4xf32, #tpu.memory_space<vmem>>, vector<1x1x4x4xf32>
    %86 = vector.shape_cast %85 : vector<1x1x4x4xf32> to vector<4x4xf32>
    %87 = vector.shape_cast %84 : vector<4x4xf32> to vector<1x1x4x4xf32>
    tpu.vector_store %arg21[%c1_65, %c0_66, %c0_67, %c0_68], %87 {strides = array<i32>} : memref<4x1x4x4xf32, #tpu.memory_space<vmem>>, vector<1x1x4x4xf32>,
    %cst_69 = arith.constant dense<0.000000e+00> : vector<4x8xf32>
    %88 = tpu.matmul %84, %69, %cst_69 {dimension_numbers = #tpu.dot_dimension_numbers<[1], [0], [0], [1], [0, 0, 1, 1], [], []>} : vector<4x4xf32>, vector<4x8xf32>, vector<4x8xf32> -> vector<4x8xf32>
    %c1_70 = arith.constant 1 : index
    %c0_71 = arith.constant 0 : index
    %c0_72 = arith.constant 0 : index
    %89 = vector.load %arg10[%c1_70, %c0_71, %c0_72] : memref<4x8x32xf32, #tpu.memory_space<vmem>>, vector<1x8x32xf32>
    %90 = vector.shape_cast %89 : vector<1x8x32xf32> to vector<8x32xf32>
    %cst_73 = arith.constant dense<0.000000e+00> : vector<4x32xf32>
    %91 = tpu.matmul %88, %90, %cst_73 {dimension_numbers = #tpu.dot_dimension_numbers<[1], [0], [0], [1], [0, 0, 1, 1], [], []>} : vector<4x8xf32>, vector<8x32xf32>, vector<4x32xf32> -> vector<4x32xf32>
    %92 = arith.addf %48, %91 : vector<4x32xf32>
    %c2 = arith.constant 2 : index
    %c0_74 = arith.constant 0 : index
    %c0_75 = arith.constant 0 : index
    %93 = vector.load %arg4[%c2, %c0_74, %c0_75] : memref<4x32x8xf32, #tpu.memory_space<vmem>>, vector<1x32x8xf32>
    %94 = vector.shape_cast %93 : vector<1x32x8xf32> to vector<32x8xf32>
    %cst_76 = arith.constant dense<0.000000e+00> : vector<4x8xf32>
    %95 = tpu.matmul %1, %94, %cst_76 {dimension_numbers = #tpu.dot_dimension_numbers<[1], [0], [0], [1], [0, 0, 1, 1], [], []>} : vector<4x32xf32>, vector<32x8xf32>, vector<4x8xf32> -> vector<4x8xf32>
    %c2_77 = arith.constant 2 : index
    %c0_78 = arith.constant 0 : index
    %c0_79 = arith.constant 0 : index
    %96 = vector.load %arg5[%c2_77, %c0_78, %c0_79] : memref<4x1x8xf32, #tpu.memory_space<vmem>>, vector<1x1x8xf32>
    %97 = vector.shape_cast %96 : vector<1x1x8xf32> to vector<1x8xf32>
    %98 = vector.broadcast %97 : vector<1x8xf32> to vector<4x8xf32>
    %99 = arith.addf %95, %98 : vector<4x8xf32>
    %c2_80 = arith.constant 2 : index
    %c0_81 = arith.constant 0 : index
    %c0_82 = arith.constant 0 : index
    %100 = vector.load %arg6[%c2_80, %c0_81, %c0_82] : memref<4x32x8xf32, #tpu.memory_space<vmem>>, vector<1x32x8xf32>
    %101 = vector.shape_cast %100 : vector<1x32x8xf32> to vector<32x8xf32>
    %cst_83 = arith.constant dense<0.000000e+00> : vector<4x8xf32>
    %102 = tpu.matmul %3, %101, %cst_83 {dimension_numbers = #tpu.dot_dimension_numbers<[1], [0], [0], [1], [0, 0, 1, 1], [], []>} : vector<4x32xf32>, vector<32x8xf32>, vector<4x8xf32> -> vector<4x8xf32>
    %c2_84 = arith.constant 2 : index
    %c0_85 = arith.constant 0 : index
    %c0_86 = arith.constant 0 : index
    %103 = vector.load %arg7[%c2_84, %c0_85, %c0_86] : memref<4x1x8xf32, #tpu.memory_space<vmem>>, vector<1x1x8xf32>
    %104 = vector.shape_cast %103 : vector<1x1x8xf32> to vector<1x8xf32>
    %105 = vector.broadcast %104 : vector<1x8xf32> to vector<4x8xf32>
    %106 = arith.addf %102, %105 : vector<4x8xf32>
    %c2_87 = arith.constant 2 : index
    %c0_88 = arith.constant 0 : index
    %c0_89 = arith.constant 0 : index
    %107 = vector.load %arg8[%c2_87, %c0_88, %c0_89] : memref<4x32x8xf32, #tpu.memory_space<vmem>>, vector<1x32x8xf32>
    %108 = vector.shape_cast %107 : vector<1x32x8xf32> to vector<32x8xf32>
    %cst_90 = arith.constant dense<0.000000e+00> : vector<4x8xf32>
    %109 = tpu.matmul %5, %108, %cst_90 {dimension_numbers = #tpu.dot_dimension_numbers<[1], [0], [0], [1], [0, 0, 1, 1], [], []>} : vector<4x32xf32>, vector<32x8xf32>, vector<4x8xf32> -> vector<4x8xf32>
    %c2_91 = arith.constant 2 : index
    %c0_92 = arith.constant 0 : index
    %c0_93 = arith.constant 0 : index
    %110 = vector.load %arg9[%c2_91, %c0_92, %c0_93] : memref<4x1x8xf32, #tpu.memory_space<vmem>>, vector<1x1x8xf32>
    %111 = vector.shape_cast %110 : vector<1x1x8xf32> to vector<1x8xf32>
    %112 = vector.broadcast %111 : vector<1x8xf32> to vector<4x8xf32>
    %113 = arith.addf %109, %112 : vector<4x8xf32>
    %cst_94 = arith.constant dense<0.000000e+00> : vector<4x4xf32>
    %114 = tpu.matmul %99, %106, %cst_94 {dimension_numbers = #tpu.dot_dimension_numbers<[1], [1], [0], [0], [0, 0, 1, 0], [], []>} : vector<4x8xf32>, vector<4x8xf32>, vector<4x4xf32> -> vector<4x4xf32>
    %115 = tpu.iota {dimensions = array<i32: 0>} : vector<4x4xi32>
    %116 = tpu.iota {dimensions = array<i32: 1>} : vector<4x4xi32>
    %117 = arith.cmpi sle, %116, %115 : vector<4x4xi32>
    %cst_95 = arith.constant -4.2949673E+9 : f32
    %118 = vector.broadcast %cst_95 : f32 to vector<4x4xf32>
    %119 = arith.select %117, %114, %118 : vector<4x4xi1>, vector<4x4xf32>
    %cst_96 = arith.constant dense<0xFF800000> : vector<4xf32>
    %120 = vector.multi_reduction <maximumf>, %119, %cst_96 [1] : vector<4x4xf32> to vector<4xf32>
    %121 = vector.shape_cast %120 : vector<4xf32> to vector<4x1xf32>
    %122 = vector.broadcast %121 : vector<4x1xf32> to vector<4x4xf32>
    %123 = arith.subf %119, %122 : vector<4x4xf32>
    %124 = math.exp %123 : vector<4x4xf32>
    %cst_97 = arith.constant dense<0.000000e+00> : vector<4xf32>
    %125 = vector.multi_reduction <add>, %124, %cst_97 [1] : vector<4x4xf32> to vector<4xf32>
    %126 = vector.shape_cast %125 : vector<4xf32> to vector<4x1xf32>
    %127 = vector.broadcast %126 : vector<4x1xf32> to vector<4x4xf32>
    %128 = arith.divf %124, %127 : vector<4x4xf32>
    %c2_98 = arith.constant 2 : index
    %c0_99 = arith.constant 0 : index
    %c0_100 = arith.constant 0 : index
    %c0_101 = arith.constant 0 : index
    %129 = vector.load %arg21[%c2_98, %c0_99, %c0_100, %c0_101] : memref<4x1x4x4xf32, #tpu.memory_space<vmem>>, vector<1x1x4x4xf32>
    %130 = vector.shape_cast %129 : vector<1x1x4x4xf32> to vector<4x4xf32>
    %131 = vector.shape_cast %128 : vector<4x4xf32> to vector<1x1x4x4xf32>
    tpu.vector_store %arg21[%c2_98, %c0_99, %c0_100, %c0_101], %131 {strides = array<i32>} : memref<4x1x4x4xf32, #tpu.memory_space<vmem>>, vector<1x1x4x4xf32>,
    %cst_102 = arith.constant dense<0.000000e+00> : vector<4x8xf32>
    %132 = tpu.matmul %128, %113, %cst_102 {dimension_numbers = #tpu.dot_dimension_numbers<[1], [0], [0], [1], [0, 0, 1, 1], [], []>} : vector<4x4xf32>, vector<4x8xf32>, vector<4x8xf32> -> vector<4x8xf32>
    %c2_103 = arith.constant 2 : index
    %c0_104 = arith.constant 0 : index
    %c0_105 = arith.constant 0 : index
    %133 = vector.load %arg10[%c2_103, %c0_104, %c0_105] : memref<4x8x32xf32, #tpu.memory_space<vmem>>, vector<1x8x32xf32>
    %134 = vector.shape_cast %133 : vector<1x8x32xf32> to vector<8x32xf32>
    %cst_106 = arith.constant dense<0.000000e+00> : vector<4x32xf32>
    %135 = tpu.matmul %132, %134, %cst_106 {dimension_numbers = #tpu.dot_dimension_numbers<[1], [0], [0], [1], [0, 0, 1, 1], [], []>} : vector<4x8xf32>, vector<8x32xf32>, vector<4x32xf32> -> vector<4x32xf32>
    %136 = arith.addf %92, %135 : vector<4x32xf32>
    %c3 = arith.constant 3 : index
    %c0_107 = arith.constant 0 : index
    %c0_108 = arith.constant 0 : index
    %137 = vector.load %arg4[%c3, %c0_107, %c0_108] : memref<4x32x8xf32, #tpu.memory_space<vmem>>, vector<1x32x8xf32>
    %138 = vector.shape_cast %137 : vector<1x32x8xf32> to vector<32x8xf32>
    %cst_109 = arith.constant dense<0.000000e+00> : vector<4x8xf32>
    %139 = tpu.matmul %1, %138, %cst_109 {dimension_numbers = #tpu.dot_dimension_numbers<[1], [0], [0], [1], [0, 0, 1, 1], [], []>} : vector<4x32xf32>, vector<32x8xf32>, vector<4x8xf32> -> vector<4x8xf32>
    %c3_110 = arith.constant 3 : index
    %c0_111 = arith.constant 0 : index
    %c0_112 = arith.constant 0 : index
    %140 = vector.load %arg5[%c3_110, %c0_111, %c0_112] : memref<4x1x8xf32, #tpu.memory_space<vmem>>, vector<1x1x8xf32>
    %141 = vector.shape_cast %140 : vector<1x1x8xf32> to vector<1x8xf32>
    %142 = vector.broadcast %141 : vector<1x8xf32> to vector<4x8xf32>
    %143 = arith.addf %139, %142 : vector<4x8xf32>
    %c3_113 = arith.constant 3 : index
    %c0_114 = arith.constant 0 : index
    %c0_115 = arith.constant 0 : index
    %144 = vector.load %arg6[%c3_113, %c0_114, %c0_115] : memref<4x32x8xf32, #tpu.memory_space<vmem>>, vector<1x32x8xf32>
    %145 = vector.shape_cast %144 : vector<1x32x8xf32> to vector<32x8xf32>
    %cst_116 = arith.constant dense<0.000000e+00> : vector<4x8xf32>
    %146 = tpu.matmul %3, %145, %cst_116 {dimension_numbers = #tpu.dot_dimension_numbers<[1], [0], [0], [1], [0, 0, 1, 1], [], []>} : vector<4x32xf32>, vector<32x8xf32>, vector<4x8xf32> -> vector<4x8xf32>
    %c3_117 = arith.constant 3 : index
    %c0_118 = arith.constant 0 : index
    %c0_119 = arith.constant 0 : index
    %147 = vector.load %arg7[%c3_117, %c0_118, %c0_119] : memref<4x1x8xf32, #tpu.memory_space<vmem>>, vector<1x1x8xf32>
    %148 = vector.shape_cast %147 : vector<1x1x8xf32> to vector<1x8xf32>
    %149 = vector.broadcast %148 : vector<1x8xf32> to vector<4x8xf32>
    %150 = arith.addf %146, %149 : vector<4x8xf32>
    %c3_120 = arith.constant 3 : index
    %c0_121 = arith.constant 0 : index
    %c0_122 = arith.constant 0 : index
    %151 = vector.load %arg8[%c3_120, %c0_121, %c0_122] : memref<4x32x8xf32, #tpu.memory_space<vmem>>, vector<1x32x8xf32>
    %152 = vector.shape_cast %151 : vector<1x32x8xf32> to vector<32x8xf32>
    %cst_123 = arith.constant dense<0.000000e+00> : vector<4x8xf32>
    %153 = tpu.matmul %5, %152, %cst_123 {dimension_numbers = #tpu.dot_dimension_numbers<[1], [0], [0], [1], [0, 0, 1, 1], [], []>} : vector<4x32xf32>, vector<32x8xf32>, vector<4x8xf32> -> vector<4x8xf32>
    %c3_124 = arith.constant 3 : index
    %c0_125 = arith.constant 0 : index
    %c0_126 = arith.constant 0 : index
    %154 = vector.load %arg9[%c3_124, %c0_125, %c0_126] : memref<4x1x8xf32, #tpu.memory_space<vmem>>, vector<1x1x8xf32>
    %155 = vector.shape_cast %154 : vector<1x1x8xf32> to vector<1x8xf32>
    %156 = vector.broadcast %155 : vector<1x8xf32> to vector<4x8xf32>
    %157 = arith.addf %153, %156 : vector<4x8xf32>
    %cst_127 = arith.constant dense<0.000000e+00> : vector<4x4xf32>
    %158 = tpu.matmul %143, %150, %cst_127 {dimension_numbers = #tpu.dot_dimension_numbers<[1], [1], [0], [0], [0, 0, 1, 0], [], []>} : vector<4x8xf32>, vector<4x8xf32>, vector<4x4xf32> -> vector<4x4xf32>
    %159 = tpu.iota {dimensions = array<i32: 0>} : vector<4x4xi32>
    %160 = tpu.iota {dimensions = array<i32: 1>} : vector<4x4xi32>
    %161 = arith.cmpi sle, %160, %159 : vector<4x4xi32>
    %cst_128 = arith.constant -4.2949673E+9 : f32
    %162 = vector.broadcast %cst_128 : f32 to vector<4x4xf32>
    %163 = arith.select %161, %158, %162 : vector<4x4xi1>, vector<4x4xf32>
    %cst_129 = arith.constant dense<0xFF800000> : vector<4xf32>
    %164 = vector.multi_reduction <maximumf>, %163, %cst_129 [1] : vector<4x4xf32> to vector<4xf32>
    %165 = vector.shape_cast %164 : vector<4xf32> to vector<4x1xf32>
    %166 = vector.broadcast %165 : vector<4x1xf32> to vector<4x4xf32>
    %167 = arith.subf %163, %166 : vector<4x4xf32>
    %168 = math.exp %167 : vector<4x4xf32>
    %cst_130 = arith.constant dense<0.000000e+00> : vector<4xf32>
    %169 = vector.multi_reduction <add>, %168, %cst_130 [1] : vector<4x4xf32> to vector<4xf32>
    %170 = vector.shape_cast %169 : vector<4xf32> to vector<4x1xf32>
    %171 = vector.broadcast %170 : vector<4x1xf32> to vector<4x4xf32>
    %172 = arith.divf %168, %171 : vector<4x4xf32>
    %c3_131 = arith.constant 3 : index
    %c0_132 = arith.constant 0 : index
    %c0_133 = arith.constant 0 : index
    %c0_134 = arith.constant 0 : index
    %173 = vector.load %arg21[%c3_131, %c0_132, %c0_133, %c0_134] : memref<4x1x4x4xf32, #tpu.memory_space<vmem>>, vector<1x1x4x4xf32>
    %174 = vector.shape_cast %173 : vector<1x1x4x4xf32> to vector<4x4xf32>
    %175 = vector.shape_cast %172 : vector<4x4xf32> to vector<1x1x4x4xf32>
    tpu.vector_store %arg21[%c3_131, %c0_132, %c0_133, %c0_134], %175 {strides = array<i32>} : memref<4x1x4x4xf32, #tpu.memory_space<vmem>>, vector<1x1x4x4xf32>,
    %cst_135 = arith.constant dense<0.000000e+00> : vector<4x8xf32>
    %176 = tpu.matmul %172, %157, %cst_135 {dimension_numbers = #tpu.dot_dimension_numbers<[1], [0], [0], [1], [0, 0, 1, 1], [], []>} : vector<4x4xf32>, vector<4x8xf32>, vector<4x8xf32> -> vector<4x8xf32>
    %c3_136 = arith.constant 3 : index
    %c0_137 = arith.constant 0 : index
    %c0_138 = arith.constant 0 : index
    %177 = vector.load %arg10[%c3_136, %c0_137, %c0_138] : memref<4x8x32xf32, #tpu.memory_space<vmem>>, vector<1x8x32xf32>
    %178 = vector.shape_cast %177 : vector<1x8x32xf32> to vector<8x32xf32>
    %cst_139 = arith.constant dense<0.000000e+00> : vector<4x32xf32>
    %179 = tpu.matmul %176, %178, %cst_139 {dimension_numbers = #tpu.dot_dimension_numbers<[1], [0], [0], [1], [0, 0, 1, 1], [], []>} : vector<4x8xf32>, vector<8x32xf32>, vector<4x32xf32> -> vector<4x32xf32>
    %180 = arith.addf %136, %179 : vector<4x32xf32>
    %c0_140 = arith.constant 0 : index
    %c0_141 = arith.constant 0 : index
    %181 = vector.load %arg11[%c0_140, %c0_141] : memref<1x32xf32, #tpu.memory_space<vmem>>, vector<1x32xf32>
    %182 = vector.broadcast %181 : vector<1x32xf32> to vector<4x32xf32>
    %183 = arith.addf %180, %182 : vector<4x32xf32>
    %184 = arith.addf %183, %1 : vector<4x32xf32>
    %cst_142 = arith.constant dense<0.000000e+00> : vector<4xf32>
    %185 = vector.multi_reduction <add>, %184, %cst_142 [1] : vector<4x32xf32> to vector<4xf32>
    %186 = vector.shape_cast %185 : vector<4xf32> to vector<4x1xf32>
    %cst_143 = arith.constant 3.200000e+01 : f32
    %187 = vector.broadcast %cst_143 : f32 to vector<4x1xf32>
    %188 = arith.divf %186, %187 : vector<4x1xf32>
    %189 = vector.broadcast %188 : vector<4x1xf32> to vector<4x32xf32>
    %190 = arith.subf %184, %189 : vector<4x32xf32>
    %191 = arith.mulf %190, %190 : vector<4x32xf32>
    %cst_144 = arith.constant dense<0.000000e+00> : vector<4xf32>
    %192 = vector.multi_reduction <add>, %191, %cst_144 [1] : vector<4x32xf32> to vector<4xf32>
    %193 = vector.shape_cast %192 : vector<4xf32> to vector<4x1xf32>
    %cst_145 = arith.constant 3.200000e+01 : f32
    %194 = vector.broadcast %cst_145 : f32 to vector<4x1xf32>
    %195 = arith.divf %193, %194 : vector<4x1xf32>
    %196 = vector.broadcast %188 : vector<4x1xf32> to vector<4x32xf32>
    %197 = arith.subf %184, %196 : vector<4x32xf32>
    %cst_146 = arith.constant 9.99999974E-6 : f32
    %198 = vector.broadcast %cst_146 : f32 to vector<4x1xf32>
    %199 = arith.addf %195, %198 : vector<4x1xf32>
    %200 = math.rsqrt %199 : vector<4x1xf32>
    %201 = vector.broadcast %200 : vector<4x1xf32> to vector<4x32xf32>
    %202 = arith.mulf %197, %201 : vector<4x32xf32>
    %c0_147 = arith.constant 0 : index
    %c0_148 = arith.constant 0 : index
    %203 = vector.load %arg12[%c0_147, %c0_148] : memref<1x32xf32, #tpu.memory_space<vmem>>, vector<1x32xf32>
    %204 = vector.broadcast %203 : vector<1x32xf32> to vector<4x32xf32>
    %205 = arith.mulf %202, %204 : vector<4x32xf32>
    %c0_149 = arith.constant 0 : index
    %c0_150 = arith.constant 0 : index
    %206 = vector.load %arg13[%c0_149, %c0_150] : memref<1x32xf32, #tpu.memory_space<vmem>>, vector<1x32xf32>
    %207 = vector.broadcast %206 : vector<1x32xf32> to vector<4x32xf32>
    %208 = arith.addf %205, %207 : vector<4x32xf32>
    %c0_151 = arith.constant 0 : index
    %c0_152 = arith.constant 0 : index
    %209 = vector.load %arg14[%c0_151, %c0_152] : memref<32x64xf32, #tpu.memory_space<vmem>>, vector<32x64xf32>
    %cst_153 = arith.constant dense<0.000000e+00> : vector<4x64xf32>
    %210 = tpu.matmul %208, %209, %cst_153 {dimension_numbers = #tpu.dot_dimension_numbers<[1], [0], [0], [1], [0, 0, 1, 1], [], []>} : vector<4x32xf32>, vector<32x64xf32>, vector<4x64xf32> -> vector<4x64xf32>
    %c0_154 = arith.constant 0 : index
    %c0_155 = arith.constant 0 : index
    %211 = vector.load %arg15[%c0_154, %c0_155] : memref<1x64xf32, #tpu.memory_space<vmem>>, vector<1x64xf32>
    %212 = vector.broadcast %211 : vector<1x64xf32> to vector<4x64xf32>
    %213 = arith.addf %210, %212 : vector<4x64xf32>
    %cst_156 = arith.constant 0.000000e+00 : f32
    %214 = vector.broadcast %cst_156 : f32 to vector<4x64xf32>
    %215 = arith.maximumf %213, %214 : vector<4x64xf32>
    %c0_157 = arith.constant 0 : index
    %c0_158 = arith.constant 0 : index
    %216 = vector.load %arg16[%c0_157, %c0_158] : memref<64x32xf32, #tpu.memory_space<vmem>>, vector<64x32xf32>
    %cst_159 = arith.constant dense<0.000000e+00> : vector<4x32xf32>
    %217 = tpu.matmul %215, %216, %cst_159 {dimension_numbers = #tpu.dot_dimension_numbers<[1], [0], [0], [1], [0, 0, 1, 1], [], []>} : vector<4x64xf32>, vector<64x32xf32>, vector<4x32xf32> -> vector<4x32xf32>
    %c0_160 = arith.constant 0 : index
    %c0_161 = arith.constant 0 : index
    %218 = vector.load %arg17[%c0_160, %c0_161] : memref<1x32xf32, #tpu.memory_space<vmem>>, vector<1x32xf32>
    %219 = vector.broadcast %218 : vector<1x32xf32> to vector<4x32xf32>
    %220 = arith.addf %217, %219 : vector<4x32xf32>
    %221 = arith.addf %208, %220 : vector<4x32xf32>
    %cst_162 = arith.constant dense<0.000000e+00> : vector<4xf32>
    %222 = vector.multi_reduction <add>, %221, %cst_162 [1] : vector<4x32xf32> to vector<4xf32>
    %223 = vector.shape_cast %222 : vector<4xf32> to vector<4x1xf32>
    %cst_163 = arith.constant 3.200000e+01 : f32
    %224 = vector.broadcast %cst_163 : f32 to vector<4x1xf32>
    %225 = arith.divf %223, %224 : vector<4x1xf32>
    %226 = vector.broadcast %225 : vector<4x1xf32> to vector<4x32xf32>
    %227 = arith.subf %221, %226 : vector<4x32xf32>
    %228 = arith.mulf %227, %227 : vector<4x32xf32>
    %cst_164 = arith.constant dense<0.000000e+00> : vector<4xf32>
    %229 = vector.multi_reduction <add>, %228, %cst_164 [1] : vector<4x32xf32> to vector<4xf32>
    %230 = vector.shape_cast %229 : vector<4xf32> to vector<4x1xf32>
    %cst_165 = arith.constant 3.200000e+01 : f32
    %231 = vector.broadcast %cst_165 : f32 to vector<4x1xf32>
    %232 = arith.divf %230, %231 : vector<4x1xf32>
    %233 = vector.broadcast %225 : vector<4x1xf32> to vector<4x32xf32>
    %234 = arith.subf %221, %233 : vector<4x32xf32>
    %cst_166 = arith.constant 9.99999974E-6 : f32
    %235 = vector.broadcast %cst_166 : f32 to vector<4x1xf32>
    %236 = arith.addf %232, %235 : vector<4x1xf32>
    %237 = math.rsqrt %236 : vector<4x1xf32>
    %238 = vector.broadcast %237 : vector<4x1xf32> to vector<4x32xf32>
    %239 = arith.mulf %234, %238 : vector<4x32xf32>
    %c0_167 = arith.constant 0 : index
    %c0_168 = arith.constant 0 : index
    %240 = vector.load %arg18[%c0_167, %c0_168] : memref<1x32xf32, #tpu.memory_space<vmem>>, vector<1x32xf32>
    %241 = vector.broadcast %240 : vector<1x32xf32> to vector<4x32xf32>
    %242 = arith.mulf %239, %241 : vector<4x32xf32>
    %c0_169 = arith.constant 0 : index
    %c0_170 = arith.constant 0 : index
    %243 = vector.load %arg19[%c0_169, %c0_170] : memref<1x32xf32, #tpu.memory_space<vmem>>, vector<1x32xf32>
    %244 = vector.broadcast %243 : vector<1x32xf32> to vector<4x32xf32>
    %245 = arith.addf %242, %244 : vector<4x32xf32>
    %c0_171 = arith.constant 0 : index
    %c0_172 = arith.constant 0 : index
    %c0_173 = arith.constant 0 : index
    %246 = vector.load %arg20[%c0_171, %c0_172, %c0_173] : memref<1x4x32xf32, #tpu.memory_space<vmem>>, vector<1x4x32xf32>
    %247 = vector.shape_cast %246 : vector<1x4x32xf32> to vector<4x32xf32>
    %248 = vector.shape_cast %245 : vector<4x32xf32> to vector<1x4x32xf32>
    tpu.vector_store %arg20[%c0_171, %c0_172, %c0_173], %248 {strides = array<i32>} : memref<1x4x32xf32, #tpu.memory_space<vmem>>, vector<1x4x32xf32>,
    return
  }
  func.func @transform_0(%arg0: i32) -> (i32, i32, i32) {
    %c0_i32 = arith.constant 0 : i32
    %c0_i32_0 = arith.constant 0 : i32
    %c0_i32_1 = arith.constant 0 : i32
    return %arg0, %c0_i32, %c0_i32_0 : i32, i32, i32
  }
  func.func @transform_1(%arg0: i32) -> (i32, i32, i32) {
    %c0_i32 = arith.constant 0 : i32
    %c0_i32_0 = arith.constant 0 : i32
    %c0_i32_1 = arith.constant 0 : i32
    return %arg0, %c0_i32, %c0_i32_0 : i32, i32, i32
  }
  func.func @transform_2(%arg0: i32) -> (i32, i32, i32) {
    %c0_i32 = arith.constant 0 : i32
    %c0_i32_0 = arith.constant 0 : i32
    %c0_i32_1 = arith.constant 0 : i32
    return %arg0, %c0_i32, %c0_i32_0 : i32, i32, i32
  }
  func.func @transform_3(%arg0: i32) -> (i32, i32, i32) {
    %c0_i32 = arith.constant 0 : i32
    %c0_i32_0 = arith.constant 0 : i32
    %c0_i32_1 = arith.constant 0 : i32
    %c0_i32_2 = arith.constant 0 : i32
    return %c0_i32, %c0_i32_0, %c0_i32_1 : i32, i32, i32
  }
  func.func @transform_4(%arg0: i32) -> (i32, i32, i32) {
    %c0_i32 = arith.constant 0 : i32
    %c0_i32_0 = arith.constant 0 : i32
    %c0_i32_1 = arith.constant 0 : i32
    %c0_i32_2 = arith.constant 0 : i32
    return %c0_i32, %c0_i32_0, %c0_i32_1 : i32, i32, i32
  }
  func.func @transform_5(%arg0: i32) -> (i32, i32, i32) {
    %c0_i32 = arith.constant 0 : i32
    %c0_i32_0 = arith.constant 0 : i32
    %c0_i32_1 = arith.constant 0 : i32
    %c0_i32_2 = arith.constant 0 : i32
    return %c0_i32, %c0_i32_0, %c0_i32_1 : i32, i32, i32
  }
  func.func @transform_6(%arg0: i32) -> (i32, i32, i32) {
    %c0_i32 = arith.constant 0 : i32
    %c0_i32_0 = arith.constant 0 : i32
    %c0_i32_1 = arith.constant 0 : i32
    %c0_i32_2 = arith.constant 0 : i32
    return %c0_i32, %c0_i32_0, %c0_i32_1 : i32, i32, i32
  }
  func.func @transform_7(%arg0: i32) -> (i32, i32, i32) {
    %c0_i32 = arith.constant 0 : i32
    %c0_i32_0 = arith.constant 0 : i32
    %c0_i32_1 = arith.constant 0 : i32
    %c0_i32_2 = arith.constant 0 : i32
    return %c0_i32, %c0_i32_0, %c0_i32_1 : i32, i32, i32
  }
  func.func @transform_8(%arg0: i32) -> (i32, i32, i32) {
    %c0_i32 = arith.constant 0 : i32
    %c0_i32_0 = arith.constant 0 : i32
    %c0_i32_1 = arith.constant 0 : i32
    %c0_i32_2 = arith.constant 0 : i32
    return %c0_i32, %c0_i32_0, %c0_i32_1 : i32, i32, i32
  }
  func.func @transform_9(%arg0: i32) -> (i32, i32, i32) {
    %c0_i32 = arith.constant 0 : i32
    %c0_i32_0 = arith.constant 0 : i32
    %c0_i32_1 = arith.constant 0 : i32
    %c0_i32_2 = arith.constant 0 : i32
    return %c0_i32, %c0_i32_0, %c0_i32_1 : i32, i32, i32
  }
  func.func @transform_10(%arg0: i32) -> (i32, i32) {
    %c0_i32 = arith.constant 0 : i32
    %c0_i32_0 = arith.constant 0 : i32
    %c0_i32_1 = arith.constant 0 : i32
    return %c0_i32, %c0_i32_0 : i32, i32
  }
  func.func @transform_11(%arg0: i32) -> (i32, i32) {
    %c0_i32 = arith.constant 0 : i32
    %c0_i32_0 = arith.constant 0 : i32
    %c0_i32_1 = arith.constant 0 : i32
    return %c0_i32, %c0_i32_0 : i32, i32
  }
  func.func @transform_12(%arg0: i32) -> (i32, i32) {
    %c0_i32 = arith.constant 0 : i32
    %c0_i32_0 = arith.constant 0 : i32
    %c0_i32_1 = arith.constant 0 : i32
    return %c0_i32, %c0_i32_0 : i32, i32
  }
  func.func @transform_13(%arg0: i32) -> (i32, i32) {
    %c0_i32 = arith.constant 0 : i32
    %c0_i32_0 = arith.constant 0 : i32
    %c0_i32_1 = arith.constant 0 : i32
    return %c0_i32, %c0_i32_0 : i32, i32
  }
  func.func @transform_14(%arg0: i32) -> (i32, i32) {
    %c0_i32 = arith.constant 0 : i32
    %c0_i32_0 = arith.constant 0 : i32
    %c0_i32_1 = arith.constant 0 : i32
    return %c0_i32, %c0_i32_0 : i32, i32
  }
  func.func @transform_15(%arg0: i32) -> (i32, i32) {
    %c0_i32 = arith.constant 0 : i32
    %c0_i32_0 = arith.constant 0 : i32
    %c0_i32_1 = arith.constant 0 : i32
    return %c0_i32, %c0_i32_0 : i32, i32
  }
  func.func @transform_16(%arg0: i32) -> (i32, i32) {
    %c0_i32 = arith.constant 0 : i32
    %c0_i32_0 = arith.constant 0 : i32
    %c0_i32_1 = arith.constant 0 : i32
    return %c0_i32, %c0_i32_0 : i32, i32
  }
  func.func @transform_17(%arg0: i32) -> (i32, i32) {
    %c0_i32 = arith.constant 0 : i32
    %c0_i32_0 = arith.constant 0 : i32
    %c0_i32_1 = arith.constant 0 : i32
    return %c0_i32, %c0_i32_0 : i32, i32
  }
  func.func @transform_18(%arg0: i32) -> (i32, i32) {
    %c0_i32 = arith.constant 0 : i32
    %c0_i32_0 = arith.constant 0 : i32
    %c0_i32_1 = arith.constant 0 : i32
    return %c0_i32, %c0_i32_0 : i32, i32
  }
  func.func @transform_19(%arg0: i32) -> (i32, i32, i32) {
    %c0_i32 = arith.constant 0 : i32
    %c0_i32_0 = arith.constant 0 : i32
    %c0_i32_1 = arith.constant 0 : i32
    return %arg0, %c0_i32, %c0_i32_0 : i32, i32, i32
  }
  func.func @transform_20(%arg0: i32) -> (i32, i32, i32, i32) {
    %c0_i32 = arith.constant 0 : i32
    %c0_i32_0 = arith.constant 0 : i32
    %c0_i32_1 = arith.constant 0 : i32
    %c0_i32_2 = arith.constant 0 : i32
    return %c0_i32, %arg0, %c0_i32_0, %c0_i32_1 : i32, i32, i32, i32
  }
}

module attributes {stable_mosaic.version = 11 : i64} {
  func.func @_encoder_kernel(%arg0: i32, %arg1: memref<1x12x32xf32, #tpu.memory_space<vmem>>, %arg2: memref<1x4x32xf32, #tpu.memory_space<vmem>>, %arg3: memref<1x4x32xf32, #tpu.memory_space<vmem>>, %arg4: memref<4x32x8xf32, #tpu.memory_space<vmem>>, %arg5: memref<4x1x8xf32, #tpu.memory_space<vmem>>, %arg6: memref<4x32x8xf32, #tpu.memory_space<vmem>>, %arg7: memref<4x1x8xf32, #tpu.memory_space<vmem>>, %arg8: memref<4x32x8xf32, #tpu.memory_space<vmem>>, %arg9: memref<4x1x8xf32, #tpu.memory_space<vmem>>, %arg10: memref<4x8x32xf32, #tpu.memory_space<vmem>>, %arg11: memref<1x32xf32, #tpu.memory_space<vmem>>, %arg12: memref<1x32xf32, #tpu.memory_space<vmem>>, %arg13: memref<1x32xf32, #tpu.memory_space<vmem>>, %arg14: memref<32x64xf32, #tpu.memory_space<vmem>>, %arg15: memref<1x64xf32, #tpu.memory_space<vmem>>, %arg16: memref<64x32xf32, #tpu.memory_space<vmem>>, %arg17: memref<1x32xf32, #tpu.memory_space<vmem>>, %arg18: memref<1x32xf32, #tpu.memory_space<vmem>>, %arg19: memref<1x32xf32, #tpu.memory_space<vmem>>, %arg20: memref<1x12x32xf32, #tpu.memory_space<vmem>>, %arg21: memref<4x1x12x4xf32, #tpu.memory_space<vmem>>) attributes {dimension_semantics = [#tpu.dimension_semantics<parallel>], iteration_bounds = array<i64: 2>, scalar_prefetch = 0 : i64, scratch_operands = 0 : i64, tpu.core_type = #tpu.core_type<tc>, window_params = [{transform_indices = @transform_0, window_bounds = array<i64: 1, 12, 32>}, {transform_indices = @transform_1, window_bounds = array<i64: 1, 4, 32>}, {transform_indices = @transform_2, window_bounds = array<i64: 1, 4, 32>}, {pipeline_mode = #tpu.pipeline_mode<synchronous>, transform_indices = @transform_3, window_bounds = array<i64: 4, 32, 8>}, {pipeline_mode = #tpu.pipeline_mode<synchronous>, transform_indices = @transform_4, window_bounds = array<i64: 4, 1, 8>}, {pipeline_mode = #tpu.pipeline_mode<synchronous>, transform_indices = @transform_5, window_bounds = array<i64: 4, 32, 8>}, {pipeline_mode = #tpu.pipeline_mode<synchronous>, transform_indices = @transform_6, window_bounds = array<i64: 4, 1, 8>}, {pipeline_mode = #tpu.pipeline_mode<synchronous>, transform_indices = @transform_7, window_bounds = array<i64: 4, 32, 8>}, {pipeline_mode = #tpu.pipeline_mode<synchronous>, transform_indices = @transform_8, window_bounds = array<i64: 4, 1, 8>}, {pipeline_mode = #tpu.pipeline_mode<synchronous>, transform_indices = @transform_9, window_bounds = array<i64: 4, 8, 32>}, {pipeline_mode = #tpu.pipeline_mode<synchronous>, transform_indices = @transform_10, window_bounds = array<i64: 1, 32>}, {pipeline_mode = #tpu.pipeline_mode<synchronous>, transform_indices = @transform_11, window_bounds = array<i64: 1, 32>}, {pipeline_mode = #tpu.pipeline_mode<synchronous>, transform_indices = @transform_12, window_bounds = array<i64: 1, 32>}, {pipeline_mode = #tpu.pipeline_mode<synchronous>, transform_indices = @transform_13, window_bounds = array<i64: 32, 64>}, {pipeline_mode = #tpu.pipeline_mode<synchronous>, transform_indices = @transform_14, window_bounds = array<i64: 1, 64>}, {pipeline_mode = #tpu.pipeline_mode<synchronous>, transform_indices = @transform_15, window_bounds = array<i64: 64, 32>}, {pipeline_mode = #tpu.pipeline_mode<synchronous>, transform_indices = @transform_16, window_bounds = array<i64: 1, 32>}, {pipeline_mode = #tpu.pipeline_mode<synchronous>, transform_indices = @transform_17, window_bounds = array<i64: 1, 32>}, {pipeline_mode = #tpu.pipeline_mode<synchronous>, transform_indices = @transform_18, window_bounds = array<i64: 1, 32>}, {transform_indices = @transform_19, window_bounds = array<i64: 1, 12, 32>}, {transform_indices = @transform_20, window_bounds = array<i64: 4, 1, 12, 4>}]} {
    %c0 = arith.constant 0 : index
    %c0_0 = arith.constant 0 : index
    %c0_1 = arith.constant 0 : index
    %0 = vector.load %arg1[%c0, %c0_0, %c0_1] : memref<1x12x32xf32, #tpu.memory_space<vmem>>, vector<1x12x32xf32>
    %1 = vector.shape_cast %0 : vector<1x12x32xf32> to vector<12x32xf32>
    %c0_2 = arith.constant 0 : index
    %c0_3 = arith.constant 0 : index
    %c0_4 = arith.constant 0 : index
    %2 = vector.load %arg2[%c0_2, %c0_3, %c0_4] : memref<1x4x32xf32, #tpu.memory_space<vmem>>, vector<1x4x32xf32>
    %3 = vector.shape_cast %2 : vector<1x4x32xf32> to vector<4x32xf32>
    %c0_5 = arith.constant 0 : index
    %c0_6 = arith.constant 0 : index
    %c0_7 = arith.constant 0 : index
    %4 = vector.load %arg3[%c0_5, %c0_6, %c0_7] : memref<1x4x32xf32, #tpu.memory_space<vmem>>, vector<1x4x32xf32>
    %5 = vector.shape_cast %4 : vector<1x4x32xf32> to vector<4x32xf32>
    %c0_8 = arith.constant 0 : index
    %c0_9 = arith.constant 0 : index
    %c0_10 = arith.constant 0 : index
    %6 = vector.load %arg4[%c0_8, %c0_9, %c0_10] : memref<4x32x8xf32, #tpu.memory_space<vmem>>, vector<1x32x8xf32>
    %7 = vector.shape_cast %6 : vector<1x32x8xf32> to vector<32x8xf32>
    %cst = arith.constant dense<0.000000e+00> : vector<12x8xf32>
    %8 = tpu.matmul %1, %7, %cst {dimension_numbers = #tpu.dot_dimension_numbers<[1], [0], [0], [1], [0, 0, 1, 1], [], []>} : vector<12x32xf32>, vector<32x8xf32>, vector<12x8xf32> -> vector<12x8xf32>
    %c0_11 = arith.constant 0 : index
    %c0_12 = arith.constant 0 : index
    %c0_13 = arith.constant 0 : index
    %9 = vector.load %arg5[%c0_11, %c0_12, %c0_13] : memref<4x1x8xf32, #tpu.memory_space<vmem>>, vector<1x1x8xf32>
    %10 = vector.shape_cast %9 : vector<1x1x8xf32> to vector<1x8xf32>
    %11 = vector.broadcast %10 : vector<1x8xf32> to vector<12x8xf32>
    %12 = arith.addf %8, %11 : vector<12x8xf32>
    %c0_14 = arith.constant 0 : index
    %c0_15 = arith.constant 0 : index
    %c0_16 = arith.constant 0 : index
    %13 = vector.load %arg6[%c0_14, %c0_15, %c0_16] : memref<4x32x8xf32, #tpu.memory_space<vmem>>, vector<1x32x8xf32>
    %14 = vector.shape_cast %13 : vector<1x32x8xf32> to vector<32x8xf32>
    %cst_17 = arith.constant dense<0.000000e+00> : vector<4x8xf32>
    %15 = tpu.matmul %3, %14, %cst_17 {dimension_numbers = #tpu.dot_dimension_numbers<[1], [0], [0], [1], [0, 0, 1, 1], [], []>} : vector<4x32xf32>, vector<32x8xf32>, vector<4x8xf32> -> vector<4x8xf32>
    %c0_18 = arith.constant 0 : index
    %c0_19 = arith.constant 0 : index
    %c0_20 = arith.constant 0 : index
    %16 = vector.load %arg7[%c0_18, %c0_19, %c0_20] : memref<4x1x8xf32, #tpu.memory_space<vmem>>, vector<1x1x8xf32>
    %17 = vector.shape_cast %16 : vector<1x1x8xf32> to vector<1x8xf32>
    %18 = vector.broadcast %17 : vector<1x8xf32> to vector<4x8xf32>
    %19 = arith.addf %15, %18 : vector<4x8xf32>
    %c0_21 = arith.constant 0 : index
    %c0_22 = arith.constant 0 : index
    %c0_23 = arith.constant 0 : index
    %20 = vector.load %arg8[%c0_21, %c0_22, %c0_23] : memref<4x32x8xf32, #tpu.memory_space<vmem>>, vector<1x32x8xf32>
    %21 = vector.shape_cast %20 : vector<1x32x8xf32> to vector<32x8xf32>
    %cst_24 = arith.constant dense<0.000000e+00> : vector<4x8xf32>
    %22 = tpu.matmul %5, %21, %cst_24 {dimension_numbers = #tpu.dot_dimension_numbers<[1], [0], [0], [1], [0, 0, 1, 1], [], []>} : vector<4x32xf32>, vector<32x8xf32>, vector<4x8xf32> -> vector<4x8xf32>
    %c0_25 = arith.constant 0 : index
    %c0_26 = arith.constant 0 : index
    %c0_27 = arith.constant 0 : index
    %23 = vector.load %arg9[%c0_25, %c0_26, %c0_27] : memref<4x1x8xf32, #tpu.memory_space<vmem>>, vector<1x1x8xf32>
    %24 = vector.shape_cast %23 : vector<1x1x8xf32> to vector<1x8xf32>
    %25 = vector.broadcast %24 : vector<1x8xf32> to vector<4x8xf32>
    %26 = arith.addf %22, %25 : vector<4x8xf32>
    %cst_28 = arith.constant dense<0.000000e+00> : vector<12x4xf32>
    %27 = tpu.matmul %12, %19, %cst_28 {dimension_numbers = #tpu.dot_dimension_numbers<[1], [1], [0], [0], [0, 0, 1, 0], [], []>} : vector<12x8xf32>, vector<4x8xf32>, vector<12x4xf32> -> vector<12x4xf32>
    %28 = tpu.iota {dimensions = array<i32: 0>} : vector<12x4xi32>
    %29 = tpu.iota {dimensions = array<i32: 1>} : vector<12x4xi32>
    %30 = arith.cmpi sle, %29, %28 : vector<12x4xi32>
    %cst_29 = arith.constant -4.2949673E+9 : f32
    %31 = vector.broadcast %cst_29 : f32 to vector<12x4xf32>
    %32 = arith.select %30, %27, %31 : vector<12x4xi1>, vector<12x4xf32>
    %cst_30 = arith.constant dense<0xFF800000> : vector<12xf32>
    %33 = vector.multi_reduction <maximumf>, %32, %cst_30 [1] : vector<12x4xf32> to vector<12xf32>
    %34 = vector.shape_cast %33 : vector<12xf32> to vector<12x1xf32>
    %35 = vector.broadcast %34 : vector<12x1xf32> to vector<12x4xf32>
    %36 = arith.subf %32, %35 : vector<12x4xf32>
    %37 = math.exp %36 : vector<12x4xf32>
    %cst_31 = arith.constant dense<0.000000e+00> : vector<12xf32>
    %38 = vector.multi_reduction <add>, %37, %cst_31 [1] : vector<12x4xf32> to vector<12xf32>
    %39 = vector.shape_cast %38 : vector<12xf32> to vector<12x1xf32>
    %40 = vector.broadcast %39 : vector<12x1xf32> to vector<12x4xf32>
    %41 = arith.divf %37, %40 : vector<12x4xf32>
    %c0_32 = arith.constant 0 : index
    %c0_33 = arith.constant 0 : index
    %c0_34 = arith.constant 0 : index
    %c0_35 = arith.constant 0 : index
    %42 = vector.load %arg21[%c0_32, %c0_33, %c0_34, %c0_35] : memref<4x1x12x4xf32, #tpu.memory_space<vmem>>, vector<1x1x12x4xf32>
    %43 = vector.shape_cast %42 : vector<1x1x12x4xf32> to vector<12x4xf32>
    %44 = vector.shape_cast %41 : vector<12x4xf32> to vector<1x1x12x4xf32>
    tpu.vector_store %arg21[%c0_32, %c0_33, %c0_34, %c0_35], %44 {strides = array<i32>} : memref<4x1x12x4xf32, #tpu.memory_space<vmem>>, vector<1x1x12x4xf32>,
    %cst_36 = arith.constant dense<0.000000e+00> : vector<12x8xf32>
    %45 = tpu.matmul %41, %26, %cst_36 {dimension_numbers = #tpu.dot_dimension_numbers<[1], [0], [0], [1], [0, 0, 1, 1], [], []>} : vector<12x4xf32>, vector<4x8xf32>, vector<12x8xf32> -> vector<12x8xf32>
    %c0_37 = arith.constant 0 : index
    %c0_38 = arith.constant 0 : index
    %c0_39 = arith.constant 0 : index
    %46 = vector.load %arg10[%c0_37, %c0_38, %c0_39] : memref<4x8x32xf32, #tpu.memory_space<vmem>>, vector<1x8x32xf32>
    %47 = vector.shape_cast %46 : vector<1x8x32xf32> to vector<8x32xf32>
    %cst_40 = arith.constant dense<0.000000e+00> : vector<12x32xf32>
    %48 = tpu.matmul %45, %47, %cst_40 {dimension_numbers = #tpu.dot_dimension_numbers<[1], [0], [0], [1], [0, 0, 1, 1], [], []>} : vector<12x8xf32>, vector<8x32xf32>, vector<12x32xf32> -> vector<12x32xf32>
    %c1 = arith.constant 1 : index
    %c0_41 = arith.constant 0 : index
    %c0_42 = arith.constant 0 : index
    %49 = vector.load %arg4[%c1, %c0_41, %c0_42] : memref<4x32x8xf32, #tpu.memory_space<vmem>>, vector<1x32x8xf32>
    %50 = vector.shape_cast %49 : vector<1x32x8xf32> to vector<32x8xf32>
    %cst_43 = arith.constant dense<0.000000e+00> : vector<12x8xf32>
    %51 = tpu.matmul %1, %50, %cst_43 {dimension_numbers = #tpu.dot_dimension_numbers<[1], [0], [0], [1], [0, 0, 1, 1], [], []>} : vector<12x32xf32>, vector<32x8xf32>, vector<12x8xf32> -> vector<12x8xf32>
    %c1_44 = arith.constant 1 : index
    %c0_45 = arith.constant 0 : index
    %c0_46 = arith.constant 0 : index
    %52 = vector.load %arg5[%c1_44, %c0_45, %c0_46] : memref<4x1x8xf32, #tpu.memory_space<vmem>>, vector<1x1x8xf32>
    %53 = vector.shape_cast %52 : vector<1x1x8xf32> to vector<1x8xf32>
    %54 = vector.broadcast %53 : vector<1x8xf32> to vector<12x8xf32>
    %55 = arith.addf %51, %54 : vector<12x8xf32>
    %c1_47 = arith.constant 1 : index
    %c0_48 = arith.constant 0 : index
    %c0_49 = arith.constant 0 : index
    %56 = vector.load %arg6[%c1_47, %c0_48, %c0_49] : memref<4x32x8xf32, #tpu.memory_space<vmem>>, vector<1x32x8xf32>
    %57 = vector.shape_cast %56 : vector<1x32x8xf32> to vector<32x8xf32>
    %cst_50 = arith.constant dense<0.000000e+00> : vector<4x8xf32>
    %58 = tpu.matmul %3, %57, %cst_50 {dimension_numbers = #tpu.dot_dimension_numbers<[1], [0], [0], [1], [0, 0, 1, 1], [], []>} : vector<4x32xf32>, vector<32x8xf32>, vector<4x8xf32> -> vector<4x8xf32>
    %c1_51 = arith.constant 1 : index
    %c0_52 = arith.constant 0 : index
    %c0_53 = arith.constant 0 : index
    %59 = vector.load %arg7[%c1_51, %c0_52, %c0_53] : memref<4x1x8xf32, #tpu.memory_space<vmem>>, vector<1x1x8xf32>
    %60 = vector.shape_cast %59 : vector<1x1x8xf32> to vector<1x8xf32>
    %61 = vector.broadcast %60 : vector<1x8xf32> to vector<4x8xf32>
    %62 = arith.addf %58, %61 : vector<4x8xf32>
    %c1_54 = arith.constant 1 : index
    %c0_55 = arith.constant 0 : index
    %c0_56 = arith.constant 0 : index
    %63 = vector.load %arg8[%c1_54, %c0_55, %c0_56] : memref<4x32x8xf32, #tpu.memory_space<vmem>>, vector<1x32x8xf32>
    %64 = vector.shape_cast %63 : vector<1x32x8xf32> to vector<32x8xf32>
    %cst_57 = arith.constant dense<0.000000e+00> : vector<4x8xf32>
    %65 = tpu.matmul %5, %64, %cst_57 {dimension_numbers = #tpu.dot_dimension_numbers<[1], [0], [0], [1], [0, 0, 1, 1], [], []>} : vector<4x32xf32>, vector<32x8xf32>, vector<4x8xf32> -> vector<4x8xf32>
    %c1_58 = arith.constant 1 : index
    %c0_59 = arith.constant 0 : index
    %c0_60 = arith.constant 0 : index
    %66 = vector.load %arg9[%c1_58, %c0_59, %c0_60] : memref<4x1x8xf32, #tpu.memory_space<vmem>>, vector<1x1x8xf32>
    %67 = vector.shape_cast %66 : vector<1x1x8xf32> to vector<1x8xf32>
    %68 = vector.broadcast %67 : vector<1x8xf32> to vector<4x8xf32>
    %69 = arith.addf %65, %68 : vector<4x8xf32>
    %cst_61 = arith.constant dense<0.000000e+00> : vector<12x4xf32>
    %70 = tpu.matmul %55, %62, %cst_61 {dimension_numbers = #tpu.dot_dimension_numbers<[1], [1], [0], [0], [0, 0, 1, 0], [], []>} : vector<12x8xf32>, vector<4x8xf32>, vector<12x4xf32> -> vector<12x4xf32>
    %71 = tpu.iota {dimensions = array<i32: 0>} : vector<12x4xi32>
    %72 = tpu.iota {dimensions = array<i32: 1>} : vector<12x4xi32>
    %73 = arith.cmpi sle, %72, %71 : vector<12x4xi32>
    %cst_62 = arith.constant -4.2949673E+9 : f32
    %74 = vector.broadcast %cst_62 : f32 to vector<12x4xf32>
    %75 = arith.select %73, %70, %74 : vector<12x4xi1>, vector<12x4xf32>
    %cst_63 = arith.constant dense<0xFF800000> : vector<12xf32>
    %76 = vector.multi_reduction <maximumf>, %75, %cst_63 [1] : vector<12x4xf32> to vector<12xf32>
    %77 = vector.shape_cast %76 : vector<12xf32> to vector<12x1xf32>
    %78 = vector.broadcast %77 : vector<12x1xf32> to vector<12x4xf32>
    %79 = arith.subf %75, %78 : vector<12x4xf32>
    %80 = math.exp %79 : vector<12x4xf32>
    %cst_64 = arith.constant dense<0.000000e+00> : vector<12xf32>
    %81 = vector.multi_reduction <add>, %80, %cst_64 [1] : vector<12x4xf32> to vector<12xf32>
    %82 = vector.shape_cast %81 : vector<12xf32> to vector<12x1xf32>
    %83 = vector.broadcast %82 : vector<12x1xf32> to vector<12x4xf32>
    %84 = arith.divf %80, %83 : vector<12x4xf32>
    %c1_65 = arith.constant 1 : index
    %c0_66 = arith.constant 0 : index
    %c0_67 = arith.constant 0 : index
    %c0_68 = arith.constant 0 : index
    %85 = vector.load %arg21[%c1_65, %c0_66, %c0_67, %c0_68] : memref<4x1x12x4xf32, #tpu.memory_space<vmem>>, vector<1x1x12x4xf32>
    %86 = vector.shape_cast %85 : vector<1x1x12x4xf32> to vector<12x4xf32>
    %87 = vector.shape_cast %84 : vector<12x4xf32> to vector<1x1x12x4xf32>
    tpu.vector_store %arg21[%c1_65, %c0_66, %c0_67, %c0_68], %87 {strides = array<i32>} : memref<4x1x12x4xf32, #tpu.memory_space<vmem>>, vector<1x1x12x4xf32>,
    %cst_69 = arith.constant dense<0.000000e+00> : vector<12x8xf32>
    %88 = tpu.matmul %84, %69, %cst_69 {dimension_numbers = #tpu.dot_dimension_numbers<[1], [0], [0], [1], [0, 0, 1, 1], [], []>} : vector<12x4xf32>, vector<4x8xf32>, vector<12x8xf32> -> vector<12x8xf32>
    %c1_70 = arith.constant 1 : index
    %c0_71 = arith.constant 0 : index
    %c0_72 = arith.constant 0 : index
    %89 = vector.load %arg10[%c1_70, %c0_71, %c0_72] : memref<4x8x32xf32, #tpu.memory_space<vmem>>, vector<1x8x32xf32>
    %90 = vector.shape_cast %89 : vector<1x8x32xf32> to vector<8x32xf32>
    %cst_73 = arith.constant dense<0.000000e+00> : vector<12x32xf32>
    %91 = tpu.matmul %88, %90, %cst_73 {dimension_numbers = #tpu.dot_dimension_numbers<[1], [0], [0], [1], [0, 0, 1, 1], [], []>} : vector<12x8xf32>, vector<8x32xf32>, vector<12x32xf32> -> vector<12x32xf32>
    %92 = arith.addf %48, %91 : vector<12x32xf32>
    %c2 = arith.constant 2 : index
    %c0_74 = arith.constant 0 : index
    %c0_75 = arith.constant 0 : index
    %93 = vector.load %arg4[%c2, %c0_74, %c0_75] : memref<4x32x8xf32, #tpu.memory_space<vmem>>, vector<1x32x8xf32>
    %94 = vector.shape_cast %93 : vector<1x32x8xf32> to vector<32x8xf32>
    %cst_76 = arith.constant dense<0.000000e+00> : vector<12x8xf32>
    %95 = tpu.matmul %1, %94, %cst_76 {dimension_numbers = #tpu.dot_dimension_numbers<[1], [0], [0], [1], [0, 0, 1, 1], [], []>} : vector<12x32xf32>, vector<32x8xf32>, vector<12x8xf32> -> vector<12x8xf32>
    %c2_77 = arith.constant 2 : index
    %c0_78 = arith.constant 0 : index
    %c0_79 = arith.constant 0 : index
    %96 = vector.load %arg5[%c2_77, %c0_78, %c0_79] : memref<4x1x8xf32, #tpu.memory_space<vmem>>, vector<1x1x8xf32>
    %97 = vector.shape_cast %96 : vector<1x1x8xf32> to vector<1x8xf32>
    %98 = vector.broadcast %97 : vector<1x8xf32> to vector<12x8xf32>
    %99 = arith.addf %95, %98 : vector<12x8xf32>
    %c2_80 = arith.constant 2 : index
    %c0_81 = arith.constant 0 : index
    %c0_82 = arith.constant 0 : index
    %100 = vector.load %arg6[%c2_80, %c0_81, %c0_82] : memref<4x32x8xf32, #tpu.memory_space<vmem>>, vector<1x32x8xf32>
    %101 = vector.shape_cast %100 : vector<1x32x8xf32> to vector<32x8xf32>
    %cst_83 = arith.constant dense<0.000000e+00> : vector<4x8xf32>
    %102 = tpu.matmul %3, %101, %cst_83 {dimension_numbers = #tpu.dot_dimension_numbers<[1], [0], [0], [1], [0, 0, 1, 1], [], []>} : vector<4x32xf32>, vector<32x8xf32>, vector<4x8xf32> -> vector<4x8xf32>
    %c2_84 = arith.constant 2 : index
    %c0_85 = arith.constant 0 : index
    %c0_86 = arith.constant 0 : index
    %103 = vector.load %arg7[%c2_84, %c0_85, %c0_86] : memref<4x1x8xf32, #tpu.memory_space<vmem>>, vector<1x1x8xf32>
    %104 = vector.shape_cast %103 : vector<1x1x8xf32> to vector<1x8xf32>
    %105 = vector.broadcast %104 : vector<1x8xf32> to vector<4x8xf32>
    %106 = arith.addf %102, %105 : vector<4x8xf32>
    %c2_87 = arith.constant 2 : index
    %c0_88 = arith.constant 0 : index
    %c0_89 = arith.constant 0 : index
    %107 = vector.load %arg8[%c2_87, %c0_88, %c0_89] : memref<4x32x8xf32, #tpu.memory_space<vmem>>, vector<1x32x8xf32>
    %108 = vector.shape_cast %107 : vector<1x32x8xf32> to vector<32x8xf32>
    %cst_90 = arith.constant dense<0.000000e+00> : vector<4x8xf32>
    %109 = tpu.matmul %5, %108, %cst_90 {dimension_numbers = #tpu.dot_dimension_numbers<[1], [0], [0], [1], [0, 0, 1, 1], [], []>} : vector<4x32xf32>, vector<32x8xf32>, vector<4x8xf32> -> vector<4x8xf32>
    %c2_91 = arith.constant 2 : index
    %c0_92 = arith.constant 0 : index
    %c0_93 = arith.constant 0 : index
    %110 = vector.load %arg9[%c2_91, %c0_92, %c0_93] : memref<4x1x8xf32, #tpu.memory_space<vmem>>, vector<1x1x8xf32>
    %111 = vector.shape_cast %110 : vector<1x1x8xf32> to vector<1x8xf32>
    %112 = vector.broadcast %111 : vector<1x8xf32> to vector<4x8xf32>
    %113 = arith.addf %109, %112 : vector<4x8xf32>
    %cst_94 = arith.constant dense<0.000000e+00> : vector<12x4xf32>
    %114 = tpu.matmul %99, %106, %cst_94 {dimension_numbers = #tpu.dot_dimension_numbers<[1], [1], [0], [0], [0, 0, 1, 0], [], []>} : vector<12x8xf32>, vector<4x8xf32>, vector<12x4xf32> -> vector<12x4xf32>
    %115 = tpu.iota {dimensions = array<i32: 0>} : vector<12x4xi32>
    %116 = tpu.iota {dimensions = array<i32: 1>} : vector<12x4xi32>
    %117 = arith.cmpi sle, %116, %115 : vector<12x4xi32>
    %cst_95 = arith.constant -4.2949673E+9 : f32
    %118 = vector.broadcast %cst_95 : f32 to vector<12x4xf32>
    %119 = arith.select %117, %114, %118 : vector<12x4xi1>, vector<12x4xf32>
    %cst_96 = arith.constant dense<0xFF800000> : vector<12xf32>
    %120 = vector.multi_reduction <maximumf>, %119, %cst_96 [1] : vector<12x4xf32> to vector<12xf32>
    %121 = vector.shape_cast %120 : vector<12xf32> to vector<12x1xf32>
    %122 = vector.broadcast %121 : vector<12x1xf32> to vector<12x4xf32>
    %123 = arith.subf %119, %122 : vector<12x4xf32>
    %124 = math.exp %123 : vector<12x4xf32>
    %cst_97 = arith.constant dense<0.000000e+00> : vector<12xf32>
    %125 = vector.multi_reduction <add>, %124, %cst_97 [1] : vector<12x4xf32> to vector<12xf32>
    %126 = vector.shape_cast %125 : vector<12xf32> to vector<12x1xf32>
    %127 = vector.broadcast %126 : vector<12x1xf32> to vector<12x4xf32>
    %128 = arith.divf %124, %127 : vector<12x4xf32>
    %c2_98 = arith.constant 2 : index
    %c0_99 = arith.constant 0 : index
    %c0_100 = arith.constant 0 : index
    %c0_101 = arith.constant 0 : index
    %129 = vector.load %arg21[%c2_98, %c0_99, %c0_100, %c0_101] : memref<4x1x12x4xf32, #tpu.memory_space<vmem>>, vector<1x1x12x4xf32>
    %130 = vector.shape_cast %129 : vector<1x1x12x4xf32> to vector<12x4xf32>
    %131 = vector.shape_cast %128 : vector<12x4xf32> to vector<1x1x12x4xf32>
    tpu.vector_store %arg21[%c2_98, %c0_99, %c0_100, %c0_101], %131 {strides = array<i32>} : memref<4x1x12x4xf32, #tpu.memory_space<vmem>>, vector<1x1x12x4xf32>,
    %cst_102 = arith.constant dense<0.000000e+00> : vector<12x8xf32>
    %132 = tpu.matmul %128, %113, %cst_102 {dimension_numbers = #tpu.dot_dimension_numbers<[1], [0], [0], [1], [0, 0, 1, 1], [], []>} : vector<12x4xf32>, vector<4x8xf32>, vector<12x8xf32> -> vector<12x8xf32>
    %c2_103 = arith.constant 2 : index
    %c0_104 = arith.constant 0 : index
    %c0_105 = arith.constant 0 : index
    %133 = vector.load %arg10[%c2_103, %c0_104, %c0_105] : memref<4x8x32xf32, #tpu.memory_space<vmem>>, vector<1x8x32xf32>
    %134 = vector.shape_cast %133 : vector<1x8x32xf32> to vector<8x32xf32>
    %cst_106 = arith.constant dense<0.000000e+00> : vector<12x32xf32>
    %135 = tpu.matmul %132, %134, %cst_106 {dimension_numbers = #tpu.dot_dimension_numbers<[1], [0], [0], [1], [0, 0, 1, 1], [], []>} : vector<12x8xf32>, vector<8x32xf32>, vector<12x32xf32> -> vector<12x32xf32>
    %136 = arith.addf %92, %135 : vector<12x32xf32>
    %c3 = arith.constant 3 : index
    %c0_107 = arith.constant 0 : index
    %c0_108 = arith.constant 0 : index
    %137 = vector.load %arg4[%c3, %c0_107, %c0_108] : memref<4x32x8xf32, #tpu.memory_space<vmem>>, vector<1x32x8xf32>
    %138 = vector.shape_cast %137 : vector<1x32x8xf32> to vector<32x8xf32>
    %cst_109 = arith.constant dense<0.000000e+00> : vector<12x8xf32>
    %139 = tpu.matmul %1, %138, %cst_109 {dimension_numbers = #tpu.dot_dimension_numbers<[1], [0], [0], [1], [0, 0, 1, 1], [], []>} : vector<12x32xf32>, vector<32x8xf32>, vector<12x8xf32> -> vector<12x8xf32>
    %c3_110 = arith.constant 3 : index
    %c0_111 = arith.constant 0 : index
    %c0_112 = arith.constant 0 : index
    %140 = vector.load %arg5[%c3_110, %c0_111, %c0_112] : memref<4x1x8xf32, #tpu.memory_space<vmem>>, vector<1x1x8xf32>
    %141 = vector.shape_cast %140 : vector<1x1x8xf32> to vector<1x8xf32>
    %142 = vector.broadcast %141 : vector<1x8xf32> to vector<12x8xf32>
    %143 = arith.addf %139, %142 : vector<12x8xf32>
    %c3_113 = arith.constant 3 : index
    %c0_114 = arith.constant 0 : index
    %c0_115 = arith.constant 0 : index
    %144 = vector.load %arg6[%c3_113, %c0_114, %c0_115] : memref<4x32x8xf32, #tpu.memory_space<vmem>>, vector<1x32x8xf32>
    %145 = vector.shape_cast %144 : vector<1x32x8xf32> to vector<32x8xf32>
    %cst_116 = arith.constant dense<0.000000e+00> : vector<4x8xf32>
    %146 = tpu.matmul %3, %145, %cst_116 {dimension_numbers = #tpu.dot_dimension_numbers<[1], [0], [0], [1], [0, 0, 1, 1], [], []>} : vector<4x32xf32>, vector<32x8xf32>, vector<4x8xf32> -> vector<4x8xf32>
    %c3_117 = arith.constant 3 : index
    %c0_118 = arith.constant 0 : index
    %c0_119 = arith.constant 0 : index
    %147 = vector.load %arg7[%c3_117, %c0_118, %c0_119] : memref<4x1x8xf32, #tpu.memory_space<vmem>>, vector<1x1x8xf32>
    %148 = vector.shape_cast %147 : vector<1x1x8xf32> to vector<1x8xf32>
    %149 = vector.broadcast %148 : vector<1x8xf32> to vector<4x8xf32>
    %150 = arith.addf %146, %149 : vector<4x8xf32>
    %c3_120 = arith.constant 3 : index
    %c0_121 = arith.constant 0 : index
    %c0_122 = arith.constant 0 : index
    %151 = vector.load %arg8[%c3_120, %c0_121, %c0_122] : memref<4x32x8xf32, #tpu.memory_space<vmem>>, vector<1x32x8xf32>
    %152 = vector.shape_cast %151 : vector<1x32x8xf32> to vector<32x8xf32>
    %cst_123 = arith.constant dense<0.000000e+00> : vector<4x8xf32>
    %153 = tpu.matmul %5, %152, %cst_123 {dimension_numbers = #tpu.dot_dimension_numbers<[1], [0], [0], [1], [0, 0, 1, 1], [], []>} : vector<4x32xf32>, vector<32x8xf32>, vector<4x8xf32> -> vector<4x8xf32>
    %c3_124 = arith.constant 3 : index
    %c0_125 = arith.constant 0 : index
    %c0_126 = arith.constant 0 : index
    %154 = vector.load %arg9[%c3_124, %c0_125, %c0_126] : memref<4x1x8xf32, #tpu.memory_space<vmem>>, vector<1x1x8xf32>
    %155 = vector.shape_cast %154 : vector<1x1x8xf32> to vector<1x8xf32>
    %156 = vector.broadcast %155 : vector<1x8xf32> to vector<4x8xf32>
    %157 = arith.addf %153, %156 : vector<4x8xf32>
    %cst_127 = arith.constant dense<0.000000e+00> : vector<12x4xf32>
    %158 = tpu.matmul %143, %150, %cst_127 {dimension_numbers = #tpu.dot_dimension_numbers<[1], [1], [0], [0], [0, 0, 1, 0], [], []>} : vector<12x8xf32>, vector<4x8xf32>, vector<12x4xf32> -> vector<12x4xf32>
    %159 = tpu.iota {dimensions = array<i32: 0>} : vector<12x4xi32>
    %160 = tpu.iota {dimensions = array<i32: 1>} : vector<12x4xi32>
    %161 = arith.cmpi sle, %160, %159 : vector<12x4xi32>
    %cst_128 = arith.constant -4.2949673E+9 : f32
    %162 = vector.broadcast %cst_128 : f32 to vector<12x4xf32>
    %163 = arith.select %161, %158, %162 : vector<12x4xi1>, vector<12x4xf32>
    %cst_129 = arith.constant dense<0xFF800000> : vector<12xf32>
    %164 = vector.multi_reduction <maximumf>, %163, %cst_129 [1] : vector<12x4xf32> to vector<12xf32>
    %165 = vector.shape_cast %164 : vector<12xf32> to vector<12x1xf32>
    %166 = vector.broadcast %165 : vector<12x1xf32> to vector<12x4xf32>
    %167 = arith.subf %163, %166 : vector<12x4xf32>
    %168 = math.exp %167 : vector<12x4xf32>
    %cst_130 = arith.constant dense<0.000000e+00> : vector<12xf32>
    %169 = vector.multi_reduction <add>, %168, %cst_130 [1] : vector<12x4xf32> to vector<12xf32>
    %170 = vector.shape_cast %169 : vector<12xf32> to vector<12x1xf32>
    %171 = vector.broadcast %170 : vector<12x1xf32> to vector<12x4xf32>
    %172 = arith.divf %168, %171 : vector<12x4xf32>
    %c3_131 = arith.constant 3 : index
    %c0_132 = arith.constant 0 : index
    %c0_133 = arith.constant 0 : index
    %c0_134 = arith.constant 0 : index
    %173 = vector.load %arg21[%c3_131, %c0_132, %c0_133, %c0_134] : memref<4x1x12x4xf32, #tpu.memory_space<vmem>>, vector<1x1x12x4xf32>
    %174 = vector.shape_cast %173 : vector<1x1x12x4xf32> to vector<12x4xf32>
    %175 = vector.shape_cast %172 : vector<12x4xf32> to vector<1x1x12x4xf32>
    tpu.vector_store %arg21[%c3_131, %c0_132, %c0_133, %c0_134], %175 {strides = array<i32>} : memref<4x1x12x4xf32, #tpu.memory_space<vmem>>, vector<1x1x12x4xf32>,
    %cst_135 = arith.constant dense<0.000000e+00> : vector<12x8xf32>
    %176 = tpu.matmul %172, %157, %cst_135 {dimension_numbers = #tpu.dot_dimension_numbers<[1], [0], [0], [1], [0, 0, 1, 1], [], []>} : vector<12x4xf32>, vector<4x8xf32>, vector<12x8xf32> -> vector<12x8xf32>
    %c3_136 = arith.constant 3 : index
    %c0_137 = arith.constant 0 : index
    %c0_138 = arith.constant 0 : index
    %177 = vector.load %arg10[%c3_136, %c0_137, %c0_138] : memref<4x8x32xf32, #tpu.memory_space<vmem>>, vector<1x8x32xf32>
    %178 = vector.shape_cast %177 : vector<1x8x32xf32> to vector<8x32xf32>
    %cst_139 = arith.constant dense<0.000000e+00> : vector<12x32xf32>
    %179 = tpu.matmul %176, %178, %cst_139 {dimension_numbers = #tpu.dot_dimension_numbers<[1], [0], [0], [1], [0, 0, 1, 1], [], []>} : vector<12x8xf32>, vector<8x32xf32>, vector<12x32xf32> -> vector<12x32xf32>
    %180 = arith.addf %136, %179 : vector<12x32xf32>
    %c0_140 = arith.constant 0 : index
    %c0_141 = arith.constant 0 : index
    %181 = vector.load %arg11[%c0_140, %c0_141] : memref<1x32xf32, #tpu.memory_space<vmem>>, vector<1x32xf32>
    %182 = vector.broadcast %181 : vector<1x32xf32> to vector<12x32xf32>
    %183 = arith.addf %180, %182 : vector<12x32xf32>
    %184 = arith.addf %183, %1 : vector<12x32xf32>
    %cst_142 = arith.constant dense<0.000000e+00> : vector<12xf32>
    %185 = vector.multi_reduction <add>, %184, %cst_142 [1] : vector<12x32xf32> to vector<12xf32>
    %186 = vector.shape_cast %185 : vector<12xf32> to vector<12x1xf32>
    %cst_143 = arith.constant 3.200000e+01 : f32
    %187 = vector.broadcast %cst_143 : f32 to vector<12x1xf32>
    %188 = arith.divf %186, %187 : vector<12x1xf32>
    %189 = vector.broadcast %188 : vector<12x1xf32> to vector<12x32xf32>
    %190 = arith.subf %184, %189 : vector<12x32xf32>
    %191 = arith.mulf %190, %190 : vector<12x32xf32>
    %cst_144 = arith.constant dense<0.000000e+00> : vector<12xf32>
    %192 = vector.multi_reduction <add>, %191, %cst_144 [1] : vector<12x32xf32> to vector<12xf32>
    %193 = vector.shape_cast %192 : vector<12xf32> to vector<12x1xf32>
    %cst_145 = arith.constant 3.200000e+01 : f32
    %194 = vector.broadcast %cst_145 : f32 to vector<12x1xf32>
    %195 = arith.divf %193, %194 : vector<12x1xf32>
    %196 = vector.broadcast %188 : vector<12x1xf32> to vector<12x32xf32>
    %197 = arith.subf %184, %196 : vector<12x32xf32>
    %cst_146 = arith.constant 9.99999974E-6 : f32
    %198 = vector.broadcast %cst_146 : f32 to vector<12x1xf32>
    %199 = arith.addf %195, %198 : vector<12x1xf32>
    %200 = math.rsqrt %199 : vector<12x1xf32>
    %201 = vector.broadcast %200 : vector<12x1xf32> to vector<12x32xf32>
    %202 = arith.mulf %197, %201 : vector<12x32xf32>
    %c0_147 = arith.constant 0 : index
    %c0_148 = arith.constant 0 : index
    %203 = vector.load %arg12[%c0_147, %c0_148] : memref<1x32xf32, #tpu.memory_space<vmem>>, vector<1x32xf32>
    %204 = vector.broadcast %203 : vector<1x32xf32> to vector<12x32xf32>
    %205 = arith.mulf %202, %204 : vector<12x32xf32>
    %c0_149 = arith.constant 0 : index
    %c0_150 = arith.constant 0 : index
    %206 = vector.load %arg13[%c0_149, %c0_150] : memref<1x32xf32, #tpu.memory_space<vmem>>, vector<1x32xf32>
    %207 = vector.broadcast %206 : vector<1x32xf32> to vector<12x32xf32>
    %208 = arith.addf %205, %207 : vector<12x32xf32>
    %c0_151 = arith.constant 0 : index
    %c0_152 = arith.constant 0 : index
    %209 = vector.load %arg14[%c0_151, %c0_152] : memref<32x64xf32, #tpu.memory_space<vmem>>, vector<32x64xf32>
    %cst_153 = arith.constant dense<0.000000e+00> : vector<12x64xf32>
    %210 = tpu.matmul %208, %209, %cst_153 {dimension_numbers = #tpu.dot_dimension_numbers<[1], [0], [0], [1], [0, 0, 1, 1], [], []>} : vector<12x32xf32>, vector<32x64xf32>, vector<12x64xf32> -> vector<12x64xf32>
    %c0_154 = arith.constant 0 : index
    %c0_155 = arith.constant 0 : index
    %211 = vector.load %arg15[%c0_154, %c0_155] : memref<1x64xf32, #tpu.memory_space<vmem>>, vector<1x64xf32>
    %212 = vector.broadcast %211 : vector<1x64xf32> to vector<12x64xf32>
    %213 = arith.addf %210, %212 : vector<12x64xf32>
    %cst_156 = arith.constant 0.000000e+00 : f32
    %214 = vector.broadcast %cst_156 : f32 to vector<12x64xf32>
    %215 = arith.maximumf %213, %214 : vector<12x64xf32>
    %c0_157 = arith.constant 0 : index
    %c0_158 = arith.constant 0 : index
    %216 = vector.load %arg16[%c0_157, %c0_158] : memref<64x32xf32, #tpu.memory_space<vmem>>, vector<64x32xf32>
    %cst_159 = arith.constant dense<0.000000e+00> : vector<12x32xf32>
    %217 = tpu.matmul %215, %216, %cst_159 {dimension_numbers = #tpu.dot_dimension_numbers<[1], [0], [0], [1], [0, 0, 1, 1], [], []>} : vector<12x64xf32>, vector<64x32xf32>, vector<12x32xf32> -> vector<12x32xf32>
    %c0_160 = arith.constant 0 : index
    %c0_161 = arith.constant 0 : index
    %218 = vector.load %arg17[%c0_160, %c0_161] : memref<1x32xf32, #tpu.memory_space<vmem>>, vector<1x32xf32>
    %219 = vector.broadcast %218 : vector<1x32xf32> to vector<12x32xf32>
    %220 = arith.addf %217, %219 : vector<12x32xf32>
    %221 = arith.addf %208, %220 : vector<12x32xf32>
    %cst_162 = arith.constant dense<0.000000e+00> : vector<12xf32>
    %222 = vector.multi_reduction <add>, %221, %cst_162 [1] : vector<12x32xf32> to vector<12xf32>
    %223 = vector.shape_cast %222 : vector<12xf32> to vector<12x1xf32>
    %cst_163 = arith.constant 3.200000e+01 : f32
    %224 = vector.broadcast %cst_163 : f32 to vector<12x1xf32>
    %225 = arith.divf %223, %224 : vector<12x1xf32>
    %226 = vector.broadcast %225 : vector<12x1xf32> to vector<12x32xf32>
    %227 = arith.subf %221, %226 : vector<12x32xf32>
    %228 = arith.mulf %227, %227 : vector<12x32xf32>
    %cst_164 = arith.constant dense<0.000000e+00> : vector<12xf32>
    %229 = vector.multi_reduction <add>, %228, %cst_164 [1] : vector<12x32xf32> to vector<12xf32>
    %230 = vector.shape_cast %229 : vector<12xf32> to vector<12x1xf32>
    %cst_165 = arith.constant 3.200000e+01 : f32
    %231 = vector.broadcast %cst_165 : f32 to vector<12x1xf32>
    %232 = arith.divf %230, %231 : vector<12x1xf32>
    %233 = vector.broadcast %225 : vector<12x1xf32> to vector<12x32xf32>
    %234 = arith.subf %221, %233 : vector<12x32xf32>
    %cst_166 = arith.constant 9.99999974E-6 : f32
    %235 = vector.broadcast %cst_166 : f32 to vector<12x1xf32>
    %236 = arith.addf %232, %235 : vector<12x1xf32>
    %237 = math.rsqrt %236 : vector<12x1xf32>
    %238 = vector.broadcast %237 : vector<12x1xf32> to vector<12x32xf32>
    %239 = arith.mulf %234, %238 : vector<12x32xf32>
    %c0_167 = arith.constant 0 : index
    %c0_168 = arith.constant 0 : index
    %240 = vector.load %arg18[%c0_167, %c0_168] : memref<1x32xf32, #tpu.memory_space<vmem>>, vector<1x32xf32>
    %241 = vector.broadcast %240 : vector<1x32xf32> to vector<12x32xf32>
    %242 = arith.mulf %239, %241 : vector<12x32xf32>
    %c0_169 = arith.constant 0 : index
    %c0_170 = arith.constant 0 : index
    %243 = vector.load %arg19[%c0_169, %c0_170] : memref<1x32xf32, #tpu.memory_space<vmem>>, vector<1x32xf32>
    %244 = vector.broadcast %243 : vector<1x32xf32> to vector<12x32xf32>
    %245 = arith.addf %242, %244 : vector<12x32xf32>
    %c0_171 = arith.constant 0 : index
    %c0_172 = arith.constant 0 : index
    %c0_173 = arith.constant 0 : index
    %246 = vector.load %arg20[%c0_171, %c0_172, %c0_173] : memref<1x12x32xf32, #tpu.memory_space<vmem>>, vector<1x12x32xf32>
    %247 = vector.shape_cast %246 : vector<1x12x32xf32> to vector<12x32xf32>
    %248 = vector.shape_cast %245 : vector<12x32xf32> to vector<1x12x32xf32>
    tpu.vector_store %arg20[%c0_171, %c0_172, %c0_173], %248 {strides = array<i32>} : memref<1x12x32xf32, #tpu.memory_space<vmem>>, vector<1x12x32xf32>,
    return
  }
  func.func @transform_0(%arg0: i32) -> (i32, i32, i32) {
    %c0_i32 = arith.constant 0 : i32
    %c0_i32_0 = arith.constant 0 : i32
    %c0_i32_1 = arith.constant 0 : i32
    return %arg0, %c0_i32, %c0_i32_0 : i32, i32, i32
  }
  func.func @transform_1(%arg0: i32) -> (i32, i32, i32) {
    %c0_i32 = arith.constant 0 : i32
    %c0_i32_0 = arith.constant 0 : i32
    %c0_i32_1 = arith.constant 0 : i32
    return %arg0, %c0_i32, %c0_i32_0 : i32, i32, i32
  }
  func.func @transform_2(%arg0: i32) -> (i32, i32, i32) {
    %c0_i32 = arith.constant 0 : i32
    %c0_i32_0 = arith.constant 0 : i32
    %c0_i32_1 = arith.constant 0 : i32
    return %arg0, %c0_i32, %c0_i32_0 : i32, i32, i32
  }
  func.func @transform_3(%arg0: i32) -> (i32, i32, i32) {
    %c0_i32 = arith.constant 0 : i32
    %c0_i32_0 = arith.constant 0 : i32
    %c0_i32_1 = arith.constant 0 : i32
    %c0_i32_2 = arith.constant 0 : i32
    return %c0_i32, %c0_i32_0, %c0_i32_1 : i32, i32, i32
  }
  func.func @transform_4(%arg0: i32) -> (i32, i32, i32) {
    %c0_i32 = arith.constant 0 : i32
    %c0_i32_0 = arith.constant 0 : i32
    %c0_i32_1 = arith.constant 0 : i32
    %c0_i32_2 = arith.constant 0 : i32
    return %c0_i32, %c0_i32_0, %c0_i32_1 : i32, i32, i32
  }
  func.func @transform_5(%arg0: i32) -> (i32, i32, i32) {
    %c0_i32 = arith.constant 0 : i32
    %c0_i32_0 = arith.constant 0 : i32
    %c0_i32_1 = arith.constant 0 : i32
    %c0_i32_2 = arith.constant 0 : i32
    return %c0_i32, %c0_i32_0, %c0_i32_1 : i32, i32, i32
  }
  func.func @transform_6(%arg0: i32) -> (i32, i32, i32) {
    %c0_i32 = arith.constant 0 : i32
    %c0_i32_0 = arith.constant 0 : i32
    %c0_i32_1 = arith.constant 0 : i32
    %c0_i32_2 = arith.constant 0 : i32
    return %c0_i32, %c0_i32_0, %c0_i32_1 : i32, i32, i32
  }
  func.func @transform_7(%arg0: i32) -> (i32, i32, i32) {
    %c0_i32 = arith.constant 0 : i32
    %c0_i32_0 = arith.constant 0 : i32
    %c0_i32_1 = arith.constant 0 : i32
    %c0_i32_2 = arith.constant 0 : i32
    return %c0_i32, %c0_i32_0, %c0_i32_1 : i32, i32, i32
  }
  func.func @transform_8(%arg0: i32) -> (i32, i32, i32) {
    %c0_i32 = arith.constant 0 : i32
    %c0_i32_0 = arith.constant 0 : i32
    %c0_i32_1 = arith.constant 0 : i32
    %c0_i32_2 = arith.constant 0 : i32
    return %c0_i32, %c0_i32_0, %c0_i32_1 : i32, i32, i32
  }
  func.func @transform_9(%arg0: i32) -> (i32, i32, i32) {
    %c0_i32 = arith.constant 0 : i32
    %c0_i32_0 = arith.constant 0 : i32
    %c0_i32_1 = arith.constant 0 : i32
    %c0_i32_2 = arith.constant 0 : i32
    return %c0_i32, %c0_i32_0, %c0_i32_1 : i32, i32, i32
  }
  func.func @transform_10(%arg0: i32) -> (i32, i32) {
    %c0_i32 = arith.constant 0 : i32
    %c0_i32_0 = arith.constant 0 : i32
    %c0_i32_1 = arith.constant 0 : i32
    return %c0_i32, %c0_i32_0 : i32, i32
  }
  func.func @transform_11(%arg0: i32) -> (i32, i32) {
    %c0_i32 = arith.constant 0 : i32
    %c0_i32_0 = arith.constant 0 : i32
    %c0_i32_1 = arith.constant 0 : i32
    return %c0_i32, %c0_i32_0 : i32, i32
  }
  func.func @transform_12(%arg0: i32) -> (i32, i32) {
    %c0_i32 = arith.constant 0 : i32
    %c0_i32_0 = arith.constant 0 : i32
    %c0_i32_1 = arith.constant 0 : i32
    return %c0_i32, %c0_i32_0 : i32, i32
  }
  func.func @transform_13(%arg0: i32) -> (i32, i32) {
    %c0_i32 = arith.constant 0 : i32
    %c0_i32_0 = arith.constant 0 : i32
    %c0_i32_1 = arith.constant 0 : i32
    return %c0_i32, %c0_i32_0 : i32, i32
  }
  func.func @transform_14(%arg0: i32) -> (i32, i32) {
    %c0_i32 = arith.constant 0 : i32
    %c0_i32_0 = arith.constant 0 : i32
    %c0_i32_1 = arith.constant 0 : i32
    return %c0_i32, %c0_i32_0 : i32, i32
  }
  func.func @transform_15(%arg0: i32) -> (i32, i32) {
    %c0_i32 = arith.constant 0 : i32
    %c0_i32_0 = arith.constant 0 : i32
    %c0_i32_1 = arith.constant 0 : i32
    return %c0_i32, %c0_i32_0 : i32, i32
  }
  func.func @transform_16(%arg0: i32) -> (i32, i32) {
    %c0_i32 = arith.constant 0 : i32
    %c0_i32_0 = arith.constant 0 : i32
    %c0_i32_1 = arith.constant 0 : i32
    return %c0_i32, %c0_i32_0 : i32, i32
  }
  func.func @transform_17(%arg0: i32) -> (i32, i32) {
    %c0_i32 = arith.constant 0 : i32
    %c0_i32_0 = arith.constant 0 : i32
    %c0_i32_1 = arith.constant 0 : i32
    return %c0_i32, %c0_i32_0 : i32, i32
  }
  func.func @transform_18(%arg0: i32) -> (i32, i32) {
    %c0_i32 = arith.constant 0 : i32
    %c0_i32_0 = arith.constant 0 : i32
    %c0_i32_1 = arith.constant 0 : i32
    return %c0_i32, %c0_i32_0 : i32, i32
  }
  func.func @transform_19(%arg0: i32) -> (i32, i32, i32) {
    %c0_i32 = arith.constant 0 : i32
    %c0_i32_0 = arith.constant 0 : i32
    %c0_i32_1 = arith.constant 0 : i32
    return %arg0, %c0_i32, %c0_i32_0 : i32, i32, i32
  }
  func.func @transform_20(%arg0: i32) -> (i32, i32, i32, i32) {
    %c0_i32 = arith.constant 0 : i32
    %c0_i32_0 = arith.constant 0 : i32
    %c0_i32_1 = arith.constant 0 : i32
    %c0_i32_2 = arith.constant 0 : i32
    return %c0_i32, %arg0, %c0_i32_0, %c0_i32_1 : i32, i32, i32, i32
  }
}

module attributes {stable_mosaic.version = 11 : i64} {
  func.func @_encoder_kernel(%arg0: i32, %arg1: memref<1x4x32xf32, #tpu.memory_space<vmem>>, %arg2: memref<1x12x32xf32, #tpu.memory_space<vmem>>, %arg3: memref<1x12x32xf32, #tpu.memory_space<vmem>>, %arg4: memref<4x32x8xf32, #tpu.memory_space<vmem>>, %arg5: memref<4x1x8xf32, #tpu.memory_space<vmem>>, %arg6: memref<4x32x8xf32, #tpu.memory_space<vmem>>, %arg7: memref<4x1x8xf32, #tpu.memory_space<vmem>>, %arg8: memref<4x32x8xf32, #tpu.memory_space<vmem>>, %arg9: memref<4x1x8xf32, #tpu.memory_space<vmem>>, %arg10: memref<4x8x32xf32, #tpu.memory_space<vmem>>, %arg11: memref<1x32xf32, #tpu.memory_space<vmem>>, %arg12: memref<1x32xf32, #tpu.memory_space<vmem>>, %arg13: memref<1x32xf32, #tpu.memory_space<vmem>>, %arg14: memref<32x64xf32, #tpu.memory_space<vmem>>, %arg15: memref<1x64xf32, #tpu.memory_space<vmem>>, %arg16: memref<64x32xf32, #tpu.memory_space<vmem>>, %arg17: memref<1x32xf32, #tpu.memory_space<vmem>>, %arg18: memref<1x32xf32, #tpu.memory_space<vmem>>, %arg19: memref<1x32xf32, #tpu.memory_space<vmem>>, %arg20: memref<1x4x32xf32, #tpu.memory_space<vmem>>, %arg21: memref<4x1x4x12xf32, #tpu.memory_space<vmem>>) attributes {dimension_semantics = [#tpu.dimension_semantics<parallel>], iteration_bounds = array<i64: 2>, scalar_prefetch = 0 : i64, scratch_operands = 0 : i64, tpu.core_type = #tpu.core_type<tc>, window_params = [{transform_indices = @transform_0, window_bounds = array<i64: 1, 4, 32>}, {transform_indices = @transform_1, window_bounds = array<i64: 1, 12, 32>}, {transform_indices = @transform_2, window_bounds = array<i64: 1, 12, 32>}, {pipeline_mode = #tpu.pipeline_mode<synchronous>, transform_indices = @transform_3, window_bounds = array<i64: 4, 32, 8>}, {pipeline_mode = #tpu.pipeline_mode<synchronous>, transform_indices = @transform_4, window_bounds = array<i64: 4, 1, 8>}, {pipeline_mode = #tpu.pipeline_mode<synchronous>, transform_indices = @transform_5, window_bounds = array<i64: 4, 32, 8>}, {pipeline_mode = #tpu.pipeline_mode<synchronous>, transform_indices = @transform_6, window_bounds = array<i64: 4, 1, 8>}, {pipeline_mode = #tpu.pipeline_mode<synchronous>, transform_indices = @transform_7, window_bounds = array<i64: 4, 32, 8>}, {pipeline_mode = #tpu.pipeline_mode<synchronous>, transform_indices = @transform_8, window_bounds = array<i64: 4, 1, 8>}, {pipeline_mode = #tpu.pipeline_mode<synchronous>, transform_indices = @transform_9, window_bounds = array<i64: 4, 8, 32>}, {pipeline_mode = #tpu.pipeline_mode<synchronous>, transform_indices = @transform_10, window_bounds = array<i64: 1, 32>}, {pipeline_mode = #tpu.pipeline_mode<synchronous>, transform_indices = @transform_11, window_bounds = array<i64: 1, 32>}, {pipeline_mode = #tpu.pipeline_mode<synchronous>, transform_indices = @transform_12, window_bounds = array<i64: 1, 32>}, {pipeline_mode = #tpu.pipeline_mode<synchronous>, transform_indices = @transform_13, window_bounds = array<i64: 32, 64>}, {pipeline_mode = #tpu.pipeline_mode<synchronous>, transform_indices = @transform_14, window_bounds = array<i64: 1, 64>}, {pipeline_mode = #tpu.pipeline_mode<synchronous>, transform_indices = @transform_15, window_bounds = array<i64: 64, 32>}, {pipeline_mode = #tpu.pipeline_mode<synchronous>, transform_indices = @transform_16, window_bounds = array<i64: 1, 32>}, {pipeline_mode = #tpu.pipeline_mode<synchronous>, transform_indices = @transform_17, window_bounds = array<i64: 1, 32>}, {pipeline_mode = #tpu.pipeline_mode<synchronous>, transform_indices = @transform_18, window_bounds = array<i64: 1, 32>}, {transform_indices = @transform_19, window_bounds = array<i64: 1, 4, 32>}, {transform_indices = @transform_20, window_bounds = array<i64: 4, 1, 4, 12>}]} {
    %c0 = arith.constant 0 : index
    %c0_0 = arith.constant 0 : index
    %c0_1 = arith.constant 0 : index
    %0 = vector.load %arg1[%c0, %c0_0, %c0_1] : memref<1x4x32xf32, #tpu.memory_space<vmem>>, vector<1x4x32xf32>
    %1 = vector.shape_cast %0 : vector<1x4x32xf32> to vector<4x32xf32>
    %c0_2 = arith.constant 0 : index
    %c0_3 = arith.constant 0 : index
    %c0_4 = arith.constant 0 : index
    %2 = vector.load %arg2[%c0_2, %c0_3, %c0_4] : memref<1x12x32xf32, #tpu.memory_space<vmem>>, vector<1x12x32xf32>
    %3 = vector.shape_cast %2 : vector<1x12x32xf32> to vector<12x32xf32>
    %c0_5 = arith.constant 0 : index
    %c0_6 = arith.constant 0 : index
    %c0_7 = arith.constant 0 : index
    %4 = vector.load %arg3[%c0_5, %c0_6, %c0_7] : memref<1x12x32xf32, #tpu.memory_space<vmem>>, vector<1x12x32xf32>
    %5 = vector.shape_cast %4 : vector<1x12x32xf32> to vector<12x32xf32>
    %c0_8 = arith.constant 0 : index
    %c0_9 = arith.constant 0 : index
    %c0_10 = arith.constant 0 : index
    %6 = vector.load %arg4[%c0_8, %c0_9, %c0_10] : memref<4x32x8xf32, #tpu.memory_space<vmem>>, vector<1x32x8xf32>
    %7 = vector.shape_cast %6 : vector<1x32x8xf32> to vector<32x8xf32>
    %cst = arith.constant dense<0.000000e+00> : vector<4x8xf32>
    %8 = tpu.matmul %1, %7, %cst {dimension_numbers = #tpu.dot_dimension_numbers<[1], [0], [0], [1], [0, 0, 1, 1], [], []>} : vector<4x32xf32>, vector<32x8xf32>, vector<4x8xf32> -> vector<4x8xf32>
    %c0_11 = arith.constant 0 : index
    %c0_12 = arith.constant 0 : index
    %c0_13 = arith.constant 0 : index
    %9 = vector.load %arg5[%c0_11, %c0_12, %c0_13] : memref<4x1x8xf32, #tpu.memory_space<vmem>>, vector<1x1x8xf32>
    %10 = vector.shape_cast %9 : vector<1x1x8xf32> to vector<1x8xf32>
    %11 = vector.broadcast %10 : vector<1x8xf32> to vector<4x8xf32>
    %12 = arith.addf %8, %11 : vector<4x8xf32>
    %c0_14 = arith.constant 0 : index
    %c0_15 = arith.constant 0 : index
    %c0_16 = arith.constant 0 : index
    %13 = vector.load %arg6[%c0_14, %c0_15, %c0_16] : memref<4x32x8xf32, #tpu.memory_space<vmem>>, vector<1x32x8xf32>
    %14 = vector.shape_cast %13 : vector<1x32x8xf32> to vector<32x8xf32>
    %cst_17 = arith.constant dense<0.000000e+00> : vector<12x8xf32>
    %15 = tpu.matmul %3, %14, %cst_17 {dimension_numbers = #tpu.dot_dimension_numbers<[1], [0], [0], [1], [0, 0, 1, 1], [], []>} : vector<12x32xf32>, vector<32x8xf32>, vector<12x8xf32> -> vector<12x8xf32>
    %c0_18 = arith.constant 0 : index
    %c0_19 = arith.constant 0 : index
    %c0_20 = arith.constant 0 : index
    %16 = vector.load %arg7[%c0_18, %c0_19, %c0_20] : memref<4x1x8xf32, #tpu.memory_space<vmem>>, vector<1x1x8xf32>
    %17 = vector.shape_cast %16 : vector<1x1x8xf32> to vector<1x8xf32>
    %18 = vector.broadcast %17 : vector<1x8xf32> to vector<12x8xf32>
    %19 = arith.addf %15, %18 : vector<12x8xf32>
    %c0_21 = arith.constant 0 : index
    %c0_22 = arith.constant 0 : index
    %c0_23 = arith.constant 0 : index
    %20 = vector.load %arg8[%c0_21, %c0_22, %c0_23] : memref<4x32x8xf32, #tpu.memory_space<vmem>>, vector<1x32x8xf32>
    %21 = vector.shape_cast %20 : vector<1x32x8xf32> to vector<32x8xf32>
    %cst_24 = arith.constant dense<0.000000e+00> : vector<12x8xf32>
    %22 = tpu.matmul %5, %21, %cst_24 {dimension_numbers = #tpu.dot_dimension_numbers<[1], [0], [0], [1], [0, 0, 1, 1], [], []>} : vector<12x32xf32>, vector<32x8xf32>, vector<12x8xf32> -> vector<12x8xf32>
    %c0_25 = arith.constant 0 : index
    %c0_26 = arith.constant 0 : index
    %c0_27 = arith.constant 0 : index
    %23 = vector.load %arg9[%c0_25, %c0_26, %c0_27] : memref<4x1x8xf32, #tpu.memory_space<vmem>>, vector<1x1x8xf32>
    %24 = vector.shape_cast %23 : vector<1x1x8xf32> to vector<1x8xf32>
    %25 = vector.broadcast %24 : vector<1x8xf32> to vector<12x8xf32>
    %26 = arith.addf %22, %25 : vector<12x8xf32>
    %cst_28 = arith.constant dense<0.000000e+00> : vector<4x12xf32>
    %27 = tpu.matmul %12, %19, %cst_28 {dimension_numbers = #tpu.dot_dimension_numbers<[1], [1], [0], [0], [0, 0, 1, 0], [], []>} : vector<4x8xf32>, vector<12x8xf32>, vector<4x12xf32> -> vector<4x12xf32>
    %28 = tpu.iota {dimensions = array<i32: 0>} : vector<4x12xi32>
    %29 = tpu.iota {dimensions = array<i32: 1>} : vector<4x12xi32>
    %30 = arith.cmpi sle, %29, %28 : vector<4x12xi32>
    %cst_29 = arith.constant -4.2949673E+9 : f32
    %31 = vector.broadcast %cst_29 : f32 to vector<4x12xf32>
    %32 = arith.select %30, %27, %31 : vector<4x12xi1>, vector<4x12xf32>
    %cst_30 = arith.constant dense<0xFF800000> : vector<4xf32>
    %33 = vector.multi_reduction <maximumf>, %32, %cst_30 [1] : vector<4x12xf32> to vector<4xf32>
    %34 = vector.shape_cast %33 : vector<4xf32> to vector<4x1xf32>
    %35 = vector.broadcast %34 : vector<4x1xf32> to vector<4x12xf32>
    %36 = arith.subf %32, %35 : vector<4x12xf32>
    %37 = math.exp %36 : vector<4x12xf32>
    %cst_31 = arith.constant dense<0.000000e+00> : vector<4xf32>
    %38 = vector.multi_reduction <add>, %37, %cst_31 [1] : vector<4x12xf32> to vector<4xf32>
    %39 = vector.shape_cast %38 : vector<4xf32> to vector<4x1xf32>
    %40 = vector.broadcast %39 : vector<4x1xf32> to vector<4x12xf32>
    %41 = arith.divf %37, %40 : vector<4x12xf32>
    %c0_32 = arith.constant 0 : index
    %c0_33 = arith.constant 0 : index
    %c0_34 = arith.constant 0 : index
    %c0_35 = arith.constant 0 : index
    %42 = vector.load %arg21[%c0_32, %c0_33, %c0_34, %c0_35] : memref<4x1x4x12xf32, #tpu.memory_space<vmem>>, vector<1x1x4x12xf32>
    %43 = vector.shape_cast %42 : vector<1x1x4x12xf32> to vector<4x12xf32>
    %44 = vector.shape_cast %41 : vector<4x12xf32> to vector<1x1x4x12xf32>
    tpu.vector_store %arg21[%c0_32, %c0_33, %c0_34, %c0_35], %44 {strides = array<i32>} : memref<4x1x4x12xf32, #tpu.memory_space<vmem>>, vector<1x1x4x12xf32>,
    %cst_36 = arith.constant dense<0.000000e+00> : vector<4x8xf32>
    %45 = tpu.matmul %41, %26, %cst_36 {dimension_numbers = #tpu.dot_dimension_numbers<[1], [0], [0], [1], [0, 0, 1, 1], [], []>} : vector<4x12xf32>, vector<12x8xf32>, vector<4x8xf32> -> vector<4x8xf32>
    %c0_37 = arith.constant 0 : index
    %c0_38 = arith.constant 0 : index
    %c0_39 = arith.constant 0 : index
    %46 = vector.load %arg10[%c0_37, %c0_38, %c0_39] : memref<4x8x32xf32, #tpu.memory_space<vmem>>, vector<1x8x32xf32>
    %47 = vector.shape_cast %46 : vector<1x8x32xf32> to vector<8x32xf32>
    %cst_40 = arith.constant dense<0.000000e+00> : vector<4x32xf32>
    %48 = tpu.matmul %45, %47, %cst_40 {dimension_numbers = #tpu.dot_dimension_numbers<[1], [0], [0], [1], [0, 0, 1, 1], [], []>} : vector<4x8xf32>, vector<8x32xf32>, vector<4x32xf32> -> vector<4x32xf32>
    %c1 = arith.constant 1 : index
    %c0_41 = arith.constant 0 : index
    %c0_42 = arith.constant 0 : index
    %49 = vector.load %arg4[%c1, %c0_41, %c0_42] : memref<4x32x8xf32, #tpu.memory_space<vmem>>, vector<1x32x8xf32>
    %50 = vector.shape_cast %49 : vector<1x32x8xf32> to vector<32x8xf32>
    %cst_43 = arith.constant dense<0.000000e+00> : vector<4x8xf32>
    %51 = tpu.matmul %1, %50, %cst_43 {dimension_numbers = #tpu.dot_dimension_numbers<[1], [0], [0], [1], [0, 0, 1, 1], [], []>} : vector<4x32xf32>, vector<32x8xf32>, vector<4x8xf32> -> vector<4x8xf32>
    %c1_44 = arith.constant 1 : index
    %c0_45 = arith.constant 0 : index
    %c0_46 = arith.constant 0 : index
    %52 = vector.load %arg5[%c1_44, %c0_45, %c0_46] : memref<4x1x8xf32, #tpu.memory_space<vmem>>, vector<1x1x8xf32>
    %53 = vector.shape_cast %52 : vector<1x1x8xf32> to vector<1x8xf32>
    %54 = vector.broadcast %53 : vector<1x8xf32> to vector<4x8xf32>
    %55 = arith.addf %51, %54 : vector<4x8xf32>
    %c1_47 = arith.constant 1 : index
    %c0_48 = arith.constant 0 : index
    %c0_49 = arith.constant 0 : index
    %56 = vector.load %arg6[%c1_47, %c0_48, %c0_49] : memref<4x32x8xf32, #tpu.memory_space<vmem>>, vector<1x32x8xf32>
    %57 = vector.shape_cast %56 : vector<1x32x8xf32> to vector<32x8xf32>
    %cst_50 = arith.constant dense<0.000000e+00> : vector<12x8xf32>
    %58 = tpu.matmul %3, %57, %cst_50 {dimension_numbers = #tpu.dot_dimension_numbers<[1], [0], [0], [1], [0, 0, 1, 1], [], []>} : vector<12x32xf32>, vector<32x8xf32>, vector<12x8xf32> -> vector<12x8xf32>
    %c1_51 = arith.constant 1 : index
    %c0_52 = arith.constant 0 : index
    %c0_53 = arith.constant 0 : index
    %59 = vector.load %arg7[%c1_51, %c0_52, %c0_53] : memref<4x1x8xf32, #tpu.memory_space<vmem>>, vector<1x1x8xf32>
    %60 = vector.shape_cast %59 : vector<1x1x8xf32> to vector<1x8xf32>
    %61 = vector.broadcast %60 : vector<1x8xf32> to vector<12x8xf32>
    %62 = arith.addf %58, %61 : vector<12x8xf32>
    %c1_54 = arith.constant 1 : index
    %c0_55 = arith.constant 0 : index
    %c0_56 = arith.constant 0 : index
    %63 = vector.load %arg8[%c1_54, %c0_55, %c0_56] : memref<4x32x8xf32, #tpu.memory_space<vmem>>, vector<1x32x8xf32>
    %64 = vector.shape_cast %63 : vector<1x32x8xf32> to vector<32x8xf32>
    %cst_57 = arith.constant dense<0.000000e+00> : vector<12x8xf32>
    %65 = tpu.matmul %5, %64, %cst_57 {dimension_numbers = #tpu.dot_dimension_numbers<[1], [0], [0], [1], [0, 0, 1, 1], [], []>} : vector<12x32xf32>, vector<32x8xf32>, vector<12x8xf32> -> vector<12x8xf32>
    %c1_58 = arith.constant 1 : index
    %c0_59 = arith.constant 0 : index
    %c0_60 = arith.constant 0 : index
    %66 = vector.load %arg9[%c1_58, %c0_59, %c0_60] : memref<4x1x8xf32, #tpu.memory_space<vmem>>, vector<1x1x8xf32>
    %67 = vector.shape_cast %66 : vector<1x1x8xf32> to vector<1x8xf32>
    %68 = vector.broadcast %67 : vector<1x8xf32> to vector<12x8xf32>
    %69 = arith.addf %65, %68 : vector<12x8xf32>
    %cst_61 = arith.constant dense<0.000000e+00> : vector<4x12xf32>
    %70 = tpu.matmul %55, %62, %cst_61 {dimension_numbers = #tpu.dot_dimension_numbers<[1], [1], [0], [0], [0, 0, 1, 0], [], []>} : vector<4x8xf32>, vector<12x8xf32>, vector<4x12xf32> -> vector<4x12xf32>
    %71 = tpu.iota {dimensions = array<i32: 0>} : vector<4x12xi32>
    %72 = tpu.iota {dimensions = array<i32: 1>} : vector<4x12xi32>
    %73 = arith.cmpi sle, %72, %71 : vector<4x12xi32>
    %cst_62 = arith.constant -4.2949673E+9 : f32
    %74 = vector.broadcast %cst_62 : f32 to vector<4x12xf32>
    %75 = arith.select %73, %70, %74 : vector<4x12xi1>, vector<4x12xf32>
    %cst_63 = arith.constant dense<0xFF800000> : vector<4xf32>
    %76 = vector.multi_reduction <maximumf>, %75, %cst_63 [1] : vector<4x12xf32> to vector<4xf32>
    %77 = vector.shape_cast %76 : vector<4xf32> to vector<4x1xf32>
    %78 = vector.broadcast %77 : vector<4x1xf32> to vector<4x12xf32>
    %79 = arith.subf %75, %78 : vector<4x12xf32>
    %80 = math.exp %79 : vector<4x12xf32>
    %cst_64 = arith.constant dense<0.000000e+00> : vector<4xf32>
    %81 = vector.multi_reduction <add>, %80, %cst_64 [1] : vector<4x12xf32> to vector<4xf32>
    %82 = vector.shape_cast %81 : vector<4xf32> to vector<4x1xf32>
    %83 = vector.broadcast %82 : vector<4x1xf32> to vector<4x12xf32>
    %84 = arith.divf %80, %83 : vector<4x12xf32>
    %c1_65 = arith.constant 1 : index
    %c0_66 = arith.constant 0 : index
    %c0_67 = arith.constant 0 : index
    %c0_68 = arith.constant 0 : index
    %85 = vector.load %arg21[%c1_65, %c0_66, %c0_67, %c0_68] : memref<4x1x4x12xf32, #tpu.memory_space<vmem>>, vector<1x1x4x12xf32>
    %86 = vector.shape_cast %85 : vector<1x1x4x12xf32> to vector<4x12xf32>
    %87 = vector.shape_cast %84 : vector<4x12xf32> to vector<1x1x4x12xf32>
    tpu.vector_store %arg21[%c1_65, %c0_66, %c0_67, %c0_68], %87 {strides = array<i32>} : memref<4x1x4x12xf32, #tpu.memory_space<vmem>>, vector<1x1x4x12xf32>,
    %cst_69 = arith.constant dense<0.000000e+00> : vector<4x8xf32>
    %88 = tpu.matmul %84, %69, %cst_69 {dimension_numbers = #tpu.dot_dimension_numbers<[1], [0], [0], [1], [0, 0, 1, 1], [], []>} : vector<4x12xf32>, vector<12x8xf32>, vector<4x8xf32> -> vector<4x8xf32>
    %c1_70 = arith.constant 1 : index
    %c0_71 = arith.constant 0 : index
    %c0_72 = arith.constant 0 : index
    %89 = vector.load %arg10[%c1_70, %c0_71, %c0_72] : memref<4x8x32xf32, #tpu.memory_space<vmem>>, vector<1x8x32xf32>
    %90 = vector.shape_cast %89 : vector<1x8x32xf32> to vector<8x32xf32>
    %cst_73 = arith.constant dense<0.000000e+00> : vector<4x32xf32>
    %91 = tpu.matmul %88, %90, %cst_73 {dimension_numbers = #tpu.dot_dimension_numbers<[1], [0], [0], [1], [0, 0, 1, 1], [], []>} : vector<4x8xf32>, vector<8x32xf32>, vector<4x32xf32> -> vector<4x32xf32>
    %92 = arith.addf %48, %91 : vector<4x32xf32>
    %c2 = arith.constant 2 : index
    %c0_74 = arith.constant 0 : index
    %c0_75 = arith.constant 0 : index
    %93 = vector.load %arg4[%c2, %c0_74, %c0_75] : memref<4x32x8xf32, #tpu.memory_space<vmem>>, vector<1x32x8xf32>
    %94 = vector.shape_cast %93 : vector<1x32x8xf32> to vector<32x8xf32>
    %cst_76 = arith.constant dense<0.000000e+00> : vector<4x8xf32>
    %95 = tpu.matmul %1, %94, %cst_76 {dimension_numbers = #tpu.dot_dimension_numbers<[1], [0], [0], [1], [0, 0, 1, 1], [], []>} : vector<4x32xf32>, vector<32x8xf32>, vector<4x8xf32> -> vector<4x8xf32>
    %c2_77 = arith.constant 2 : index
    %c0_78 = arith.constant 0 : index
    %c0_79 = arith.constant 0 : index
    %96 = vector.load %arg5[%c2_77, %c0_78, %c0_79] : memref<4x1x8xf32, #tpu.memory_space<vmem>>, vector<1x1x8xf32>
    %97 = vector.shape_cast %96 : vector<1x1x8xf32> to vector<1x8xf32>
    %98 = vector.broadcast %97 : vector<1x8xf32> to vector<4x8xf32>
    %99 = arith.addf %95, %98 : vector<4x8xf32>
    %c2_80 = arith.constant 2 : index
    %c0_81 = arith.constant 0 : index
    %c0_82 = arith.constant 0 : index
    %100 = vector.load %arg6[%c2_80, %c0_81, %c0_82] : memref<4x32x8xf32, #tpu.memory_space<vmem>>, vector<1x32x8xf32>
    %101 = vector.shape_cast %100 : vector<1x32x8xf32> to vector<32x8xf32>
    %cst_83 = arith.constant dense<0.000000e+00> : vector<12x8xf32>
    %102 = tpu.matmul %3, %101, %cst_83 {dimension_numbers = #tpu.dot_dimension_numbers<[1], [0], [0], [1], [0, 0, 1, 1], [], []>} : vector<12x32xf32>, vector<32x8xf32>, vector<12x8xf32> -> vector<12x8xf32>
    %c2_84 = arith.constant 2 : index
    %c0_85 = arith.constant 0 : index
    %c0_86 = arith.constant 0 : index
    %103 = vector.load %arg7[%c2_84, %c0_85, %c0_86] : memref<4x1x8xf32, #tpu.memory_space<vmem>>, vector<1x1x8xf32>
    %104 = vector.shape_cast %103 : vector<1x1x8xf32> to vector<1x8xf32>
    %105 = vector.broadcast %104 : vector<1x8xf32> to vector<12x8xf32>
    %106 = arith.addf %102, %105 : vector<12x8xf32>
    %c2_87 = arith.constant 2 : index
    %c0_88 = arith.constant 0 : index
    %c0_89 = arith.constant 0 : index
    %107 = vector.load %arg8[%c2_87, %c0_88, %c0_89] : memref<4x32x8xf32, #tpu.memory_space<vmem>>, vector<1x32x8xf32>
    %108 = vector.shape_cast %107 : vector<1x32x8xf32> to vector<32x8xf32>
    %cst_90 = arith.constant dense<0.000000e+00> : vector<12x8xf32>
    %109 = tpu.matmul %5, %108, %cst_90 {dimension_numbers = #tpu.dot_dimension_numbers<[1], [0], [0], [1], [0, 0, 1, 1], [], []>} : vector<12x32xf32>, vector<32x8xf32>, vector<12x8xf32> -> vector<12x8xf32>
    %c2_91 = arith.constant 2 : index
    %c0_92 = arith.constant 0 : index
    %c0_93 = arith.constant 0 : index
    %110 = vector.load %arg9[%c2_91, %c0_92, %c0_93] : memref<4x1x8xf32, #tpu.memory_space<vmem>>, vector<1x1x8xf32>
    %111 = vector.shape_cast %110 : vector<1x1x8xf32> to vector<1x8xf32>
    %112 = vector.broadcast %111 : vector<1x8xf32> to vector<12x8xf32>
    %113 = arith.addf %109, %112 : vector<12x8xf32>
    %cst_94 = arith.constant dense<0.000000e+00> : vector<4x12xf32>
    %114 = tpu.matmul %99, %106, %cst_94 {dimension_numbers = #tpu.dot_dimension_numbers<[1], [1], [0], [0], [0, 0, 1, 0], [], []>} : vector<4x8xf32>, vector<12x8xf32>, vector<4x12xf32> -> vector<4x12xf32>
    %115 = tpu.iota {dimensions = array<i32: 0>} : vector<4x12xi32>
    %116 = tpu.iota {dimensions = array<i32: 1>} : vector<4x12xi32>
    %117 = arith.cmpi sle, %116, %115 : vector<4x12xi32>
    %cst_95 = arith.constant -4.2949673E+9 : f32
    %118 = vector.broadcast %cst_95 : f32 to vector<4x12xf32>
    %119 = arith.select %117, %114, %118 : vector<4x12xi1>, vector<4x12xf32>
    %cst_96 = arith.constant dense<0xFF800000> : vector<4xf32>
    %120 = vector.multi_reduction <maximumf>, %119, %cst_96 [1] : vector<4x12xf32> to vector<4xf32>
    %121 = vector.shape_cast %120 : vector<4xf32> to vector<4x1xf32>
    %122 = vector.broadcast %121 : vector<4x1xf32> to vector<4x12xf32>
    %123 = arith.subf %119, %122 : vector<4x12xf32>
    %124 = math.exp %123 : vector<4x12xf32>
    %cst_97 = arith.constant dense<0.000000e+00> : vector<4xf32>
    %125 = vector.multi_reduction <add>, %124, %cst_97 [1] : vector<4x12xf32> to vector<4xf32>
    %126 = vector.shape_cast %125 : vector<4xf32> to vector<4x1xf32>
    %127 = vector.broadcast %126 : vector<4x1xf32> to vector<4x12xf32>
    %128 = arith.divf %124, %127 : vector<4x12xf32>
    %c2_98 = arith.constant 2 : index
    %c0_99 = arith.constant 0 : index
    %c0_100 = arith.constant 0 : index
    %c0_101 = arith.constant 0 : index
    %129 = vector.load %arg21[%c2_98, %c0_99, %c0_100, %c0_101] : memref<4x1x4x12xf32, #tpu.memory_space<vmem>>, vector<1x1x4x12xf32>
    %130 = vector.shape_cast %129 : vector<1x1x4x12xf32> to vector<4x12xf32>
    %131 = vector.shape_cast %128 : vector<4x12xf32> to vector<1x1x4x12xf32>
    tpu.vector_store %arg21[%c2_98, %c0_99, %c0_100, %c0_101], %131 {strides = array<i32>} : memref<4x1x4x12xf32, #tpu.memory_space<vmem>>, vector<1x1x4x12xf32>,
    %cst_102 = arith.constant dense<0.000000e+00> : vector<4x8xf32>
    %132 = tpu.matmul %128, %113, %cst_102 {dimension_numbers = #tpu.dot_dimension_numbers<[1], [0], [0], [1], [0, 0, 1, 1], [], []>} : vector<4x12xf32>, vector<12x8xf32>, vector<4x8xf32> -> vector<4x8xf32>
    %c2_103 = arith.constant 2 : index
    %c0_104 = arith.constant 0 : index
    %c0_105 = arith.constant 0 : index
    %133 = vector.load %arg10[%c2_103, %c0_104, %c0_105] : memref<4x8x32xf32, #tpu.memory_space<vmem>>, vector<1x8x32xf32>
    %134 = vector.shape_cast %133 : vector<1x8x32xf32> to vector<8x32xf32>
    %cst_106 = arith.constant dense<0.000000e+00> : vector<4x32xf32>
    %135 = tpu.matmul %132, %134, %cst_106 {dimension_numbers = #tpu.dot_dimension_numbers<[1], [0], [0], [1], [0, 0, 1, 1], [], []>} : vector<4x8xf32>, vector<8x32xf32>, vector<4x32xf32> -> vector<4x32xf32>
    %136 = arith.addf %92, %135 : vector<4x32xf32>
    %c3 = arith.constant 3 : index
    %c0_107 = arith.constant 0 : index
    %c0_108 = arith.constant 0 : index
    %137 = vector.load %arg4[%c3, %c0_107, %c0_108] : memref<4x32x8xf32, #tpu.memory_space<vmem>>, vector<1x32x8xf32>
    %138 = vector.shape_cast %137 : vector<1x32x8xf32> to vector<32x8xf32>
    %cst_109 = arith.constant dense<0.000000e+00> : vector<4x8xf32>
    %139 = tpu.matmul %1, %138, %cst_109 {dimension_numbers = #tpu.dot_dimension_numbers<[1], [0], [0], [1], [0, 0, 1, 1], [], []>} : vector<4x32xf32>, vector<32x8xf32>, vector<4x8xf32> -> vector<4x8xf32>
    %c3_110 = arith.constant 3 : index
    %c0_111 = arith.constant 0 : index
    %c0_112 = arith.constant 0 : index
    %140 = vector.load %arg5[%c3_110, %c0_111, %c0_112] : memref<4x1x8xf32, #tpu.memory_space<vmem>>, vector<1x1x8xf32>
    %141 = vector.shape_cast %140 : vector<1x1x8xf32> to vector<1x8xf32>
    %142 = vector.broadcast %141 : vector<1x8xf32> to vector<4x8xf32>
    %143 = arith.addf %139, %142 : vector<4x8xf32>
    %c3_113 = arith.constant 3 : index
    %c0_114 = arith.constant 0 : index
    %c0_115 = arith.constant 0 : index
    %144 = vector.load %arg6[%c3_113, %c0_114, %c0_115] : memref<4x32x8xf32, #tpu.memory_space<vmem>>, vector<1x32x8xf32>
    %145 = vector.shape_cast %144 : vector<1x32x8xf32> to vector<32x8xf32>
    %cst_116 = arith.constant dense<0.000000e+00> : vector<12x8xf32>
    %146 = tpu.matmul %3, %145, %cst_116 {dimension_numbers = #tpu.dot_dimension_numbers<[1], [0], [0], [1], [0, 0, 1, 1], [], []>} : vector<12x32xf32>, vector<32x8xf32>, vector<12x8xf32> -> vector<12x8xf32>
    %c3_117 = arith.constant 3 : index
    %c0_118 = arith.constant 0 : index
    %c0_119 = arith.constant 0 : index
    %147 = vector.load %arg7[%c3_117, %c0_118, %c0_119] : memref<4x1x8xf32, #tpu.memory_space<vmem>>, vector<1x1x8xf32>
    %148 = vector.shape_cast %147 : vector<1x1x8xf32> to vector<1x8xf32>
    %149 = vector.broadcast %148 : vector<1x8xf32> to vector<12x8xf32>
    %150 = arith.addf %146, %149 : vector<12x8xf32>
    %c3_120 = arith.constant 3 : index
    %c0_121 = arith.constant 0 : index
    %c0_122 = arith.constant 0 : index
    %151 = vector.load %arg8[%c3_120, %c0_121, %c0_122] : memref<4x32x8xf32, #tpu.memory_space<vmem>>, vector<1x32x8xf32>
    %152 = vector.shape_cast %151 : vector<1x32x8xf32> to vector<32x8xf32>
    %cst_123 = arith.constant dense<0.000000e+00> : vector<12x8xf32>
    %153 = tpu.matmul %5, %152, %cst_123 {dimension_numbers = #tpu.dot_dimension_numbers<[1], [0], [0], [1], [0, 0, 1, 1], [], []>} : vector<12x32xf32>, vector<32x8xf32>, vector<12x8xf32> -> vector<12x8xf32>
    %c3_124 = arith.constant 3 : index
    %c0_125 = arith.constant 0 : index
    %c0_126 = arith.constant 0 : index
    %154 = vector.load %arg9[%c3_124, %c0_125, %c0_126] : memref<4x1x8xf32, #tpu.memory_space<vmem>>, vector<1x1x8xf32>
    %155 = vector.shape_cast %154 : vector<1x1x8xf32> to vector<1x8xf32>
    %156 = vector.broadcast %155 : vector<1x8xf32> to vector<12x8xf32>
    %157 = arith.addf %153, %156 : vector<12x8xf32>
    %cst_127 = arith.constant dense<0.000000e+00> : vector<4x12xf32>
    %158 = tpu.matmul %143, %150, %cst_127 {dimension_numbers = #tpu.dot_dimension_numbers<[1], [1], [0], [0], [0, 0, 1, 0], [], []>} : vector<4x8xf32>, vector<12x8xf32>, vector<4x12xf32> -> vector<4x12xf32>
    %159 = tpu.iota {dimensions = array<i32: 0>} : vector<4x12xi32>
    %160 = tpu.iota {dimensions = array<i32: 1>} : vector<4x12xi32>
    %161 = arith.cmpi sle, %160, %159 : vector<4x12xi32>
    %cst_128 = arith.constant -4.2949673E+9 : f32
    %162 = vector.broadcast %cst_128 : f32 to vector<4x12xf32>
    %163 = arith.select %161, %158, %162 : vector<4x12xi1>, vector<4x12xf32>
    %cst_129 = arith.constant dense<0xFF800000> : vector<4xf32>
    %164 = vector.multi_reduction <maximumf>, %163, %cst_129 [1] : vector<4x12xf32> to vector<4xf32>
    %165 = vector.shape_cast %164 : vector<4xf32> to vector<4x1xf32>
    %166 = vector.broadcast %165 : vector<4x1xf32> to vector<4x12xf32>
    %167 = arith.subf %163, %166 : vector<4x12xf32>
    %168 = math.exp %167 : vector<4x12xf32>
    %cst_130 = arith.constant dense<0.000000e+00> : vector<4xf32>
    %169 = vector.multi_reduction <add>, %168, %cst_130 [1] : vector<4x12xf32> to vector<4xf32>
    %170 = vector.shape_cast %169 : vector<4xf32> to vector<4x1xf32>
    %171 = vector.broadcast %170 : vector<4x1xf32> to vector<4x12xf32>
    %172 = arith.divf %168, %171 : vector<4x12xf32>
    %c3_131 = arith.constant 3 : index
    %c0_132 = arith.constant 0 : index
    %c0_133 = arith.constant 0 : index
    %c0_134 = arith.constant 0 : index
    %173 = vector.load %arg21[%c3_131, %c0_132, %c0_133, %c0_134] : memref<4x1x4x12xf32, #tpu.memory_space<vmem>>, vector<1x1x4x12xf32>
    %174 = vector.shape_cast %173 : vector<1x1x4x12xf32> to vector<4x12xf32>
    %175 = vector.shape_cast %172 : vector<4x12xf32> to vector<1x1x4x12xf32>
    tpu.vector_store %arg21[%c3_131, %c0_132, %c0_133, %c0_134], %175 {strides = array<i32>} : memref<4x1x4x12xf32, #tpu.memory_space<vmem>>, vector<1x1x4x12xf32>,
    %cst_135 = arith.constant dense<0.000000e+00> : vector<4x8xf32>
    %176 = tpu.matmul %172, %157, %cst_135 {dimension_numbers = #tpu.dot_dimension_numbers<[1], [0], [0], [1], [0, 0, 1, 1], [], []>} : vector<4x12xf32>, vector<12x8xf32>, vector<4x8xf32> -> vector<4x8xf32>
    %c3_136 = arith.constant 3 : index
    %c0_137 = arith.constant 0 : index
    %c0_138 = arith.constant 0 : index
    %177 = vector.load %arg10[%c3_136, %c0_137, %c0_138] : memref<4x8x32xf32, #tpu.memory_space<vmem>>, vector<1x8x32xf32>
    %178 = vector.shape_cast %177 : vector<1x8x32xf32> to vector<8x32xf32>
    %cst_139 = arith.constant dense<0.000000e+00> : vector<4x32xf32>
    %179 = tpu.matmul %176, %178, %cst_139 {dimension_numbers = #tpu.dot_dimension_numbers<[1], [0], [0], [1], [0, 0, 1, 1], [], []>} : vector<4x8xf32>, vector<8x32xf32>, vector<4x32xf32> -> vector<4x32xf32>
    %180 = arith.addf %136, %179 : vector<4x32xf32>
    %c0_140 = arith.constant 0 : index
    %c0_141 = arith.constant 0 : index
    %181 = vector.load %arg11[%c0_140, %c0_141] : memref<1x32xf32, #tpu.memory_space<vmem>>, vector<1x32xf32>
    %182 = vector.broadcast %181 : vector<1x32xf32> to vector<4x32xf32>
    %183 = arith.addf %180, %182 : vector<4x32xf32>
    %184 = arith.addf %183, %1 : vector<4x32xf32>
    %cst_142 = arith.constant dense<0.000000e+00> : vector<4xf32>
    %185 = vector.multi_reduction <add>, %184, %cst_142 [1] : vector<4x32xf32> to vector<4xf32>
    %186 = vector.shape_cast %185 : vector<4xf32> to vector<4x1xf32>
    %cst_143 = arith.constant 3.200000e+01 : f32
    %187 = vector.broadcast %cst_143 : f32 to vector<4x1xf32>
    %188 = arith.divf %186, %187 : vector<4x1xf32>
    %189 = vector.broadcast %188 : vector<4x1xf32> to vector<4x32xf32>
    %190 = arith.subf %184, %189 : vector<4x32xf32>
    %191 = arith.mulf %190, %190 : vector<4x32xf32>
    %cst_144 = arith.constant dense<0.000000e+00> : vector<4xf32>
    %192 = vector.multi_reduction <add>, %191, %cst_144 [1] : vector<4x32xf32> to vector<4xf32>
    %193 = vector.shape_cast %192 : vector<4xf32> to vector<4x1xf32>
    %cst_145 = arith.constant 3.200000e+01 : f32
    %194 = vector.broadcast %cst_145 : f32 to vector<4x1xf32>
    %195 = arith.divf %193, %194 : vector<4x1xf32>
    %196 = vector.broadcast %188 : vector<4x1xf32> to vector<4x32xf32>
    %197 = arith.subf %184, %196 : vector<4x32xf32>
    %cst_146 = arith.constant 9.99999974E-6 : f32
    %198 = vector.broadcast %cst_146 : f32 to vector<4x1xf32>
    %199 = arith.addf %195, %198 : vector<4x1xf32>
    %200 = math.rsqrt %199 : vector<4x1xf32>
    %201 = vector.broadcast %200 : vector<4x1xf32> to vector<4x32xf32>
    %202 = arith.mulf %197, %201 : vector<4x32xf32>
    %c0_147 = arith.constant 0 : index
    %c0_148 = arith.constant 0 : index
    %203 = vector.load %arg12[%c0_147, %c0_148] : memref<1x32xf32, #tpu.memory_space<vmem>>, vector<1x32xf32>
    %204 = vector.broadcast %203 : vector<1x32xf32> to vector<4x32xf32>
    %205 = arith.mulf %202, %204 : vector<4x32xf32>
    %c0_149 = arith.constant 0 : index
    %c0_150 = arith.constant 0 : index
    %206 = vector.load %arg13[%c0_149, %c0_150] : memref<1x32xf32, #tpu.memory_space<vmem>>, vector<1x32xf32>
    %207 = vector.broadcast %206 : vector<1x32xf32> to vector<4x32xf32>
    %208 = arith.addf %205, %207 : vector<4x32xf32>
    %c0_151 = arith.constant 0 : index
    %c0_152 = arith.constant 0 : index
    %209 = vector.load %arg14[%c0_151, %c0_152] : memref<32x64xf32, #tpu.memory_space<vmem>>, vector<32x64xf32>
    %cst_153 = arith.constant dense<0.000000e+00> : vector<4x64xf32>
    %210 = tpu.matmul %208, %209, %cst_153 {dimension_numbers = #tpu.dot_dimension_numbers<[1], [0], [0], [1], [0, 0, 1, 1], [], []>} : vector<4x32xf32>, vector<32x64xf32>, vector<4x64xf32> -> vector<4x64xf32>
    %c0_154 = arith.constant 0 : index
    %c0_155 = arith.constant 0 : index
    %211 = vector.load %arg15[%c0_154, %c0_155] : memref<1x64xf32, #tpu.memory_space<vmem>>, vector<1x64xf32>
    %212 = vector.broadcast %211 : vector<1x64xf32> to vector<4x64xf32>
    %213 = arith.addf %210, %212 : vector<4x64xf32>
    %cst_156 = arith.constant 0.000000e+00 : f32
    %214 = vector.broadcast %cst_156 : f32 to vector<4x64xf32>
    %215 = arith.maximumf %213, %214 : vector<4x64xf32>
    %c0_157 = arith.constant 0 : index
    %c0_158 = arith.constant 0 : index
    %216 = vector.load %arg16[%c0_157, %c0_158] : memref<64x32xf32, #tpu.memory_space<vmem>>, vector<64x32xf32>
    %cst_159 = arith.constant dense<0.000000e+00> : vector<4x32xf32>
    %217 = tpu.matmul %215, %216, %cst_159 {dimension_numbers = #tpu.dot_dimension_numbers<[1], [0], [0], [1], [0, 0, 1, 1], [], []>} : vector<4x64xf32>, vector<64x32xf32>, vector<4x32xf32> -> vector<4x32xf32>
    %c0_160 = arith.constant 0 : index
    %c0_161 = arith.constant 0 : index
    %218 = vector.load %arg17[%c0_160, %c0_161] : memref<1x32xf32, #tpu.memory_space<vmem>>, vector<1x32xf32>
    %219 = vector.broadcast %218 : vector<1x32xf32> to vector<4x32xf32>
    %220 = arith.addf %217, %219 : vector<4x32xf32>
    %221 = arith.addf %208, %220 : vector<4x32xf32>
    %cst_162 = arith.constant dense<0.000000e+00> : vector<4xf32>
    %222 = vector.multi_reduction <add>, %221, %cst_162 [1] : vector<4x32xf32> to vector<4xf32>
    %223 = vector.shape_cast %222 : vector<4xf32> to vector<4x1xf32>
    %cst_163 = arith.constant 3.200000e+01 : f32
    %224 = vector.broadcast %cst_163 : f32 to vector<4x1xf32>
    %225 = arith.divf %223, %224 : vector<4x1xf32>
    %226 = vector.broadcast %225 : vector<4x1xf32> to vector<4x32xf32>
    %227 = arith.subf %221, %226 : vector<4x32xf32>
    %228 = arith.mulf %227, %227 : vector<4x32xf32>
    %cst_164 = arith.constant dense<0.000000e+00> : vector<4xf32>
    %229 = vector.multi_reduction <add>, %228, %cst_164 [1] : vector<4x32xf32> to vector<4xf32>
    %230 = vector.shape_cast %229 : vector<4xf32> to vector<4x1xf32>
    %cst_165 = arith.constant 3.200000e+01 : f32
    %231 = vector.broadcast %cst_165 : f32 to vector<4x1xf32>
    %232 = arith.divf %230, %231 : vector<4x1xf32>
    %233 = vector.broadcast %225 : vector<4x1xf32> to vector<4x32xf32>
    %234 = arith.subf %221, %233 : vector<4x32xf32>
    %cst_166 = arith.constant 9.99999974E-6 : f32
    %235 = vector.broadcast %cst_166 : f32 to vector<4x1xf32>
    %236 = arith.addf %232, %235 : vector<4x1xf32>
    %237 = math.rsqrt %236 : vector<4x1xf32>
    %238 = vector.broadcast %237 : vector<4x1xf32> to vector<4x32xf32>
    %239 = arith.mulf %234, %238 : vector<4x32xf32>
    %c0_167 = arith.constant 0 : index
    %c0_168 = arith.constant 0 : index
    %240 = vector.load %arg18[%c0_167, %c0_168] : memref<1x32xf32, #tpu.memory_space<vmem>>, vector<1x32xf32>
    %241 = vector.broadcast %240 : vector<1x32xf32> to vector<4x32xf32>
    %242 = arith.mulf %239, %241 : vector<4x32xf32>
    %c0_169 = arith.constant 0 : index
    %c0_170 = arith.constant 0 : index
    %243 = vector.load %arg19[%c0_169, %c0_170] : memref<1x32xf32, #tpu.memory_space<vmem>>, vector<1x32xf32>
    %244 = vector.broadcast %243 : vector<1x32xf32> to vector<4x32xf32>
    %245 = arith.addf %242, %244 : vector<4x32xf32>
    %c0_171 = arith.constant 0 : index
    %c0_172 = arith.constant 0 : index
    %c0_173 = arith.constant 0 : index
    %246 = vector.load %arg20[%c0_171, %c0_172, %c0_173] : memref<1x4x32xf32, #tpu.memory_space<vmem>>, vector<1x4x32xf32>
    %247 = vector.shape_cast %246 : vector<1x4x32xf32> to vector<4x32xf32>
    %248 = vector.shape_cast %245 : vector<4x32xf32> to vector<1x4x32xf32>
    tpu.vector_store %arg20[%c0_171, %c0_172, %c0_173], %248 {strides = array<i32>} : memref<1x4x32xf32, #tpu.memory_space<vmem>>, vector<1x4x32xf32>,
    return
  }
  func.func @transform_0(%arg0: i32) -> (i32, i32, i32) {
    %c0_i32 = arith.constant 0 : i32
    %c0_i32_0 = arith.constant 0 : i32
    %c0_i32_1 = arith.constant 0 : i32
    return %arg0, %c0_i32, %c0_i32_0 : i32, i32, i32
  }
  func.func @transform_1(%arg0: i32) -> (i32, i32, i32) {
    %c0_i32 = arith.constant 0 : i32
    %c0_i32_0 = arith.constant 0 : i32
    %c0_i32_1 = arith.constant 0 : i32
    return %arg0, %c0_i32, %c0_i32_0 : i32, i32, i32
  }
  func.func @transform_2(%arg0: i32) -> (i32, i32, i32) {
    %c0_i32 = arith.constant 0 : i32
    %c0_i32_0 = arith.constant 0 : i32
    %c0_i32_1 = arith.constant 0 : i32
    return %arg0, %c0_i32, %c0_i32_0 : i32, i32, i32
  }
  func.func @transform_3(%arg0: i32) -> (i32, i32, i32) {
    %c0_i32 = arith.constant 0 : i32
    %c0_i32_0 = arith.constant 0 : i32
    %c0_i32_1 = arith.constant 0 : i32
    %c0_i32_2 = arith.constant 0 : i32
    return %c0_i32, %c0_i32_0, %c0_i32_1 : i32, i32, i32
  }
  func.func @transform_4(%arg0: i32) -> (i32, i32, i32) {
    %c0_i32 = arith.constant 0 : i32
    %c0_i32_0 = arith.constant 0 : i32
    %c0_i32_1 = arith.constant 0 : i32
    %c0_i32_2 = arith.constant 0 : i32
    return %c0_i32, %c0_i32_0, %c0_i32_1 : i32, i32, i32
  }
  func.func @transform_5(%arg0: i32) -> (i32, i32, i32) {
    %c0_i32 = arith.constant 0 : i32
    %c0_i32_0 = arith.constant 0 : i32
    %c0_i32_1 = arith.constant 0 : i32
    %c0_i32_2 = arith.constant 0 : i32
    return %c0_i32, %c0_i32_0, %c0_i32_1 : i32, i32, i32
  }
  func.func @transform_6(%arg0: i32) -> (i32, i32, i32) {
    %c0_i32 = arith.constant 0 : i32
    %c0_i32_0 = arith.constant 0 : i32
    %c0_i32_1 = arith.constant 0 : i32
    %c0_i32_2 = arith.constant 0 : i32
    return %c0_i32, %c0_i32_0, %c0_i32_1 : i32, i32, i32
  }
  func.func @transform_7(%arg0: i32) -> (i32, i32, i32) {
    %c0_i32 = arith.constant 0 : i32
    %c0_i32_0 = arith.constant 0 : i32
    %c0_i32_1 = arith.constant 0 : i32
    %c0_i32_2 = arith.constant 0 : i32
    return %c0_i32, %c0_i32_0, %c0_i32_1 : i32, i32, i32
  }
  func.func @transform_8(%arg0: i32) -> (i32, i32, i32) {
    %c0_i32 = arith.constant 0 : i32
    %c0_i32_0 = arith.constant 0 : i32
    %c0_i32_1 = arith.constant 0 : i32
    %c0_i32_2 = arith.constant 0 : i32
    return %c0_i32, %c0_i32_0, %c0_i32_1 : i32, i32, i32
  }
  func.func @transform_9(%arg0: i32) -> (i32, i32, i32) {
    %c0_i32 = arith.constant 0 : i32
    %c0_i32_0 = arith.constant 0 : i32
    %c0_i32_1 = arith.constant 0 : i32
    %c0_i32_2 = arith.constant 0 : i32
    return %c0_i32, %c0_i32_0, %c0_i32_1 : i32, i32, i32
  }
  func.func @transform_10(%arg0: i32) -> (i32, i32) {
    %c0_i32 = arith.constant 0 : i32
    %c0_i32_0 = arith.constant 0 : i32
    %c0_i32_1 = arith.constant 0 : i32
    return %c0_i32, %c0_i32_0 : i32, i32
  }
  func.func @transform_11(%arg0: i32) -> (i32, i32) {
    %c0_i32 = arith.constant 0 : i32
    %c0_i32_0 = arith.constant 0 : i32
    %c0_i32_1 = arith.constant 0 : i32
    return %c0_i32, %c0_i32_0 : i32, i32
  }
  func.func @transform_12(%arg0: i32) -> (i32, i32) {
    %c0_i32 = arith.constant 0 : i32
    %c0_i32_0 = arith.constant 0 : i32
    %c0_i32_1 = arith.constant 0 : i32
    return %c0_i32, %c0_i32_0 : i32, i32
  }
  func.func @transform_13(%arg0: i32) -> (i32, i32) {
    %c0_i32 = arith.constant 0 : i32
    %c0_i32_0 = arith.constant 0 : i32
    %c0_i32_1 = arith.constant 0 : i32
    return %c0_i32, %c0_i32_0 : i32, i32
  }
  func.func @transform_14(%arg0: i32) -> (i32, i32) {
    %c0_i32 = arith.constant 0 : i32
    %c0_i32_0 = arith.constant 0 : i32
    %c0_i32_1 = arith.constant 0 : i32
    return %c0_i32, %c0_i32_0 : i32, i32
  }
  func.func @transform_15(%arg0: i32) -> (i32, i32) {
    %c0_i32 = arith.constant 0 : i32
    %c0_i32_0 = arith.constant 0 : i32
    %c0_i32_1 = arith.constant 0 : i32
    return %c0_i32, %c0_i32_0 : i32, i32
  }
  func.func @transform_16(%arg0: i32) -> (i32, i32) {
    %c0_i32 = arith.constant 0 : i32
    %c0_i32_0 = arith.constant 0 : i32
    %c0_i32_1 = arith.constant 0 : i32
    return %c0_i32, %c0_i32_0 : i32, i32
  }
  func.func @transform_17(%arg0: i32) -> (i32, i32) {
    %c0_i32 = arith.constant 0 : i32
    %c0_i32_0 = arith.constant 0 : i32
    %c0_i32_1 = arith.constant 0 : i32
    return %c0_i32, %c0_i32_0 : i32, i32
  }
  func.func @transform_18(%arg0: i32) -> (i32, i32) {
    %c0_i32 = arith.constant 0 : i32
    %c0_i32_0 = arith.constant 0 : i32
    %c0_i32_1 = arith.constant 0 : i32
    return %c0_i32, %c0_i32_0 : i32, i32
  }
  func.func @transform_19(%arg0: i32) -> (i32, i32, i32) {
    %c0_i32 = arith.constant 0 : i32
    %c0_i32_0 = arith.constant 0 : i32
    %c0_i32_1 = arith.constant 0 : i32
    return %arg0, %c0_i32, %c0_i32_0 : i32, i32, i32
  }
  func.func @transform_20(%arg0: i32) -> (i32, i32, i32, i32) {
    %c0_i32 = arith.constant 0 : i32
    %c0_i32_0 = arith.constant 0 : i32
    %c0_i32_1 = arith.constant 0 : i32
    %c0_i32_2 = arith.constant 0 : i32
    return %c0_i32, %arg0, %c0_i32_0, %c0_i32_1 : i32, i32, i32, i32
  }
}

module attributes {stable_mosaic.version = 11 : i64} {
  func.func @_output_kernel(%arg0: i32, %arg1: memref<2x384xf32, #tpu.memory_space<vmem>>, %arg2: memref<2x128xf32, #tpu.memory_space<vmem>>, %arg3: memref<384x4xf32, #tpu.memory_space<vmem>>, %arg4: memref<1x4xf32, #tpu.memory_space<vmem>>, %arg5: memref<128x4xf32, #tpu.memory_space<vmem>>, %arg6: memref<1x4xf32, #tpu.memory_space<vmem>>, %arg7: memref<2x1xf32, #tpu.memory_space<vmem>>, %arg8: memref<4xf32, #tpu.memory_space<smem>>, %arg9: memref<2x4xf32, #tpu.memory_space<vmem>>) attributes {dimension_semantics = [#tpu.dimension_semantics<arbitrary>], iteration_bounds = array<i64: 1>, scalar_prefetch = 0 : i64, scratch_operands = 0 : i64, tpu.core_type = #tpu.core_type<tc>, window_params = [{pipeline_mode = #tpu.pipeline_mode<synchronous>, transform_indices = @transform_0, window_bounds = array<i64: 2, 384>}, {pipeline_mode = #tpu.pipeline_mode<synchronous>, transform_indices = @transform_1, window_bounds = array<i64: 2, 128>}, {pipeline_mode = #tpu.pipeline_mode<synchronous>, transform_indices = @transform_2, window_bounds = array<i64: 384, 4>}, {pipeline_mode = #tpu.pipeline_mode<synchronous>, transform_indices = @transform_3, window_bounds = array<i64: 1, 4>}, {pipeline_mode = #tpu.pipeline_mode<synchronous>, transform_indices = @transform_4, window_bounds = array<i64: 128, 4>}, {pipeline_mode = #tpu.pipeline_mode<synchronous>, transform_indices = @transform_5, window_bounds = array<i64: 1, 4>}, {pipeline_mode = #tpu.pipeline_mode<synchronous>, transform_indices = @transform_6, window_bounds = array<i64: 2, 1>}, {transform_indices = @transform_7, window_bounds = array<i64: 4>}, {pipeline_mode = #tpu.pipeline_mode<synchronous>, transform_indices = @transform_8, window_bounds = array<i64: 2, 4>}]} {
    %c0 = arith.constant 0 : index
    %c0_0 = arith.constant 0 : index
    %0 = vector.load %arg1[%c0, %c0_0] : memref<2x384xf32, #tpu.memory_space<vmem>>, vector<2x384xf32>
    %c0_1 = arith.constant 0 : index
    %c0_2 = arith.constant 0 : index
    %1 = vector.load %arg3[%c0_1, %c0_2] : memref<384x4xf32, #tpu.memory_space<vmem>>, vector<384x4xf32>
    %cst = arith.constant dense<0.000000e+00> : vector<2x4xf32>
    %2 = tpu.matmul %0, %1, %cst {dimension_numbers = #tpu.dot_dimension_numbers<[1], [0], [0], [1], [0, 0, 1, 1], [], []>} : vector<2x384xf32>, vector<384x4xf32>, vector<2x4xf32> -> vector<2x4xf32>
    %c0_3 = arith.constant 0 : index
    %c0_4 = arith.constant 0 : index
    %3 = vector.load %arg4[%c0_3, %c0_4] : memref<1x4xf32, #tpu.memory_space<vmem>>, vector<1x4xf32>
    %4 = vector.broadcast %3 : vector<1x4xf32> to vector<2x4xf32>
    %5 = arith.addf %2, %4 : vector<2x4xf32>
    %c0_5 = arith.constant 0 : index
    %c0_6 = arith.constant 0 : index
    %6 = vector.load %arg2[%c0_5, %c0_6] : memref<2x128xf32, #tpu.memory_space<vmem>>, vector<2x128xf32>
    %c0_7 = arith.constant 0 : index
    %c0_8 = arith.constant 0 : index
    %7 = vector.load %arg5[%c0_7, %c0_8] : memref<128x4xf32, #tpu.memory_space<vmem>>, vector<128x4xf32>
    %cst_9 = arith.constant dense<0.000000e+00> : vector<2x4xf32>
    %8 = tpu.matmul %6, %7, %cst_9 {dimension_numbers = #tpu.dot_dimension_numbers<[1], [0], [0], [1], [0, 0, 1, 1], [], []>} : vector<2x128xf32>, vector<128x4xf32>, vector<2x4xf32> -> vector<2x4xf32>
    %c0_10 = arith.constant 0 : index
    %c0_11 = arith.constant 0 : index
    %9 = vector.load %arg6[%c0_10, %c0_11] : memref<1x4xf32, #tpu.memory_space<vmem>>, vector<1x4xf32>
    %10 = vector.broadcast %9 : vector<1x4xf32> to vector<2x4xf32>
    %11 = arith.addf %8, %10 : vector<2x4xf32>
    %c0_12 = arith.constant 0 : index
    %12 = memref.load %arg8[%c0_12] : memref<4xf32, #tpu.memory_space<smem>>
    %c1 = arith.constant 1 : index
    %13 = memref.load %arg8[%c1] : memref<4xf32, #tpu.memory_space<smem>>
    %c2 = arith.constant 2 : index
    %14 = memref.load %arg8[%c2] : memref<4xf32, #tpu.memory_space<smem>>
    %c3 = arith.constant 3 : index
    %15 = memref.load %arg8[%c3] : memref<4xf32, #tpu.memory_space<smem>>
    %16 = vector.broadcast %12 : f32 to vector<2x4xf32>
    %17 = arith.mulf %11, %16 : vector<2x4xf32>
    %18 = vector.broadcast %13 : f32 to vector<2x4xf32>
    %19 = arith.mulf %5, %18 : vector<2x4xf32>
    %20 = arith.addf %17, %19 : vector<2x4xf32>
    %21 = vector.broadcast %15 : f32 to vector<2x4xf32>
    %22 = arith.addf %20, %21 : vector<2x4xf32>
    %c0_13 = arith.constant 0 : index
    %c0_14 = arith.constant 0 : index
    %23 = vector.load %arg7[%c0_13, %c0_14] : memref<2x1xf32, #tpu.memory_space<vmem>>, vector<2x1xf32>
    %24 = vector.broadcast %14 : f32 to vector<2x1xf32>
    %25 = arith.mulf %23, %24 : vector<2x1xf32>
    %26 = vector.broadcast %25 : vector<2x1xf32> to vector<2x4xf32>
    %27 = arith.addf %22, %26 : vector<2x4xf32>
    %c0_15 = arith.constant 0 : index
    %c0_16 = arith.constant 0 : index
    %28 = vector.load %arg9[%c0_15, %c0_16] : memref<2x4xf32, #tpu.memory_space<vmem>>, vector<2x4xf32>
    tpu.vector_store %arg9[%c0_15, %c0_16], %27 {strides = array<i32>} : memref<2x4xf32, #tpu.memory_space<vmem>>, vector<2x4xf32>,
    return
  }
  func.func @transform_0(%arg0: i32) -> (i32, i32) {
    %c0_i32 = arith.constant 0 : i32
    %c0_i32_0 = arith.constant 0 : i32
    %c0_i32_1 = arith.constant 0 : i32
    return %c0_i32, %c0_i32_0 : i32, i32
  }
  func.func @transform_1(%arg0: i32) -> (i32, i32) {
    %c0_i32 = arith.constant 0 : i32
    %c0_i32_0 = arith.constant 0 : i32
    %c0_i32_1 = arith.constant 0 : i32
    return %c0_i32, %c0_i32_0 : i32, i32
  }
  func.func @transform_2(%arg0: i32) -> (i32, i32) {
    %c0_i32 = arith.constant 0 : i32
    %c0_i32_0 = arith.constant 0 : i32
    %c0_i32_1 = arith.constant 0 : i32
    return %c0_i32, %c0_i32_0 : i32, i32
  }
  func.func @transform_3(%arg0: i32) -> (i32, i32) {
    %c0_i32 = arith.constant 0 : i32
    %c0_i32_0 = arith.constant 0 : i32
    %c0_i32_1 = arith.constant 0 : i32
    return %c0_i32, %c0_i32_0 : i32, i32
  }
  func.func @transform_4(%arg0: i32) -> (i32, i32) {
    %c0_i32 = arith.constant 0 : i32
    %c0_i32_0 = arith.constant 0 : i32
    %c0_i32_1 = arith.constant 0 : i32
    return %c0_i32, %c0_i32_0 : i32, i32
  }
  func.func @transform_5(%arg0: i32) -> (i32, i32) {
    %c0_i32 = arith.constant 0 : i32
    %c0_i32_0 = arith.constant 0 : i32
    %c0_i32_1 = arith.constant 0 : i32
    return %c0_i32, %c0_i32_0 : i32, i32
  }
  func.func @transform_6(%arg0: i32) -> (i32, i32) {
    %c0_i32 = arith.constant 0 : i32
    %c0_i32_0 = arith.constant 0 : i32
    %c0_i32_1 = arith.constant 0 : i32
    return %c0_i32, %c0_i32_0 : i32, i32
  }
  func.func @transform_7(%arg0: i32) -> i32 {
    %c0_i32 = arith.constant 0 : i32
    %c0_i32_0 = arith.constant 0 : i32
    return %c0_i32 : i32
  }
  func.func @transform_8(%arg0: i32) -> (i32, i32) {
    %c0_i32 = arith.constant 0 : i32
    %c0_i32_0 = arith.constant 0 : i32
    %c0_i32_1 = arith.constant 0 : i32
    return %c0_i32, %c0_i32_0 : i32, i32
  }
}

</mosaic_0001>

<bundles_post_ra>
// kernel: ours_forward.7
= control target key start
LH: loop header
LB: loop body
LE: loop exit
PB: predicated region body
PF: predicated region fallthrough
CT: control target
= control target key end

     0   :  { %s458_s15 = smov 0   ;;  %s484_s0 = inlined_call_operand.vmem [shape: f32[2,12,4], index: 0, kind: input, shape index: {}]   ;;  %s485_s1 = inlined_call_operand.vmem [shape: f32[4,32], index: 1, kind: input, shape index: {}]   ;;  %s486_s2 = inlined_call_operand.vmem [shape: f32[1,32], index: 2, kind: input, shape index: {}]   ;;  %s487_s3 = inlined_call_operand.vmem [shape: f32[2,12,32], index: 3, kind: input, shape index: {}]   ;;  %s488_s4 = inlined_call_operand.vmem [shape: f32[2,12,32], index: 4, kind: output, shape index: {}]  }
   0x1 LB: > { %s389_s16 = sadd.s32 4294967295, %s431_s15   ;;  %p393_p0 = scmp.ge.s32.totalorder %s431_s15, 1  ;;  %s431_s15 = sphi %s458_s15, %s14_s15  }
   0x2   : > { %p172_p1 = scmp.lt.s32.totalorder %s431_s15, 3 }
   0x4   : > { %p173_p2 = pnand %p393_p0, %p172_p1 }
   0x5   : > { %v220_v0 = vld [vmem:[%s485_s1] sm:$0xf] (!%p173_p2)  ;;  %vm235_vm0 = vcmask (!%p173_p2), 1043456   ;;  %p203_p3 = scmp.lt.s32.totalorder (!%p173_p2), %s389_s16, 1  ;;  %vm228_vm1 = vcmask (!%p173_p2), 31744   ;;  %vm320_vm2 = vcmask (!%p173_p2), 257024  }
   0x6   : > { %176 = sbr.rel (%p173_p2) target bundleno = 236 (0xec), region = 36  ;;  %412 = vmatprep.subr.msk.mxu0 (!%p173_p2), %vm235_vm0, %v220_v0  ;;  %v400_v3 = vld [vmem:[%s486_s2] ss:$0 sm:$0xff] (!%p173_p2)  ;;  %vm318_vm3 = vcmask (!%p173_p2), 261120  }
   0x7   : > { %413 = vmatpush3.msk.msra.mxu0 (!%p173_p2), %vm235_vm0, %v220_v0 }
   0xd   : > { %s490_s16 = smov (!%p203_p3, %s389_s16), 1 }
   0xe   : > { %s406_s19 = sshll.u32 %s490_s16, 4 }
   0xf   : > { %s207_s22 = scalar_lea.vmem %s484_s0, %s406_s19  ;;  %s212_s25 = scalar_lea.vmem %s487_s3, %s406_s19 }
  0x10   : > { %v218_v1 = vld [vmem:[%s207_s22] sm:$0xff]  ;;  %v219_v2 = vld [vmem:[%s207_s22 + $0x8] sm:$0xf]  ;;  %s217_s30 = scalar_lea.vmem %s488_s4, %s406_s19 }
  0x11   : > { %414 = vmatprep.mubr.msk.f32.mxu0 %vm228_vm1, %v218_v1  ;;  %v315_v5 = vld [vmem:[%s212_s25 + $0x8] sm:$0xf]  ;;  %v314_v8 = vld [vmem:[%s212_s25] sm:$0xff] }
  0x12   : > { %415 = vmatmul.mubr.msk.f32.vlgmr.msra.gmra.mrb[0].mxu0 %vm228_vm1, %v219_v2 }
  0xe5   : > { %v416_v4 = vpop.f32.mrb[0].mxu0 }
  0xe6   : > { %v311_v6 = vadd.f32 %v416_v4, %v400_v3  ;;  %v305_v7 = vpop.f32.mrb[1].mxu0 }
  0xe7   : > { %v306_v9 = vadd.f32 %v400_v3, %v305_v7 }
  0xe8   : > { %v317_v10 = vadd.f32 %v315_v5, %v311_v6 }
  0xe9   : > { %v316_v11 = vadd.f32 %v314_v8, %v306_v9 }
  0xea   : > { %321 = vst.msk [vmem:[%s217_s30 + $0x8] sm:$0xf] %vm320_vm2, %v317_v10 }
  0xeb   : > { %319 = vst.msk [vmem:[%s217_s30] sm:$0xff] %vm318_vm3, %v316_v11 }
  0xec PF: > { %s14_s15 = sadd.s32 1, %s431_s15  }
  0xed   : > { %p11_p4 = scmp.ge.s32.totalorder %s14_s15, 4  }
  0xef   :  { %13 = sbr.rel (!%p11_p4) target bundleno = 1 (0x1), region = 69 }

// kernel: ours_forward.8
= control target key start
LH: loop header
LB: loop body
LE: loop exit
PB: predicated region body
PF: predicated region fallthrough
CT: control target
= control target key end

     0   :  { %s413_s15 = smov 0   ;;  %s442_s0 = inlined_call_operand.vmem [shape: f32[2,4,12], index: 0, kind: input, shape index: {}]   ;;  %s443_s1 = inlined_call_operand.vmem [shape: f32[12,32], index: 1, kind: input, shape index: {}]   ;;  %s444_s2 = inlined_call_operand.vmem [shape: f32[1,32], index: 2, kind: input, shape index: {}]   ;;  %s445_s3 = inlined_call_operand.vmem [shape: f32[1,4,32], index: 3, kind: input, shape index: {}]   ;;  %s446_s4 = inlined_call_operand.vmem [shape: f32[2,4,32], index: 4, kind: output, shape index: {}]  }
   0x1 LB: > { %s338_s16 = sadd.s32 4294967295, %s382_s15   ;;  %p342_p0 = scmp.ge.s32.totalorder %s382_s15, 1  ;;  %s382_s15 = sphi %s413_s15, %s14_s15  }
   0x2   : > { %p161_p1 = scmp.lt.s32.totalorder %s382_s15, 3 }
   0x4   : > { %p162_p2 = pnand %p342_p0, %p161_p1 }
   0x5   : > { %v194_v0 = vld [vmem:[%s443_s1] sm:$0xff] (!%p162_p2)  ;;  %v195_v1 = vld [vmem:[%s443_s1 + $0x8] sm:$0xf] (!%p162_p2)  ;;  %vm207_vm0 = vcmask (!%p162_p2), 1043456   ;;  %v384_v2 = vmov (!%p162_p2), 0.0|0.0   ;;  %vm385_vm1 = vmmov (!%p162_p2), 1  }
   0x6   : > { %165 = sbr.rel (%p162_p2) target bundleno = 234 (0xea), region = 36  ;;  %360 = vmatprep.subr.bf16.mxu0 (!%p162_p2), %v384_v2  ;;  %v361_v3 = vpack.c.bf16 (!%p162_p2), %v195_v1, %v194_v0  ;;  %vm362_vm2 = vmpackc.low (!%p162_p2), %vm207_vm0, %vm385_vm1  ;;  %p185_p3 = scmp.lt.s32.totalorder (!%p162_p2), %s338_s16, 1  ;;  %vm386_vm3 = vmmov (!%p162_p2), 0   ;;  %v387_v4 = vmov (!%p162_p2), 0.0   ;;  %vm203_vm4 = vcmask (!%p162_p2), 97280  }
   0x7   : > { %357 = vmatprep.mubr.msk.f32.mxu0 (!%p162_p2), %vm386_vm3, %v387_v4  ;;  %v345_v6 = vld [vmem:[%s444_s2] ss:$0 sm:$0xff] (!%p162_p2)  ;;  %vm283_vm5 = vcmask (!%p162_p2), 257024  }
   0x8   : > { %363 = vmatpush3.bf16.msk.msra.mxu0 (!%p162_p2), %vm362_vm2, %v361_v3  ;;  %v281_v8 = vld [vmem:[%s445_s3] sm:$0xf] (!%p162_p2) }
   0xd   : > { %s448_s16 = smov (!%p185_p3, %s338_s16), 1 }
   0xe   : > { %s343_s21 = sshll.u32 %s448_s16, 2 }
   0xf   : > { %s188_s24 = scalar_lea.vmem %s442_s0, %s343_s21  ;;  %s192_s5 = scalar_lea.vmem %s446_s4, %s343_s21 }
  0x10   : > { %v193_v5 = vld [vmem:[%s188_s24] sm:$0xf] }
  0x11   : > { %358 = vmatmul.mubr.msk.f32.vlgmr.msra.gmra.mrb[0].mxu0 %vm203_vm4, %v193_v5 }
  0xe4   : > { %v277_v7 = vpop.f32.mrb[0].mxu0 }
  0xe5   : > { %v278_v9 = vadd.f32 %v345_v6, %v277_v7  ;;  %v359_v10 = vpop.f32.mrb[1].mxu0 }
  0xe7   : > { %v282_v11 = vadd.f32 %v281_v8, %v278_v9 }
  0xe9   : > { %284 = vst.msk [vmem:[%s192_s5] sm:$0xf] %vm283_vm5, %v282_v11 }
  0xea PF: > { %s14_s15 = sadd.s32 1, %s382_s15  }
  0xeb   : > { %p11_p4 = scmp.ge.s32.totalorder %s14_s15, 4  }
  0xed   :  { %13 = sbr.rel (!%p11_p4) target bundleno = 1 (0x1), region = 66 }

// kernel: ours_forward.9
= control target key start
LH: loop header
LB: loop body
LE: loop exit
PB: predicated region body
PF: predicated region fallthrough
CT: control target
= control target key end

     0   :  { %s4800_s0 = inlined_call_operand.vmem [shape: f32[2,12,32], index: 0, kind: input, shape index: {}, may-alias: {0,1,2}]   ;;  %s4801_s1 = inlined_call_operand.vmem [shape: f32[2,12,32], index: 1, kind: input, shape index: {}, may-alias: {0,1,2}]   ;;  %s4802_s2 = inlined_call_operand.vmem [shape: f32[2,12,32], index: 2, kind: input, shape index: {}, may-alias: {0,1,2}]   ;;  %s4803_s3 = inlined_call_operand.vmem [shape: f32[4,32,8], index: 3, kind: input, shape index: {}]   ;;  %s4804_s4 = inlined_call_operand.vmem [shape: f32[4,1,8], index: 4, kind: input, shape index: {}]   ;;  %s4805_s5 = inlined_call_operand.vmem [shape: f32[4,32,8], index: 5, kind: input, shape index: {}]   ;;  %s4806_s6 = inlined_call_operand.vmem [shape: f32[4,1,8], index: 6, kind: input, shape index: {}]   ;;  %s4807_s7 = inlined_call_operand.vmem [shape: f32[4,32,8], index: 7, kind: input, shape index: {}]   ;;  %s4808_s8 = inlined_call_operand.vmem [shape: f32[4,1,8], index: 8, kind: input, shape index: {}]   ;;  %s4809_s9 = inlined_call_operand.vmem [shape: f32[4,8,32], index: 9, kind: input, shape index: {}]   ;;  %s4810_s10 = inlined_call_operand.vmem [shape: f32[1,32], index: 10, kind: input, shape index: {}]   ;;  %s4811_s11 = inlined_call_operand.vmem [shape: f32[1,32], index: 11, kind: input, shape index: {}]   ;;  %s4812_s12 = inlined_call_operand.vmem [shape: f32[1,32], index: 12, kind: input, shape index: {}]   ;;  %s4813_s13 = inlined_call_operand.vmem [shape: f32[32,64], index: 13, kind: input, shape index: {}]   ;;  %s4814_s14 = inlined_call_operand.vmem [shape: f32[1,64], index: 14, kind: input, shape index: {}]   ;;  %s4815_s15 = inlined_call_operand.vmem [shape: f32[64,32], index: 15, kind: input, shape index: {}]   ;;  %s4816_s16 = inlined_call_operand.vmem [shape: f32[1,32], index: 16, kind: input, shape index: {}]   ;;  %s4817_s17 = inlined_call_operand.vmem [shape: f32[1,32], index: 17, kind: input, shape index: {}]   ;;  %s4818_s18 = inlined_call_operand.vmem [shape: f32[1,32], index: 18, kind: input, shape index: {}]   ;;  %s4819_s19 = inlined_call_operand.vmem [shape: f32[2,12,32], index: 19, kind: output, shape index: {0}]   ;;  %s4820_s20 = inlined_call_operand.vmem [shape: f32[4,2,12,12], index: 20, kind: output, shape index: {1}]  }
   0x1   :  { %4828 = sst [smem:[#allocation8_spill]] %s4800_s0 }
   0x2   :  { %4829 = sst [smem:[#allocation9_spill]] %s4801_s1 }
   0x3   :  { %4830 = sst [smem:[#allocation10_spill]] %s4802_s2 }
   0x4   :  { %4831 = sst [smem:[#allocation11_spill]] %s4803_s3 }
   0x5   :  { %4832 = sst [smem:[#allocation12_spill]] %s4804_s4 }
   0x6   :  { %4833 = sst [smem:[#allocation13_spill]] %s4820_s20 }
   0x7   :  { %s4262_s1 = smov 0   ;;  %s4264_s22 = smov 0  }
   0x8   :  { %s4266_s23 = smov 0  }
   0x9 LB: > { %4834 = sst [smem:[#allocation3_spill]] %s4150_s22  ;;  %s4275_s24 = sadd.s32 4294967295, %s4154_s23   ;;  %s4154_s23 = sphi %s4266_s23, %s4852_s23   ;;  %s4150_s22 = sphi %s4264_s22, %s4854_s22   ;;  %s4146_s1 = sphi %s4262_s1, %s4853_s1  }
   0xa   : > { %4835 = sst [smem:[#allocation4_spill]] %s4275_s24  ;;  %s4277_s2 = sadd.s32 1, %s4154_s23  }
   0xb   : > { %4836 = sst [smem:[#allocation5_spill]] %s4277_s2  ;;  %s475_s25 = ssub.s32 %s4154_s23, %s4277_s2 }
   0xc   : > { %s478_s3 = sadd.s32 1, %s4150_s22  ;;  %p476_p0 = scmp.eq.s32.totalorder %s475_s25, 0 }
   0xd   : > { %p488_p1 = scmp.ne.s32.totalorder %s4150_s22, %s4146_s1  ;;  %p489_p2 = scmp.eq.s32.totalorder %s4275_s24, 1 }
   0xe   : > { %p3366_p3 = scmp.ge.s32.totalorder %s4154_s23, 1  ;;  %p585_p5 = scmp.lt.s32.totalorder %s4154_s23, 3 }
   0xf   : > { %s4285_s26 = scalar_select %p476_p0, %s4150_s22, %s478_s3  }
  0x10   : > { %p4287_p4 = por %p489_p2, %p488_p1  ;;  %p586_p6 = pnand %p3366_p3, %p585_p5 }
  0x11   : > { %4837 = sst [smem:[#allocation6_spill]] %s4285_s26  ;;  %s4840_s29 = sld [smem:[#allocation11_spill]] (!%p586_p6)  ;;  %v776_v6 = vld [vmem:[%s4805_s5] sm:$0xff] (!%p586_p6)  ;;  %v777_v7 = vld [vmem:[%s4805_s5 + $0x8] sm:$0xff] (!%p586_p6)  ;;  %vm694_vm0 = vcmask (!%p586_p6), 261120   ;;  %v778_v10 = vld [vmem:[%s4805_s5 + $0x10] sm:$0xff] (!%p586_p6)  ;;  %v1048_v36 = vlaneseq (!%p586_p6) }
  0x12   : > { %s4838_s27 = scalar_select %p4287_p4, 1, 0 }
  0x13   : > { %589 = sbr.rel (%p586_p6) target bundleno = 5015 (0x1397), region = 96  ;;  %p657_p7 = scmp.lt.s32.totalorder (!%p586_p6), %s4275_s24, 1  ;;  %v3901_v8 = vpack.c.bf16 (!%p586_p6), %v777_v7, %v776_v6  ;;  %v779_v11 = vld [vmem:[%s4805_s5 + $0x18] sm:$0xff] (!%p586_p6)  ;;  %vm960_vm1 = vcmask (!%p586_p6), 64512   ;;  %v3379_v20 = vld [vmem:[%s4806_s6] ss:$0 sm:$0xff] (!%p586_p6) }
  0x14   : > { %4839 = sst [smem:[#allocation7_spill]] %s4838_s27  ;;  %s4841_s25 = sld [smem:[#allocation8_spill]] (!%p586_p6)  ;;  %v3905_v13 = vpack.c.bf16 (!%p586_p6), %v779_v11, %v778_v10  ;;  %vm4352_vm2 = vmpackc.low (!%p586_p6), %vm960_vm1, %vm960_vm1  ;;  %v868_v28 = vld [vmem:[%s4807_s7] sm:$0xff] (!%p586_p6)  ;;  %v869_v29 = vld [vmem:[%s4807_s7 + $0x8] sm:$0xff] (!%p586_p6)  ;;  %v4387_v37 = vshrl.u32 (!%p586_p6), %v1048_v36, 7  ;;  %v4389_v38 = vand.u32 (!%p586_p6), 127, %v1048_v36 }
  0x15   : > { %s4842_s20 = sld [smem:[#allocation9_spill]] (!%p586_p6)  ;;  %s4843_s21 = sld [smem:[#allocation12_spill]] (!%p586_p6)  ;;  %v870_v30 = vld [vmem:[%s4807_s7 + $0x10] sm:$0xff] (!%p586_p6)  ;;  %v3909_v31 = vpack.c.bf16 (!%p586_p6), %v869_v29, %v868_v28  ;;  %v871_v32 = vld [vmem:[%s4807_s7 + $0x18] sm:$0xff] (!%p586_p6)  ;;  %vm1057_vm4 = vcmask (!%p586_p6), 97280   ;;  %vm1061_vm6 = vcmask (!%p586_p6), 93184  }
  0x16   : > { %s4846_s0 = sld [smem:[#allocation10_spill]] (!%p586_p6)  ;;  %v3913_v34 = vpack.c.bf16 (!%p586_p6), %v871_v32, %v870_v30  ;;  %v4392_v39 = vadd.s32 (!%p586_p6), 8, %v4387_v37  ;;  %vm1053_vm3 = vcmp.le.s32.totalorder (!%p586_p6), %v4389_v38, %v4387_v37  ;;  %v3382_v57 = vld [vmem:[%s4808_s8] ss:$0 sm:$0xff] (!%p586_p6)  ;;  %vm1089_vm7 = vcmask (!%p586_p6), 1043456   ;;  %s654_s23 = sand.u32 (!%p586_p6), 1, %s4146_s1  }
  0x17   : > { %v683_v0 = vld [vmem:[%s4840_s29] sm:$0xff] (!%p586_p6)  ;;  %v684_v1 = vld [vmem:[%s4840_s29 + $0x8] sm:$0xff] (!%p586_p6)  ;;  %v685_v2 = vld [vmem:[%s4840_s29 + $0x10] sm:$0xff] (!%p586_p6)  ;;  %3910 = vmatprep.subr.bf16.mxu0 (!%p586_p6), %v3909_v31  ;;  %vm4156_vm8 = vmmov (!%p586_p6), 1   ;;  %s3367_s28 = sshll.u32 (!%p586_p6), %s654_s23, 6  ;;  %vm2903_vm10 = vcmask (!%p586_p6), 257024  }
  0x18   : > { %v3893_v3 = vpack.c.bf16 (!%p586_p6), %v684_v1, %v683_v0  ;;  %v686_v4 = vld [vmem:[%s4840_s29 + $0x18] sm:$0xff] (!%p586_p6)  ;;  %3912 = vmatpush3.bf16.msra.mxu0 (!%p586_p6), %v3909_v31  ;;  %vm1054_vm5 = vcmp.le.s32.totalorder (!%p586_p6), %v4389_v38, %v4392_v39  ;;  %vm4411_vm9 = vmpackc.low (!%p586_p6), %vm1089_vm7, %vm4156_vm8  ;;  %v3400_v63 = vld [vmem:[%s4805_s5 + $0x20] sm:$0xff] (!%p586_p6)  ;;  %vm3055_vm11 = vcmask (!%p586_p6), 523264  }
  0x19   : > { %v3897_v5 = vpack.c.bf16 (!%p586_p6), %v686_v4, %v685_v2  ;;  %3914 = vmatprep.subr.bf16.mxu0 (!%p586_p6), %v3913_v34  ;;  %v3401_v0 = vld [vmem:[%s4805_s5 + $0x28] sm:$0xff] (!%p586_p6)  ;;  %v3392_v2 = vld [vmem:[%s4840_s29 + $0x20] sm:$0xff] (!%p586_p6)  ;;  %v3395_v6 = vld [vmem:[%s4840_s29 + $0x38] sm:$0xff] (!%p586_p6) }
  0x1a   : > { %s658_s26 = scalar_select %p657_p7, %s4275_s24, 1  ;;  %3894 = vmatprep.subr.bf16.mxu1 %v3893_v3  ;;  %v3937_v1 = vpack.c.bf16 %v3401_v0, %v3400_v63  ;;  %v3405_v29 = vld [vmem:[%s4806_s6 + $0x1] ss:$0 sm:$0xff]  ;;  %v3485_v25 = vld [vmem:[%s4807_s7 + $0x78] sm:$0xff] }
  0x1b   : > { %3896 = vmatpush3.bf16.msra.mxu1 %v3893_v3  ;;  %v3376_v16 = vld [vmem:[%s4843_s21] ss:$0 sm:$0xff]  ;;  %v3393_v3 = vld [vmem:[%s4840_s29 + $0x28] sm:$0xff]  ;;  %v3413_v0 = vld [vmem:[%s4808_s8 + $0x1] ss:$0 sm:$0xff]  ;;  %s4850_s27 = sld [smem:[#allocation4_spill]] (%p4287_p4) }
  0x1c   : > { %s4311_s30 = sshll.u32 %s658_s26, 4  ;;  %3898 = vmatprep.subr.bf16.mxu1 %v3897_v5  ;;  %3916 = vmatpush3.bf16.msra.mxu0 %v3913_v34  ;;  %v3929_v4 = vpack.c.bf16 %v3393_v3, %v3392_v2 }
  0x1d   : > { %s661_s3 = scalar_lea.vmem %s4841_s25, %s4311_s30  ;;  %s666_s24 = scalar_lea.vmem %s4842_s20, %s4311_s30 }
  0x1e   : > { %v4317_v9 = vld [vmem:[%s661_s3] sm:$0xff]  ;;  %v4331_v12 = vld [vmem:[%s661_s3 + $0x8] sm:$0xf]  ;;  %s671_s25 = scalar_lea.vmem %s4846_s0, %s4311_s30  ;;  %s4448_s20 = scalar_lea.vmem [#allocation2], %s3367_s28 }
  0x1f   : > { %3663 = vmatprep.mubr.msk.f32.mxu1 %vm694_vm0, %v4317_v9  ;;  %3900 = vmatpush3.bf16.msra.mxu1 %v3897_v5  ;;  %v4333_v14 = vld [vmem:[%s666_s24] sm:$0xff]  ;;  %v4339_v15 = vld [vmem:[%s666_s24 + $0x8] sm:$0xf]  ;;  %v3394_v5 = vld [vmem:[%s4840_s29 + $0x30] sm:$0xff]  ;;  %s4851_s28 = sld [smem:[#allocation13_spill]] (%p4287_p4) }
  0x20   : > { %3902 = vmatprep.subr.bf16.mxu1 %v3901_v8  ;;  %v4379_v33 = vld [vmem:[%s671_s25] sm:$0xff]  ;;  %v4383_v35 = vld [vmem:[%s671_s25 + $0x8] sm:$0xf]  ;;  %v3933_v7 = vpack.c.bf16 %v3395_v6, %v3394_v5  ;;  %s676_s25 = scalar_lea.vmem %s4819_s19, %s4311_s30 }
  0x21   : > { %3685 = vmatprep.mubr.msk.f32.mxu0 %vm694_vm0, %v4379_v33  ;;  %v3425_v5 = vld [vmem:[%s4809_s9 + $0x8] sm:$0xff]  ;;  %s3522_s30 = sshll.u32 (%p4287_p4), %s4850_s27, 4 }
  0x22   : > { %3664 = vmatmul.mubr.msk.f32.vlgmr.msra.gmra.mrb[0].mxu1 %vm694_vm0, %v4331_v12  ;;  %3686 = vmatmul.mubr.msk.f32.vlgmr.msra.gmra.mrb[0].mxu0 %vm694_vm0, %v4383_v35 }
  0x23   : > { %3904 = vmatpush3.bf16.msra.mxu1 %v3901_v8  ;;  %3674 = vmatprep.mubr.msk.f32.mxu1 %vm694_vm0, %v4333_v14 }
  0x24   : > { %3906 = vmatprep.subr.bf16.mxu1 %v3905_v13 }
  0x25   : > { %s3202_s22 = scalar_lea.vmem (%p4287_p4), %s4851_s28, %s3522_s30 }
  0x27   : > { %3908 = vmatpush3.bf16.msra.mxu1 %v3905_v13 }
  0x2a   : > { %3675 = vmatmul.mubr.msk.f32.vlgmr.msra.gmra.mrb[2].mxu1 %vm694_vm0, %v4339_v15 }
  0xf5   : > { %v3665_v17 = vpop.f32.mrb[0].mxu1  ;;  %v3687_v56 = vpop.f32.mrb[0].mxu0 }
  0xf6   : > { %v767_v18 = vpop.f32.mrb[1].mxu1  ;;  %v773_v27 = vadd.f32 %v3665_v17, %v3376_v16  ;;  %v951_v58 = vpop.f32.mrb[1].mxu0  ;;  %v957_v59 = vadd.f32 %v3687_v56, %v3382_v57  ;;  %v3403_v17 = vld [vmem:[%s4805_s5 + $0x38] sm:$0xff] }
  0xf7   : > { %v768_v19 = vadd.f32 %v3376_v16, %v767_v18  ;;  %v952_v60 = vadd.f32 %v3382_v57, %v951_v58  ;;  %v3402_v16 = vld [vmem:[%s4805_s5 + $0x30] sm:$0xff] }
  0xf9   : > { %3692 = vmatprep.mubr.msk.f32.mxu1 %vm960_vm1, %v768_v19  ;;  %v3923_v61 = vpack.c.bf16 %v957_v59, %v952_v60 }
  0xfb   : > { %3925 = vmatprep.subr.msk.bf16.mxu0 %vm4411_vm9, %v3923_v61 }
  0xfc   : > { %3928 = vmatpush3.bf16.msk.msra.mxu0 %vm4411_vm9, %v3923_v61 }
  0xfd   : > { %v3676_v21 = vpop.f32.mrb[2].mxu1  ;;  %3938 = vmatprep.subr.bf16.mxu0 %v3937_v1 }
  0xfe   : > { %v865_v22 = vadd.f32 %v3676_v21, %v3379_v20  ;;  %v859_v23 = vpop.f32.mrb[3].mxu1  ;;  %v3397_v21 = vld [vmem:[%s4843_s21 + $0x1] ss:$0 sm:$0xff] }
  0xff   : > { %v860_v24 = vadd.f32 %v3379_v20, %v859_v23  ;;  %v3941_v20 = vpack.c.bf16 %v3403_v17, %v3402_v16  ;;  %v1168_v16 = vld [vmem:[%s4809_s9] sm:$0xff] }
 0x100   : > { %v3430_v17 = vld [vmem:[%s4840_s29 + $0x40] sm:$0xff] }
 0x101   : > { %v3917_v26 = vpack.c.bf16 %v865_v22, %v860_v24 }
 0x103   : > { %3919 = vmatprep.subr.msk.bf16.mxu1 %vm4352_vm2, %v3917_v26 }
 0x104   : > { %3922 = vmatpush3.bf16.xpose.msk.msra.mxu1 %vm4352_vm2, %v3917_v26 }
 0x105   : > { %3930 = vmatprep.subr.bf16.mxu1 %v3929_v4 }
 0x10b   : > { %3693 = vmatmul.mubr.msk.f32.vlgmr.msra.gmra.mrb[4].mxu1 %vm960_vm1, %v773_v27 }
 0x10c   : > { %3710 = vmatprep.mubr.msk.f32.mxu1 %vm694_vm0, %v4317_v9  ;;  %3932 = vmatpush3.bf16.msra.mxu1 %v3929_v4 }
 0x10d   : > { %3934 = vmatprep.subr.bf16.mxu1 %v3933_v7 }
 0x110   : > { %3936 = vmatpush3.bf16.msra.mxu1 %v3933_v7 }
 0x113   : > { %3711 = vmatmul.mubr.msk.f32.vlgmr.msra.gmra.mrb[6].mxu1 %vm694_vm0, %v4331_v12 }
 0x114   : > { %3732 = vmatprep.mubr.msk.f32.mxu1 %vm694_vm0, %v4379_v33 }
 0x1de   : > { %v3694_v40 = vpop.f32.mrb[4].mxu1 }
 0x1df   : > { %v1039_v41 = vpop.f32.mrb[5].mxu1  ;;  %v1056_v44 = vsel %vm1054_vm5, %v3694_v40, -4.2949673e+09  ;;  %v3408_v40 = vld [vmem:[%s4807_s7 + $0x20] sm:$0xff] }
 0x1e0   : > { %v1055_v42 = vsel %vm1053_vm3, %v1039_v41, -4.2949673e+09  ;;  %v1062_v45 = vsel %vm1061_vm6, %v1056_v44, -inf  ;;  %v3409_v41 = vld [vmem:[%s4807_s7 + $0x28] sm:$0xff] }
 0x1e1   : > { %v1058_v43 = vsel %vm1057_vm4, %v1055_v42, -inf }
 0x1e2   : > { %1059 = vmax.xlane.f32.xlu0 %v1058_v43  ;;  %v3945_v43 = vpack.c.bf16 %v3409_v41, %v3408_v40 }
 0x1e4   : > { %3946 = vmatprep.subr.bf16.mxu1 %v3945_v43 }
 0x1e5   : > { %3948 = vmatpush3.bf16.msra.mxu1 %v3945_v43 }
 0x1e6   : > { %1063 = vmax.xlane.f32.xlu0 %v1062_v45  ;;  %v3712_v22 = vpop.f32.mrb[6].mxu1 }
 0x1e7   : > { %v1254_v23 = vadd.f32 %v3712_v22, %v3397_v21  ;;  %v1248_v24 = vpop.f32.mrb[7].mxu1 }
 0x1e8   : > { %v1249_v26 = vadd.f32 %v3397_v21, %v1248_v24  ;;  %v3433_v21 = vld [vmem:[%s4840_s29 + $0x58] sm:$0xff]  ;;  %v3439_v24 = vld [vmem:[%s4805_s5 + $0x48] sm:$0xff] }
 0x26f   : > { %v1060_v46 = vpop.xlane.xlu0 %1059 }
 0x270   : > { %v1065_v47 = vsub.f32 %v1055_v42, %v1060_v46  ;;  %v3410_v42 = vld [vmem:[%s4807_s7 + $0x30] sm:$0xff] }
 0x272   : > { %v1067_v48 = vmul.f32 1.442695, %v1065_v47 }
 0x273   : > { %v1064_v49 = vpop.xlane.xlu0 %1063 }
 0x274   : > { %4092 = vpow2.f32 %v1067_v48  ;;  %v1066_v50 = vsub.f32 %v1056_v44, %v1064_v49  ;;  %v3411_v44 = vld [vmem:[%s4807_s7 + $0x38] sm:$0xff] }
 0x275   : > { %v3949_v45 = vpack.c.bf16 %v3411_v44, %v3410_v42 }
 0x276   : > { %v1069_v51 = vmul.f32 1.442695, %v1066_v50 }
 0x277   : > { %3950 = vmatprep.subr.bf16.mxu1 %v3949_v45 }
 0x278   : > { %4094 = vpow2.f32 %v1069_v51  ;;  %3952 = vmatpush3.bf16.msra.mxu1 %v3949_v45 }
 0x27b   : > { %3733 = vmatmul.mubr.msk.f32.vlgmr.msra.gmra.mrb[8].mxu1 %vm694_vm0, %v4383_v35 }
 0x27e   : > { %v4093_v52 = vpop.eup %4092 }
 0x27f   : > { %v1071_v53 = vsel %vm1057_vm4, %v4093_v52, 0.0 }
 0x280   : > { %1072 = vadd.xlane.f32.xlu1 %v1071_v53 }
 0x282   : > { %v4095_v54 = vpop.eup %4094 }
 0x283   : > { %v1074_v55 = vsel %vm1061_vm6, %v4095_v54, 0.0 }
 0x284   : > { %1075 = vadd.xlane.f32.xlu1 %v1074_v55 }
 0x30d   : > { %v1073_v8 = vpop.xlane.xlu1 %1072 }
 0x30e   : > { %4096 = vrcp.f32 %v1073_v8 }
 0x311   : > { %v1076_v10 = vpop.xlane.xlu1 %1075 }
 0x312   : > { %4098 = vrcp.f32 %v1076_v10 }
 0x318   : > { %v4097_v11 = vpop.eup %4096 }
 0x319   : > { %v1078_v13 = vmul.f32 %v4097_v11, %v4093_v52 }
 0x31b   : > { %1081 = vst.msk [vmem:[%s4448_s20] sm:$0xff] %vm1057_vm4, %v1078_v13  ;;  %3699 = vmatprep.mubr.msk.f32.mxu0 %vm1057_vm4, %v1078_v13 }
 0x31c   : > { %v4099_v18 = vpop.eup %4098 }
 0x31d   : > { %v1080_v19 = vmul.f32 %v4099_v18, %v4095_v54  ;;  %v3431_v18 = vld [vmem:[%s4840_s29 + $0x48] sm:$0xff] }
 0x31f   : > { %1082 = vst.msk [vmem:[%s4448_s20 + $0x8] sm:$0xf] %vm1061_vm6, %v1080_v19  ;;  %3700 = vmatmul.mubr.msk.f32.vlgmr.msra.gmra.mrb[2].mxu0 %vm1057_vm4, %v1080_v19  ;;  %v3965_v19 = vpack.c.bf16 %v3431_v18, %v3430_v17  ;;  %v3463_v17 = vld [vmem:[%s4809_s9 + $0x10] sm:$0xff] }
 0x320   : > { %3940 = vmatpush3.bf16.msra.mxu0 %v3937_v1  ;;  %3721 = vmatprep.mubr.msk.f32.mxu0 %vm694_vm0, %v4333_v14 }
 0x321   : > { %3942 = vmatprep.subr.bf16.mxu0 %v3941_v20 }
 0x324   : > { %3944 = vmatpush3.bf16.msra.mxu0 %v3941_v20  ;;  %v3432_v20 = vld [vmem:[%s4840_s29 + $0x50] sm:$0xff] }
 0x325   : > { %v3969_v22 = vpack.c.bf16 %v3433_v21, %v3432_v20 }
 0x327   : > { %3722 = vmatmul.mubr.msk.f32.vlgmr.msra.gmra.mrb[4].mxu0 %vm694_vm0, %v4339_v15 }
 0x328   : > { %3739 = vmatprep.mubr.msk.f32.mxu0 %vm960_vm1, %v1249_v26 }
 0x34e   : > { %v3734_v63 = vpop.f32.mrb[8].mxu1 }
 0x34f   : > { %v1424_v1 = vpop.f32.mrb[9].mxu1  ;;  %v1430_v2 = vadd.f32 %v3734_v63, %v3413_v0 }
 0x350   : > { %v1425_v3 = vadd.f32 %v3413_v0, %v1424_v1 }
 0x352   : > { %v3959_v4 = vpack.c.bf16 %v1430_v2, %v1425_v3 }
 0x354   : > { %3961 = vmatprep.subr.msk.bf16.mxu1 %vm4411_vm9, %v3959_v4 }
 0x355   : > { %3964 = vmatpush3.bf16.msk.msra.mxu1 %vm4411_vm9, %v3959_v4 }
 0x356   : > { %3966 = vmatprep.subr.bf16.mxu1 %v3965_v19 }
 0x3f2   : > { %v4464_v27 = vpop.f32.mrb[2].mxu0 }
 0x3f3   : > { %v4466_v28 = vpop.f32.mrb[3].mxu0 }
 0x3fa   : > { %v3723_v30 = vpop.f32.mrb[4].mxu0 }
 0x3fb   : > { %v1342_v31 = vadd.f32 %v3723_v30, %v3405_v29  ;;  %v1336_v32 = vpop.f32.mrb[5].mxu0 }
 0x3fc   : > { %v1337_v34 = vadd.f32 %v3405_v29, %v1336_v32  ;;  %v3441_v32 = vld [vmem:[%s4805_s5 + $0x58] sm:$0xff] }
 0x3fe   : > { %v3953_v36 = vpack.c.bf16 %v1342_v31, %v1337_v34  ;;  %v3440_v31 = vld [vmem:[%s4805_s5 + $0x50] sm:$0xff] }
 0x3ff   : > { %v3977_v34 = vpack.c.bf16 %v3441_v32, %v3440_v31  ;;  %v3467_v31 = vld [vmem:[%s4840_s29 + $0x68] sm:$0xff] }
 0x400   : > { %3955 = vmatprep.subr.msk.bf16.mxu0 %vm4352_vm2, %v3953_v36 }
 0x401   : > { %3958 = vmatpush3.bf16.xpose.msk.msra.mxu0 %vm4352_vm2, %v3953_v36 }
 0x402   : > { %3749 = vmatprep.subr.mxu0 %v3425_v5 }
 0x408   : > { %3740 = vmatmul.mubr.msk.f32.vlgmr.msra.gmra.mrb[6].mxu0 %vm960_vm1, %v1254_v23  ;;  %v3438_v23 = vld [vmem:[%s4805_s5 + $0x40] sm:$0xff] }
 0x409   : > { %3750 = vmatpush3.msra.mxu0 %v3425_v5  ;;  %v3973_v30 = vpack.c.bf16 %v3439_v24, %v3438_v23  ;;  %v3474_v24 = vld [vmem:[%s4805_s5 + $0x60] sm:$0xff] }
 0x40a   : > { %3754 = vmatprep.subr.mxu0 %v1168_v16 }
 0x4db   : > { %v3741_v46 = vpop.f32.mrb[6].mxu0 }
 0x4dc   : > { %v1521_v47 = vsel %vm1054_vm5, %v3741_v46, -4.2949673e+09  ;;  %v1511_v48 = vpop.f32.mrb[7].mxu0 }
 0x4dd   : > { %v1520_v49 = vsel %vm1053_vm3, %v1511_v48, -4.2949673e+09  ;;  %v1525_v50 = vsel %vm1061_vm6, %v1521_v47, -inf  ;;  %v3446_v48 = vld [vmem:[%s4807_s7 + $0x40] sm:$0xff] }
 0x4de   : > { %1526 = vmax.xlane.f32.xlu1 %v1525_v50  ;;  %v1522_v51 = vsel %vm1057_vm4, %v1520_v49, -inf  ;;  %v3448_v50 = vld [vmem:[%s4807_s7 + $0x50] sm:$0xff] }
 0x4df   : > { %1523 = vmax.xlane.f32.xlu0 %v1522_v51 }
 0x56b   : > { %v1527_v52 = vpop.xlane.xlu1 %1526 }
 0x56c   : > { %v1529_v53 = vsub.f32 %v1521_v47, %v1527_v52  ;;  %v1524_v54 = vpop.xlane.xlu0 %1523  ;;  %v3449_v52 = vld [vmem:[%s4807_s7 + $0x58] sm:$0xff] }
 0x56d   : > { %v1528_v55 = vsub.f32 %v1520_v49, %v1524_v54  ;;  %v3447_v49 = vld [vmem:[%s4807_s7 + $0x48] sm:$0xff] }
 0x56e   : > { %v1532_v56 = vmul.f32 1.442695, %v1529_v53  ;;  %v3981_v51 = vpack.c.bf16 %v3447_v49, %v3446_v48  ;;  %v3985_v53 = vpack.c.bf16 %v3449_v52, %v3448_v50  ;;  %v3479_v48 = vld [vmem:[%s4806_s6 + $0x3] ss:$0 sm:$0xff] }
 0x56f   : > { %v1530_v57 = vmul.f32 1.442695, %v1528_v55 }
 0x570   : > { %4100 = vpow2.f32 %v1532_v56 }
 0x571   : > { %4102 = vpow2.f32 %v1530_v57 }
 0x57a   : > { %v4101_v58 = vpop.eup %4100 }
 0x57b   : > { %v4103_v59 = vpop.eup %4102  ;;  %v1537_v60 = vsel %vm1061_vm6, %v4101_v58, 0.0 }
 0x57c   : > { %1538 = vadd.xlane.f32.xlu1 %v1537_v60  ;;  %v1534_v61 = vsel %vm1057_vm4, %v4103_v59, 0.0 }
 0x57d   : > { %1535 = vadd.xlane.f32.xlu0 %v1534_v61 }
 0x609   : > { %v1539_v6 = vpop.xlane.xlu1 %1538 }
 0x60a   : > { %4104 = vrcp.f32 %v1539_v6  ;;  %v1536_v7 = vpop.xlane.xlu0 %1535 }
 0x60b   : > { %4106 = vrcp.f32 %v1536_v7 }
 0x614   : > { %v4105_v8 = vpop.eup %4104 }
 0x615   : > { %v4107_v10 = vpop.eup %4106  ;;  %v1543_v11 = vmul.f32 %v4105_v8, %v4101_v58  ;;  %v3451_v8 = vld [vmem:[%s4808_s8 + $0x2] ss:$0 sm:$0xff] }
 0x616   : > { %v1541_v13 = vmul.f32 %v4107_v10, %v4103_v59 }
 0x617   : > { %3421 = vst.msk [vmem:[%s4448_s20 + $0x18] sm:$0xf] %vm1061_vm6, %v1543_v11 }
 0x618   : > { %3420 = vst.msk [vmem:[%s4448_s20 + $0x10] sm:$0xff] %vm1057_vm4, %v1541_v13  ;;  %3746 = vmatprep.mubr.msk.f32.mxu1 %vm1057_vm4, %v1541_v13 }
 0x619   : > { %3747 = vmatmul.mubr.msk.f32.vlgmr.msra.gmra.mrb[10].mxu1 %vm1057_vm4, %v1543_v11 }
 0x61a   : > { %3767 = vmatprep.mubr.msk.f32.mxu1 %vm694_vm0, %v4317_v9  ;;  %3968 = vmatpush3.bf16.msra.mxu1 %v3965_v19 }
 0x61b   : > { %3970 = vmatprep.subr.bf16.mxu1 %v3969_v22 }
 0x61e   : > { %3972 = vmatpush3.bf16.msra.mxu1 %v3969_v22 }
 0x61f   : > { %3982 = vmatprep.subr.bf16.mxu1 %v3981_v51 }
 0x621   : > { %3768 = vmatmul.mubr.msk.f32.vlgmr.msra.gmra.mrb[12].mxu1 %vm694_vm0, %v4331_v12 }
 0x622   : > { %3789 = vmatprep.mubr.msk.f32.mxu1 %vm694_vm0, %v4379_v33  ;;  %3984 = vmatpush3.bf16.msra.mxu1 %v3981_v51 }
 0x623   : > { %3986 = vmatprep.subr.bf16.mxu1 %v3985_v53 }
 0x626   : > { %3988 = vmatpush3.bf16.msra.mxu1 %v3985_v53  ;;  %v3483_v53 = vld [vmem:[%s4807_s7 + $0x68] sm:$0xff] }
 0x629   : > { %3790 = vmatmul.mubr.msk.f32.vlgmr.msra.gmra.mrb[14].mxu1 %vm694_vm0, %v4383_v35 }
 0x6ec   : > { %v3748_v26 = vpop.f32.mrb[10].mxu1 }
 0x6ed   : > { %v1622_v29 = vpop.f32.mrb[11].mxu1 }
 0x6ee   : > { %3751 = vmatprep.mubr.msk.f32.mxu0 %vm960_vm1, %v1622_v29 }
 0x6ef   : > { %3752 = vmatmul.mubr.msk.f32.vlgmr.msra.gmra.mrb[8].mxu0 %vm960_vm1, %v3748_v26  ;;  %v3475_v26 = vld [vmem:[%s4805_s5 + $0x68] sm:$0xff] }
 0x6f0   : > { %3755 = vmatpush3.msra.mxu0 %v1168_v16  ;;  %3756 = vmatprep.mubr.msk.f32.mxu0 %vm960_vm1, %v4466_v28  ;;  %v3435_v28 = vld [vmem:[%s4843_s21 + $0x2] ss:$0 sm:$0xff]  ;;  %v4009_v29 = vpack.c.bf16 %v3475_v26, %v3474_v24  ;;  %v3502_v24 = vld [vmem:[%s4810_s10] ss:$0 sm:$0xff] }
 0x6f1   : > { %3974 = vmatprep.subr.bf16.mxu0 %v3973_v30 }
 0x6f4   : > { %v3769_v36 = vpop.f32.mrb[12].mxu1 }
 0x6f5   : > { %v1880_v40 = vadd.f32 %v3769_v36, %v3435_v28  ;;  %v1874_v41 = vpop.f32.mrb[13].mxu1 }
 0x6f6   : > { %v1875_v42 = vadd.f32 %v3435_v28, %v1874_v41  ;;  %v3469_v28 = vld [vmem:[%s4840_s29 + $0x78] sm:$0xff] }
 0x6f7   : > { %3757 = vmatmul.mubr.msk.f32.vlgmr.msra.gmra.mrb[8].mxu0 %vm960_vm1, %v4464_v27  ;;  %v3443_v27 = vld [vmem:[%s4806_s6 + $0x2] ss:$0 sm:$0xff]  ;;  %v3477_v41 = vld [vmem:[%s4805_s5 + $0x78] sm:$0xff] }
 0x6f8   : > { %3976 = vmatpush3.bf16.msra.mxu0 %v3973_v30  ;;  %3778 = vmatprep.mubr.msk.f32.mxu0 %vm694_vm0, %v4333_v14  ;;  %v3466_v30 = vld [vmem:[%s4840_s29 + $0x60] sm:$0xff] }
 0x6f9   : > { %3978 = vmatprep.subr.bf16.mxu0 %v3977_v34  ;;  %v4001_v32 = vpack.c.bf16 %v3467_v31, %v3466_v30 }
 0x6fc   : > { %3980 = vmatpush3.bf16.msra.mxu0 %v3977_v34  ;;  %v3791_v7 = vpop.f32.mrb[14].mxu1  ;;  %v3468_v34 = vld [vmem:[%s4840_s29 + $0x70] sm:$0xff] }
 0x6fd   : > { %v2050_v10 = vpop.f32.mrb[15].mxu1  ;;  %v2056_v11 = vadd.f32 %v3791_v7, %v3451_v8  ;;  %v4005_v36 = vpack.c.bf16 %v3469_v28, %v3468_v34  ;;  %v3487_v7 = vld [vmem:[%s4808_s8 + $0x3] ss:$0 sm:$0xff] }
 0x6fe   : > { %v2051_v13 = vadd.f32 %v3451_v8, %v2050_v10 }
 0x6ff   : > { %3779 = vmatmul.mubr.msk.f32.vlgmr.msra.gmra.mrb[10].mxu0 %vm694_vm0, %v4339_v15 }
 0x700   : > { %3796 = vmatprep.mubr.msk.f32.mxu0 %vm960_vm1, %v1875_v42  ;;  %v3995_v16 = vpack.c.bf16 %v2056_v11, %v2051_v13 }
 0x702   : > { %3997 = vmatprep.subr.msk.bf16.mxu1 %vm4411_vm9, %v3995_v16 }
 0x703   : > { %4000 = vmatpush3.bf16.msk.msra.mxu1 %vm4411_vm9, %v3995_v16  ;;  %v3499_v16 = vld [vmem:[%s4809_s9 + $0x18] sm:$0xff] }
 0x704   : > { %4002 = vmatprep.subr.bf16.mxu1 %v4001_v32 }
 0x7d2   : > { %v3780_v43 = vpop.f32.mrb[10].mxu0 }
 0x7d3   : > { %v1968_v44 = vadd.f32 %v3780_v43, %v3443_v27  ;;  %v1962_v45 = vpop.f32.mrb[11].mxu0 }
 0x7d4   : > { %v1963_v46 = vadd.f32 %v3443_v27, %v1962_v45 }
 0x7d6   : > { %v3989_v47 = vpack.c.bf16 %v1968_v44, %v1963_v46 }
 0x7d8   : > { %3991 = vmatprep.subr.msk.bf16.mxu0 %vm4352_vm2, %v3989_v47 }
 0x7d9   : > { %3994 = vmatpush3.bf16.xpose.msk.msra.mxu0 %vm4352_vm2, %v3989_v47 }
 0x7da   : > { %3806 = vmatprep.subr.mxu0 %v3463_v17 }
 0x7e0   : > { %3797 = vmatmul.mubr.msk.f32.vlgmr.msra.gmra.mrb[12].mxu0 %vm960_vm1, %v1880_v40  ;;  %v3476_v40 = vld [vmem:[%s4805_s5 + $0x70] sm:$0xff] }
 0x7e1   : > { %3807 = vmatpush3.msra.mxu0 %v3463_v17  ;;  %v4013_v43 = vpack.c.bf16 %v3477_v41, %v3476_v40 }
 0x7e2   : > { %4010 = vmatprep.subr.bf16.mxu0 %v4009_v29 }
 0x8b3   : > { %v3798_v54 = vpop.f32.mrb[12].mxu0 }
 0x8b4   : > { %v2147_v55 = vsel %vm1054_vm5, %v3798_v54, -4.2949673e+09  ;;  %v2137_v56 = vpop.f32.mrb[13].mxu0  ;;  %v3484_v54 = vld [vmem:[%s4807_s7 + $0x70] sm:$0xff] }
 0x8b5   : > { %v2146_v57 = vsel %vm1053_vm3, %v2137_v56, -4.2949673e+09  ;;  %v2151_v58 = vsel %vm1061_vm6, %v2147_v55, -inf  ;;  %v4021_v56 = vpack.c.bf16 %v3485_v25, %v3484_v54  ;;  %v3043_v54 = vld [vmem:[%s4815_s15 + $0x18] sm:$0xff]  ;;  %v3044_v25 = vld [vmem:[%s4815_s15 + $0x20] sm:$0xff] }
 0x8b6   : > { %2152 = vmax.xlane.f32.xlu1 %v2151_v58  ;;  %v2148_v59 = vsel %vm1057_vm4, %v2146_v57, -inf }
 0x8b7   : > { %2149 = vmax.xlane.f32.xlu0 %v2148_v59 }
 0x943   : > { %v2153_v60 = vpop.xlane.xlu1 %2152 }
 0x944   : > { %v2155_v61 = vsub.f32 %v2147_v55, %v2153_v60  ;;  %v2150_v63 = vpop.xlane.xlu0 %2149 }
 0x945   : > { %v2154_v0 = vsub.f32 %v2146_v57, %v2150_v63 }
 0x946   : > { %v2158_v1 = vmul.f32 1.442695, %v2155_v61 }
 0x947   : > { %v2156_v2 = vmul.f32 1.442695, %v2154_v0 }
 0x948   : > { %4108 = vpow2.f32 %v2158_v1 }
 0x949   : > { %4110 = vpow2.f32 %v2156_v2 }
 0x952   : > { %v4109_v3 = vpop.eup %4108 }
 0x953   : > { %v4111_v4 = vpop.eup %4110  ;;  %v2163_v5 = vsel %vm1061_vm6, %v4109_v3, 0.0 }
 0x954   : > { %2164 = vadd.xlane.f32.xlu1 %v2163_v5  ;;  %v2160_v6 = vsel %vm1057_vm4, %v4111_v4, 0.0 }
 0x955   : > { %2161 = vadd.xlane.f32.xlu0 %v2160_v6 }
 0x9e1   : > { %v2165_v18 = vpop.xlane.xlu1 %2164 }
 0x9e2   : > { %4112 = vrcp.f32 %v2165_v18  ;;  %v2162_v19 = vpop.xlane.xlu0 %2161 }
 0x9e3   : > { %4114 = vrcp.f32 %v2162_v19 }
 0x9ec   : > { %v4113_v20 = vpop.eup %4112 }
 0x9ed   : > { %v4115_v21 = vpop.eup %4114  ;;  %v2169_v22 = vmul.f32 %v4113_v20, %v4109_v3 }
 0x9ee   : > { %v2167_v23 = vmul.f32 %v4115_v21, %v4111_v4 }
 0x9ef   : > { %3459 = vst.msk [vmem:[%s4448_s20 + $0x28] sm:$0xf] %vm1061_vm6, %v2169_v22 }
 0x9f0   : > { %3458 = vst.msk [vmem:[%s4448_s20 + $0x20] sm:$0xff] %vm1057_vm4, %v2167_v23  ;;  %3803 = vmatprep.mubr.msk.f32.mxu1 %vm1057_vm4, %v2167_v23 }
 0x9f1   : > { %3804 = vmatmul.mubr.msk.f32.vlgmr.msra.gmra.mrb[16].mxu1 %vm1057_vm4, %v2169_v22 }
 0x9f2   : > { %3819 = vmatprep.mubr.msk.f32.mxu1 %vm694_vm0, %v4317_v9  ;;  %4004 = vmatpush3.bf16.msra.mxu1 %v4001_v32 }
 0x9f3   : > { %4006 = vmatprep.subr.bf16.mxu1 %v4005_v36 }
 0x9f6   : > { %4008 = vmatpush3.bf16.msra.mxu1 %v4005_v36 }
 0x9f9   : > { %3820 = vmatmul.mubr.msk.f32.vlgmr.msra.gmra.mrb[18].mxu1 %vm694_vm0, %v4331_v12 }
 0x9fa   : > { %3841 = vmatprep.mubr.msk.f32.mxu1 %vm694_vm0, %v4379_v33  ;;  %v3471_v33 = vld [vmem:[%s4843_s21 + $0x3] ss:$0 sm:$0xff] }
 0xac4   : > { %v3805_v42 = vpop.f32.mrb[16].mxu1 }
 0xac5   : > { %v2248_v27 = vpop.f32.mrb[17].mxu1 }
 0xac6   : > { %3808 = vmatprep.mubr.msk.f32.mxu0 %vm960_vm1, %v2248_v27 }
 0xac7   : > { %3809 = vmatmul.mubr.msk.f32.vlgmr.msra.gmra.mrb[8].mxu0 %vm960_vm1, %v3805_v42 }
 0xac8   : > { %4012 = vmatpush3.bf16.msra.mxu0 %v4009_v29  ;;  %3830 = vmatprep.mubr.msk.f32.mxu0 %vm694_vm0, %v4333_v14 }
 0xac9   : > { %4014 = vmatprep.subr.bf16.mxu0 %v4013_v43 }
 0xacc   : > { %4016 = vmatpush3.bf16.msra.mxu0 %v4013_v43  ;;  %v3821_v44 = vpop.f32.mrb[18].mxu1 }
 0xacd   : > { %v2427_v45 = vadd.f32 %v3821_v44, %v3471_v33  ;;  %v2421_v46 = vpop.f32.mrb[19].mxu1 }
 0xace   : > { %v2422_v47 = vadd.f32 %v3471_v33, %v2421_v46 }
 0xacf   : > { %3831 = vmatmul.mubr.msk.f32.vlgmr.msra.gmra.mrb[14].mxu0 %vm694_vm0, %v4339_v15  ;;  %v3482_v15 = vld [vmem:[%s4807_s7 + $0x60] sm:$0xff] }
 0xad0   : > { %3848 = vmatprep.mubr.msk.f32.mxu0 %vm960_vm1, %v2422_v47  ;;  %v4017_v55 = vpack.c.bf16 %v3483_v53, %v3482_v15  ;;  %v2947_v47 = vld [vmem:[%s4813_s13 + $0x8] sm:$0xff]  ;;  %v3042_v15 = vld [vmem:[%s4815_s15 + $0x10] sm:$0xff] }
 0xad2   : > { %4018 = vmatprep.subr.bf16.mxu1 %v4017_v55 }
 0xad3   : > { %4020 = vmatpush3.bf16.msra.mxu1 %v4017_v55  ;;  %v4049_v55 = vpack.c.bf16 %v3043_v54, %v3042_v15 }
 0xad4   : > { %4022 = vmatprep.subr.bf16.mxu1 %v4021_v56 }
 0xad7   : > { %4024 = vmatpush3.bf16.msra.mxu1 %v4021_v56  ;;  %v3045_v56 = vld [vmem:[%s4815_s15 + $0x28] sm:$0xff] }
 0xada   : > { %3842 = vmatmul.mubr.msk.f32.vlgmr.msra.gmra.mrb[20].mxu1 %vm694_vm0, %v4383_v35 }
 0xba2   : > { %v3832_v14 = vpop.f32.mrb[14].mxu0 }
 0xba3   : > { %v2515_v49 = vadd.f32 %v3832_v14, %v3479_v48  ;;  %v2509_v50 = vpop.f32.mrb[15].mxu0  ;;  %v2948_v14 = vld [vmem:[%s4813_s13 + $0x10] sm:$0xff] }
 0xba4   : > { %v2510_v51 = vadd.f32 %v3479_v48, %v2509_v50 }
 0xba6   : > { %v4025_v52 = vpack.c.bf16 %v2515_v49, %v2510_v51  ;;  %v2949_v49 = vld [vmem:[%s4813_s13 + $0x18] sm:$0xff]  ;;  %v3040_v51 = vld [vmem:[%s4815_s15] sm:$0xff] }
 0xba7   : > { %v4041_v50 = vpack.c.bf16 %v2949_v49, %v2948_v14  ;;  %v3511_v14 = vld [vmem:[%s4817_s17] ss:$0 sm:$0xff] }
 0xba8   : > { %4027 = vmatprep.subr.msk.bf16.mxu0 %vm4352_vm2, %v4025_v52 }
 0xba9   : > { %4030 = vmatpush3.bf16.xpose.msk.msra.mxu0 %vm4352_vm2, %v4025_v52  ;;  %v3041_v52 = vld [vmem:[%s4815_s15 + $0x8] sm:$0xff] }
 0xbaa   : > { %3858 = vmatprep.subr.mxu0 %v3499_v16  ;;  %v4045_v53 = vpack.c.bf16 %v3041_v52, %v3040_v51  ;;  %v3512_v51 = vld [vmem:[%s4818_s18] ss:$0 sm:$0xff] }
 0xbad   : > { %v3843_v38 = vpop.f32.mrb[20].mxu1 }
 0xbae   : > { %v2597_v8 = vpop.f32.mrb[21].mxu1  ;;  %v2603_v10 = vadd.f32 %v3843_v38, %v3487_v7 }
 0xbaf   : > { %v2598_v11 = vadd.f32 %v3487_v7, %v2597_v8  ;;  %v3046_v7 = vld [vmem:[%s4815_s15 + $0x30] sm:$0xff]  ;;  %v3047_v8 = vld [vmem:[%s4815_s15 + $0x38] sm:$0xff] }
 0xbb0   : > { %3849 = vmatmul.mubr.msk.f32.vlgmr.msra.gmra.mrb[16].mxu0 %vm960_vm1, %v2427_v45 }
 0xbb1   : > { %v4031_v13 = vpack.c.bf16 %v2603_v10, %v2598_v11  ;;  %3859 = vmatpush3.msra.mxu0 %v3499_v16  ;;  %v4057_v10 = vpack.c.bf16 %v3047_v8, %v3046_v7  ;;  %v3505_v11 = vld [vmem:[%s4814_s14] ss:$0 sm:$0xff] }
 0xbb2   : > { %4046 = vmatprep.subr.bf16.mxu0 %v4045_v53 }
 0xbb3   : > { %4033 = vmatprep.subr.msk.bf16.mxu1 %vm4411_vm9, %v4031_v13 }
 0xbb4   : > { %4036 = vmatpush3.bf16.msk.msra.mxu1 %vm4411_vm9, %v4031_v13 }
 0xc83   : > { %v3850_v57 = vpop.f32.mrb[16].mxu0 }
 0xc84   : > { %v2694_v58 = vsel %vm1054_vm5, %v3850_v57, -4.2949673e+09  ;;  %v2684_v59 = vpop.f32.mrb[17].mxu0  ;;  %v4053_v57 = vpack.c.bf16 %v3045_v56, %v3044_v25  ;;  %v3244_v25 = vld [vmem:[%s4448_s20] sm:$0xff] (%p4287_p4)  ;;  %v3246_v56 = vld [vmem:[%s4448_s20 + $0x8] sm:$0xff] (%p4287_p4) }
 0xc85   : > { %v2693_v60 = vsel %vm1053_vm3, %v2684_v59, -4.2949673e+09  ;;  %v2698_v61 = vsel %vm1061_vm6, %v2694_v58, -inf  ;;  %3245 = vst [vmem:[%s3202_s22] sm:$0xff] (%p4287_p4), %v3244_v25  ;;  %3247 = vst [vmem:[%s3202_s22 + $0x8] sm:$0xff] (%p4287_p4), %v3246_v56 }
 0xc86   : > { %2699 = vmax.xlane.f32.xlu1 %v2698_v61  ;;  %v2695_v63 = vsel %vm1057_vm4, %v2693_v60, -inf }
 0xc87   : > { %2696 = vmax.xlane.f32.xlu0 %v2695_v63 }
 0xd13   : > { %v2700_v0 = vpop.xlane.xlu1 %2699 }
 0xd14   : > { %v2702_v1 = vsub.f32 %v2694_v58, %v2700_v0  ;;  %v2697_v2 = vpop.xlane.xlu0 %2696 }
 0xd15   : > { %v2701_v35 = vsub.f32 %v2693_v60, %v2697_v2  ;;  %v3503_v2 = vld [vmem:[%s4811_s11] ss:$0 sm:$0xff] }
 0xd16   : > { %v2705_v3 = vmul.f32 1.442695, %v2702_v1 }
 0xd17   : > { %v2703_v4 = vmul.f32 1.442695, %v2701_v35 }
 0xd18   : > { %4116 = vpow2.f32 %v2705_v3 }
 0xd19   : > { %4118 = vpow2.f32 %v2703_v4 }
 0xd22   : > { %v4117_v39 = vpop.eup %4116 }
 0xd23   : > { %v4119_v5 = vpop.eup %4118  ;;  %v2710_v6 = vsel %vm1061_vm6, %v4117_v39, 0.0 }
 0xd24   : > { %2711 = vadd.xlane.f32.xlu1 %v2710_v6  ;;  %v2707_v37 = vsel %vm1057_vm4, %v4119_v5, 0.0 }
 0xd25   : > { %2708 = vadd.xlane.f32.xlu0 %v2707_v37 }
 0xdb1   : > { %v2712_v17 = vpop.xlane.xlu1 %2711 }
 0xdb2   : > { %4120 = vrcp.f32 %v2712_v17  ;;  %v2709_v18 = vpop.xlane.xlu0 %2708 }
 0xdb3   : > { %4122 = vrcp.f32 %v2709_v18 }
 0xdbc   : > { %v4121_v19 = vpop.eup %4120 }
 0xdbd   : > { %v4123_v20 = vpop.eup %4122  ;;  %v2716_v21 = vmul.f32 %v4121_v19, %v4117_v39 }
 0xdbe   : > { %v2714_v22 = vmul.f32 %v4123_v20, %v4119_v5  ;;  %v3504_v5 = vld [vmem:[%s4812_s12] ss:$0 sm:$0xff] }
 0xdbf   : > { %3495 = vst.msk [vmem:[%s4448_s20 + $0x38] sm:$0xf] %vm1061_vm6, %v2716_v21 }
 0xdc0   : > { %3494 = vst.msk [vmem:[%s4448_s20 + $0x30] sm:$0xff] %vm1057_vm4, %v2714_v22  ;;  %3855 = vmatprep.mubr.msk.f32.mxu1 %vm1057_vm4, %v2714_v22 }
 0xdc1   : > { %3856 = vmatmul.mubr.msk.f32.vlgmr.msra.gmra.mrb[22].mxu1 %vm1057_vm4, %v2716_v21  ;;  %v3508_v21 = vld [vmem:[%s4816_s16] ss:$0 sm:$0xff] }
 0xe94   : > { %v3857_v62 = vpop.f32.mrb[22].mxu1 }
 0xe95   : > { %v2795_v23 = vpop.f32.mrb[23].mxu1 }
 0xe96   : > { %3860 = vmatprep.mubr.msk.f32.mxu0 %vm960_vm1, %v2795_v23 }
 0xe97   : > { %3861 = vmatmul.mubr.msk.f32.vlgmr.msra.gmra.mrb[8].mxu0 %vm960_vm1, %v3857_v62 }
 0xe98   : > { %4048 = vmatpush3.bf16.msra.mxu0 %v4045_v53 }
 0xe99   : > { %4050 = vmatprep.subr.bf16.mxu0 %v4049_v55 }
 0xe9c   : > { %4052 = vmatpush3.bf16.msra.mxu0 %v4049_v55 }
 0xe9d   : > { %4054 = vmatprep.subr.bf16.mxu0 %v4053_v57 }
 0xea0   : > { %4056 = vmatpush3.bf16.msra.mxu0 %v4053_v57  ;;  %v3248_v57 = vld [vmem:[%s4448_s20 + $0x10] sm:$0xff] (%p4287_p4) }
 0xea1   : > { %4058 = vmatprep.subr.bf16.mxu0 %v4057_v10  ;;  %3249 = vst [vmem:[%s3202_s22 + $0x20] sm:$0xff] (%p4287_p4), %v3248_v57 }
 0xea4   : > { %4060 = vmatpush3.bf16.msra.mxu0 %v4057_v10 }
 0xf6a   : > { %v3862_v26 = vpop.f32.mrb[8].mxu0 }
 0xf6b   : > { %v2897_v29 = vadd.f32 %v3862_v26, %v3502_v24  ;;  %v2878_v30 = vpop.f32.mrb[9].mxu0 }
 0xf6c   : > { %v2896_v31 = vadd.f32 %v3502_v24, %v2878_v30 }
 0xf6d   : > { %v2899_v32 = vadd.f32 %v2897_v29, %v4331_v12 }
 0xf6e   : > { %v2898_v34 = vadd.f32 %v2896_v31, %v4317_v9  ;;  %v2946_v9 = vld [vmem:[%s4813_s13] sm:$0xff] }
 0xf6f   : > { %v2904_v28 = vsel %vm2903_vm10, %v2899_v32, 0.0  ;;  %v4037_v48 = vpack.c.bf16 %v2947_v47, %v2946_v9 }
 0xf70   : > { %2905 = vadd.xlane.f32.xlu1 %v2904_v28  ;;  %v2900_v36 = vsel %vm694_vm0, %v2898_v34, 0.0 }
 0xf71   : > { %2901 = vadd.xlane.f32.xlu0 %v2900_v36  ;;  %4038 = vmatprep.subr.bf16.mxu1 %v4037_v48 }
 0xf72   : > { %4040 = vmatpush3.bf16.msra.mxu1 %v4037_v48 }
 0xf73   : > { %4042 = vmatprep.subr.bf16.mxu1 %v4041_v50 }
 0xf76   : > { %4044 = vmatpush3.bf16.msra.mxu1 %v4041_v50 }
 0xffd   : > { %v2906_v40 = vpop.xlane.xlu1 %2905 }
 0xffe   : > { %v2909_v41 = vmul.f32 0.03125, %v2906_v40  ;;  %v2902_v42 = vpop.xlane.xlu0 %2901 }
 0xfff   : > { %v2908_v27 = vmul.f32 0.03125, %v2902_v42 }
0x1000   : > { %v2911_v43 = vsub.f32 %v2899_v32, %v2909_v41 }
0x1001   : > { %v2910_v33 = vsub.f32 %v2898_v34, %v2908_v27 }
0x1002   : > { %v2913_v44 = vmul.f32 %v2911_v43, %v2911_v43 }
0x1003   : > { %v2912_v45 = vmul.f32 %v2910_v33, %v2910_v33 }
0x1004   : > { %v2917_v46 = vsel %vm2903_vm10, %v2913_v44, 0.0 }
0x1005   : > { %2918 = vadd.xlane.f32.xlu1 %v2917_v46  ;;  %v2914_v12 = vsel %vm694_vm0, %v2912_v45, 0.0 }
0x1006   : > { %2915 = vadd.xlane.f32.xlu0 %v2914_v12 }
0x1092   : > { %v2919_v58 = vpop.xlane.xlu1 %2918 }
0x1093   : > { %v2921_v59 = vmul.f32 0.03125, %v2919_v58  ;;  %v2916_v60 = vpop.xlane.xlu0 %2915  ;;  %v3250_v58 = vld [vmem:[%s4448_s20 + $0x18] sm:$0xff] (%p4287_p4) }
0x1094   : > { %v2920_v61 = vmul.f32 0.03125, %v2916_v60  ;;  %v3254_v60 = vld [vmem:[%s4448_s20 + $0x28] sm:$0xff] (%p4287_p4)  ;;  %3251 = vst [vmem:[%s3202_s22 + $0x28] sm:$0xff] (%p4287_p4), %v3250_v58 }
0x1095   : > { %v2923_v63 = vadd.f32 1e-05, %v2921_v59  ;;  %v3252_v59 = vld [vmem:[%s4448_s20 + $0x20] sm:$0xff] (%p4287_p4)  ;;  %3255 = vst [vmem:[%s3202_s22 + $0x48] sm:$0xff] (%p4287_p4), %v3254_v60 }
0x1096   : > { %v2922_v0 = vadd.f32 1e-05, %v2920_v61  ;;  %3253 = vst [vmem:[%s3202_s22 + $0x40] sm:$0xff] (%p4287_p4), %v3252_v59  ;;  %v3256_v61 = vld [vmem:[%s4448_s20 + $0x30] sm:$0xff] (%p4287_p4) }
0x1097   : > { %4124 = vrsqrt.f32 %v2923_v63  ;;  %v3258_v63 = vld [vmem:[%s4448_s20 + $0x38] sm:$0xff] (%p4287_p4)  ;;  %3257 = vst [vmem:[%s3202_s22 + $0x60] sm:$0xff] (%p4287_p4), %v3256_v61 }
0x1098   : > { %4126 = vrsqrt.f32 %v2922_v0  ;;  %3259 = vst [vmem:[%s3202_s22 + $0x68] sm:$0xff] (%p4287_p4), %v3258_v63 }
0x10a1   : > { %v4125_v1 = vpop.eup %4124 }
0x10a2   : > { %v4127_v35 = vpop.eup %4126  ;;  %v2927_v3 = vmul.f32 %v4125_v1, %v2911_v43 }
0x10a3   : > { %v2926_v4 = vmul.f32 %v4127_v35, %v2910_v33 }
0x10a4   : > { %v2936_v39 = vmul.f32 %v3503_v2, %v2927_v3 }
0x10a5   : > { %v2935_v6 = vmul.f32 %v3503_v2, %v2926_v4 }
0x10a6   : > { %v2945_v38 = vadd.f32 %v3504_v5, %v2936_v39 }
0x10a7   : > { %v2944_v37 = vadd.f32 %v3504_v5, %v2935_v6 }
0x10a9   : > { %3871 = vmatprep.mubr.msk.f32.mxu1 %vm694_vm0, %v2944_v37 }
0x10aa   : > { %3872 = vmatmul.mubr.msk.f32.vlgmr.msra.gmra.mrb[24].mxu1 %vm694_vm0, %v2945_v38 }
0x117d   : > { %v3873_v13 = vpop.f32.mrb[24].mxu1 }
0x117e   : > { %v3035_v16 = vadd.f32 %v3873_v13, %v3505_v11  ;;  %v3029_v17 = vpop.f32.mrb[25].mxu1 }
0x117f   : > { %v3030_v18 = vadd.f32 %v3505_v11, %v3029_v17 }
0x1180   : > { %v3039_v20 = vmax.f32 %v3035_v16, 0.0 }
0x1181   : > { %v3038_v19 = vmax.f32 %v3030_v18, 0.0 }
0x1183   : > { %3890 = vmatprep.mubr.msk.f32.mxu0 %vm3055_vm11, %v3038_v19 }
0x1184   : > { %3891 = vmatmul.mubr.msk.f32.vlgmr.msra.gmra.mrb[18].mxu0 %vm3055_vm11, %v3039_v20 }
0x1257   : > { %v3892_v22 = vpop.f32.mrb[18].mxu0 }
0x1258   : > { %v3134_v62 = vadd.f32 %v3892_v22, %v3508_v21  ;;  %v3128_v23 = vpop.f32.mrb[19].mxu0 }
0x1259   : > { %v3129_v24 = vadd.f32 %v3508_v21, %v3128_v23 }
0x125a   : > { %v3138_v26 = vadd.f32 %v3134_v62, %v2945_v38 }
0x125b   : > { %v3137_v29 = vadd.f32 %v3129_v24, %v2944_v37 }
0x125c   : > { %v3142_v30 = vsel %vm2903_vm10, %v3138_v26, 0.0 }
0x125d   : > { %3143 = vadd.xlane.f32.xlu1 %v3142_v30  ;;  %v3139_v31 = vsel %vm694_vm0, %v3137_v29, 0.0 }
0x125e   : > { %3140 = vadd.xlane.f32.xlu0 %v3139_v31 }
0x12ea   : > { %v3144_v32 = vpop.xlane.xlu1 %3143 }
0x12eb   : > { %v3146_v34 = vmul.f32 0.03125, %v3144_v32  ;;  %v3141_v28 = vpop.xlane.xlu0 %3140 }
0x12ec   : > { %v3145_v36 = vmul.f32 0.03125, %v3141_v28 }
0x12ed   : > { %v3148_v40 = vsub.f32 %v3138_v26, %v3146_v34 }
0x12ee   : > { %v3147_v41 = vsub.f32 %v3137_v29, %v3145_v36 }
0x12ef   : > { %v3150_v42 = vmul.f32 %v3148_v40, %v3148_v40 }
0x12f0   : > { %v3149_v27 = vmul.f32 %v3147_v41, %v3147_v41 }
0x12f1   : > { %v3154_v43 = vsel %vm2903_vm10, %v3150_v42, 0.0 }
0x12f2   : > { %3155 = vadd.xlane.f32.xlu1 %v3154_v43  ;;  %v3151_v33 = vsel %vm694_vm0, %v3149_v27, 0.0 }
0x12f3   : > { %3152 = vadd.xlane.f32.xlu0 %v3151_v33 }
0x137f   : > { %v3156_v44 = vpop.xlane.xlu1 %3155 }
0x1380   : > { %v3158_v45 = vmul.f32 0.03125, %v3156_v44  ;;  %v3153_v46 = vpop.xlane.xlu0 %3152 }
0x1381   : > { %v3157_v12 = vmul.f32 0.03125, %v3153_v46 }
0x1382   : > { %v3160_v9 = vadd.f32 1e-05, %v3158_v45 }
0x1383   : > { %v3159_v47 = vadd.f32 1e-05, %v3157_v12 }
0x1384   : > { %4128 = vrsqrt.f32 %v3160_v9 }
0x1385   : > { %4130 = vrsqrt.f32 %v3159_v47 }
0x138e   : > { %v4129_v48 = vpop.eup %4128 }
0x138f   : > { %v4131_v49 = vpop.eup %4130  ;;  %v3164_v50 = vmul.f32 %v4129_v48, %v3148_v40 }
0x1390   : > { %v3163_v52 = vmul.f32 %v4131_v49, %v3147_v41  ;;  %3199 = sbr.rel (!%p4287_p4) target bundleno = 5015 (0x1397), region = 104 }
0x1391   : > { %v3173_v15 = vmul.f32 %v3511_v14, %v3164_v50 }
0x1392   : > { %v3172_v53 = vmul.f32 %v3511_v14, %v3163_v52 }
0x1393   : > { %v3182_v54 = vadd.f32 %v3512_v51, %v3173_v15 }
0x1394   : > { %v3181_v55 = vadd.f32 %v3512_v51, %v3172_v53 }
0x1395   : > { %3184 = vst.msk [vmem:[%s676_s25 + $0x8] sm:$0xf] %vm2903_vm10, %v3182_v54 }
0x1396   : > { %3183 = vst.msk [vmem:[%s676_s25] sm:$0xff] %vm694_vm0, %v3181_v55 }
0x1397 PF: > { %s4852_s23 = sld [smem:[#allocation5_spill]]  ;;  %s4853_s1 = sld [smem:[#allocation3_spill]] }
0x1398   : > { %s4854_s22 = sld [smem:[#allocation6_spill]] }
0x139d   : > { %p28_p8 = scmp.ge.s32.totalorder %s4852_s23, 4  }
0x139f   :  { %30 = sbr.rel (!%p28_p8) target bundleno = 9 (0x9), region = 206 }

// kernel: ours_forward.10
= control target key start
LH: loop header
LB: loop body
LE: loop exit
PB: predicated region body
PF: predicated region fallthrough
CT: control target
= control target key end

     0   :  { %s4268_s0 = inlined_call_operand.vmem [shape: f32[2,4,32], index: 0, kind: input, shape index: {}, may-alias: {0,1,2}]   ;;  %s4269_s1 = inlined_call_operand.vmem [shape: f32[2,4,32], index: 1, kind: input, shape index: {}, may-alias: {0,1,2}]   ;;  %s4270_s2 = inlined_call_operand.vmem [shape: f32[2,4,32], index: 2, kind: input, shape index: {}, may-alias: {0,1,2}]   ;;  %s4271_s3 = inlined_call_operand.vmem [shape: f32[4,32,8], index: 3, kind: input, shape index: {}]   ;;  %s4272_s4 = inlined_call_operand.vmem [shape: f32[4,1,8], index: 4, kind: input, shape index: {}]   ;;  %s4273_s5 = inlined_call_operand.vmem [shape: f32[4,32,8], index: 5, kind: input, shape index: {}]   ;;  %s4274_s6 = inlined_call_operand.vmem [shape: f32[4,1,8], index: 6, kind: input, shape index: {}]   ;;  %s4275_s7 = inlined_call_operand.vmem [shape: f32[4,32,8], index: 7, kind: input, shape index: {}]   ;;  %s4276_s8 = inlined_call_operand.vmem [shape: f32[4,1,8], index: 8, kind: input, shape index: {}]   ;;  %s4277_s9 = inlined_call_operand.vmem [shape: f32[4,8,32], index: 9, kind: input, shape index: {}]   ;;  %s4278_s10 = inlined_call_operand.vmem [shape: f32[1,32], index: 10, kind: input, shape index: {}]   ;;  %s4279_s11 = inlined_call_operand.vmem [shape: f32[1,32], index: 11, kind: input, shape index: {}]   ;;  %s4280_s12 = inlined_call_operand.vmem [shape: f32[1,32], index: 12, kind: input, shape index: {}]   ;;  %s4281_s13 = inlined_call_operand.vmem [shape: f32[32,64], index: 13, kind: input, shape index: {}]   ;;  %s4282_s14 = inlined_call_operand.vmem [shape: f32[1,64], index: 14, kind: input, shape index: {}]   ;;  %s4283_s15 = inlined_call_operand.vmem [shape: f32[64,32], index: 15, kind: input, shape index: {}]   ;;  %s4284_s16 = inlined_call_operand.vmem [shape: f32[1,32], index: 16, kind: input, shape index: {}]   ;;  %s4285_s17 = inlined_call_operand.vmem [shape: f32[1,32], index: 17, kind: input, shape index: {}]   ;;  %s4286_s18 = inlined_call_operand.vmem [shape: f32[1,32], index: 18, kind: input, shape index: {}]   ;;  %s4287_s19 = inlined_call_operand.vmem [shape: f32[2,4,32], index: 19, kind: output, shape index: {0}]   ;;  %s4288_s20 = inlined_call_operand.vmem [shape: f32[4,2,4,4], index: 20, kind: output, shape index: {1}]  }
   0x1   :  { %4295 = sst [smem:[#allocation7_spill]] %s4268_s0 }
   0x2   :  { %4296 = sst [smem:[#allocation8_spill]] %s4269_s1 }
   0x3   :  { %4297 = sst [smem:[#allocation9_spill]] %s4270_s2 }
   0x4   :  { %4298 = sst [smem:[#allocation10_spill]] %s4271_s3 }
   0x5   :  { %4299 = sst [smem:[#allocation11_spill]] %s4272_s4 }
   0x6   :  { %4300 = sst [smem:[#allocation12_spill]] %s4288_s20 }
   0x7   :  { %s3759_s1 = smov 0   ;;  %s3761_s22 = smov 0  }
   0x8   :  { %s3763_s23 = smov 0  }
   0x9 LB: > { %4301 = sst [smem:[#allocation3_spill]] %s3645_s22  ;;  %s3772_s24 = sadd.s32 4294967295, %s3649_s23   ;;  %s3649_s23 = sphi %s3763_s23, %s4314_s23   ;;  %s3645_s22 = sphi %s3761_s22, %s4316_s22   ;;  %s3641_s1 = sphi %s3759_s1, %s4315_s1  }
   0xa   : > { %4302 = sst [smem:[#allocation4_spill]] %s3772_s24  ;;  %s3774_s2 = sadd.s32 1, %s3649_s23  }
   0xb   : > { %4303 = sst [smem:[#allocation5_spill]] %s3774_s2  ;;  %s475_s25 = ssub.s32 %s3649_s23, %s3774_s2 }
   0xc   : > { %s478_s3 = sadd.s32 1, %s3645_s22  ;;  %p476_p0 = scmp.eq.s32.totalorder %s475_s25, 0 }
   0xd   : > { %p488_p1 = scmp.ne.s32.totalorder %s3645_s22, %s3641_s1  ;;  %p489_p2 = scmp.eq.s32.totalorder %s3772_s24, 1 }
   0xe   : > { %p3056_p3 = scmp.ge.s32.totalorder %s3649_s23, 1  ;;  %p582_p5 = scmp.lt.s32.totalorder %s3649_s23, 3 }
   0xf   : > { %s3782_s26 = scalar_select %p476_p0, %s3645_s22, %s478_s3  }
  0x10   : > { %p3784_p4 = por %p489_p2, %p488_p1  ;;  %p583_p6 = pnand %p3056_p3, %p582_p5 }
  0x11   : > { %4304 = sst [smem:[#allocation6_spill]] %s3782_s26  ;;  %v754_v0 = vld [vmem:[%s4273_s5] sm:$0xff] (!%p583_p6)  ;;  %v755_v1 = vld [vmem:[%s4273_s5 + $0x8] sm:$0xff] (!%p583_p6)  ;;  %s4306_s25 = sld [smem:[#allocation10_spill]] (!%p583_p6)  ;;  %v3651_v3 = vmov (!%p583_p6), 0.0|0.0   ;;  %v756_v6 = vld [vmem:[%s4273_s5 + $0x10] sm:$0xff] (!%p583_p6)  ;;  %v999_v35 = vlaneseq (!%p583_p6) }
  0x12   : > { %586 = sbr.rel (%p583_p6) target bundleno = 4940 (0x134c), region = 96  ;;  %3496 = vmatprep.subr.bf16.mxu1 (!%p583_p6), %v3651_v3  ;;  %v3497_v4 = vpack.c.bf16 (!%p583_p6), %v755_v1, %v754_v0  ;;  %3490 = vmatprep.subr.bf16.mxu0 (!%p583_p6), %v3651_v3  ;;  %v757_v7 = vld [vmem:[%s4273_s5 + $0x18] sm:$0xff] (!%p583_p6)  ;;  %p650_p7 = scmp.lt.s32.totalorder (!%p583_p6), %s3772_s24, 1  ;;  %vm3652_vm0 = vmmov (!%p583_p6), 0   ;;  %v3653_v11 = vmov (!%p583_p6), 0.0   ;;  %v838_v14 = vld [vmem:[%s4275_s7] sm:$0xff] (!%p583_p6) }
  0x13   : > { %3287 = vmatprep.mubr.msk.f32.mxu1 (!%p583_p6), %vm3652_vm0, %v3653_v11  ;;  %3276 = vmatprep.mubr.msk.f32.mxu0 (!%p583_p6), %vm3652_vm0, %v3653_v11  ;;  %v3500_v12 = vpack.c.bf16 (!%p583_p6), %v757_v7, %v756_v6  ;;  %v839_v15 = vld [vmem:[%s4275_s7 + $0x8] sm:$0xff] (!%p583_p6)  ;;  %s4307_s0 = sld [smem:[#allocation8_spill]] (!%p583_p6)  ;;  %vm680_vm1 = vcmask (!%p583_p6), 261120   ;;  %s4308_s20 = sld [smem:[#allocation7_spill]] (!%p583_p6)  ;;  %v840_v19 = vld [vmem:[%s4275_s7 + $0x10] sm:$0xff] (!%p583_p6)  ;;  %v841_v20 = vld [vmem:[%s4275_s7 + $0x18] sm:$0xff] (!%p583_p6) }
  0x14   : > { %3498 = vmatpush3.bf16.msra.mxu1 (!%p583_p6), %v3497_v4  ;;  %v3503_v18 = vpack.c.bf16 (!%p583_p6), %v839_v15, %v838_v14  ;;  %v3506_v21 = vpack.c.bf16 (!%p583_p6), %v841_v20, %v840_v19  ;;  %s4309_s2 = sld [smem:[#allocation9_spill]] (!%p583_p6)  ;;  %v3064_v23 = vld [vmem:[%s4274_s6] ss:$0 sm:$0xff] (!%p583_p6)  ;;  %s4310_s22 = sld [smem:[#allocation11_spill]] (!%p583_p6)  ;;  %vm922_vm2 = vcmask (!%p583_p6), 64512   ;;  %vm1022_vm3 = vcmask (!%p583_p6), 1043456  }
  0x15   : > { %3499 = vmatprep.subr.bf16.mxu1 (!%p583_p6), %v3651_v3  ;;  %v3066_v31 = vld [vmem:[%s4276_s8] ss:$0 sm:$0xff] (!%p583_p6)  ;;  %v3886_v36 = vshrl.u32 (!%p583_p6), %v999_v35, 7  ;;  %v3888_v37 = vand.u32 (!%p583_p6), 127, %v999_v35  ;;  %vm1005_vm5 = vcmask (!%p583_p6), 27648   ;;  %v3080_v55 = vld [vmem:[%s4273_s5 + $0x28] sm:$0xff] (!%p583_p6) }
  0x16   : > { %v3079_v54 = vld [vmem:[%s4273_s5 + $0x20] sm:$0xff] (!%p583_p6)  ;;  %vm1018_vm6 = vcmask (!%p583_p6), 31744   ;;  %v3081_v59 = vld [vmem:[%s4273_s5 + $0x30] sm:$0xff] (!%p583_p6)  ;;  %v3082_v60 = vld [vmem:[%s4273_s5 + $0x38] sm:$0xff] (!%p583_p6)  ;;  %vm2651_vm7 = vcmask (!%p583_p6), 257024   ;;  %vm2782_vm8 = vcmask (!%p583_p6), 523264  }
  0x17   : > { %v669_v2 = vld [vmem:[%s4306_s25] sm:$0xff] (!%p583_p6)  ;;  %v670_v5 = vld [vmem:[%s4306_s25 + $0x8] sm:$0xff] (!%p583_p6)  ;;  %v671_v9 = vld [vmem:[%s4306_s25 + $0x10] sm:$0xff] (!%p583_p6)  ;;  %vm1003_vm4 = vcmp.le.s32.totalorder (!%p583_p6), %v3888_v37, %v3886_v36  ;;  %v3515_v57 = vpack.c.bf16 (!%p583_p6), %v3080_v55, %v3079_v54  ;;  %v3518_v61 = vpack.c.bf16 (!%p583_p6), %v3082_v60, %v3081_v59 }
  0x18   : > { %v3491_v8 = vpack.c.bf16 (!%p583_p6), %v670_v5, %v669_v2  ;;  %v672_v10 = vld [vmem:[%s4306_s25 + $0x18] sm:$0xff] (!%p583_p6)  ;;  %3501 = vmatpush3.bf16.msra.mxu1 (!%p583_p6), %v3500_v12  ;;  %v3072_v47 = vld [vmem:[%s4306_s25 + $0x20] sm:$0xff] (!%p583_p6)  ;;  %v3073_v48 = vld [vmem:[%s4306_s25 + $0x28] sm:$0xff] (!%p583_p6) }
  0x19   : > { %s651_s23 = scalar_select %p650_p7, %s3772_s24, 1  ;;  %v3494_v13 = vpack.c.bf16 %v672_v10, %v671_v9  ;;  %3306 = vmatprep.subr.mxu1 %v3653_v11  ;;  %v3509_v49 = vpack.c.bf16 %v3073_v48, %v3072_v47  ;;  %v3074_v50 = vld [vmem:[%s4306_s25 + $0x30] sm:$0xff]  ;;  %v3075_v51 = vld [vmem:[%s4306_s25 + $0x38] sm:$0xff]  ;;  %v3084_v2 = vld [vmem:[%s4274_s6 + $0x1] ss:$0 sm:$0xff] }
  0x1a   : > { %3492 = vmatpush3.bf16.msra.mxu0 %v3491_v8  ;;  %s4311_s26 = smov %s4310_s22  ;;  %v3062_v24 = vld [vmem:[%s4310_s22] ss:$0 sm:$0xff]  ;;  %v3512_v52 = vpack.c.bf16 %v3075_v51, %v3074_v50  ;;  %s647_s22 = sand.u32 1, %s3641_s1   ;;  %v3087_v10 = vld [vmem:[%s4275_s7 + $0x28] sm:$0xff]  ;;  %v3088_v12 = vld [vmem:[%s4275_s7 + $0x30] sm:$0xff] }
  0x1b   : > { %3493 = vmatprep.subr.bf16.mxu0 %v3651_v3  ;;  %s3822_s3 = sshll.u32 %s651_s23, 2  ;;  %s3057_s28 = sshll.u32 %s647_s22, 4  ;;  %v3077_v4 = vld [vmem:[%s4311_s26 + $0x1] ss:$0 sm:$0xff]  ;;  %v3089_v14 = vld [vmem:[%s4275_s7 + $0x38] sm:$0xff]  ;;  %v3103_v48 = vld [vmem:[%s4306_s25 + $0x50] sm:$0xff] }
  0x1c   : > { %s657_s21 = scalar_lea.vmem %s4307_s0, %s3822_s3  ;;  %s653_s24 = scalar_lea.vmem %s4308_s20, %s3822_s3  ;;  %v3086_v9 = vld [vmem:[%s4275_s7 + $0x20] sm:$0xff]  ;;  %v3524_v15 = vpack.c.bf16 %v3089_v14, %v3088_v12 }
  0x1d   : > { %v3834_v16 = vld [vmem:[%s657_s21] sm:$0xf]  ;;  %s661_s29 = scalar_lea.vmem %s4309_s2, %s3822_s3  ;;  %s3928_s1 = scalar_lea.vmem [#allocation2], %s3057_s28 }
  0x1e   : > { %3495 = vmatpush3.bf16.msra.mxu0 %v3494_v13  ;;  %v3840_v17 = vld [vmem:[%s653_s24] sm:$0xf]  ;;  %3288 = vmatmul.mubr.msk.f32.vlgmr.msra.gmra.mrb[0].mxu1 %vm680_vm1, %v3834_v16  ;;  %v3521_v13 = vpack.c.bf16 %v3087_v10, %v3086_v9  ;;  %s665_s22 = scalar_lea.vmem %s4287_s19, %s3822_s3  ;;  %s4312_s28 = sld [smem:[#allocation4_spill]] (%p3784_p4) }
  0x1f   : > { %3502 = vmatprep.subr.bf16.mxu0 %v3651_v3  ;;  %3308 = vmatprep.mubr.msk.f32.mxu1 %vm3652_vm0, %v3653_v11  ;;  %v3864_v22 = vld [vmem:[%s661_s29] sm:$0xf]  ;;  %s4313_s2 = sld [smem:[#allocation12_spill]] (%p3784_p4) }
  0x20   : > { %v3113_v55 = vld [vmem:[%s4274_s6 + $0x2] ss:$0 sm:$0xff] }
  0x21   : > { %3277 = vmatmul.mubr.msk.f32.vlgmr.msra.gmra.mrb[0].mxu0 %vm680_vm1, %v3840_v17 }
  0x22   : > { %3504 = vmatpush3.bf16.msra.mxu0 %v3503_v18  ;;  %3298 = vmatprep.mubr.msk.f32.mxu0 %vm3652_vm0, %v3653_v11 }
  0x23   : > { %3505 = vmatprep.subr.bf16.mxu0 %v3651_v3 }
  0x24   : > { %s3167_s4 = sshll.u32 (%p3784_p4), %s4312_s28, 2 }
  0x25   : > { %s2902_s29 = scalar_lea.vmem (%p3784_p4), %s4313_s2, %s3167_s4 }
  0x26   : > { %3507 = vmatpush3.bf16.msra.mxu0 %v3506_v21 }
  0x27   : > { %3301 = vmatprep.subr.mxu0 %v3653_v11 }
  0x29   : > { %3299 = vmatmul.mubr.msk.f32.vlgmr.msra.gmra.mrb[2].mxu0 %vm680_vm1, %v3864_v22 }
  0x2a   : > { %3303 = vmatprep.mubr.msk.f32.mxu0 %vm3652_vm0, %v3653_v11 }
  0xf1   : > { %v834_v25 = vpop.f32.mrb[0].mxu1 }
  0xf2   : > { %v835_v26 = vadd.f32 %v3064_v23, %v834_v25  ;;  %v3289_v27 = vpop.f32.mrb[1].mxu1 }
  0xf4   : > { %v750_v28 = vpop.f32.mrb[0].mxu0  ;;  %3302 = vmatpush3.xpose.msk.msra.mxu0 %vm922_vm2, %v835_v26 }
  0xf5   : > { %v751_v29 = vadd.f32 %v3062_v24, %v750_v28  ;;  %v3278_v30 = vpop.f32.mrb[1].mxu0  ;;  %3508 = vmatprep.subr.bf16.mxu0 %v3651_v3 }
  0xf7   : > { %3304 = vmatmul.mubr.msk.f32.vlgmr.msra.gmra.mrb[4].mxu0 %vm922_vm2, %v751_v29  ;;  %v3091_v29 = vld [vmem:[%s4276_s8 + $0x1] ss:$0 sm:$0xff] }
  0xf8   : > { %3319 = vmatprep.mubr.msk.f32.mxu0 %vm3652_vm0, %v3653_v11  ;;  %3510 = vmatpush3.bf16.msra.mxu0 %v3509_v49  ;;  %v3104_v49 = vld [vmem:[%s4306_s25 + $0x58] sm:$0xff] }
  0xf9   : > { %3511 = vmatprep.subr.bf16.mxu0 %v3651_v3 }
  0xfc   : > { %v918_v32 = vpop.f32.mrb[2].mxu0  ;;  %3513 = vmatpush3.bf16.msra.mxu0 %v3512_v52  ;;  %v3530_v52 = vpack.c.bf16 %v3104_v49, %v3103_v48 }
  0xfd   : > { %v919_v33 = vadd.f32 %v3066_v31, %v918_v32  ;;  %v3300_v34 = vpop.f32.mrb[3].mxu0  ;;  %3520 = vmatprep.subr.bf16.mxu0 %v3651_v3  ;;  %v3098_v32 = vld [vmem:[%s4277_s9 + $0x8] sm:$0xff] }
  0xff   : > { %3307 = vmatpush3.msk.msra.mxu1 %vm1022_vm3, %v919_v33  ;;  %3320 = vmatmul.mubr.msk.f32.vlgmr.msra.gmra.mrb[6].mxu0 %vm680_vm1, %v3840_v17 }
 0x100   : > { %3514 = vmatprep.subr.bf16.mxu1 %v3651_v3  ;;  %3341 = vmatprep.mubr.msk.f32.mxu0 %vm3652_vm0, %v3653_v11 }
 0x101   : > { %3522 = vmatpush3.bf16.msra.mxu0 %v3521_v13 }
 0x102   : > { %3523 = vmatprep.subr.bf16.mxu0 %v3651_v3 }
 0x105   : > { %3525 = vmatpush3.bf16.msra.mxu0 %v3524_v15 }
 0x106   : > { %3354 = vmatprep.subr.mxu0 %v3653_v11 }
 0x108   : > { %3342 = vmatmul.mubr.msk.f32.vlgmr.msra.gmra.mrb[8].mxu0 %vm680_vm1, %v3864_v22 }
 0x109   : > { %3356 = vmatprep.mubr.msk.f32.mxu0 %vm3652_vm0, %v3653_v11  ;;  %3355 = vmatpush3.msra.mxu0 %v3098_v32 }
 0x10a   : > { %3526 = vmatprep.subr.bf16.mxu0 %v3651_v3 }
 0x1ca   : > { %v995_v38 = vpop.f32.mrb[4].mxu0 }
 0x1cb   : > { %v1004_v39 = vsel %vm1003_vm4, %v995_v38, -4.2949673e+09  ;;  %v3305_v40 = vpop.f32.mrb[5].mxu0  ;;  %v1096_v38 = vld [vmem:[%s4277_s9] sm:$0xff] }
 0x1cc   : > { %v1006_v41 = vsel %vm1005_vm5, %v1004_v39, -inf  ;;  %v3109_v40 = vld [vmem:[%s4273_s5 + $0x48] sm:$0xff] }
 0x1cd   : > { %1007 = vmax.xlane.f32.xlu0 %v1006_v41 }
 0x1d2   : > { %v1176_v62 = vpop.f32.mrb[6].mxu0 }
 0x1d3   : > { %v3321_v63 = vpop.f32.mrb[7].mxu0  ;;  %v1177_v8 = vadd.f32 %v3077_v4, %v1176_v62  ;;  %v3106_v62 = vld [vmem:[%s4311_s26 + $0x2] ss:$0 sm:$0xff]  ;;  %v3116_v4 = vld [vmem:[%s4275_s7 + $0x48] sm:$0xff] }
 0x1db   : > { %v1342_v28 = vpop.f32.mrb[8].mxu0 }
 0x1dc   : > { %v3343_v30 = vpop.f32.mrb[9].mxu0  ;;  %v1343_v31 = vadd.f32 %v3091_v29, %v1342_v28 }
 0x1dd   : > { %v3129_v30 = vld [vmem:[%s4306_s25 + $0x60] sm:$0xff] }
 0x25a   : > { %v1008_v42 = vpop.xlane.xlu0 %1007 }
 0x25b   : > { %v1009_v43 = vsub.f32 %v1004_v39, %v1008_v42  ;;  %v3108_v39 = vld [vmem:[%s4273_s5 + $0x40] sm:$0xff]  ;;  %v3110_v42 = vld [vmem:[%s4273_s5 + $0x50] sm:$0xff] }
 0x25c   : > { %v3533_v41 = vpack.c.bf16 %v3109_v40, %v3108_v39  ;;  %v3137_v39 = vld [vmem:[%s4273_s5 + $0x68] sm:$0xff] }
 0x25d   : > { %v1010_v44 = vmul.f32 1.442695, %v1009_v43  ;;  %v3111_v43 = vld [vmem:[%s4273_s5 + $0x58] sm:$0xff] }
 0x25f   : > { %3607 = vpow2.f32 %v1010_v44  ;;  %v3536_v44 = vpack.c.bf16 %v3111_v43, %v3110_v42  ;;  %v3139_v42 = vld [vmem:[%s4273_s5 + $0x78] sm:$0xff] }
 0x269   : > { %v3608_v45 = vpop.eup %3607 }
 0x26a   : > { %v1012_v46 = vsel %vm1005_vm5, %v3608_v45, 0.0 }
 0x26b   : > { %1013 = vadd.xlane.f32.xlu0 %v1012_v46  ;;  %v3102_v46 = vld [vmem:[%s4306_s25 + $0x48] sm:$0xff] }
 0x2f8   : > { %v1014_v53 = vpop.xlane.xlu0 %1013 }
 0x2f9   : > { %3609 = vrcp.f32 %v1014_v53 }
 0x303   : > { %v3610_v56 = vpop.eup %3609 }
 0x304   : > { %v1016_v58 = vmul.f32 %v3610_v56, %v3608_v45  ;;  %v3101_v45 = vld [vmem:[%s4306_s25 + $0x40] sm:$0xff] }
 0x305   : > { %v3527_v47 = vpack.c.bf16 %v3102_v46, %v3101_v45 }
 0x306   : > { %1017 = vst.msk [vmem:[%s3928_s1] sm:$0xf] %vm1005_vm5, %v1016_v58  ;;  %3309 = vmatmul.mubr.msk.f32.vlgmr.msra.gmra.mrb[2].mxu1 %vm1018_vm6, %v1016_v58 }
 0x307   : > { %3516 = vmatpush3.bf16.msra.mxu1 %v3515_v57  ;;  %3330 = vmatprep.mubr.msk.f32.mxu1 %vm3652_vm0, %v3653_v11 }
 0x308   : > { %3517 = vmatprep.subr.bf16.mxu1 %v3651_v3 }
 0x30b   : > { %3519 = vmatpush3.bf16.msra.mxu1 %v3518_v61 }
 0x30c   : > { %3344 = vmatprep.subr.mxu1 %v3653_v11 }
 0x30e   : > { %3331 = vmatmul.mubr.msk.f32.vlgmr.msra.gmra.mrb[4].mxu1 %vm680_vm1, %v3834_v16 }
 0x30f   : > { %3346 = vmatprep.mubr.msk.f32.mxu1 %vm3652_vm0, %v3653_v11 }
 0x3d9   : > { %v1092_v0 = vpop.f32.mrb[2].mxu1 }
 0x3da   : > { %v3310_v1 = vpop.f32.mrb[3].mxu1 }
 0x3e1   : > { %v1259_v5 = vpop.f32.mrb[4].mxu1 }
 0x3e2   : > { %v1260_v6 = vadd.f32 %v3084_v2, %v1259_v5  ;;  %v3332_v7 = vpop.f32.mrb[5].mxu1  ;;  %v3115_v2 = vld [vmem:[%s4275_s7 + $0x40] sm:$0xff]  ;;  %v3117_v5 = vld [vmem:[%s4275_s7 + $0x50] sm:$0xff] }
 0x3e3   : > { %v3118_v7 = vld [vmem:[%s4275_s7 + $0x58] sm:$0xff] }
 0x3e4   : > { %3345 = vmatpush3.xpose.msk.msra.mxu1 %vm922_vm2, %v1260_v6  ;;  %v3539_v6 = vpack.c.bf16 %v3116_v4, %v3115_v2 }
 0x3e5   : > { %3349 = vmatprep.subr.mxu1 %v3653_v11 }
 0x3e7   : > { %3347 = vmatmul.mubr.msk.f32.vlgmr.msra.gmra.mrb[6].mxu1 %vm922_vm2, %v1177_v8  ;;  %v3542_v8 = vpack.c.bf16 %v3118_v7, %v3117_v5 }
 0x3e8   : > { %3351 = vmatprep.mubr.msk.f32.mxu1 %vm3652_vm0, %v3653_v11  ;;  %3350 = vmatpush3.msk.msra.mxu1 %vm1022_vm3, %v1343_v31  ;;  %v3130_v31 = vld [vmem:[%s4306_s25 + $0x68] sm:$0xff] }
 0x3e9   : > { %3359 = vmatprep.subr.mxu1 %v3653_v11  ;;  %v3545_v32 = vpack.c.bf16 %v3130_v31, %v3129_v30  ;;  %v2682_v30 = vld [vmem:[%s4281_s13] sm:$0xff]  ;;  %v2683_v31 = vld [vmem:[%s4281_s13 + $0x8] sm:$0xff] }
 0x4ba   : > { %v1418_v18 = vpop.f32.mrb[6].mxu1 }
 0x4bb   : > { %v1422_v19 = vsel %vm1003_vm4, %v1418_v18, -4.2949673e+09  ;;  %v3348_v20 = vpop.f32.mrb[7].mxu1 }
 0x4bc   : > { %v1423_v21 = vsel %vm1005_vm5, %v1422_v19, -inf }
 0x4bd   : > { %1424 = vmax.xlane.f32.xlu1 %v1423_v21 }
 0x54a   : > { %v1425_v23 = vpop.xlane.xlu1 %1424 }
 0x54b   : > { %v1426_v24 = vsub.f32 %v1422_v19, %v1425_v23  ;;  %v3120_v23 = vld [vmem:[%s4276_s8 + $0x2] ss:$0 sm:$0xff] }
 0x54d   : > { %v1427_v25 = vmul.f32 1.442695, %v1426_v24 }
 0x54f   : > { %3611 = vpow2.f32 %v1427_v25 }
 0x559   : > { %v3612_v26 = vpop.eup %3611 }
 0x55a   : > { %v1429_v27 = vsel %vm1005_vm5, %v3612_v26, 0.0 }
 0x55b   : > { %1430 = vadd.xlane.f32.xlu1 %v1429_v27 }
 0x5e8   : > { %v1431_v33 = vpop.xlane.xlu1 %1430 }
 0x5e9   : > { %3613 = vrcp.f32 %v1431_v33  ;;  %v3131_v33 = vld [vmem:[%s4306_s25 + $0x70] sm:$0xff] }
 0x5f3   : > { %v3614_v34 = vpop.eup %3613 }
 0x5f4   : > { %v1433_v35 = vmul.f32 %v3614_v34, %v3612_v26  ;;  %v3127_v26 = vld [vmem:[%s4277_s9 + $0x10] sm:$0xff]  ;;  %v3132_v34 = vld [vmem:[%s4306_s25 + $0x78] sm:$0xff] }
 0x5f6   : > { %3095 = vst.msk [vmem:[%s3928_s1 + $0x4] sm:$0xf] %vm1005_vm5, %v1433_v35  ;;  %3352 = vmatmul.mubr.msk.f32.vlgmr.msra.gmra.mrb[8].mxu1 %vm1018_vm6, %v1433_v35  ;;  %v3548_v35 = vpack.c.bf16 %v3132_v34, %v3131_v33  ;;  %v2685_v33 = vld [vmem:[%s4281_s13 + $0x18] sm:$0xff] }
 0x5f7   : > { %3360 = vmatpush3.msra.mxu1 %v1096_v38  ;;  %3361 = vmatprep.mubr.msk.f32.mxu1 %vm3652_vm0, %v3653_v11  ;;  %v3136_v38 = vld [vmem:[%s4273_s5 + $0x60] sm:$0xff] }
 0x5f8   : > { %3532 = vmatprep.subr.bf16.mxu1 %v3651_v3  ;;  %v3551_v40 = vpack.c.bf16 %v3137_v39, %v3136_v38  ;;  %v2768_v38 = vld [vmem:[%s4283_s15 + $0x8] sm:$0xff]  ;;  %v2769_v39 = vld [vmem:[%s4283_s15 + $0x10] sm:$0xff] }
 0x5fa   : > { %3362 = vmatmul.mubr.msk.f32.vlgmr.msra.gmra.mrb[10].mxu1 %vm922_vm2, %v1092_v0 }
 0x5fb   : > { %3534 = vmatpush3.bf16.msra.mxu1 %v3533_v41  ;;  %3383 = vmatprep.mubr.msk.f32.mxu1 %vm3652_vm0, %v3653_v11  ;;  %v3138_v41 = vld [vmem:[%s4273_s5 + $0x70] sm:$0xff] }
 0x5fc   : > { %3535 = vmatprep.subr.bf16.mxu1 %v3651_v3  ;;  %v3554_v45 = vpack.c.bf16 %v3139_v42, %v3138_v41  ;;  %v2770_v41 = vld [vmem:[%s4283_s15 + $0x18] sm:$0xff] }
 0x5fd   : > { %v3572_v42 = vpack.c.bf16 %v2770_v41, %v2769_v39 }
 0x5ff   : > { %3537 = vmatpush3.bf16.msra.mxu1 %v3536_v44 }
 0x600   : > { %3397 = vmatprep.subr.mxu1 %v3653_v11 }
 0x602   : > { %3384 = vmatmul.mubr.msk.f32.vlgmr.msra.gmra.mrb[12].mxu1 %vm680_vm1, %v3834_v16 }
 0x603   : > { %3399 = vmatprep.mubr.msk.f32.mxu1 %vm3652_vm0, %v3653_v11 }
 0x6c9   : > { %v1508_v50 = vpop.f32.mrb[8].mxu1 }
 0x6ca   : > { %v3353_v51 = vpop.f32.mrb[9].mxu1  ;;  %3357 = vmatmul.mubr.msk.f32.vlgmr.msra.gmra.mrb[10].mxu0 %vm922_vm2, %v1508_v50 }
 0x6cb   : > { %3528 = vmatpush3.bf16.msra.mxu0 %v3527_v47  ;;  %3372 = vmatprep.mubr.msk.f32.mxu0 %vm3652_vm0, %v3653_v11  ;;  %v3141_v51 = vld [vmem:[%s4274_s6 + $0x3] ss:$0 sm:$0xff] }
 0x6cc   : > { %3529 = vmatprep.subr.bf16.mxu0 %v3651_v3 }
 0x6cd   : > { %v1656_v53 = vpop.f32.mrb[10].mxu1 }
 0x6ce   : > { %v3363_v54 = vpop.f32.mrb[11].mxu1 }
 0x6cf   : > { %3531 = vmatpush3.bf16.msra.mxu0 %v3530_v52  ;;  %v3134_v52 = vld [vmem:[%s4311_s26 + $0x3] ss:$0 sm:$0xff] }
 0x6d0   : > { %3538 = vmatprep.subr.bf16.mxu0 %v3651_v3 }
 0x6d2   : > { %3373 = vmatmul.mubr.msk.f32.vlgmr.msra.gmra.mrb[12].mxu0 %vm680_vm1, %v3840_v17 }
 0x6d3   : > { %3394 = vmatprep.mubr.msk.f32.mxu0 %vm3652_vm0, %v3653_v11  ;;  %3540 = vmatpush3.bf16.msra.mxu0 %v3539_v6 }
 0x6d4   : > { %3541 = vmatprep.subr.bf16.mxu0 %v3651_v3 }
 0x6d5   : > { %v1822_v56 = vpop.f32.mrb[12].mxu1 }
 0x6d6   : > { %v1823_v57 = vadd.f32 %v3113_v55, %v1822_v56  ;;  %v3385_v58 = vpop.f32.mrb[13].mxu1  ;;  %v3143_v56 = vld [vmem:[%s4275_s7 + $0x60] sm:$0xff] }
 0x6d7   : > { %3543 = vmatpush3.bf16.msra.mxu0 %v3542_v8  ;;  %v3145_v58 = vld [vmem:[%s4275_s7 + $0x70] sm:$0xff]  ;;  %v3148_v8 = vld [vmem:[%s4276_s8 + $0x3] ss:$0 sm:$0xff] }
 0x6d8   : > { %3398 = vmatpush3.xpose.msk.msra.mxu1 %vm922_vm2, %v1823_v57  ;;  %3407 = vmatprep.subr.mxu0 %v3653_v11  ;;  %v3144_v57 = vld [vmem:[%s4275_s7 + $0x68] sm:$0xff] }
 0x6d9   : > { %3402 = vmatprep.subr.mxu1 %v3653_v11 }
 0x6da   : > { %3395 = vmatmul.mubr.msk.f32.vlgmr.msra.gmra.mrb[14].mxu0 %vm680_vm1, %v3864_v22 }
 0x6db   : > { %3409 = vmatprep.mubr.msk.f32.mxu0 %vm3652_vm0, %v3653_v11  ;;  %3408 = vmatpush3.msra.mxu0 %v3127_v26 }
 0x6dc   : > { %3550 = vmatprep.subr.bf16.mxu0 %v3651_v3 }
 0x79d   : > { %v1583_v59 = vpop.f32.mrb[10].mxu0 }
 0x79e   : > { %v4040_v60 = vadd.f32 %v1656_v53, %v1583_v59  ;;  %v3358_v61 = vpop.f32.mrb[11].mxu0  ;;  %v3557_v59 = vpack.c.bf16 %v3144_v57, %v3143_v56  ;;  %v3160_v56 = vld [vmem:[%s4282_s14] ss:$0 sm:$0xff] }
 0x7a5   : > { %v1739_v63 = vpop.f32.mrb[12].mxu0 }
 0x7a6   : > { %v1740_v0 = vadd.f32 %v3106_v62, %v1739_v63  ;;  %v3374_v1 = vpop.f32.mrb[13].mxu0 }
 0x7a8   : > { %3400 = vmatmul.mubr.msk.f32.vlgmr.msra.gmra.mrb[14].mxu1 %vm922_vm2, %v1740_v0 }
 0x7a9   : > { %3404 = vmatprep.mubr.msk.f32.mxu1 %vm3652_vm0, %v3653_v11 }
 0x7ad   : > { %v1905_v21 = vpop.f32.mrb[14].mxu0 }
 0x7ae   : > { %v3396_v24 = vpop.f32.mrb[15].mxu0  ;;  %v1906_v25 = vadd.f32 %v3120_v23, %v1905_v21 }
 0x7b0   : > { %3403 = vmatpush3.msk.msra.mxu1 %vm1022_vm3, %v1906_v25 }
 0x7b1   : > { %3544 = vmatprep.subr.bf16.mxu1 %v3651_v3 }
 0x87b   : > { %v1981_v9 = vpop.f32.mrb[14].mxu1 }
 0x87c   : > { %v1985_v10 = vsel %vm1003_vm4, %v1981_v9, -4.2949673e+09  ;;  %v3401_v12 = vpop.f32.mrb[15].mxu1  ;;  %v3155_v9 = vld [vmem:[%s4277_s9 + $0x18] sm:$0xff] }
 0x87d   : > { %v1986_v13 = vsel %vm1005_vm5, %v1985_v10, -inf }
 0x87e   : > { %1987 = vmax.xlane.f32.xlu0 %v1986_v13 }
 0x90b   : > { %v1988_v14 = vpop.xlane.xlu0 %1987 }
 0x90c   : > { %v1989_v15 = vsub.f32 %v1985_v10, %v1988_v14 }
 0x90e   : > { %v1990_v18 = vmul.f32 1.442695, %v1989_v15 }
 0x910   : > { %3615 = vpow2.f32 %v1990_v18 }
 0x91a   : > { %v3616_v19 = vpop.eup %3615 }
 0x91b   : > { %v1992_v20 = vsel %vm1005_vm5, %v3616_v19, 0.0 }
 0x91c   : > { %1993 = vadd.xlane.f32.xlu1 %v1992_v20 }
 0x9a9   : > { %v1994_v27 = vpop.xlane.xlu1 %1993 }
 0x9aa   : > { %3617 = vrcp.f32 %v1994_v27 }
 0x9b4   : > { %v3618_v28 = vpop.eup %3617 }
 0x9b5   : > { %v1996_v29 = vmul.f32 %v3618_v28, %v3616_v19  ;;  %v3157_v19 = vld [vmem:[%s4278_s10] ss:$0 sm:$0xff] }
 0x9b7   : > { %3124 = vst.msk [vmem:[%s3928_s1 + $0x8] sm:$0xf] %vm1005_vm5, %v1996_v29  ;;  %3405 = vmatmul.mubr.msk.f32.vlgmr.msra.gmra.mrb[16].mxu1 %vm1018_vm6, %v1996_v29 }
 0x9b8   : > { %3420 = vmatprep.mubr.msk.f32.mxu1 %vm3652_vm0, %v3653_v11  ;;  %3546 = vmatpush3.bf16.msra.mxu1 %v3545_v32  ;;  %v3563_v32 = vpack.c.bf16 %v2683_v31, %v2682_v30 }
 0x9b9   : > { %3547 = vmatprep.subr.bf16.mxu1 %v3651_v3 }
 0x9bc   : > { %3549 = vmatpush3.bf16.msra.mxu1 %v3548_v35  ;;  %v2767_v35 = vld [vmem:[%s4283_s15] sm:$0xff] }
 0x9bd   : > { %3556 = vmatprep.subr.bf16.mxu1 %v3651_v3 }
 0x9bf   : > { %3421 = vmatmul.mubr.msk.f32.vlgmr.msra.gmra.mrb[18].mxu1 %vm680_vm1, %v3840_v17 }
 0x9c0   : > { %3442 = vmatprep.mubr.msk.f32.mxu1 %vm3652_vm0, %v3653_v11  ;;  %3558 = vmatpush3.bf16.msra.mxu1 %v3557_v59 }
 0x9c1   : > { %3559 = vmatprep.subr.bf16.mxu1 %v3651_v3 }
 0xa8a   : > { %v2071_v43 = vpop.f32.mrb[16].mxu1 }
 0xa8b   : > { %v3406_v44 = vpop.f32.mrb[17].mxu1  ;;  %3410 = vmatmul.mubr.msk.f32.vlgmr.msra.gmra.mrb[16].mxu0 %vm922_vm2, %v2071_v43  ;;  %v2771_v43 = vld [vmem:[%s4283_s15 + $0x20] sm:$0xff] }
 0xa8c   : > { %3552 = vmatpush3.bf16.msra.mxu0 %v3551_v40  ;;  %3431 = vmatprep.mubr.msk.f32.mxu0 %vm3652_vm0, %v3653_v11  ;;  %v3569_v40 = vpack.c.bf16 %v2768_v38, %v2767_v35  ;;  %v2772_v44 = vld [vmem:[%s4283_s15 + $0x28] sm:$0xff] }
 0xa8d   : > { %3553 = vmatprep.subr.bf16.mxu0 %v3651_v3 }
 0xa90   : > { %3555 = vmatpush3.bf16.msra.mxu0 %v3554_v45  ;;  %v3575_v45 = vpack.c.bf16 %v2772_v44, %v2771_v43 }
 0xa91   : > { %3445 = vmatprep.subr.mxu0 %v3653_v11 }
 0xa92   : > { %v2230_v46 = vpop.f32.mrb[18].mxu1 }
 0xa93   : > { %3432 = vmatmul.mubr.msk.f32.vlgmr.msra.gmra.mrb[18].mxu0 %vm680_vm1, %v3834_v16  ;;  %v3422_v47 = vpop.f32.mrb[19].mxu1  ;;  %v2231_v55 = vadd.f32 %v3134_v52, %v2230_v46  ;;  %v3159_v52 = vld [vmem:[%s4280_s12] ss:$0 sm:$0xff] }
 0xa94   : > { %3447 = vmatprep.mubr.msk.f32.mxu0 %vm3652_vm0, %v3653_v11 }
 0xb5e   : > { %v2146_v48 = vpop.f32.mrb[16].mxu0 }
 0xb5f   : > { %v2150_v49 = vadd.f32 %v2146_v48, %v4040_v60  ;;  %v3411_v50 = vpop.f32.mrb[17].mxu0  ;;  %v3146_v60 = vld [vmem:[%s4275_s7 + $0x78] sm:$0xff] }
 0xb60   : > { %v3560_v61 = vpack.c.bf16 %v3146_v60, %v3145_v58  ;;  %v3158_v50 = vld [vmem:[%s4279_s11] ss:$0 sm:$0xff] }
 0xb62   : > { %3561 = vmatpush3.bf16.msra.mxu1 %v3560_v61  ;;  %v3162_v61 = vld [vmem:[%s4284_s16] ss:$0 sm:$0xff] }
 0xb63   : > { %3455 = vmatprep.subr.mxu1 %v3653_v11 }
 0xb65   : > { %3443 = vmatmul.mubr.msk.f32.vlgmr.msra.gmra.mrb[20].mxu1 %vm680_vm1, %v3864_v22 }
 0xb66   : > { %v2313_v53 = vpop.f32.mrb[18].mxu0  ;;  %3457 = vmatprep.mubr.msk.f32.mxu1 %vm3652_vm0, %v3653_v11  ;;  %3456 = vmatpush3.msra.mxu1 %v3155_v9 }
 0xb67   : > { %v2314_v54 = vadd.f32 %v3141_v51, %v2313_v53  ;;  %v3433_v16 = vpop.f32.mrb[19].mxu0  ;;  %3568 = vmatprep.subr.bf16.mxu1 %v3651_v3 }
 0xb68   : > { %v2774_v16 = vld [vmem:[%s4283_s15 + $0x38] sm:$0xff] }
 0xb69   : > { %3446 = vmatpush3.xpose.msk.msra.mxu0 %vm922_vm2, %v2314_v54 }
 0xb6a   : > { %3450 = vmatprep.subr.mxu0 %v3653_v11 }
 0xb6c   : > { %3448 = vmatmul.mubr.msk.f32.vlgmr.msra.gmra.mrb[20].mxu0 %vm922_vm2, %v2231_v55 }
 0xb6d   : > { %3452 = vmatprep.mubr.msk.f32.mxu0 %vm3652_vm0, %v3653_v11 }
 0xc38   : > { %v2396_v7 = vpop.f32.mrb[20].mxu1 }
 0xc39   : > { %v3444_v36 = vpop.f32.mrb[21].mxu1  ;;  %v2397_v37 = vadd.f32 %v3148_v8, %v2396_v7 }
 0xc3b   : > { %3451 = vmatpush3.msk.msra.mxu0 %vm1022_vm3, %v2397_v37 }
 0xc3c   : > { %3562 = vmatprep.subr.bf16.mxu0 %v3651_v3 }
 0xc3f   : > { %v2472_v62 = vpop.f32.mrb[20].mxu0 }
 0xc40   : > { %v2476_v63 = vsel %vm1003_vm4, %v2472_v62, -4.2949673e+09  ;;  %v3449_v0 = vpop.f32.mrb[21].mxu0 }
 0xc41   : > { %v2477_v1 = vsel %vm1005_vm5, %v2476_v63, -inf }
 0xc42   : > { %2478 = vmax.xlane.f32.xlu0 %v2477_v1 }
 0xccf   : > { %v2479_v2 = vpop.xlane.xlu0 %2478 }
 0xcd0   : > { %v2480_v4 = vsub.f32 %v2476_v63, %v2479_v2 }
 0xcd2   : > { %v2481_v5 = vmul.f32 1.442695, %v2480_v4 }
 0xcd4   : > { %3619 = vpow2.f32 %v2481_v5 }
 0xcde   : > { %v3620_v6 = vpop.eup %3619 }
 0xcdf   : > { %v2483_v22 = vsel %vm1005_vm5, %v3620_v6, 0.0 }
 0xce0   : > { %2484 = vadd.xlane.f32.xlu1 %v2483_v22 }
 0xd6d   : > { %v2485_v10 = vpop.xlane.xlu1 %2484 }
 0xd6e   : > { %3621 = vrcp.f32 %v2485_v10  ;;  %v3164_v10 = vld [vmem:[%s4285_s17] ss:$0 sm:$0xff] }
 0xd78   : > { %v3622_v12 = vpop.eup %3621 }
 0xd79   : > { %v2487_v13 = vmul.f32 %v3622_v12, %v3620_v6 }
 0xd7b   : > { %3152 = vst.msk [vmem:[%s3928_s1 + $0xc] sm:$0xf] %vm1005_vm5, %v2487_v13  ;;  %3453 = vmatmul.mubr.msk.f32.vlgmr.msra.gmra.mrb[22].mxu0 %vm1018_vm6, %v2487_v13  ;;  %v3165_v13 = vld [vmem:[%s4286_s18] ss:$0 sm:$0xff] }
 0xd7c   : > { %3468 = vmatprep.mubr.msk.f32.mxu0 %vm3652_vm0, %v3653_v11  ;;  %3564 = vmatpush3.bf16.msra.mxu0 %v3563_v32 }
 0xd7d   : > { %3565 = vmatprep.subr.bf16.mxu0 %v3651_v3 }
 0xe4e   : > { %v2562_v14 = vpop.f32.mrb[22].mxu0 }
 0xe4f   : > { %v3454_v15 = vpop.f32.mrb[23].mxu0  ;;  %3458 = vmatmul.mubr.msk.f32.vlgmr.msra.gmra.mrb[22].mxu1 %vm922_vm2, %v2562_v14 }
 0xe50   : > { %3487 = vmatprep.mubr.msk.f32.mxu1 %vm3652_vm0, %v3653_v11  ;;  %3570 = vmatpush3.bf16.msra.mxu1 %v3569_v40 }
 0xe51   : > { %3571 = vmatprep.subr.bf16.mxu1 %v3651_v3 }
 0xe54   : > { %3573 = vmatpush3.bf16.msra.mxu1 %v3572_v42 }
 0xe55   : > { %3574 = vmatprep.subr.bf16.mxu1 %v3651_v3 }
 0xe58   : > { %3576 = vmatpush3.bf16.msra.mxu1 %v3575_v45 }
 0xe59   : > { %3577 = vmatprep.subr.bf16.mxu1 %v3651_v3  ;;  %v2773_v3 = vld [vmem:[%s4283_s15 + $0x30] sm:$0xff] }
 0xe5a   : > { %v3578_v55 = vpack.c.bf16 %v2774_v16, %v2773_v3 }
 0xe5c   : > { %3579 = vmatpush3.bf16.msra.mxu1 %v3578_v55 }
 0xf22   : > { %v2637_v18 = vpop.f32.mrb[22].mxu1 }
 0xf23   : > { %v2641_v20 = vadd.f32 %v2637_v18, %v2150_v49  ;;  %v3459_v21 = vpop.f32.mrb[23].mxu1  ;;  %v2918_v18 = vld [vmem:[%s3928_s1] sm:$0xf] (%p3784_p4) }
 0xf24   : > { %v2924_v21 = vld [vmem:[%s3928_s1 + $0xc] sm:$0xf] (%p3784_p4)  ;;  %2919 = vst [vmem:[%s2902_s29] sm:$0xf] (%p3784_p4), %v2918_v18 }
 0xf25   : > { %v2649_v23 = vadd.f32 %v3157_v19, %v2641_v20  ;;  %v2920_v19 = vld [vmem:[%s3928_s1 + $0x4] sm:$0xf] (%p3784_p4)  ;;  %v2922_v20 = vld [vmem:[%s3928_s1 + $0x8] sm:$0xf] (%p3784_p4)  ;;  %2925 = vst [vmem:[%s2902_s29 + $0x18] sm:$0xf] (%p3784_p4), %v2924_v21 }
 0xf26   : > { %2921 = vst [vmem:[%s2902_s29 + $0x8] sm:$0xf] (%p3784_p4), %v2920_v19  ;;  %2923 = vst [vmem:[%s2902_s29 + $0x10] sm:$0xf] (%p3784_p4), %v2922_v20 }
 0xf27   : > { %v2650_v24 = vadd.f32 %v2649_v23, %v3840_v17  ;;  %v2684_v17 = vld [vmem:[%s4281_s13 + $0x10] sm:$0xff] }
 0xf28   : > { %v3566_v34 = vpack.c.bf16 %v2685_v33, %v2684_v17 }
 0xf29   : > { %v2652_v25 = vsel %vm2651_vm7, %v2650_v24, 0.0 }
 0xf2a   : > { %2653 = vadd.xlane.f32.xlu0 %v2652_v25  ;;  %3567 = vmatpush3.bf16.msra.mxu0 %v3566_v34 }
 0xfb7   : > { %v2654_v26 = vpop.xlane.xlu0 %2653 }
 0xfb8   : > { %v2656_v27 = vmul.f32 0.03125, %v2654_v26 }
 0xfba   : > { %v2657_v28 = vsub.f32 %v2650_v24, %v2656_v27 }
 0xfbc   : > { %v2658_v29 = vmul.f32 %v2657_v28, %v2657_v28 }
 0xfbe   : > { %v2659_v11 = vsel %vm2651_vm7, %v2658_v29, 0.0 }
 0xfbf   : > { %2660 = vadd.xlane.f32.xlu1 %v2659_v11 }
0x104c   : > { %v2661_v46 = vpop.xlane.xlu1 %2660 }
0x104d   : > { %v2662_v47 = vmul.f32 0.03125, %v2661_v46 }
0x104f   : > { %v2663_v48 = vadd.f32 1e-05, %v2662_v47 }
0x1051   : > { %3623 = vrsqrt.f32 %v2663_v48 }
0x105b   : > { %v3624_v49 = vpop.eup %3623 }
0x105c   : > { %v2665_v51 = vmul.f32 %v3624_v49, %v2657_v28 }
0x105e   : > { %v2673_v53 = vmul.f32 %v3158_v50, %v2665_v51 }
0x1060   : > { %v2681_v54 = vadd.f32 %v3159_v52, %v2673_v53 }
0x1062   : > { %3469 = vmatmul.mubr.msk.f32.vlgmr.msra.gmra.mrb[24].mxu0 %vm680_vm1, %v2681_v54 }
0x1135   : > { %v2762_v57 = vpop.f32.mrb[24].mxu0 }
0x1136   : > { %v2763_v58 = vadd.f32 %v3160_v56, %v2762_v57  ;;  %v3470_v59 = vpop.f32.mrb[25].mxu0 }
0x1138   : > { %v2766_v60 = vmax.f32 %v2763_v58, 0.0 }
0x113a   : > { %3488 = vmatmul.mubr.msk.f32.vlgmr.msra.gmra.mrb[24].mxu1 %vm2782_vm8, %v2766_v60 }
0x120d   : > { %v2852_v62 = vpop.f32.mrb[24].mxu1 }
0x120e   : > { %v2853_v63 = vadd.f32 %v3162_v61, %v2852_v62  ;;  %v3489_v0 = vpop.f32.mrb[25].mxu1 }
0x1210   : > { %v2856_v1 = vadd.f32 %v2853_v63, %v2681_v54 }
0x1212   : > { %v2857_v2 = vsel %vm2651_vm7, %v2856_v1, 0.0 }
0x1213   : > { %2858 = vadd.xlane.f32.xlu0 %v2857_v2 }
0x12a0   : > { %v2859_v4 = vpop.xlane.xlu0 %2858 }
0x12a1   : > { %v2860_v5 = vmul.f32 0.03125, %v2859_v4 }
0x12a3   : > { %v2861_v6 = vsub.f32 %v2856_v1, %v2860_v5 }
0x12a5   : > { %v2862_v22 = vmul.f32 %v2861_v6, %v2861_v6 }
0x12a7   : > { %v2863_v7 = vsel %vm2651_vm7, %v2862_v22, 0.0 }
0x12a8   : > { %2864 = vadd.xlane.f32.xlu1 %v2863_v7 }
0x1335   : > { %v2865_v8 = vpop.xlane.xlu1 %2864 }
0x1336   : > { %v2866_v36 = vmul.f32 0.03125, %v2865_v8 }
0x1338   : > { %v2867_v37 = vadd.f32 1e-05, %v2866_v36 }
0x133a   : > { %3625 = vrsqrt.f32 %v2867_v37 }
0x1344   : > { %v3626_v9 = vpop.eup %3625 }
0x1345   : > { %v2869_v12 = vmul.f32 %v3626_v9, %v2861_v6  ;;  %2900 = sbr.rel (!%p3784_p4) target bundleno = 4940 (0x134c), region = 104 }
0x1347   : > { %v2877_v14 = vmul.f32 %v3164_v10, %v2869_v12 }
0x1349   : > { %v2885_v15 = vadd.f32 %v3165_v13, %v2877_v14 }
0x134b   : > { %2886 = vst.msk [vmem:[%s665_s22] sm:$0xf] %vm2651_vm7, %v2885_v15 }
0x134c PF: > { %s4314_s23 = sld [smem:[#allocation5_spill]]  ;;  %s4315_s1 = sld [smem:[#allocation3_spill]] }
0x134d   : > { %s4316_s22 = sld [smem:[#allocation6_spill]] }
0x1352   : > { %p28_p8 = scmp.ge.s32.totalorder %s4314_s23, 4  }
0x1354   :  { %30 = sbr.rel (!%p28_p8) target bundleno = 9 (0x9), region = 209 }

// kernel: ours_forward.11
= control target key start
LH: loop header
LB: loop body
LE: loop exit
PB: predicated region body
PF: predicated region fallthrough
CT: control target
= control target key end

     0   :  { %s4618_s0 = inlined_call_operand.vmem [shape: f32[2,12,32], index: 0, kind: input, shape index: {}]   ;;  %s4619_s1 = inlined_call_operand.vmem [shape: f32[2,4,32], index: 1, kind: input, shape index: {}, may-alias: {1,2}]   ;;  %s4620_s2 = inlined_call_operand.vmem [shape: f32[2,4,32], index: 2, kind: input, shape index: {}, may-alias: {1,2}]   ;;  %s4621_s3 = inlined_call_operand.vmem [shape: f32[4,32,8], index: 3, kind: input, shape index: {}]   ;;  %s4622_s4 = inlined_call_operand.vmem [shape: f32[4,1,8], index: 4, kind: input, shape index: {}]   ;;  %s4623_s5 = inlined_call_operand.vmem [shape: f32[4,32,8], index: 5, kind: input, shape index: {}]   ;;  %s4624_s6 = inlined_call_operand.vmem [shape: f32[4,1,8], index: 6, kind: input, shape index: {}]   ;;  %s4625_s7 = inlined_call_operand.vmem [shape: f32[4,32,8], index: 7, kind: input, shape index: {}]   ;;  %s4626_s8 = inlined_call_operand.vmem [shape: f32[4,1,8], index: 8, kind: input, shape index: {}]   ;;  %s4627_s9 = inlined_call_operand.vmem [shape: f32[4,8,32], index: 9, kind: input, shape index: {}]   ;;  %s4628_s10 = inlined_call_operand.vmem [shape: f32[1,32], index: 10, kind: input, shape index: {}]   ;;  %s4629_s11 = inlined_call_operand.vmem [shape: f32[1,32], index: 11, kind: input, shape index: {}]   ;;  %s4630_s12 = inlined_call_operand.vmem [shape: f32[1,32], index: 12, kind: input, shape index: {}]   ;;  %s4631_s13 = inlined_call_operand.vmem [shape: f32[32,64], index: 13, kind: input, shape index: {}]   ;;  %s4632_s14 = inlined_call_operand.vmem [shape: f32[1,64], index: 14, kind: input, shape index: {}]   ;;  %s4633_s15 = inlined_call_operand.vmem [shape: f32[64,32], index: 15, kind: input, shape index: {}]   ;;  %s4634_s16 = inlined_call_operand.vmem [shape: f32[1,32], index: 16, kind: input, shape index: {}]   ;;  %s4635_s17 = inlined_call_operand.vmem [shape: f32[1,32], index: 17, kind: input, shape index: {}]   ;;  %s4636_s18 = inlined_call_operand.vmem [shape: f32[1,32], index: 18, kind: input, shape index: {}]   ;;  %s4637_s19 = inlined_call_operand.vmem [shape: f32[2,12,32], index: 19, kind: output, shape index: {0}]   ;;  %s4638_s20 = inlined_call_operand.vmem [shape: f32[4,2,12,4], index: 20, kind: output, shape index: {1}]  }
   0x1   :  { %4646 = sst [smem:[#allocation7_spill]] %s4618_s0 }
   0x2   :  { %4647 = sst [smem:[#allocation8_spill]] %s4619_s1 }
   0x3   :  { %4648 = sst [smem:[#allocation9_spill]] %s4620_s2 }
   0x4   :  { %4649 = sst [smem:[#allocation10_spill]] %s4621_s3 }
   0x5   :  { %4650 = sst [smem:[#allocation11_spill]] %s4622_s4 }
   0x6   :  { %4651 = sst [smem:[#allocation12_spill]] %s4638_s20 }
   0x7   :  { %s4088_s1 = smov 0   ;;  %s4090_s22 = smov 0  }
   0x8   :  { %s4092_s23 = smov 0  }
   0x9 LB: > { %4652 = sst [smem:[#allocation3_spill]] %s3974_s22  ;;  %s4101_s24 = sadd.s32 4294967295, %s3978_s23   ;;  %s3978_s23 = sphi %s4092_s23, %s4665_s23   ;;  %s3974_s22 = sphi %s4090_s22, %s4667_s22   ;;  %s3970_s1 = sphi %s4088_s1, %s4666_s1  }
   0xa   : > { %4653 = sst [smem:[#allocation4_spill]] %s4101_s24  ;;  %s4103_s2 = sadd.s32 1, %s3978_s23  }
   0xb   : > { %4654 = sst [smem:[#allocation5_spill]] %s4103_s2  ;;  %s475_s25 = ssub.s32 %s3978_s23, %s4103_s2 }
   0xc   : > { %s478_s3 = sadd.s32 1, %s3974_s22  ;;  %p476_p0 = scmp.eq.s32.totalorder %s475_s25, 0 }
   0xd   : > { %p488_p1 = scmp.ne.s32.totalorder %s3974_s22, %s3970_s1  ;;  %p489_p2 = scmp.eq.s32.totalorder %s4101_s24, 1 }
   0xe   : > { %p3300_p3 = scmp.ge.s32.totalorder %s3978_s23, 1  ;;  %p583_p5 = scmp.lt.s32.totalorder %s3978_s23, 3 }
   0xf   : > { %s4111_s26 = scalar_select %p476_p0, %s3974_s22, %s478_s3  }
  0x10   : > { %p4113_p4 = por %p489_p2, %p488_p1  ;;  %p584_p6 = pnand %p3300_p3, %p583_p5 }
  0x11   : > { %4655 = sst [smem:[#allocation6_spill]] %s4111_s26  ;;  %s4657_s29 = sld [smem:[#allocation10_spill]] (!%p584_p6)  ;;  %v3980_v5 = vmov (!%p584_p6), 0.0|0.0   ;;  %vm3981_vm0 = vmmov (!%p584_p6), 0   ;;  %v3982_v7 = vmov (!%p584_p6), 0.0   ;;  %vm686_vm1 = vcmask (!%p584_p6), 261120  }
  0x12   : > { %587 = sbr.rel (%p584_p6) target bundleno = 4987 (0x137b), region = 96  ;;  %p653_p7 = scmp.lt.s32.totalorder (!%p584_p6), %s4101_s24, 1  ;;  %3793 = vmatprep.subr.bf16.mxu0 (!%p584_p6), %v3980_v5  ;;  %3587 = vmatprep.mubr.msk.f32.mxu0 (!%p584_p6), %vm3981_vm0, %v3982_v7  ;;  %v768_v8 = vld [vmem:[%s4623_s5] sm:$0xff] (!%p584_p6)  ;;  %v769_v9 = vld [vmem:[%s4623_s5 + $0x8] sm:$0xff] (!%p584_p6)  ;;  %v770_v13 = vld [vmem:[%s4623_s5 + $0x10] sm:$0xff] (!%p584_p6)  ;;  %vm936_vm2 = vcmask (!%p584_p6), 64512   ;;  %v1021_v33 = vlaneseq (!%p584_p6) }
  0x13   : > { %s4658_s21 = sld [smem:[#allocation7_spill]] (!%p584_p6)  ;;  %v3788_v12 = vpack.c.bf16 (!%p584_p6), %v769_v9, %v768_v8  ;;  %v771_v14 = vld [vmem:[%s4623_s5 + $0x18] sm:$0xff] (!%p584_p6)  ;;  %s4659_s23 = sld [smem:[#allocation8_spill]] (!%p584_p6)  ;;  %v3311_v21 = vld [vmem:[%s4624_s6] ss:$0 sm:$0xff] (!%p584_p6)  ;;  %v853_v27 = vld [vmem:[%s4625_s7 + $0x8] sm:$0xff] (!%p584_p6) }
  0x14   : > { %v3791_v15 = vpack.c.bf16 (!%p584_p6), %v771_v14, %v770_v13  ;;  %s4660_s3 = sld [smem:[#allocation11_spill]] (!%p584_p6)  ;;  %v852_v26 = vld [vmem:[%s4625_s7] sm:$0xff] (!%p584_p6)  ;;  %v854_v28 = vld [vmem:[%s4625_s7 + $0x10] sm:$0xff] (!%p584_p6)  ;;  %v855_v30 = vld [vmem:[%s4625_s7 + $0x18] sm:$0xff] (!%p584_p6)  ;;  %s4661_s20 = sld [smem:[#allocation9_spill]] (!%p584_p6)  ;;  %v4210_v34 = vshrl.u32 (!%p584_p6), %v1021_v33, 7 }
  0x15   : > { %v3794_v29 = vpack.c.bf16 (!%p584_p6), %v853_v27, %v852_v26  ;;  %v3797_v31 = vpack.c.bf16 (!%p584_p6), %v855_v30, %v854_v28  ;;  %v4212_v35 = vand.u32 (!%p584_p6), 127, %v1021_v33  ;;  %vm1030_vm4 = vcmask (!%p584_p6), 31744   ;;  %v3313_v53 = vld [vmem:[%s4626_s8] ss:$0 sm:$0xff] (!%p584_p6)  ;;  %v3332_v13 = vld [vmem:[%s4623_s5 + $0x38] sm:$0xff] (!%p584_p6)  ;;  %v3337_v28 = vld [vmem:[%s4625_s7 + $0x28] sm:$0xff] (!%p584_p6) }
  0x16   : > { %v4215_v36 = vadd.s32 (!%p584_p6), 8, %v4210_v34  ;;  %vm1034_vm6 = vcmask (!%p584_p6), 27648   ;;  %vm1062_vm7 = vcmask (!%p584_p6), 1043456   ;;  %v3336_v27 = vld [vmem:[%s4625_s7 + $0x20] sm:$0xff] (!%p584_p6)  ;;  %vm2837_vm8 = vcmask (!%p584_p6), 257024  }
  0x17   : > { %v675_v0 = vld [vmem:[%s4657_s29] sm:$0xff] (!%p584_p6)  ;;  %v676_v1 = vld [vmem:[%s4657_s29 + $0x8] sm:$0xff] (!%p584_p6)  ;;  %v677_v2 = vld [vmem:[%s4657_s29 + $0x10] sm:$0xff] (!%p584_p6)  ;;  %3795 = vmatpush3.bf16.msra.mxu0 (!%p584_p6), %v3794_v29  ;;  %vm1026_vm3 = vcmp.le.s32.totalorder (!%p584_p6), %v4212_v35, %v4210_v34  ;;  %v3814_v30 = vpack.c.bf16 (!%p584_p6), %v3337_v28, %v3336_v27  ;;  %vm2989_vm9 = vcmask (!%p584_p6), 523264  }
  0x18   : > { %v3779_v3 = vpack.c.bf16 (!%p584_p6), %v676_v1, %v675_v0  ;;  %v678_v4 = vld [vmem:[%s4657_s29 + $0x18] sm:$0xff] (!%p584_p6)  ;;  %3796 = vmatprep.subr.bf16.mxu0 (!%p584_p6), %v3980_v5  ;;  %vm1027_vm5 = vcmp.le.s32.totalorder (!%p584_p6), %v4212_v35, %v4215_v36  ;;  %v3321_v57 = vld [vmem:[%s4657_s29 + $0x20] sm:$0xff] (!%p584_p6)  ;;  %v3322_v58 = vld [vmem:[%s4657_s29 + $0x28] sm:$0xff] (!%p584_p6) }
  0x19   : > { %v3783_v6 = vpack.c.bf16 %v678_v4, %v677_v2  ;;  %s4132_s28 = scalar_select %p653_p7, %s4101_s24, 1  ;;  %v3799_v59 = vpack.c.bf16 %v3322_v58, %v3321_v57  ;;  %v3323_v60 = vld [vmem:[%s4657_s29 + $0x30] sm:$0xff]  ;;  %v3324_v61 = vld [vmem:[%s4657_s29 + $0x38] sm:$0xff]  ;;  %v3330_v4 = vld [vmem:[%s4623_s5 + $0x28] sm:$0xff] }
  0x1a   : > { %3780 = vmatprep.subr.bf16.mxu1 %v3779_v3  ;;  %v3308_v17 = vld [vmem:[%s4660_s3] ss:$0 sm:$0xff]  ;;  %v3803_v62 = vpack.c.bf16 %v3324_v61, %v3323_v60  ;;  %v3338_v29 = vld [vmem:[%s4625_s7 + $0x30] sm:$0xff]  ;;  %v3351_v57 = vld [vmem:[%s4627_s9 + $0x8] sm:$0xff] }
  0x1b   : > { %3782 = vmatpush3.bf16.msra.mxu1 %v3779_v3  ;;  %s4642_s4 = sshll.u32 %s4132_s28, 4  ;;  %s3304_s22 = sshll.u32 %s4132_s28, 2  ;;  %3798 = vmatpush3.bf16.msra.mxu0 %v3797_v31  ;;  %v3329_v3 = vld [vmem:[%s4623_s5 + $0x20] sm:$0xff]  ;;  %v3339_v31 = vld [vmem:[%s4625_s7 + $0x38] sm:$0xff] }
  0x1c   : > { %3784 = vmatprep.subr.bf16.mxu1 %v3783_v6  ;;  %s657_s25 = scalar_lea.vmem %s4658_s21, %s4642_s4  ;;  %s661_s30 = scalar_lea.vmem %s4659_s23, %s3304_s22  ;;  %3800 = vmatprep.subr.bf16.mxu0 %v3799_v59  ;;  %v3808_v8 = vpack.c.bf16 %v3330_v4, %v3329_v3  ;;  %v3817_v33 = vpack.c.bf16 %v3339_v31, %v3338_v29  ;;  %v3358_v4 = vld [vmem:[%s4657_s29 + $0x50] sm:$0xff]  ;;  %v3371_v29 = vld [vmem:[%s4625_s7 + $0x40] sm:$0xff] }
  0x1d   : > { %v4148_v10 = vld [vmem:[%s657_s25] sm:$0xff]  ;;  %v4152_v11 = vld [vmem:[%s657_s25 + $0x8] sm:$0xf]  ;;  %s665_s24 = scalar_lea.vmem %s4661_s20, %s3304_s22  ;;  %s650_s25 = sand.u32 1, %s3970_s1   ;;  %v3373_v31 = vld [vmem:[%s4625_s7 + $0x50] sm:$0xff] }
  0x1e   : > { %3565 = vmatprep.mubr.msk.f32.mxu1 %vm686_vm1, %v4148_v10  ;;  %v4172_v16 = vld [vmem:[%s661_s30] sm:$0xf]  ;;  %s3301_s20 = sshll.u32 %s650_s25, 6  ;;  %s4662_s21 = sshll.u32 %s4132_s28, 4 }
  0x1f   : > { %3786 = vmatpush3.bf16.msra.mxu1 %v3783_v6  ;;  %v4204_v32 = vld [vmem:[%s665_s24] sm:$0xf]  ;;  %s4261_s2 = scalar_lea.vmem [#allocation2], %s3301_s20  ;;  %s670_s20 = scalar_lea.vmem %s4637_s19, %s4662_s21 }
  0x20   : > { %3787 = vmatprep.subr.bf16.mxu1 %v3980_v5  ;;  %3588 = vmatmul.mubr.msk.f32.vlgmr.msra.gmra.mrb[0].mxu0 %vm686_vm1, %v4204_v32  ;;  %v3409_v35 = vld [vmem:[%s4626_s8 + $0x3] ss:$0 sm:$0xff]  ;;  %s4663_s24 = sld [smem:[#allocation4_spill]] (%p4113_p4)  ;;  %s4664_s30 = sld [smem:[#allocation12_spill]] (%p4113_p4) }
  0x21   : > { %3608 = vmatprep.mubr.msk.f32.mxu0 %vm686_vm1, %v4148_v10  ;;  %3802 = vmatpush3.bf16.msra.mxu0 %v3799_v59 }
  0x22   : > { %3566 = vmatmul.mubr.msk.f32.vlgmr.msra.gmra.mrb[0].mxu1 %vm686_vm1, %v4152_v11  ;;  %3804 = vmatprep.subr.bf16.mxu0 %v3803_v62 }
  0x23   : > { %3789 = vmatpush3.bf16.msra.mxu1 %v3788_v12  ;;  %3576 = vmatprep.mubr.msk.f32.mxu1 %vm3981_vm0, %v3982_v7  ;;  %v3331_v12 = vld [vmem:[%s4623_s5 + $0x30] sm:$0xff] }
  0x24   : > { %3790 = vmatprep.subr.bf16.mxu1 %v3980_v5  ;;  %v3811_v14 = vpack.c.bf16 %v3332_v13, %v3331_v12  ;;  %v3364_v13 = vld [vmem:[%s4623_s5 + $0x40] sm:$0xff] }
  0x25   : > { %3806 = vmatpush3.bf16.msra.mxu0 %v3803_v62 }
  0x26   : > { %3813 = vmatprep.subr.bf16.mxu0 %v3980_v5  ;;  %s3440_s28 = sshll.u32 (%p4113_p4), %s4663_s24, 4 }
  0x27   : > { %3792 = vmatpush3.bf16.msra.mxu1 %v3791_v15  ;;  %s3136_s1 = scalar_lea.vmem (%p4113_p4), %s4664_s30, %s3440_s28 }
  0x28   : > { %3609 = vmatmul.mubr.msk.f32.vlgmr.msra.gmra.mrb[2].mxu0 %vm686_vm1, %v4152_v11 }
  0x29   : > { %3630 = vmatprep.mubr.msk.f32.mxu0 %vm3981_vm0, %v3982_v7  ;;  %3815 = vmatpush3.bf16.msra.mxu0 %v3814_v30  ;;  %v3372_v30 = vld [vmem:[%s4625_s7 + $0x48] sm:$0xff] }
  0x2a   : > { %3577 = vmatmul.mubr.msk.f32.vlgmr.msra.gmra.mrb[2].mxu1 %vm686_vm1, %v4172_v16  ;;  %3816 = vmatprep.subr.bf16.mxu0 %v3980_v5 }
  0x2d   : > { %3818 = vmatpush3.bf16.msra.mxu0 %v3817_v33  ;;  %v3834_v33 = vpack.c.bf16 %v3372_v30, %v3371_v29  ;;  %v3405_v29 = vld [vmem:[%s4625_s7 + $0x68] sm:$0xff]  ;;  %v3406_v30 = vld [vmem:[%s4625_s7 + $0x70] sm:$0xff] }
  0x2e   : > { %3643 = vmatprep.subr.mxu0 %v3351_v57 }
  0x30   : > { %3631 = vmatmul.mubr.msk.f32.vlgmr.msra.gmra.mrb[4].mxu0 %vm686_vm1, %v4204_v32 }
  0x31   : > { %3644 = vmatpush3.msra.mxu0 %v3351_v57 }
  0xf3   : > { %v932_v54 = vpop.f32.mrb[0].mxu0 }
  0xf4   : > { %v933_v55 = vadd.f32 %v3313_v53, %v932_v54  ;;  %v3589_v56 = vpop.f32.mrb[1].mxu0  ;;  %v3341_v53 = vld [vmem:[%s4626_s8 + $0x1] ss:$0 sm:$0xff] }
  0xf5   : > { %v3567_v18 = vpop.f32.mrb[0].mxu1 }
  0xf6   : > { %v759_v19 = vpop.f32.mrb[1].mxu1  ;;  %v765_v25 = vadd.f32 %v3567_v18, %v3308_v17 }
  0xf7   : > { %v760_v20 = vadd.f32 %v3308_v17, %v759_v19  ;;  %v3326_v17 = vld [vmem:[%s4660_s3 + $0x1] ss:$0 sm:$0xff] }
  0xf9   : > { %3592 = vmatprep.mubr.msk.f32.mxu1 %vm936_vm2, %v760_v20 }
  0xfb   : > { %v3610_v15 = vpop.f32.mrb[2].mxu0 }
  0xfc   : > { %v1227_v18 = vadd.f32 %v3610_v15, %v3326_v17  ;;  %v1221_v19 = vpop.f32.mrb[3].mxu0 }
  0xfd   : > { %v848_v22 = vpop.f32.mrb[2].mxu1  ;;  %v1222_v20 = vadd.f32 %v3326_v17, %v1221_v19  ;;  %v3366_v17 = vld [vmem:[%s4623_s5 + $0x50] sm:$0xff] }
  0xfe   : > { %v849_v23 = vadd.f32 %v3311_v21, %v848_v22  ;;  %v3578_v24 = vpop.f32.mrb[3].mxu1 }
 0x100   : > { %3590 = vmatprep.subr.msk.mxu1 %vm936_vm2, %v849_v23 }
 0x101   : > { %3591 = vmatpush3.xpose.msk.msra.mxu1 %vm936_vm2, %v849_v23  ;;  %v3334_v23 = vld [vmem:[%s4624_s6 + $0x1] ss:$0 sm:$0xff] }
 0x102   : > { %3595 = vmatprep.subr.msk.mxu1 %vm1062_vm7, %v933_v55 }
 0x103   : > { %v1392_v54 = vpop.f32.mrb[4].mxu0 }
 0x104   : > { %3593 = vmatmul.mubr.msk.f32.vlgmr.msra.gmra.mrb[4].mxu1 %vm936_vm2, %v765_v25  ;;  %v3632_v56 = vpop.f32.mrb[5].mxu0 }
 0x105   : > { %3596 = vmatpush3.msk.msra.mxu1 %vm1062_vm7, %v933_v55  ;;  %v1393_v55 = vadd.f32 %v3341_v53, %v1392_v54 }
 0x106   : > { %3807 = vmatprep.subr.bf16.mxu1 %v3980_v5 }
 0x1d7   : > { %v3594_v37 = vpop.f32.mrb[4].mxu1 }
 0x1d8   : > { %v1012_v38 = vpop.f32.mrb[5].mxu1  ;;  %v1029_v41 = vsel %vm1027_vm5, %v3594_v37, -4.2949673e+09 }
 0x1d9   : > { %v1028_v39 = vsel %vm1026_vm3, %v1012_v38, -4.2949673e+09  ;;  %v1035_v42 = vsel %vm1034_vm6, %v1029_v41, -inf }
 0x1da   : > { %v1031_v40 = vsel %vm1030_vm4, %v1028_v39, -inf }
 0x1db   : > { %1032 = vmax.xlane.f32.xlu0 %v1031_v40 }
 0x1df   : > { %1036 = vmax.xlane.f32.xlu0 %v1035_v42 }
 0x268   : > { %v1033_v43 = vpop.xlane.xlu0 %1032 }
 0x269   : > { %v1038_v44 = vsub.f32 %v1028_v39, %v1033_v43 }
 0x26b   : > { %v1040_v45 = vmul.f32 1.442695, %v1038_v44 }
 0x26c   : > { %v1037_v46 = vpop.xlane.xlu0 %1036 }
 0x26d   : > { %3916 = vpow2.f32 %v1040_v45  ;;  %v1039_v47 = vsub.f32 %v1029_v41, %v1037_v46 }
 0x26f   : > { %v1042_v48 = vmul.f32 1.442695, %v1039_v47 }
 0x271   : > { %3918 = vpow2.f32 %v1042_v48 }
 0x277   : > { %v3917_v49 = vpop.eup %3916 }
 0x278   : > { %v1044_v50 = vsel %vm1030_vm4, %v3917_v49, 0.0 }
 0x279   : > { %1045 = vadd.xlane.f32.xlu1 %v1044_v50 }
 0x27b   : > { %v3919_v51 = vpop.eup %3918 }
 0x27c   : > { %v1047_v52 = vsel %vm1034_vm6, %v3919_v51, 0.0 }
 0x27d   : > { %1048 = vadd.xlane.f32.xlu1 %v1047_v52 }
 0x306   : > { %v1046_v63 = vpop.xlane.xlu1 %1045 }
 0x307   : > { %3920 = vrcp.f32 %v1046_v63 }
 0x30a   : > { %v1049_v0 = vpop.xlane.xlu1 %1048 }
 0x30b   : > { %3922 = vrcp.f32 %v1049_v0  ;;  %v1141_v0 = vld [vmem:[%s4627_s9] sm:$0xff] }
 0x30c   : > { %3648 = vmatprep.subr.mxu0 %v1141_v0 }
 0x311   : > { %v3921_v1 = vpop.eup %3920 }
 0x312   : > { %v1051_v2 = vmul.f32 %v3921_v1, %v3917_v49  ;;  %v3356_v1 = vld [vmem:[%s4657_s29 + $0x40] sm:$0xff] }
 0x314   : > { %1054 = vst.msk [vmem:[%s4261_s2] sm:$0xff] %vm1030_vm4, %v1051_v2  ;;  %3597 = vmatprep.mubr.msk.f32.mxu1 %vm1030_vm4, %v1051_v2  ;;  %v3357_v2 = vld [vmem:[%s4657_s29 + $0x48] sm:$0xff] }
 0x315   : > { %v3923_v6 = vpop.eup %3922  ;;  %v3819_v3 = vpack.c.bf16 %v3357_v2, %v3356_v1  ;;  %v3389_v2 = vld [vmem:[%s4657_s29 + $0x60] sm:$0xff] }
 0x316   : > { %v1053_v9 = vmul.f32 %v3923_v6, %v3919_v51  ;;  %v3359_v6 = vld [vmem:[%s4657_s29 + $0x58] sm:$0xff] }
 0x318   : > { %1055 = vst.msk [vmem:[%s4261_s2 + $0x8] sm:$0xf] %vm1034_vm6, %v1053_v9  ;;  %3598 = vmatmul.mubr.msk.f32.vlgmr.msra.gmra.mrb[6].mxu1 %vm1030_vm4, %v1053_v9 }
 0x319   : > { %3809 = vmatpush3.bf16.msra.mxu1 %v3808_v8  ;;  %3619 = vmatprep.mubr.msk.f32.mxu1 %vm3981_vm0, %v3982_v7  ;;  %v3823_v8 = vpack.c.bf16 %v3359_v6, %v3358_v4  ;;  %v3391_v6 = vld [vmem:[%s4657_s29 + $0x70] sm:$0xff] }
 0x31a   : > { %3810 = vmatprep.subr.bf16.mxu1 %v3980_v5 }
 0x31d   : > { %3812 = vmatpush3.bf16.msra.mxu1 %v3811_v14  ;;  %v3365_v14 = vld [vmem:[%s4623_s5 + $0x48] sm:$0xff] }
 0x31e   : > { %v3828_v15 = vpack.c.bf16 %v3365_v14, %v3364_v13  ;;  %v3398_v13 = vld [vmem:[%s4623_s5 + $0x68] sm:$0xff] }
 0x320   : > { %3620 = vmatmul.mubr.msk.f32.vlgmr.msra.gmra.mrb[8].mxu1 %vm686_vm1, %v4172_v16 }
 0x321   : > { %3635 = vmatprep.mubr.msk.f32.mxu1 %vm936_vm2, %v1222_v20 }
 0x3eb   : > { %v4284_v21 = vpop.f32.mrb[6].mxu1 }
 0x3ec   : > { %v4286_v22 = vpop.f32.mrb[7].mxu1 }
 0x3f3   : > { %v1309_v24 = vpop.f32.mrb[8].mxu1 }
 0x3f4   : > { %v1310_v25 = vadd.f32 %v3334_v23, %v1309_v24  ;;  %v3621_v26 = vpop.f32.mrb[9].mxu1 }
 0x3f6   : > { %3633 = vmatprep.subr.msk.mxu1 %vm936_vm2, %v1310_v25 }
 0x3f7   : > { %3634 = vmatpush3.xpose.msk.msra.mxu1 %vm936_vm2, %v1310_v25 }
 0x3f8   : > { %3638 = vmatprep.subr.msk.mxu1 %vm1062_vm7, %v1393_v55 }
 0x3fa   : > { %3636 = vmatmul.mubr.msk.f32.vlgmr.msra.gmra.mrb[10].mxu1 %vm936_vm2, %v1227_v18  ;;  %v3367_v18 = vld [vmem:[%s4623_s5 + $0x58] sm:$0xff] }
 0x3fb   : > { %3639 = vmatpush3.msk.msra.mxu1 %vm1062_vm7, %v1393_v55  ;;  %v3831_v19 = vpack.c.bf16 %v3367_v18, %v3366_v17  ;;  %v3376_v55 = vld [vmem:[%s4626_s8 + $0x2] ss:$0 sm:$0xff]  ;;  %v3399_v18 = vld [vmem:[%s4623_s5 + $0x70] sm:$0xff] }
 0x3fc   : > { %3820 = vmatprep.subr.bf16.mxu1 %v3819_v3 }
 0x4cd   : > { %v3637_v37 = vpop.f32.mrb[10].mxu1 }
 0x4ce   : > { %v1481_v38 = vsel %vm1027_vm5, %v3637_v37, -4.2949673e+09  ;;  %v1471_v39 = vpop.f32.mrb[11].mxu1  ;;  %v3374_v37 = vld [vmem:[%s4625_s7 + $0x58] sm:$0xff] }
 0x4cf   : > { %v1480_v40 = vsel %vm1026_vm3, %v1471_v39, -4.2949673e+09  ;;  %v1485_v41 = vsel %vm1034_vm6, %v1481_v38, -inf }
 0x4d0   : > { %1486 = vmax.xlane.f32.xlu1 %v1485_v41  ;;  %v1482_v42 = vsel %vm1030_vm4, %v1480_v40, -inf }
 0x4d1   : > { %1483 = vmax.xlane.f32.xlu0 %v1482_v42 }
 0x55d   : > { %v1487_v43 = vpop.xlane.xlu1 %1486 }
 0x55e   : > { %v1489_v44 = vsub.f32 %v1481_v38, %v1487_v43  ;;  %v1484_v45 = vpop.xlane.xlu0 %1483  ;;  %v3837_v38 = vpack.c.bf16 %v3374_v37, %v3373_v31 }
 0x55f   : > { %v1488_v46 = vsub.f32 %v1480_v40, %v1484_v45 }
 0x560   : > { %v1492_v47 = vmul.f32 1.442695, %v1489_v44 }
 0x561   : > { %v1490_v48 = vmul.f32 1.442695, %v1488_v46 }
 0x562   : > { %3924 = vpow2.f32 %v1492_v47 }
 0x563   : > { %3926 = vpow2.f32 %v1490_v48 }
 0x56c   : > { %v3925_v49 = vpop.eup %3924 }
 0x56d   : > { %v3927_v50 = vpop.eup %3926  ;;  %v1497_v51 = vsel %vm1034_vm6, %v3925_v49, 0.0 }
 0x56e   : > { %1498 = vadd.xlane.f32.xlu1 %v1497_v51  ;;  %v1494_v52 = vsel %vm1030_vm4, %v3927_v50, 0.0 }
 0x56f   : > { %1495 = vadd.xlane.f32.xlu0 %v1494_v52 }
 0x5fb   : > { %v1499_v58 = vpop.xlane.xlu1 %1498 }
 0x5fc   : > { %3928 = vrcp.f32 %v1499_v58  ;;  %v1496_v59 = vpop.xlane.xlu0 %1495 }
 0x5fd   : > { %3930 = vrcp.f32 %v1496_v59  ;;  %v3386_v59 = vld [vmem:[%s4627_s9 + $0x10] sm:$0xff] }
 0x606   : > { %v3929_v60 = vpop.eup %3928 }
 0x607   : > { %v3931_v61 = vpop.eup %3930  ;;  %v1503_v62 = vmul.f32 %v3929_v60, %v3925_v49 }
 0x608   : > { %v1501_v63 = vmul.f32 %v3931_v61, %v3927_v50 }
 0x609   : > { %3347 = vst.msk [vmem:[%s4261_s2 + $0x18] sm:$0xf] %vm1034_vm6, %v1503_v62 }
 0x60a   : > { %3346 = vst.msk [vmem:[%s4261_s2 + $0x10] sm:$0xff] %vm1030_vm4, %v1501_v63  ;;  %3640 = vmatprep.mubr.msk.f32.mxu1 %vm1030_vm4, %v1501_v63 }
 0x60b   : > { %3641 = vmatmul.mubr.msk.f32.vlgmr.msra.gmra.mrb[12].mxu1 %vm1030_vm4, %v1503_v62 }
 0x60c   : > { %3661 = vmatprep.mubr.msk.f32.mxu1 %vm686_vm1, %v4148_v10  ;;  %3822 = vmatpush3.bf16.msra.mxu1 %v3819_v3  ;;  %v3390_v3 = vld [vmem:[%s4657_s29 + $0x68] sm:$0xff] }
 0x60d   : > { %3824 = vmatprep.subr.bf16.mxu1 %v3823_v8  ;;  %v3839_v4 = vpack.c.bf16 %v3390_v3, %v3389_v2 }
 0x610   : > { %3826 = vmatpush3.bf16.msra.mxu1 %v3823_v8  ;;  %v3392_v8 = vld [vmem:[%s4657_s29 + $0x78] sm:$0xff] }
 0x611   : > { %3833 = vmatprep.subr.bf16.mxu1 %v3980_v5 }
 0x613   : > { %3662 = vmatmul.mubr.msk.f32.vlgmr.msra.gmra.mrb[14].mxu1 %vm686_vm1, %v4152_v11 }
 0x614   : > { %3683 = vmatprep.mubr.msk.f32.mxu1 %vm3981_vm0, %v3982_v7  ;;  %3835 = vmatpush3.bf16.msra.mxu1 %v3834_v33  ;;  %v3407_v33 = vld [vmem:[%s4625_s7 + $0x78] sm:$0xff] }
 0x615   : > { %3836 = vmatprep.subr.bf16.mxu1 %v3980_v5  ;;  %v3857_v37 = vpack.c.bf16 %v3407_v33, %v3406_v30  ;;  %v2978_v30 = vld [vmem:[%s4633_s15 + $0x20] sm:$0xff] }
 0x618   : > { %3838 = vmatpush3.bf16.msra.mxu1 %v3837_v38 }
 0x61b   : > { %3684 = vmatmul.mubr.msk.f32.vlgmr.msra.gmra.mrb[16].mxu1 %vm686_vm1, %v4204_v32 }
 0x6de   : > { %v3642_v9 = vpop.f32.mrb[12].mxu1 }
 0x6df   : > { %v1582_v12 = vpop.f32.mrb[13].mxu1 }
 0x6e0   : > { %3645 = vmatprep.mubr.msk.f32.mxu0 %vm936_vm2, %v1582_v12  ;;  %v3397_v12 = vld [vmem:[%s4623_s5 + $0x60] sm:$0xff] }
 0x6e1   : > { %3646 = vmatmul.mubr.msk.f32.vlgmr.msra.gmra.mrb[6].mxu0 %vm936_vm2, %v3642_v9  ;;  %v3843_v9 = vpack.c.bf16 %v3392_v8, %v3391_v6 }
 0x6e2   : > { %3649 = vmatpush3.msra.mxu0 %v1141_v0  ;;  %3650 = vmatprep.mubr.msk.f32.mxu0 %vm936_vm2, %v4286_v22  ;;  %v3361_v22 = vld [vmem:[%s4660_s3 + $0x2] ss:$0 sm:$0xff] }
 0x6e3   : > { %3827 = vmatprep.subr.bf16.mxu0 %v3980_v5 }
 0x6e6   : > { %v3663_v20 = vpop.f32.mrb[14].mxu1 }
 0x6e7   : > { %v1840_v23 = vadd.f32 %v3663_v20, %v3361_v22  ;;  %v1834_v24 = vpop.f32.mrb[15].mxu1 }
 0x6e8   : > { %v1835_v25 = vadd.f32 %v3361_v22, %v1834_v24  ;;  %v3394_v22 = vld [vmem:[%s4660_s3 + $0x3] ss:$0 sm:$0xff] }
 0x6e9   : > { %3651 = vmatmul.mubr.msk.f32.vlgmr.msra.gmra.mrb[6].mxu0 %vm936_vm2, %v4284_v21  ;;  %v3369_v21 = vld [vmem:[%s4624_s6 + $0x2] ss:$0 sm:$0xff] }
 0x6ea   : > { %3829 = vmatpush3.bf16.msra.mxu0 %v3828_v15  ;;  %3672 = vmatprep.mubr.msk.f32.mxu0 %vm3981_vm0, %v3982_v7  ;;  %v3848_v15 = vpack.c.bf16 %v3398_v13, %v3397_v12 }
 0x6eb   : > { %3830 = vmatprep.subr.bf16.mxu0 %v3980_v5 }
 0x6ee   : > { %3832 = vmatpush3.bf16.msra.mxu0 %v3831_v19  ;;  %v2005_v56 = vpop.f32.mrb[16].mxu1  ;;  %v3400_v19 = vld [vmem:[%s4623_s5 + $0x78] sm:$0xff] }
 0x6ef   : > { %v2006_v57 = vadd.f32 %v3376_v55, %v2005_v56  ;;  %v3685_v58 = vpop.f32.mrb[17].mxu1  ;;  %v3851_v20 = vpack.c.bf16 %v3400_v19, %v3399_v18 }
 0x6f1   : > { %3673 = vmatmul.mubr.msk.f32.vlgmr.msra.gmra.mrb[8].mxu0 %vm686_vm1, %v4172_v16  ;;  %3691 = vmatprep.subr.msk.mxu1 %vm1062_vm7, %v2006_v57 }
 0x6f2   : > { %3688 = vmatprep.mubr.msk.f32.mxu0 %vm936_vm2, %v1835_v25  ;;  %3692 = vmatpush3.msk.msra.mxu1 %vm1062_vm7, %v2006_v57 }
 0x6f3   : > { %3840 = vmatprep.subr.bf16.mxu1 %v3839_v4 }
 0x7c4   : > { %v1922_v26 = vpop.f32.mrb[8].mxu0 }
 0x7c5   : > { %v1923_v27 = vadd.f32 %v3369_v21, %v1922_v26  ;;  %v3674_v28 = vpop.f32.mrb[9].mxu0 }
 0x7c7   : > { %3686 = vmatprep.subr.msk.mxu0 %vm936_vm2, %v1923_v27 }
 0x7c8   : > { %3687 = vmatpush3.xpose.msk.msra.mxu0 %vm936_vm2, %v1923_v27 }
 0x7c9   : > { %3696 = vmatprep.subr.mxu0 %v3386_v59 }
 0x7cb   : > { %3689 = vmatmul.mubr.msk.f32.vlgmr.msra.gmra.mrb[10].mxu0 %vm936_vm2, %v1840_v23 }
 0x7cc   : > { %3697 = vmatpush3.msra.mxu0 %v3386_v59 }
 0x7cd   : > { %3847 = vmatprep.subr.bf16.mxu0 %v3980_v5 }
 0x89e   : > { %v3690_v39 = vpop.f32.mrb[10].mxu0 }
 0x89f   : > { %v2094_v40 = vsel %vm1027_vm5, %v3690_v39, -4.2949673e+09  ;;  %v2084_v41 = vpop.f32.mrb[11].mxu0 }
 0x8a0   : > { %v2093_v42 = vsel %vm1026_vm3, %v2084_v41, -4.2949673e+09  ;;  %v2098_v43 = vsel %vm1034_vm6, %v2094_v40, -inf }
 0x8a1   : > { %2099 = vmax.xlane.f32.xlu1 %v2098_v43  ;;  %v2095_v44 = vsel %vm1030_vm4, %v2093_v42, -inf }
 0x8a2   : > { %2096 = vmax.xlane.f32.xlu0 %v2095_v44 }
 0x92e   : > { %v2100_v45 = vpop.xlane.xlu1 %2099 }
 0x92f   : > { %v2102_v46 = vsub.f32 %v2094_v40, %v2100_v45  ;;  %v2097_v47 = vpop.xlane.xlu0 %2096 }
 0x930   : > { %v2101_v48 = vsub.f32 %v2093_v42, %v2097_v47 }
 0x931   : > { %v2105_v49 = vmul.f32 1.442695, %v2102_v46 }
 0x932   : > { %v2103_v50 = vmul.f32 1.442695, %v2101_v48 }
 0x933   : > { %3932 = vpow2.f32 %v2105_v49 }
 0x934   : > { %3934 = vpow2.f32 %v2103_v50 }
 0x93d   : > { %v3933_v51 = vpop.eup %3932 }
 0x93e   : > { %v3935_v52 = vpop.eup %3934  ;;  %v2110_v53 = vsel %vm1034_vm6, %v3933_v51, 0.0 }
 0x93f   : > { %2111 = vadd.xlane.f32.xlu1 %v2110_v53  ;;  %v2107_v54 = vsel %vm1030_vm4, %v3935_v52, 0.0  ;;  %v3419_v53 = vld [vmem:[%s4627_s9 + $0x18] sm:$0xff] }
 0x940   : > { %2108 = vadd.xlane.f32.xlu0 %v2107_v54 }
 0x9cc   : > { %v2112_v60 = vpop.xlane.xlu1 %2111 }
 0x9cd   : > { %3936 = vrcp.f32 %v2112_v60  ;;  %v2109_v61 = vpop.xlane.xlu0 %2108 }
 0x9ce   : > { %3938 = vrcp.f32 %v2109_v61 }
 0x9d7   : > { %v3937_v62 = vpop.eup %3936 }
 0x9d8   : > { %v3939_v63 = vpop.eup %3938  ;;  %v2116_v0 = vmul.f32 %v3937_v62, %v3933_v51  ;;  %v3422_v62 = vld [vmem:[%s4628_s10] ss:$0 sm:$0xff] }
 0x9d9   : > { %v2114_v1 = vmul.f32 %v3939_v63, %v3935_v52 }
 0x9da   : > { %3382 = vst.msk [vmem:[%s4261_s2 + $0x28] sm:$0xf] %vm1034_vm6, %v2116_v0 }
 0x9db   : > { %3381 = vst.msk [vmem:[%s4261_s2 + $0x20] sm:$0xff] %vm1030_vm4, %v2114_v1  ;;  %3693 = vmatprep.mubr.msk.f32.mxu1 %vm1030_vm4, %v2114_v1 }
 0x9dc   : > { %3694 = vmatmul.mubr.msk.f32.vlgmr.msra.gmra.mrb[18].mxu1 %vm1030_vm4, %v2116_v0 }
 0x9dd   : > { %3709 = vmatprep.mubr.msk.f32.mxu1 %vm686_vm1, %v4148_v10  ;;  %3842 = vmatpush3.bf16.msra.mxu1 %v3839_v4 }
 0x9de   : > { %3844 = vmatprep.subr.bf16.mxu1 %v3843_v9 }
 0x9e1   : > { %3846 = vmatpush3.bf16.msra.mxu1 %v3843_v9 }
 0x9e2   : > { %3853 = vmatprep.subr.bf16.mxu1 %v3980_v5 }
 0x9e4   : > { %3710 = vmatmul.mubr.msk.f32.vlgmr.msra.gmra.mrb[20].mxu1 %vm686_vm1, %v4152_v11 }
 0x9e5   : > { %3731 = vmatprep.mubr.msk.f32.mxu1 %vm3981_vm0, %v3982_v7 }
 0xaaf   : > { %v3695_v14 = vpop.f32.mrb[18].mxu1 }
 0xab0   : > { %v2195_v17 = vpop.f32.mrb[19].mxu1 }
 0xab1   : > { %3698 = vmatprep.mubr.msk.f32.mxu0 %vm936_vm2, %v2195_v17 }
 0xab2   : > { %3699 = vmatmul.mubr.msk.f32.vlgmr.msra.gmra.mrb[6].mxu0 %vm936_vm2, %v3695_v14 }
 0xab3   : > { %3849 = vmatpush3.bf16.msra.mxu0 %v3848_v15  ;;  %3720 = vmatprep.mubr.msk.f32.mxu0 %vm3981_vm0, %v3982_v7  ;;  %v3402_v7 = vld [vmem:[%s4624_s6 + $0x3] ss:$0 sm:$0xff] }
 0xab4   : > { %3850 = vmatprep.subr.bf16.mxu0 %v3980_v5 }
 0xab7   : > { %3852 = vmatpush3.bf16.msra.mxu0 %v3851_v20  ;;  %v3711_v23 = vpop.f32.mrb[20].mxu1 }
 0xab8   : > { %v2374_v24 = vadd.f32 %v3711_v23, %v3394_v22  ;;  %v2368_v25 = vpop.f32.mrb[21].mxu1 }
 0xab9   : > { %v2369_v21 = vadd.f32 %v3394_v22, %v2368_v25  ;;  %v2881_v22 = vld [vmem:[%s4631_s13 + $0x8] sm:$0xff]  ;;  %v2883_v25 = vld [vmem:[%s4631_s13 + $0x18] sm:$0xff] }
 0xaba   : > { %3721 = vmatmul.mubr.msk.f32.vlgmr.msra.gmra.mrb[12].mxu0 %vm686_vm1, %v4172_v16  ;;  %v3404_v16 = vld [vmem:[%s4625_s7 + $0x60] sm:$0xff] }
 0xabb   : > { %3736 = vmatprep.mubr.msk.f32.mxu0 %vm936_vm2, %v2369_v21  ;;  %v3854_v31 = vpack.c.bf16 %v3405_v29, %v3404_v16  ;;  %v2977_v16 = vld [vmem:[%s4633_s15 + $0x18] sm:$0xff] }
 0xabd   : > { %3855 = vmatpush3.bf16.msra.mxu1 %v3854_v31  ;;  %v2979_v31 = vld [vmem:[%s4633_s15 + $0x28] sm:$0xff] }
 0xabe   : > { %3856 = vmatprep.subr.bf16.mxu1 %v3980_v5  ;;  %v3875_v33 = vpack.c.bf16 %v2979_v31, %v2978_v30  ;;  %v3178_v30 = vld [vmem:[%s4261_s2] sm:$0xff] (%p4113_p4)  ;;  %v3180_v31 = vld [vmem:[%s4261_s2 + $0x8] sm:$0xff] (%p4113_p4) }
 0xabf   : > { %3179 = vst [vmem:[%s3136_s1] sm:$0xff] (%p4113_p4), %v3178_v30  ;;  %3181 = vst [vmem:[%s3136_s1 + $0x8] sm:$0xff] (%p4113_p4), %v3180_v31 }
 0xac1   : > { %3858 = vmatpush3.bf16.msra.mxu1 %v3857_v37 }
 0xac4   : > { %3732 = vmatmul.mubr.msk.f32.vlgmr.msra.gmra.mrb[22].mxu1 %vm686_vm1, %v4204_v32 }
 0xb8d   : > { %v2456_v26 = vpop.f32.mrb[12].mxu0 }
 0xb8e   : > { %v2457_v27 = vadd.f32 %v3402_v7, %v2456_v26  ;;  %v3722_v28 = vpop.f32.mrb[13].mxu0  ;;  %v2974_v7 = vld [vmem:[%s4633_s15] sm:$0xff]  ;;  %v2975_v26 = vld [vmem:[%s4633_s15 + $0x8] sm:$0xff] }
 0xb8f   : > { %v3867_v28 = vpack.c.bf16 %v2975_v26, %v2974_v7  ;;  %v3432_v7 = vld [vmem:[%s4636_s18] ss:$0 sm:$0xff] }
 0xb90   : > { %3734 = vmatprep.subr.msk.mxu0 %vm936_vm2, %v2457_v27 }
 0xb91   : > { %3735 = vmatpush3.xpose.msk.msra.mxu0 %vm936_vm2, %v2457_v27  ;;  %v2976_v27 = vld [vmem:[%s4633_s15 + $0x10] sm:$0xff] }
 0xb92   : > { %v3871_v29 = vpack.c.bf16 %v2977_v16, %v2976_v27 }
 0xb94   : > { %3737 = vmatmul.mubr.msk.f32.vlgmr.msra.gmra.mrb[14].mxu0 %vm936_vm2, %v2374_v24  ;;  %v2882_v24 = vld [vmem:[%s4631_s13 + $0x10] sm:$0xff] }
 0xb95   : > { %v3863_v21 = vpack.c.bf16 %v2883_v25, %v2882_v24  ;;  %v3431_v24 = vld [vmem:[%s4635_s17] ss:$0 sm:$0xff] }
 0xb97   : > { %v2539_v50 = vpop.f32.mrb[22].mxu1 }
 0xb98   : > { %v2540_v51 = vadd.f32 %v3409_v35, %v2539_v50  ;;  %v3733_v52 = vpop.f32.mrb[23].mxu1  ;;  %v2981_v35 = vld [vmem:[%s4633_s15 + $0x38] sm:$0xff] }
 0xb9a   : > { %3739 = vmatprep.subr.msk.mxu0 %vm1062_vm7, %v2540_v51 }
 0xb9b   : > { %3740 = vmatpush3.msk.msra.mxu0 %vm1062_vm7, %v2540_v51  ;;  %v3425_v51 = vld [vmem:[%s4632_s14] ss:$0 sm:$0xff] }
 0xb9c   : > { %3744 = vmatprep.subr.mxu0 %v3419_v53 }
 0xc67   : > { %v3738_v38 = vpop.f32.mrb[14].mxu0 }
 0xc68   : > { %v2628_v39 = vsel %vm1027_vm5, %v3738_v38, -4.2949673e+09  ;;  %v2618_v40 = vpop.f32.mrb[15].mxu0 }
 0xc69   : > { %v2627_v41 = vsel %vm1026_vm3, %v2618_v40, -4.2949673e+09  ;;  %v2632_v42 = vsel %vm1034_vm6, %v2628_v39, -inf }
 0xc6a   : > { %2633 = vmax.xlane.f32.xlu1 %v2632_v42  ;;  %v2629_v43 = vsel %vm1030_vm4, %v2627_v41, -inf }
 0xc6b   : > { %2630 = vmax.xlane.f32.xlu0 %v2629_v43 }
 0xcf7   : > { %v2634_v5 = vpop.xlane.xlu1 %2633 }
 0xcf8   : > { %v2636_v44 = vsub.f32 %v2628_v39, %v2634_v5  ;;  %v2631_v45 = vpop.xlane.xlu0 %2630  ;;  %v3423_v5 = vld [vmem:[%s4629_s11] ss:$0 sm:$0xff] }
 0xcf9   : > { %v2635_v32 = vsub.f32 %v2627_v41, %v2631_v45 }
 0xcfa   : > { %v2639_v46 = vmul.f32 1.442695, %v2636_v44 }
 0xcfb   : > { %v2637_v47 = vmul.f32 1.442695, %v2635_v32 }
 0xcfc   : > { %3940 = vpow2.f32 %v2639_v46 }
 0xcfd   : > { %3942 = vpow2.f32 %v2637_v47  ;;  %v3424_v47 = vld [vmem:[%s4630_s12] ss:$0 sm:$0xff] }
 0xd06   : > { %v3941_v36 = vpop.eup %3940 }
 0xd07   : > { %v3943_v48 = vpop.eup %3942  ;;  %v2644_v49 = vsel %vm1034_vm6, %v3941_v36, 0.0 }
 0xd08   : > { %2645 = vadd.xlane.f32.xlu1 %v2644_v49  ;;  %v2641_v34 = vsel %vm1030_vm4, %v3943_v48, 0.0 }
 0xd09   : > { %2642 = vadd.xlane.f32.xlu0 %v2641_v34  ;;  %v2980_v34 = vld [vmem:[%s4633_s15 + $0x30] sm:$0xff] }
 0xd0a   : > { %v3879_v50 = vpack.c.bf16 %v2981_v35, %v2980_v34 }
 0xd95   : > { %v2646_v54 = vpop.xlane.xlu1 %2645 }
 0xd96   : > { %3944 = vrcp.f32 %v2646_v54  ;;  %v2643_v55 = vpop.xlane.xlu0 %2642 }
 0xd97   : > { %3946 = vrcp.f32 %v2643_v55 }
 0xda0   : > { %v3945_v56 = vpop.eup %3944 }
 0xda1   : > { %v3947_v57 = vpop.eup %3946  ;;  %v2650_v58 = vmul.f32 %v3945_v56, %v3941_v36 }
 0xda2   : > { %v2648_v59 = vmul.f32 %v3947_v57, %v3943_v48 }
 0xda3   : > { %3415 = vst.msk [vmem:[%s4261_s2 + $0x38] sm:$0xf] %vm1034_vm6, %v2650_v58 }
 0xda4   : > { %3414 = vst.msk [vmem:[%s4261_s2 + $0x30] sm:$0xff] %vm1030_vm4, %v2648_v59  ;;  %3741 = vmatprep.mubr.msk.f32.mxu0 %vm1030_vm4, %v2648_v59 }
 0xda5   : > { %3742 = vmatmul.mubr.msk.f32.vlgmr.msra.gmra.mrb[16].mxu0 %vm1030_vm4, %v2650_v58  ;;  %v3428_v58 = vld [vmem:[%s4634_s16] ss:$0 sm:$0xff] }
 0xda6   : > { %3745 = vmatpush3.msra.mxu0 %v3419_v53 }
 0xda7   : > { %3868 = vmatprep.subr.bf16.mxu0 %v3867_v28 }
 0xe78   : > { %v3743_v60 = vpop.f32.mrb[16].mxu0 }
 0xe79   : > { %v2729_v61 = vpop.f32.mrb[17].mxu0 }
 0xe7a   : > { %3746 = vmatprep.mubr.msk.f32.mxu0 %vm936_vm2, %v2729_v61 }
 0xe7b   : > { %3747 = vmatmul.mubr.msk.f32.vlgmr.msra.gmra.mrb[6].mxu0 %vm936_vm2, %v3743_v60 }
 0xe7c   : > { %3870 = vmatpush3.bf16.msra.mxu0 %v3867_v28 }
 0xe7d   : > { %3872 = vmatprep.subr.bf16.mxu0 %v3871_v29 }
 0xe80   : > { %3874 = vmatpush3.bf16.msra.mxu0 %v3871_v29 }
 0xe81   : > { %3876 = vmatprep.subr.bf16.mxu0 %v3875_v33 }
 0xe84   : > { %3878 = vmatpush3.bf16.msra.mxu0 %v3875_v33  ;;  %v3182_v33 = vld [vmem:[%s4261_s2 + $0x10] sm:$0xff] (%p4113_p4) }
 0xe85   : > { %3880 = vmatprep.subr.bf16.mxu0 %v3879_v50  ;;  %3183 = vst [vmem:[%s3136_s1 + $0x20] sm:$0xff] (%p4113_p4), %v3182_v33 }
 0xe88   : > { %3882 = vmatpush3.bf16.msra.mxu0 %v3879_v50 }
 0xf4e   : > { %v3748_v63 = vpop.f32.mrb[6].mxu0 }
 0xf4f   : > { %v2831_v0 = vadd.f32 %v3748_v63, %v3422_v62  ;;  %v2812_v1 = vpop.f32.mrb[7].mxu0 }
 0xf50   : > { %v2830_v2 = vadd.f32 %v3422_v62, %v2812_v1 }
 0xf51   : > { %v2833_v3 = vadd.f32 %v2831_v0, %v4152_v11 }
 0xf52   : > { %v2832_v4 = vadd.f32 %v2830_v2, %v4148_v10  ;;  %v2880_v10 = vld [vmem:[%s4631_s13] sm:$0xff] }
 0xf53   : > { %v2838_v6 = vsel %vm2837_vm8, %v2833_v3, 0.0  ;;  %v3859_v23 = vpack.c.bf16 %v2881_v22, %v2880_v10 }
 0xf54   : > { %2839 = vadd.xlane.f32.xlu1 %v2838_v6  ;;  %v2834_v8 = vsel %vm686_vm1, %v2832_v4, 0.0 }
 0xf55   : > { %2835 = vadd.xlane.f32.xlu0 %v2834_v8  ;;  %3860 = vmatprep.subr.bf16.mxu1 %v3859_v23 }
 0xf56   : > { %3862 = vmatpush3.bf16.msra.mxu1 %v3859_v23 }
 0xf57   : > { %3864 = vmatprep.subr.bf16.mxu1 %v3863_v21 }
 0xf5a   : > { %3866 = vmatpush3.bf16.msra.mxu1 %v3863_v21 }
 0xfe1   : > { %v2840_v9 = vpop.xlane.xlu1 %2839 }
 0xfe2   : > { %v2843_v12 = vmul.f32 0.03125, %v2840_v9  ;;  %v2836_v13 = vpop.xlane.xlu0 %2835 }
 0xfe3   : > { %v2842_v14 = vmul.f32 0.03125, %v2836_v13 }
 0xfe4   : > { %v2845_v15 = vsub.f32 %v2833_v3, %v2843_v12 }
 0xfe5   : > { %v2844_v17 = vsub.f32 %v2832_v4, %v2842_v14 }
 0xfe6   : > { %v2847_v18 = vmul.f32 %v2845_v15, %v2845_v15 }
 0xfe7   : > { %v2846_v19 = vmul.f32 %v2844_v17, %v2844_v17 }
 0xfe8   : > { %v2851_v20 = vsel %vm2837_vm8, %v2847_v18, 0.0 }
 0xfe9   : > { %2852 = vadd.xlane.f32.xlu1 %v2851_v20  ;;  %v2848_v11 = vsel %vm686_vm1, %v2846_v19, 0.0 }
 0xfea   : > { %2849 = vadd.xlane.f32.xlu0 %v2848_v11 }
0x1076   : > { %v2853_v37 = vpop.xlane.xlu1 %2852 }
0x1077   : > { %v2855_v38 = vmul.f32 0.03125, %v2853_v37  ;;  %v2850_v39 = vpop.xlane.xlu0 %2849  ;;  %v3184_v37 = vld [vmem:[%s4261_s2 + $0x18] sm:$0xff] (%p4113_p4) }
0x1078   : > { %v2854_v40 = vmul.f32 0.03125, %v2850_v39  ;;  %v3188_v39 = vld [vmem:[%s4261_s2 + $0x28] sm:$0xff] (%p4113_p4)  ;;  %3185 = vst [vmem:[%s3136_s1 + $0x28] sm:$0xff] (%p4113_p4), %v3184_v37 }
0x1079   : > { %v2857_v41 = vadd.f32 1e-05, %v2855_v38  ;;  %v3186_v38 = vld [vmem:[%s4261_s2 + $0x20] sm:$0xff] (%p4113_p4)  ;;  %3189 = vst [vmem:[%s3136_s1 + $0x48] sm:$0xff] (%p4113_p4), %v3188_v39 }
0x107a   : > { %v2856_v42 = vadd.f32 1e-05, %v2854_v40  ;;  %3187 = vst [vmem:[%s3136_s1 + $0x40] sm:$0xff] (%p4113_p4), %v3186_v38  ;;  %v3190_v40 = vld [vmem:[%s4261_s2 + $0x30] sm:$0xff] (%p4113_p4) }
0x107b   : > { %3948 = vrsqrt.f32 %v2857_v41  ;;  %v3192_v41 = vld [vmem:[%s4261_s2 + $0x38] sm:$0xff] (%p4113_p4)  ;;  %3191 = vst [vmem:[%s3136_s1 + $0x60] sm:$0xff] (%p4113_p4), %v3190_v40 }
0x107c   : > { %3950 = vrsqrt.f32 %v2856_v42  ;;  %3193 = vst [vmem:[%s3136_s1 + $0x68] sm:$0xff] (%p4113_p4), %v3192_v41 }
0x1085   : > { %v3949_v43 = vpop.eup %3948 }
0x1086   : > { %v3951_v44 = vpop.eup %3950  ;;  %v2861_v45 = vmul.f32 %v3949_v43, %v2845_v15 }
0x1087   : > { %v2860_v32 = vmul.f32 %v3951_v44, %v2844_v17 }
0x1088   : > { %v2870_v46 = vmul.f32 %v3423_v5, %v2861_v45 }
0x1089   : > { %v2869_v36 = vmul.f32 %v3423_v5, %v2860_v32 }
0x108a   : > { %v2879_v49 = vadd.f32 %v3424_v47, %v2870_v46 }
0x108b   : > { %v2878_v48 = vadd.f32 %v3424_v47, %v2869_v36 }
0x108d   : > { %3757 = vmatprep.mubr.msk.f32.mxu1 %vm686_vm1, %v2878_v48 }
0x108e   : > { %3758 = vmatmul.mubr.msk.f32.vlgmr.msra.gmra.mrb[24].mxu1 %vm686_vm1, %v2879_v49 }
0x1161   : > { %v3759_v52 = vpop.f32.mrb[24].mxu1 }
0x1162   : > { %v2969_v53 = vadd.f32 %v3759_v52, %v3425_v51  ;;  %v2963_v54 = vpop.f32.mrb[25].mxu1 }
0x1163   : > { %v2964_v55 = vadd.f32 %v3425_v51, %v2963_v54 }
0x1164   : > { %v2973_v57 = vmax.f32 %v2969_v53, 0.0 }
0x1165   : > { %v2972_v56 = vmax.f32 %v2964_v55, 0.0 }
0x1167   : > { %3776 = vmatprep.mubr.msk.f32.mxu0 %vm2989_vm9, %v2972_v56 }
0x1168   : > { %3777 = vmatmul.mubr.msk.f32.vlgmr.msra.gmra.mrb[18].mxu0 %vm2989_vm9, %v2973_v57 }
0x123b   : > { %v3778_v59 = vpop.f32.mrb[18].mxu0 }
0x123c   : > { %v3068_v60 = vadd.f32 %v3778_v59, %v3428_v58  ;;  %v3062_v61 = vpop.f32.mrb[19].mxu0 }
0x123d   : > { %v3063_v62 = vadd.f32 %v3428_v58, %v3062_v61 }
0x123e   : > { %v3072_v63 = vadd.f32 %v3068_v60, %v2879_v49 }
0x123f   : > { %v3071_v0 = vadd.f32 %v3063_v62, %v2878_v48 }
0x1240   : > { %v3076_v1 = vsel %vm2837_vm8, %v3072_v63, 0.0 }
0x1241   : > { %3077 = vadd.xlane.f32.xlu1 %v3076_v1  ;;  %v3073_v2 = vsel %vm686_vm1, %v3071_v0, 0.0 }
0x1242   : > { %3074 = vadd.xlane.f32.xlu0 %v3073_v2 }
0x12ce   : > { %v3078_v3 = vpop.xlane.xlu1 %3077 }
0x12cf   : > { %v3080_v4 = vmul.f32 0.03125, %v3078_v3  ;;  %v3075_v6 = vpop.xlane.xlu0 %3074 }
0x12d0   : > { %v3079_v8 = vmul.f32 0.03125, %v3075_v6 }
0x12d1   : > { %v3082_v9 = vsub.f32 %v3072_v63, %v3080_v4 }
0x12d2   : > { %v3081_v12 = vsub.f32 %v3071_v0, %v3079_v8 }
0x12d3   : > { %v3084_v13 = vmul.f32 %v3082_v9, %v3082_v9 }
0x12d4   : > { %v3083_v14 = vmul.f32 %v3081_v12, %v3081_v12 }
0x12d5   : > { %v3088_v15 = vsel %vm2837_vm8, %v3084_v13, 0.0 }
0x12d6   : > { %3089 = vadd.xlane.f32.xlu1 %v3088_v15  ;;  %v3085_v17 = vsel %vm686_vm1, %v3083_v14, 0.0 }
0x12d7   : > { %3086 = vadd.xlane.f32.xlu0 %v3085_v17 }
0x1363   : > { %v3090_v18 = vpop.xlane.xlu1 %3089 }
0x1364   : > { %v3092_v19 = vmul.f32 0.03125, %v3090_v18  ;;  %v3087_v20 = vpop.xlane.xlu0 %3086 }
0x1365   : > { %v3091_v11 = vmul.f32 0.03125, %v3087_v20 }
0x1366   : > { %v3094_v10 = vadd.f32 1e-05, %v3092_v19 }
0x1367   : > { %v3093_v22 = vadd.f32 1e-05, %v3091_v11 }
0x1368   : > { %3952 = vrsqrt.f32 %v3094_v10 }
0x1369   : > { %3954 = vrsqrt.f32 %v3093_v22 }
0x1372   : > { %v3953_v23 = vpop.eup %3952 }
0x1373   : > { %v3955_v25 = vpop.eup %3954  ;;  %v3098_v21 = vmul.f32 %v3953_v23, %v3082_v9 }
0x1374   : > { %v3097_v26 = vmul.f32 %v3955_v25, %v3081_v12  ;;  %3133 = sbr.rel (!%p4113_p4) target bundleno = 4987 (0x137b), region = 104 }
0x1375   : > { %v3107_v27 = vmul.f32 %v3431_v24, %v3098_v21 }
0x1376   : > { %v3106_v28 = vmul.f32 %v3431_v24, %v3097_v26 }
0x1377   : > { %v3116_v16 = vadd.f32 %v3432_v7, %v3107_v27 }
0x1378   : > { %v3115_v29 = vadd.f32 %v3432_v7, %v3106_v28 }
0x1379   : > { %3118 = vst.msk [vmem:[%s670_s20 + $0x8] sm:$0xf] %vm2837_vm8, %v3116_v16 }
0x137a   : > { %3117 = vst.msk [vmem:[%s670_s20] sm:$0xff] %vm686_vm1, %v3115_v29 }
0x137b PF: > { %s4665_s23 = sld [smem:[#allocation5_spill]]  ;;  %s4666_s1 = sld [smem:[#allocation3_spill]] }
0x137c   : > { %s4667_s22 = sld [smem:[#allocation6_spill]] }
0x1381   : > { %p28_p8 = scmp.ge.s32.totalorder %s4665_s23, 4  }
0x1383   :  { %30 = sbr.rel (!%p28_p8) target bundleno = 9 (0x9), region = 206 }

// kernel: ours_forward.13
= control target key start
LH: loop header
LB: loop body
LE: loop exit
PB: predicated region body
PF: predicated region fallthrough
CT: control target
= control target key end

     0   :  { %13 = vsyncpa [#allocation4], 0  ;;  %s962_s0 = inlined_call_operand.vmem [shape: f32[2,384], index: 0, kind: input, shape index: {}]   ;;  %s963_s1 = inlined_call_operand.vmem [shape: f32[2,128], index: 1, kind: input, shape index: {}]   ;;  %s964_s2 = inlined_call_operand.vmem [shape: f32[384,4], index: 2, kind: input, shape index: {}]   ;;  %s965_s3 = inlined_call_operand.vmem [shape: f32[1,4], index: 3, kind: input, shape index: {}]   ;;  %s966_s4 = inlined_call_operand.vmem [shape: f32[128,4], index: 4, kind: input, shape index: {}]   ;;  %s967_s5 = inlined_call_operand.vmem [shape: f32[1,4], index: 5, kind: input, shape index: {}]   ;;  %s968_s6 = inlined_call_operand.vmem [shape: f32[2,1], index: 6, kind: input, shape index: {}]   ;;  %s969_s7 = inlined_call_operand.vmem [shape: f32[4], index: 7, kind: input, shape index: {}]   ;;  %s970_s8 = inlined_call_operand.hbm [shape: f32[2,4], index: 8, kind: output, shape index: {}]  }
   0x1   :  { %14 = vsyncpa [#allocation3], 0  ;;  %s35_s29 = sshll.u32 %s969_s7, 4  ;;  %s36_s29 = int_to_ptr.vmem [resolvable:$true] %s35_s29 }
   0x2   :  { %s623_s30 = scalar_lea.vmem %s36_s29, 16  ;;  %p628_p1 = scmp.lt.s32.totalorder %s36_s29, %s36_s29 }
   0x3   :  { %p624_p0 = scmp.ne.s32.totalorder %s36_s29, %s623_s30  ;;  %p629_p2 = scmp.lt.s32.totalorder %s623_s30, %s623_s30 }
   0x5   :  { %p630_p3 = por %p629_p2, %p628_p1 }
   0x7   :  { %p631_p4 = pnand %p630_p3, %p624_p0 }
   0x9   :  { %634 = shalt.err (!%p631_p4)
}
   0xa   :  { %s661_s9 = smov [#allocation2]  }
   0xb   :  { %38 = dma.vmem_to_smem %s36_s29, 16, %s661_s9, [#allocation4]  }
   0xc   :  { %657 = dma.done.wait [#allocation4], 16  }
   0xd   :  { %658 = vsyncadd [#allocation4], 4294967280 }
   0xe   :  { %42 = sfence }
   0xf   :  { %v60_v0 = vld [vmem:[%s964_s2 + $0x80] sm:$0xff]  ;;  %v61_v1 = vld [vmem:[%s964_s2 + $0x88] sm:$0xff]  ;;  %v62_v5 = vld [vmem:[%s964_s2 + $0x90] sm:$0xff]  ;;  %v662_v7 = vmov 0.0|0.0   ;;  %vm663_vm0 = vmmov 0   ;;  %v664_v13 = vmov 0.0   ;;  %v104_v23 = vlaneseq }
  0x10   :  { %v44_v2 = vld [vmem:[%s964_s2] sm:$0xff]  ;;  %v534_v3 = vpack.c.bf16 %v61_v1, %v60_v0  ;;  %v45_v4 = vld [vmem:[%s964_s2 + $0x8] sm:$0xff]  ;;  %v63_v6 = vld [vmem:[%s964_s2 + $0x98] sm:$0xff]  ;;  %566 = vmatprep.subr.bf16.mxu1 %v662_v7  ;;  %496 = vmatprep.mubr.msk.f32.mxu1 %vm663_vm0, %v664_v13  ;;  %v665_v17 = vmov 0   ;;  %v666_v21 = vmov 1983009808  }
  0x11   :  { %v536_v8 = vpack.c.bf16 %v45_v4, %v44_v2  ;;  %v538_v9 = vpack.c.bf16 %v63_v6, %v62_v5  ;;  %v46_v10 = vld [vmem:[%s964_s2 + $0x10] sm:$0xff]  ;;  %v47_v11 = vld [vmem:[%s964_s2 + $0x18] sm:$0xff]  ;;  %v76_v12 = vld [vmem:[%s964_s2 + $0x100] sm:$0xff]  ;;  %621 = vset.pattern.permute.xlu0 %v665_v17  ;;  %v102_v22 = vunpack.c.l.s4 %v666_v21  ;;  %v105_v35 = vshrl.u32 %v104_v23, 7  ;;  %s801_s15 = sld [smem:[#allocation2 + $0x2]]  ;;  %s353_s25 = sld [smem:[#allocation2]] }
  0x12   :  { %535 = vmatprep.subr.bf16.mxu0 %v534_v3  ;;  %v77_v14 = vld [vmem:[%s964_s2 + $0x108] sm:$0xff]  ;;  %v64_v15 = vld [vmem:[%s964_s2 + $0xa0] sm:$0xff]  ;;  %v540_v18 = vpack.c.bf16 %v47_v11, %v46_v10  ;;  %v78_v20 = vld [vmem:[%s964_s2 + $0x110] sm:$0xff]  ;;  %s394_s26 = sld [smem:[#allocation2 + $0x3]]  ;;  %vm373_vm1 = vcmask 25600  }
  0x13   :  { %v65_v16 = vld [vmem:[%s964_s2 + $0xa8] sm:$0xff]  ;;  %537 = vmatpush3.bf16.msra.mxu0 %v536_v8  ;;  %v567_v19 = vpack.c.bf16 %v77_v14, %v76_v12  ;;  %v48_v25 = vld [vmem:[%s964_s2 + $0x20] sm:$0xff]  ;;  %v79_v27 = vld [vmem:[%s964_s2 + $0x118] sm:$0xff]  ;;  %v103_v34 = vunpack.c.0.s8 %v102_v22 }
  0x14   :  { %539 = vmatprep.subr.bf16.mxu0 %v538_v9  ;;  %v542_v24 = vpack.c.bf16 %v65_v16, %v64_v15  ;;  %v49_v26 = vld [vmem:[%s964_s2 + $0x28] sm:$0xff]  ;;  %v570_v28 = vpack.c.bf16 %v79_v27, %v78_v20  ;;  %v66_v29 = vld [vmem:[%s964_s2 + $0xb0] sm:$0xff]  ;;  %v67_v30 = vld [vmem:[%s964_s2 + $0xb8] sm:$0xff] }
  0x15   :  { %568 = vmatpush3.bf16.msra.mxu1 %v567_v19  ;;  %v80_v31 = vld [vmem:[%s964_s2 + $0x120] sm:$0xff]  ;;  %v81_v32 = vld [vmem:[%s964_s2 + $0x128] sm:$0xff]  ;;  %v544_v33 = vpack.c.bf16 %v49_v26, %v48_v25  ;;  %v546_v36 = vpack.c.bf16 %v67_v30, %v66_v29  ;;  %v50_v37 = vld [vmem:[%s964_s2 + $0x30] sm:$0xff]  ;;  %v799_v45 = vsub.s32 %v103_v34, %v105_v35 }
  0x16   :  { %569 = vmatprep.subr.bf16.mxu1 %v662_v7  ;;  %v51_v38 = vld [vmem:[%s964_s2 + $0x38] sm:$0xff]  ;;  %v573_v39 = vpack.c.bf16 %v81_v32, %v80_v31  ;;  %v68_v40 = vld [vmem:[%s964_s2 + $0xc0] sm:$0xff]  ;;  %v69_v41 = vld [vmem:[%s964_s2 + $0xc8] sm:$0xff] }
  0x17   :  { %541 = vmatpush3.bf16.msra.mxu0 %v540_v18  ;;  %v82_v42 = vld [vmem:[%s964_s2 + $0x130] sm:$0xff]  ;;  %v83_v43 = vld [vmem:[%s964_s2 + $0x138] sm:$0xff]  ;;  %v548_v44 = vpack.c.bf16 %v51_v38, %v50_v37  ;;  %v550_v46 = vpack.c.bf16 %v69_v41, %v68_v40  ;;  %v52_v47 = vld [vmem:[%s964_s2 + $0x40] sm:$0xff]  ;;  %v365_v3 = vstv %s801_s15 }
  0x18   :  { %543 = vmatprep.subr.bf16.mxu0 %v542_v24  ;;  %v53_v48 = vld [vmem:[%s964_s2 + $0x48] sm:$0xff]  ;;  %v576_v49 = vpack.c.bf16 %v83_v43, %v82_v42  ;;  %v70_v50 = vld [vmem:[%s964_s2 + $0xd0] sm:$0xff]  ;;  %v71_v51 = vld [vmem:[%s964_s2 + $0xd8] sm:$0xff] }
  0x19   :  { %571 = vmatpush3.bf16.msra.mxu1 %v570_v28  ;;  %v84_v52 = vld [vmem:[%s964_s2 + $0x140] sm:$0xff]  ;;  %v85_v53 = vld [vmem:[%s964_s2 + $0x148] sm:$0xff]  ;;  %v552_v55 = vpack.c.bf16 %v53_v48, %v52_v47  ;;  %v554_v57 = vpack.c.bf16 %v71_v51, %v70_v50  ;;  %v54_v58 = vld [vmem:[%s964_s2 + $0x50] sm:$0xff] }
  0x1a   :  { %572 = vmatprep.subr.bf16.mxu1 %v662_v7  ;;  %v43_v54 = vld [vmem:[%s962_s0] sm:$0x3f]  ;;  %v55_v59 = vld [vmem:[%s964_s2 + $0x58] sm:$0xff]  ;;  %v579_v60 = vpack.c.bf16 %v85_v53, %v84_v52  ;;  %v73_v62 = vld [vmem:[%s964_s2 + $0xe8] sm:$0xff] }
  0x1b   :  { %545 = vmatpush3.bf16.msra.mxu0 %v544_v33  ;;  %v107_v56 = vrot.slane %v43_v54, %v799_v45  ;;  %v72_v61 = vld [vmem:[%s964_s2 + $0xe0] sm:$0xff]  ;;  %v86_v0 = vld [vmem:[%s964_s2 + $0x150] sm:$0xff]  ;;  %v87_v1 = vld [vmem:[%s964_s2 + $0x158] sm:$0xff]  ;;  %v556_v2 = vpack.c.bf16 %v55_v59, %v54_v58  ;;  %v100_v24 = vcombine.high %v43_v54, %v43_v54 }
  0x1c   :  { %547 = vmatprep.subr.bf16.mxu0 %v546_v36  ;;  %v558_v4 = vpack.c.bf16 %v73_v62, %v72_v61  ;;  %v56_v5 = vld [vmem:[%s964_s2 + $0x60] sm:$0xff]  ;;  %v57_v6 = vld [vmem:[%s964_s2 + $0x68] sm:$0xff]  ;;  %v582_v8 = vpack.c.bf16 %v87_v1, %v86_v0  ;;  %v74_v9 = vld [vmem:[%s964_s2 + $0xf0] sm:$0xff]  ;;  %v357_v61 = vstv %s353_s25 }
  0x1d   :  { %574 = vmatpush3.bf16.msra.mxu1 %v573_v39  ;;  %v115_v63 = vcombine.high %v107_v56, %v107_v56  ;;  %v75_v10 = vld [vmem:[%s964_s2 + $0xf8] sm:$0xff]  ;;  %v364_v11 = vld [vmem:[%s968_s6] sm:$0x3]  ;;  %v89_v14 = vld [vmem:[%s964_s2 + $0x168] sm:$0xff]  ;;  %v560_v16 = vpack.c.bf16 %v57_v6, %v56_v5  ;;  %v114_v29 = vrot.slane %v100_v24, %v799_v45 }
  0x1e   :  { %575 = vmatprep.subr.bf16.mxu1 %v662_v7  ;;  %v88_v12 = vld [vmem:[%s964_s2 + $0x160] sm:$0xff]  ;;  %v366_v15 = vmul.f32 %v365_v3, %v364_v11  ;;  %v562_v17 = vpack.c.bf16 %v75_v10, %v74_v9  ;;  %v58_v18 = vld [vmem:[%s964_s2 + $0x70] sm:$0xff]  ;;  %v59_v19 = vld [vmem:[%s964_s2 + $0x78] sm:$0xff] }
  0x1f   :  { %549 = vmatpush3.bf16.msra.mxu0 %v548_v44  ;;  %183 = vmatprep.mubr.f32.mxu0 %v115_v63  ;;  %v585_v20 = vpack.c.bf16 %v89_v14, %v88_v12  ;;  %v90_v21 = vld [vmem:[%s964_s2 + $0x170] sm:$0xff]  ;;  %v91_v22 = vld [vmem:[%s964_s2 + $0x178] sm:$0xff]  ;;  %v564_v23 = vpack.c.bf16 %v59_v19, %v58_v18  ;;  %v260_v25 = vld [vmem:[%s966_s4] sm:$0xff] }
  0x20   :  { %551 = vmatprep.subr.bf16.mxu0 %v550_v46  ;;  %369 = vperm.xlu0 %621, %v366_v15   ;;  %v261_v26 = vld [vmem:[%s966_s4 + $0x8] sm:$0xff]  ;;  %v588_v27 = vpack.c.bf16 %v91_v22, %v90_v21  ;;  %v262_v30 = vld [vmem:[%s966_s4 + $0x10] sm:$0xff]  ;;  %v263_v31 = vld [vmem:[%s966_s4 + $0x18] sm:$0xff] }
  0x21   :  { %577 = vmatpush3.bf16.msra.mxu1 %v576_v49  ;;  %v591_v28 = vpack.c.bf16 %v261_v26, %v260_v25  ;;  %v594_v32 = vpack.c.bf16 %v263_v31, %v262_v30  ;;  %v264_v33 = vld [vmem:[%s966_s4 + $0x20] sm:$0xff]  ;;  %v265_v34 = vld [vmem:[%s966_s4 + $0x28] sm:$0xff]  ;;  %v266_v36 = vld [vmem:[%s966_s4 + $0x30] sm:$0xff] }
  0x22   :  { %578 = vmatprep.subr.bf16.mxu1 %v662_v7  ;;  %v597_v35 = vpack.c.bf16 %v265_v34, %v264_v33  ;;  %v268_v38 = vld [vmem:[%s966_s4 + $0x40] sm:$0xff]  ;;  %v269_v39 = vld [vmem:[%s966_s4 + $0x48] sm:$0xff]  ;;  %v270_v41 = vld [vmem:[%s966_s4 + $0x50] sm:$0xff] }
  0x23   :  { %553 = vmatpush3.bf16.msra.mxu0 %v552_v55  ;;  %v603_v40 = vpack.c.bf16 %v269_v39, %v268_v38  ;;  %v271_v42 = vld [vmem:[%s966_s4 + $0x58] sm:$0xff]  ;;  %v272_v44 = vld [vmem:[%s966_s4 + $0x60] sm:$0xff]  ;;  %v273_v45 = vld [vmem:[%s966_s4 + $0x68] sm:$0xff] }
  0x24   :  { %555 = vmatprep.subr.bf16.mxu0 %v554_v57  ;;  %v606_v43 = vpack.c.bf16 %v271_v42, %v270_v41  ;;  %v609_v46 = vpack.c.bf16 %v273_v45, %v272_v44  ;;  %v274_v47 = vld [vmem:[%s966_s4 + $0x70] sm:$0xff]  ;;  %v275_v48 = vld [vmem:[%s966_s4 + $0x78] sm:$0xff]  ;;  %v259_v50 = vld [vmem:[%s963_s1] sm:$0x3]  ;;  %s667_s1 = smov [#allocation5]  }
  0x25   :  { %580 = vmatpush3.bf16.msra.mxu1 %v579_v60  ;;  %v612_v49 = vpack.c.bf16 %v275_v48, %v274_v47  ;;  %v390_v53 = vld [vmem:[%s965_s3] ss:$0 sm:$0xff]  ;;  %s381_s3 = sshll.u32 %s667_s1, 4  ;;  %s382_s3 = int_to_ptr.vmem [resolvable:$true] %s381_s3 }
  0x26   :  { %581 = vmatprep.subr.bf16.mxu1 %v662_v7  ;;  %s635_s28 = scalar_lea.vmem %s382_s3, 32  ;;  %p640_p6 = scmp.lt.s32.totalorder %s382_s3, %s382_s3 }
  0x27   :  { %557 = vmatpush3.bf16.msra.mxu0 %v556_v2  ;;  %v362_v2 = vstv %s394_s26  ;;  %p636_p5 = scmp.ne.s32.totalorder %s382_s3, %s635_s28  ;;  %p641_p7 = scmp.lt.s32.totalorder %s635_s28, %s635_s28 }
  0x28   :  { %559 = vmatprep.subr.bf16.mxu0 %v558_v4 }
  0x29   :  { %583 = vmatpush3.bf16.msra.mxu1 %v582_v8  ;;  %p642_p8 = por %p641_p7, %p640_p6 }
  0x2a   :  { %584 = vmatprep.subr.bf16.mxu1 %v662_v7 }
  0x2b   :  { %561 = vmatpush3.bf16.msra.mxu0 %v560_v16  ;;  %p643_p9 = pnand %p642_p8, %p636_p5 }
  0x2c   :  { %563 = vmatprep.subr.bf16.mxu0 %v562_v17 }
  0x2d   :  { %586 = vmatpush3.bf16.msra.mxu1 %v585_v20 }
  0x2e   :  { %587 = vmatprep.subr.bf16.mxu1 %v662_v7 }
  0x2f   :  { %565 = vmatpush3.bf16.msra.mxu0 %v564_v23 }
  0x30   :  { %590 = vmatprep.subr.bf16.mxu0 %v662_v7 }
  0x31   :  { %589 = vmatpush3.bf16.msra.mxu1 %v588_v27 }
  0x32   :  { %184 = vmatmul.mubr.f32.vlgmr.msra.gmra.mrb[0].mxu0 %v107_v56 }
  0x33   :  { %592 = vmatpush3.bf16.msra.mxu0 %v591_v28  ;;  %531 = vmatprep.mubr.msk.f32.mxu0 %vm663_vm0, %v664_v13  ;;  %v267_v13 = vld [vmem:[%s966_s4 + $0x38] sm:$0xff]  ;;  %s392_s4 = sld [smem:[#allocation2 + $0x1]] }
  0x34   :  { %593 = vmatprep.subr.bf16.mxu0 %v662_v7  ;;  %497 = vmatmul.mubr.f32.vlgmr.msra.gmra.mrb[0].mxu1 %v114_v29  ;;  %v600_v37 = vpack.c.bf16 %v267_v13, %v266_v36 }
  0x37   :  { %595 = vmatpush3.bf16.msra.mxu0 %v594_v32 }
  0x38   :  { %596 = vmatprep.subr.bf16.mxu0 %v662_v7 }
  0x39   :  { %v359_v59 = vstv %s392_s4 }
  0x3b   :  { %598 = vmatpush3.bf16.msra.mxu0 %v597_v35 }
  0x3c   :  { %599 = vmatprep.subr.bf16.mxu0 %v662_v7 }
  0x3f   :  { %601 = vmatpush3.bf16.msra.mxu0 %v600_v37 }
  0x40   :  { %602 = vmatprep.subr.bf16.mxu0 %v662_v7 }
  0x43   :  { %604 = vmatpush3.bf16.msra.mxu0 %v603_v40 }
  0x44   :  { %605 = vmatprep.subr.bf16.mxu0 %v662_v7 }
  0x47   :  { %607 = vmatpush3.bf16.msra.mxu0 %v606_v43 }
  0x48   :  { %608 = vmatprep.subr.bf16.mxu0 %v662_v7 }
  0x4b   :  { %610 = vmatpush3.bf16.msra.mxu0 %v609_v46 }
  0x4c   :  { %611 = vmatprep.subr.bf16.mxu0 %v662_v7  ;;  %v391_v7 = vld [vmem:[%s967_s5] ss:$0 sm:$0xff] }
  0x4f   :  { %613 = vmatpush3.bf16.msra.mxu0 %v612_v49 }
  0x52   :  { %532 = vmatmul.mubr.f32.vlgmr.msra.gmra.mrb[2].mxu0 %v259_v50 }
  0x9f   :  { %v370_v4 = vpop.permute.xlu0 %369 }
 0x105   :  { %v427_v51 = vpop.f32.mrb[0].mxu0 }
 0x106   :  { %v428_v52 = vpop.f32.mrb[1].mxu0 }
 0x107   :  { %v429_v54 = vadd.f32 %v428_v52, %v427_v51  ;;  %v255_v55 = vpop.f32.mrb[0].mxu1 }
 0x108   :  { %v498_v56 = vpop.f32.mrb[1].mxu1 }
 0x109   :  { %v186_v57 = vadd.f32 %v429_v54, %v390_v53 }
 0x10b   :  { %v256_v58 = vadd.f32 %v255_v55, %v186_v57 }
 0x10d   :  { %v360_v0 = vmul.f32 %v359_v59, %v256_v58 }
 0x125   :  { %v349_v60 = vpop.f32.mrb[2].mxu0 }
 0x126   :  { %v350_v62 = vadd.f32 %v391_v7, %v349_v60  ;;  %v533_v63 = vpop.f32.mrb[3].mxu0 }
 0x128   :  { %v358_v1 = vmul.f32 %v357_v61, %v350_v62 }
 0x12a   :  { %v361_v3 = vadd.f32 %v360_v0, %v358_v1 }
 0x12c   :  { %v363_v5 = vadd.f32 %v362_v2, %v361_v3 }
 0x12e   :  { %v372_v6 = vadd.f32 %v370_v4, %v363_v5 }
 0x130   :  { %374 = vst.msk [vmem:[#allocation5] sm:$0x3] %vm373_vm1, %v372_v6 }
 0x131   :  { %646 = shalt.err (!%p643_p9)
}
 0x132   :  { %s647_s30 = scalar_lea.hbm %s970_s8, 32 }
 0x133   :  { %p648_p10 = scmp.ne.s32.totalorder %s970_s8, %s647_s30  ;;  %p651_p11 = scmp.lt.u32.totalorder %s647_s30, %s970_s8 }
 0x135   :  { %p653_p12 = pnand %p651_p11, %p648_p10 }
 0x137   :  { %656 = shalt.err (!%p653_p12)
}
 0x138   :  { %384 = dma.vmem_to_hbm [thread:$0]  %s382_s3, 32, %s970_s8, [#allocation3]  }
 0x139   :  { %659 = dma.done.wait [#allocation3], 32  }
 0x13a   :  { %660 = vsyncadd [#allocation3], 4294967264 }
 0x13b   :  { %388 = vsyncpa [#allocation3], 1 }
 0x13c   :  { %389 = vsyncpa [#allocation4], 1 }

// kernel: ours_forward.12
= control target key start
LH: loop header
LB: loop body
LE: loop exit
PB: predicated region body
PF: predicated region fallthrough
CT: control target
= control target key end

     0   :  { %s4530_s0 = inlined_call_operand.vmem [shape: f32[2,4,32], index: 0, kind: input, shape index: {}]   ;;  %s4531_s1 = inlined_call_operand.vmem [shape: f32[2,12,32], index: 1, kind: input, shape index: {}, may-alias: {1,2}]   ;;  %s4532_s2 = inlined_call_operand.vmem [shape: f32[2,12,32], index: 2, kind: input, shape index: {}, may-alias: {1,2}]   ;;  %s4533_s3 = inlined_call_operand.vmem [shape: f32[4,32,8], index: 3, kind: input, shape index: {}]   ;;  %s4534_s4 = inlined_call_operand.vmem [shape: f32[4,1,8], index: 4, kind: input, shape index: {}]   ;;  %s4535_s5 = inlined_call_operand.vmem [shape: f32[4,32,8], index: 5, kind: input, shape index: {}]   ;;  %s4536_s6 = inlined_call_operand.vmem [shape: f32[4,1,8], index: 6, kind: input, shape index: {}]   ;;  %s4537_s7 = inlined_call_operand.vmem [shape: f32[4,32,8], index: 7, kind: input, shape index: {}]   ;;  %s4538_s8 = inlined_call_operand.vmem [shape: f32[4,1,8], index: 8, kind: input, shape index: {}]   ;;  %s4539_s9 = inlined_call_operand.vmem [shape: f32[4,8,32], index: 9, kind: input, shape index: {}]   ;;  %s4540_s10 = inlined_call_operand.vmem [shape: f32[1,32], index: 10, kind: input, shape index: {}]   ;;  %s4541_s11 = inlined_call_operand.vmem [shape: f32[1,32], index: 11, kind: input, shape index: {}]   ;;  %s4542_s12 = inlined_call_operand.vmem [shape: f32[1,32], index: 12, kind: input, shape index: {}]   ;;  %s4543_s13 = inlined_call_operand.vmem [shape: f32[32,64], index: 13, kind: input, shape index: {}]   ;;  %s4544_s14 = inlined_call_operand.vmem [shape: f32[1,64], index: 14, kind: input, shape index: {}]   ;;  %s4545_s15 = inlined_call_operand.vmem [shape: f32[64,32], index: 15, kind: input, shape index: {}]   ;;  %s4546_s16 = inlined_call_operand.vmem [shape: f32[1,32], index: 16, kind: input, shape index: {}]   ;;  %s4547_s17 = inlined_call_operand.vmem [shape: f32[1,32], index: 17, kind: input, shape index: {}]   ;;  %s4548_s18 = inlined_call_operand.vmem [shape: f32[1,32], index: 18, kind: input, shape index: {}]   ;;  %s4549_s19 = inlined_call_operand.vmem [shape: f32[2,4,32], index: 19, kind: output, shape index: {0}]   ;;  %s4550_s20 = inlined_call_operand.hbm [shape: f32[4,2,4,12], index: 20, kind: output, shape index: {1}]  }
   0x1   :  { %4563 = sst [smem:[#allocation11_spill]] %s4530_s0 }
   0x2   :  { %4564 = sst [smem:[#allocation12_spill]] %s4531_s1 }
   0x3   :  { %4565 = sst [smem:[#allocation13_spill]] %s4532_s2 }
   0x4   :  { %4566 = sst [smem:[#allocation14_spill]] %s4533_s3 }
   0x5   :  { %4567 = sst [smem:[#allocation15_spill]] %s4534_s4 }
   0x6   :  { %4568 = sst [smem:[#allocation16_spill]] %s4535_s5 }
   0x7   :  { %4569 = sst [smem:[#allocation17_spill]] %s4547_s17 }
   0x8   :  { %4570 = sst [smem:[#allocation18_spill]] %s4548_s18 }
   0x9   :  { %4571 = sst [smem:[#allocation19_spill]] %s4549_s19 }
   0xa   :  { %4572 = sst [smem:[#allocation20_spill]] %s4550_s20 }
   0xb   :  { %26 = vsyncpa [#allocation3], 0 }
   0xc   :  { %28 = vsyncpa [#allocation3 + $0x1], 0  ;;  %s3953_s1 = smov 0   ;;  %s3955_s22 = smov 0  }
   0xd   :  { %s3957_s23 = smov 0   ;;  %s3959_s24 = smov 0  }
   0xe LB: > { %4573 = sst [smem:[#allocation5_spill]] %s3826_s1  ;;  %s3974_s2 = sadd.s32 4294967295, %s3838_s24   ;;  %s3838_s24 = sphi %s3959_s24, %s4601_s24   ;;  %s3834_s23 = sphi %s3957_s23, %s4603_s23   ;;  %s3830_s22 = sphi %s3955_s22, %s4605_s22   ;;  %s3826_s1 = sphi %s3953_s1, %s4604_s1  }
   0xf   : > { %4574 = sst [smem:[#allocation6_spill]] %s3834_s23  ;;  %s3087_s25 = sadd.s32 4294967294, %s3838_s24  }
  0x10   : > { %4575 = sst [smem:[#allocation7_spill]] %s3838_s24  ;;  %s3978_s3 = sadd.s32 1, %s3838_s24  }
  0x11   : > { %4576 = sst [smem:[#allocation8_spill]] %s3978_s3  ;;  %s481_s26 = sadd.s32 1, %s3834_s23 }
  0x12   : > { %s478_s27 = ssub.s32 %s3838_s24, %s3978_s3  ;;  %p491_p0 = scmp.ne.s32.totalorder %s3834_s23, %s3830_s22 }
  0x13   : > { %p479_p1 = scmp.eq.s32.totalorder %s478_s27, 0  ;;  %p492_p2 = scmp.eq.s32.totalorder %s3974_s2, 1 }
  0x14   : > { %p497_p3 = scmp.ne.s32.totalorder %s3830_s22, %s3826_s1  ;;  %p498_p4 = scmp.eq.s32.totalorder %s3087_s25, 1 }
  0x15   : > { %s3989_s28 = scalar_select %p479_p1, %s3834_s23, %s481_s26  }
  0x16   : > { %p3991_p5 = por %p492_p2, %p491_p0  ;;  %p3995_p6 = por %p498_p4, %p497_p3 }
  0x17   : > { %4577 = sst [smem:[#allocation9_spill]] %s3989_s28  ;;  %p3090_p7 = scmp.ge.s32.totalorder %s3838_s24, 1 }
  0x18   : > { %s4579_s29 = scalar_select %p3995_p6, 1, 0 }
  0x19   : > { %p587_p8 = scmp.lt.s32.totalorder %s3838_s24, 3 }
  0x1a   : > { %4580 = sst [smem:[#allocation10_spill]] %s4579_s29 }
  0x1b   : > { %p588_p9 = pnand %p3090_p7, %p587_p8 }
  0x1c   : > { %s4581_s5 = sld [smem:[#allocation16_spill]] (!%p588_p9)  ;;  %p658_p10 = scmp.lt.s32.totalorder (!%p588_p9), %s3974_s2, 1  ;;  %v3840_v5 = vmov (!%p588_p9), 0.0|0.0   ;;  %vm3841_vm0 = vmmov (!%p588_p9), 0   ;;  %v3842_v12 = vmov (!%p588_p9), 0.0   ;;  %vm692_vm1 = vcmask (!%p588_p9), 261120  }
  0x1d   : > { %591 = sbr.rel (%p588_p9) target bundleno = 4976 (0x1370), region = 96  ;;  %3572 = vmatprep.subr.bf16.mxu0 (!%p588_p9), %v3840_v5  ;;  %s4582_s3 = sld [smem:[#allocation14_spill]] (!%p588_p9)  ;;  %3342 = vmatprep.mubr.msk.f32.mxu0 (!%p588_p9), %vm3841_vm0, %v3842_v12  ;;  %v3100_v17 = vld [vmem:[%s4536_s6] ss:$0 sm:$0xff] (!%p588_p9)  ;;  %vm950_vm2 = vcmask (!%p588_p9), 64512   ;;  %v859_v29 = vld [vmem:[%s4537_s7 + $0x8] sm:$0xff] (!%p588_p9)  ;;  %v1030_v36 = vlaneseq (!%p588_p9) }
  0x1e   : > { %s4583_s23 = sld [smem:[#allocation12_spill]] (!%p588_p9)  ;;  %s4584_s1 = sld [smem:[#allocation11_spill]] (!%p588_p9)  ;;  %vm4065_vm3 = vmpackc.low (!%p588_p9), %vm950_vm2, %vm950_vm2  ;;  %v858_v28 = vld [vmem:[%s4537_s7] sm:$0xff] (!%p588_p9)  ;;  %v860_v30 = vld [vmem:[%s4537_s7 + $0x10] sm:$0xff] (!%p588_p9)  ;;  %vm1036_vm5 = vcmask (!%p588_p9), 93184   ;;  %vm1053_vm6 = vcmask (!%p588_p9), 1043456  }
  0x1f   : > { %s4590_s19 = sld [smem:[#allocation13_spill]] (!%p588_p9)  ;;  %v3586_v31 = vpack.c.bf16 (!%p588_p9), %v859_v29, %v858_v28  ;;  %v861_v32 = vld [vmem:[%s4537_s7 + $0x18] sm:$0xff] (!%p588_p9)  ;;  %v4106_v37 = vshrl.u32 (!%p588_p9), %v1030_v36, 7  ;;  %v4108_v38 = vand.u32 (!%p588_p9), 127, %v1030_v36  ;;  %v3103_v49 = vld [vmem:[%s4538_s8] ss:$0 sm:$0xff] (!%p588_p9) }
  0x20   : > { %v3590_v34 = vpack.c.bf16 (!%p588_p9), %v861_v32, %v860_v30  ;;  %vm3843_vm7 = vmmov (!%p588_p9), 1   ;;  %v3126_v63 = vld [vmem:[%s4537_s7 + $0x20] sm:$0xff] (!%p588_p9)  ;;  %s655_s0 = sand.u32 (!%p588_p9), 1, %s3830_s22   ;;  %vm1049_vm9 = vcmask (!%p588_p9), 97280   ;;  %v3190_v24 = vld [vmem:[%s4537_s7 + $0x68] sm:$0xff] (!%p588_p9)  ;;  %vm2721_vm10 = vcmask (!%p588_p9), 257024  }
  0x21   : > { %vm1034_vm4 = vcmp.le.s32.totalorder (!%p588_p9), %v4108_v38, %v4106_v37  ;;  %vm4120_vm8 = vmpackc.low (!%p588_p9), %vm1053_vm6, %vm3843_vm7  ;;  %v3123_v29 = vld [vmem:[%s4536_s6 + $0x1] ss:$0 sm:$0xff] (!%p588_p9)  ;;  %vm2852_vm11 = vcmask (!%p588_p9), 523264   ;;  %s3215_s17 = sshll.u32 (!%p588_p9), %s3974_s2, 6  ;;  %s4477_s27 = scalar_lea.sflag (!%p588_p9), [#allocation3], %s655_s0 }
  0x22   : > { %v766_v0 = vld [vmem:[%s4581_s5] sm:$0xff] (!%p588_p9)  ;;  %v767_v1 = vld [vmem:[%s4581_s5 + $0x8] sm:$0xff] (!%p588_p9)  ;;  %v768_v2 = vld [vmem:[%s4581_s5 + $0x10] sm:$0xff] (!%p588_p9) }
  0x23   : > { %v3578_v3 = vpack.c.bf16 (!%p588_p9), %v767_v1, %v766_v0  ;;  %v769_v4 = vld [vmem:[%s4581_s5 + $0x18] sm:$0xff] (!%p588_p9)  ;;  %v681_v6 = vld [vmem:[%s4582_s3] sm:$0xff] (!%p588_p9)  ;;  %v682_v7 = vld [vmem:[%s4582_s3 + $0x8] sm:$0xff] (!%p588_p9) }
  0x24   : > { %v3582_v8 = vpack.c.bf16 %v769_v4, %v768_v2  ;;  %s4022_s25 = scalar_select %p658_p10, %s3974_s2, 1  ;;  %v3573_v9 = vpack.c.bf16 %v682_v7, %v681_v6  ;;  %v683_v10 = vld [vmem:[%s4582_s3 + $0x10] sm:$0xff]  ;;  %v684_v11 = vld [vmem:[%s4582_s3 + $0x18] sm:$0xff]  ;;  %v3118_v55 = vld [vmem:[%s4581_s5 + $0x20] sm:$0xff] }
  0x25   : > { %3579 = vmatprep.subr.bf16.mxu1 %v3578_v3  ;;  %v3576_v13 = vpack.c.bf16 %v684_v11, %v683_v10  ;;  %v3119_v56 = vld [vmem:[%s4581_s5 + $0x28] sm:$0xff]  ;;  %v3111_v58 = vld [vmem:[%s4582_s3 + $0x20] sm:$0xff]  ;;  %v3113_v61 = vld [vmem:[%s4582_s3 + $0x30] sm:$0xff]  ;;  %s3844_s2 = smov [#allocation2]  }
  0x26   : > { %3581 = vmatpush3.bf16.msra.mxu1 %v3578_v3  ;;  %s4560_s29 = sshll.u32 %s4022_s25, 4  ;;  %3574 = vmatpush3.bf16.msra.mxu0 %v3573_v9  ;;  %s4559_s30 = sshll.u32 %s4022_s25, 2  ;;  %v3608_v57 = vpack.c.bf16 %v3119_v56, %v3118_v55  ;;  %v3112_v59 = vld [vmem:[%s4582_s3 + $0x28] sm:$0xff]  ;;  %v3114_v62 = vld [vmem:[%s4582_s3 + $0x38] sm:$0xff]  ;;  %v3128_v3 = vld [vmem:[%s4537_s7 + $0x30] sm:$0xff] }
  0x27   : > { %3583 = vmatprep.subr.bf16.mxu1 %v3582_v8  ;;  %s666_s28 = scalar_lea.vmem %s4583_s23, %s4560_s29  ;;  %3575 = vmatprep.subr.bf16.mxu0 %v3840_v5  ;;  %s661_s24 = scalar_lea.vmem %s4584_s1, %s4559_s30  ;;  %v3603_v60 = vpack.c.bf16 %v3112_v59, %v3111_v58  ;;  %v3127_v0 = vld [vmem:[%s4537_s7 + $0x28] sm:$0xff]  ;;  %v3606_v1 = vpack.c.bf16 %v3114_v62, %v3113_v61  ;;  %v3129_v4 = vld [vmem:[%s4537_s7 + $0x38] sm:$0xff]  ;;  %v3152_v55 = vld [vmem:[%s4581_s5 + $0x50] sm:$0xff] }
  0x28   : > { %v4045_v14 = vld [vmem:[%s666_s28] sm:$0xff]  ;;  %v4049_v15 = vld [vmem:[%s666_s28 + $0x8] sm:$0xf]  ;;  %s4587_s23 = sld [smem:[#allocation15_spill]]  ;;  %v3616_v2 = vpack.c.bf16 %v3127_v0, %v3126_v63  ;;  %v3620_v6 = vpack.c.bf16 %v3129_v4, %v3128_v3  ;;  %v3121_v9 = vld [vmem:[%s4581_s5 + $0x38] sm:$0xff]  ;;  %s4593_s30 = sld [smem:[#allocation20_spill]] }
  0x29   : > { %3353 = vmatprep.mubr.msk.f32.mxu1 %vm692_vm1, %v4045_v14  ;;  %v4051_v16 = vld [vmem:[%s661_s24] sm:$0xf]  ;;  %s4589_s24 = sshll.u32 %s4022_s25, 4  ;;  %v3140_v62 = vld [vmem:[%s4539_s9 + $0x8] sm:$0xff] }
  0x2a   : > { %3585 = vmatpush3.bf16.msra.mxu1 %v3582_v8  ;;  %3577 = vmatpush3.bf16.msra.mxu0 %v3576_v13  ;;  %s671_s18 = scalar_lea.vmem %s4590_s19, %s4589_s24  ;;  %s3091_s24 = sshll.u32 %s655_s0, 4  ;;  %v3120_v8 = vld [vmem:[%s4581_s5 + $0x30] sm:$0xff]  ;;  %v3155_v63 = vld [vmem:[%s4536_s6 + $0x2] ss:$0 sm:$0xff] }
  0x2b   : > { %3594 = vmatprep.subr.bf16.mxu1 %v3840_v5  ;;  %v4095_v33 = vld [vmem:[%s671_s18] sm:$0xff]  ;;  %3587 = vmatprep.subr.bf16.mxu0 %v3586_v31  ;;  %v4099_v35 = vld [vmem:[%s671_s18 + $0x8] sm:$0xf]  ;;  %v3612_v13 = vpack.c.bf16 %v3121_v9, %v3120_v8  ;;  %s4175_s19 = scalar_lea.vmem [#allocation2], %s3091_s24  ;;  %v3145_v9 = vld [vmem:[%s4582_s3 + $0x50] sm:$0xff] }
  0x2c   : > { %s2977_s18 = sshll.u32 %s4175_s19, 4  ;;  %s4473_s18 = int_to_ptr.vmem [resolvable:$true] %s2977_s18 }
  0x2d   : > { %3354 = vmatmul.mubr.msk.f32.vlgmr.msra.gmra.mrb[0].mxu1 %vm692_vm1, %v4049_v15  ;;  %3343 = vmatmul.mubr.msk.f32.vlgmr.msra.gmra.mrb[0].mxu0 %vm692_vm1, %v4051_v16  ;;  %s3776_s1 = scalar_lea.vmem %s4473_s18, 256 }
  0x2e   : > { %3371 = vmatprep.mubr.msk.f32.mxu1 %vm3841_vm0, %v3842_v12  ;;  %s4588_s28 = smov %s4587_s23  ;;  %v3098_v26 = vld [vmem:[%s4587_s23] ss:$0 sm:$0xff]  ;;  %3364 = vmatprep.mubr.msk.f32.mxu0 %vm692_vm1, %v4095_v33  ;;  %s4471_s26 = scalar_lea.hbm %s4593_s30, %s3215_s17 }
  0x2f   : > { %3589 = vmatpush3.bf16.msra.mxu0 %v3586_v31  ;;  %p3777_p11 = scmp.ne.s32.totalorder %s4473_s18, %s3776_s1 }
  0x30   : > { %3591 = vmatprep.subr.bf16.mxu0 %v3590_v34 }
  0x31   : > { %p3778_p12 = pnand %p3777_p11, %p3991_p5 }
  0x33   : > { %3593 = vmatpush3.bf16.msra.mxu0 %v3590_v34  ;;  %p3779_p13 = pneg %p3778_p12 }
  0x34   : > { %3598 = vmatprep.subr.bf16.mxu0 %v3840_v5 }
  0x36   : > { %3365 = vmatmul.mubr.msk.f32.vlgmr.msra.gmra.mrb[2].mxu0 %vm692_vm1, %v4099_v35 }
  0x37   : > { %3378 = vmatprep.mubr.msk.f32.mxu0 %vm3841_vm0, %v3842_v12 }
 0x100   : > { %v3355_v18 = vpop.f32.mrb[0].mxu1  ;;  %v762_v19 = vpop.f32.mrb[0].mxu0 }
 0x101   : > { %v855_v20 = vadd.f32 %v3355_v18, %v3100_v17  ;;  %v849_v21 = vpop.f32.mrb[1].mxu1  ;;  %v3344_v22 = vpop.f32.mrb[1].mxu0  ;;  %v763_v27 = vadd.f32 %v3098_v26, %v762_v19 }
 0x102   : > { %v850_v23 = vadd.f32 %v3100_v17, %v849_v21  ;;  %v1127_v17 = vld [vmem:[%s4539_s9] sm:$0xff] }
 0x104   : > { %v3595_v25 = vpack.c.bf16 %v855_v20, %v850_v23  ;;  %v3131_v20 = vld [vmem:[%s4538_s8 + $0x1] ss:$0 sm:$0xff] }
 0x106   : > { %3597 = vmatpush3.bf16.xpose.msk.msra.mxu1 %vm4065_vm3, %v3595_v25 }
 0x107   : > { %3602 = vmatprep.subr.bf16.mxu1 %v3840_v5 }
 0x109   : > { %v3366_v48 = vpop.f32.mrb[2].mxu0 }
 0x10a   : > { %v941_v50 = vpop.f32.mrb[3].mxu0  ;;  %v947_v51 = vadd.f32 %v3366_v48, %v3103_v49 }
 0x10b   : > { %v942_v52 = vadd.f32 %v3103_v49, %v941_v50 }
 0x10d   : > { %3372 = vmatmul.mubr.msk.f32.vlgmr.msra.gmra.mrb[2].mxu1 %vm950_vm2, %v763_v27  ;;  %v3599_v53 = vpack.c.bf16 %v947_v51, %v942_v52  ;;  %v3150_v52 = vld [vmem:[%s4581_s5 + $0x40] sm:$0xff] }
 0x10e   : > { %3389 = vmatprep.mubr.msk.f32.mxu1 %vm3841_vm0, %v3842_v12  ;;  %3604 = vmatpush3.bf16.msra.mxu1 %v3603_v60 }
 0x10f   : > { %3601 = vmatpush3.bf16.msk.msra.mxu0 %vm4120_vm8, %v3599_v53  ;;  %3605 = vmatprep.subr.bf16.mxu1 %v3840_v5  ;;  %v3151_v53 = vld [vmem:[%s4581_s5 + $0x48] sm:$0xff] }
 0x110   : > { %3609 = vmatprep.subr.bf16.mxu0 %v3608_v57  ;;  %v3638_v56 = vpack.c.bf16 %v3151_v53, %v3150_v52 }
 0x112   : > { %3607 = vmatpush3.bf16.msra.mxu1 %v3606_v1 }
 0x113   : > { %3617 = vmatprep.subr.bf16.mxu1 %v3616_v2 }
 0x115   : > { %3390 = vmatmul.mubr.msk.f32.vlgmr.msra.gmra.mrb[4].mxu1 %vm692_vm1, %v4051_v16 }
 0x116   : > { %3619 = vmatpush3.bf16.msra.mxu1 %v3616_v2  ;;  %3411 = vmatprep.mubr.msk.f32.mxu1 %vm692_vm1, %v4095_v33 }
 0x117   : > { %3621 = vmatprep.subr.bf16.mxu1 %v3620_v6 }
 0x11a   : > { %3623 = vmatpush3.bf16.msra.mxu1 %v3620_v6  ;;  %v3143_v6 = vld [vmem:[%s4582_s3 + $0x40] sm:$0xff] }
 0x11b   : > { %3433 = vmatprep.subr.mxu1 %v3842_v12 }
 0x11d   : > { %3412 = vmatmul.mubr.msk.f32.vlgmr.msra.gmra.mrb[6].mxu1 %vm692_vm1, %v4099_v35 }
 0x11e   : > { %3435 = vmatprep.mubr.msk.f32.mxu1 %vm3841_vm0, %v3842_v12  ;;  %3434 = vmatpush3.msra.mxu1 %v1127_v17 }
 0x11f   : > { %3639 = vmatprep.subr.bf16.mxu1 %v3638_v56 }
 0x1e0   : > { %v1026_v39 = vpop.f32.mrb[2].mxu1 }
 0x1e1   : > { %v1035_v40 = vsel %vm1034_vm4, %v1026_v39, -4.2949673e+09  ;;  %v3373_v41 = vpop.f32.mrb[3].mxu1  ;;  %v3116_v39 = vld [vmem:[%s4588_s28 + $0x1] ss:$0 sm:$0xff] }
 0x1e2   : > { %v1037_v42 = vsel %vm1036_vm5, %v1035_v40, -inf }
 0x1e3   : > { %1038 = vmax.xlane.f32.xlu0 %v1037_v42 }
 0x1e8   : > { %v1207_v18 = vpop.f32.mrb[4].mxu1 }
 0x1e9   : > { %v3391_v19 = vpop.f32.mrb[5].mxu1 }
 0x1f0   : > { %v3413_v21 = vpop.f32.mrb[6].mxu1 }
 0x1f1   : > { %v1384_v22 = vadd.f32 %v3413_v21, %v3131_v20  ;;  %v1378_v23 = vpop.f32.mrb[7].mxu1  ;;  %v3148_v21 = vld [vmem:[%s4588_s28 + $0x2] ss:$0 sm:$0xff] }
 0x1f2   : > { %v1379_v25 = vadd.f32 %v3131_v20, %v1378_v23 }
 0x1f4   : > { %v3629_v26 = vpack.c.bf16 %v1384_v22, %v1379_v25 }
 0x270   : > { %v1039_v43 = vpop.xlane.xlu0 %1038 }
 0x271   : > { %v1040_v44 = vsub.f32 %v1035_v40, %v1039_v43  ;;  %v1208_v40 = vadd.f32 %v3116_v39, %v1207_v18 }
 0x273   : > { %v1041_v45 = vmul.f32 1.442695, %v1040_v44 }
 0x275   : > { %3756 = vpow2.f32 %v1041_v45 }
 0x27f   : > { %v3757_v46 = vpop.eup %3756 }
 0x280   : > { %v1043_v47 = vsel %vm1036_vm5, %v3757_v46, 0.0 }
 0x281   : > { %1044 = vadd.xlane.f32.xlu0 %v1043_v47 }
 0x30e   : > { %v1045_v7 = vpop.xlane.xlu0 %1044 }
 0x30f   : > { %3758 = vrcp.f32 %v1045_v7  ;;  %v3144_v7 = vld [vmem:[%s4582_s3 + $0x48] sm:$0xff] }
 0x310   : > { %v3633_v8 = vpack.c.bf16 %v3144_v7, %v3143_v6 }
 0x319   : > { %v3759_v10 = vpop.eup %3758 }
 0x31a   : > { %v1047_v11 = vmul.f32 %v3759_v10, %v3757_v46  ;;  %v3146_v10 = vld [vmem:[%s4582_s3 + $0x58] sm:$0xff] }
 0x31b   : > { %v3636_v17 = vpack.c.bf16 %v3146_v10, %v3145_v9 }
 0x31c   : > { %1048 = vst.msk [vmem:[%s4175_s19] sm:$0xf] %vm1036_vm5, %v1047_v11  ;;  %3379 = vmatmul.mubr.msk.f32.vlgmr.msra.gmra.mrb[4].mxu0 %vm1049_vm9, %v1047_v11 }
 0x31d   : > { %3611 = vmatpush3.bf16.msra.mxu0 %v3608_v57  ;;  %3400 = vmatprep.mubr.msk.f32.mxu0 %vm692_vm1, %v4045_v14  ;;  %v3153_v57 = vld [vmem:[%s4581_s5 + $0x58] sm:$0xff] }
 0x31e   : > { %3613 = vmatprep.subr.bf16.mxu0 %v3612_v13  ;;  %v3642_v58 = vpack.c.bf16 %v3153_v57, %v3152_v55  ;;  %v3182_v57 = vld [vmem:[%s4581_s5 + $0x68] sm:$0xff] }
 0x321   : > { %3615 = vmatpush3.bf16.msra.mxu0 %v3612_v13 }
 0x322   : > { %3624 = vmatprep.subr.bf16.mxu0 %v3840_v5 }
 0x324   : > { %3401 = vmatmul.mubr.msk.f32.vlgmr.msra.gmra.mrb[6].mxu0 %vm692_vm1, %v4049_v15 }
 0x325   : > { %3418 = vmatprep.mubr.msk.f32.mxu0 %vm3841_vm0, %v3842_v12 }
 0x3ef   : > { %v1123_v27 = vpop.f32.mrb[4].mxu0 }
 0x3f0   : > { %v3380_v28 = vpop.f32.mrb[5].mxu0  ;;  %3436 = vmatmul.mubr.msk.f32.vlgmr.msra.gmra.mrb[8].mxu1 %vm950_vm2, %v1123_v27  ;;  %v3159_v27 = vld [vmem:[%s4537_s7 + $0x48] sm:$0xff] }
 0x3f1   : > { %3457 = vmatprep.mubr.msk.f32.mxu1 %vm692_vm1, %v4045_v14  ;;  %3641 = vmatpush3.bf16.msra.mxu1 %v3638_v56  ;;  %v3160_v28 = vld [vmem:[%s4537_s7 + $0x50] sm:$0xff]  ;;  %v3181_v56 = vld [vmem:[%s4581_s5 + $0x60] sm:$0xff] }
 0x3f2   : > { %3643 = vmatprep.subr.bf16.mxu1 %v3642_v58 }
 0x3f5   : > { %3645 = vmatpush3.bf16.msra.mxu1 %v3642_v58  ;;  %v3668_v58 = vpack.c.bf16 %v3182_v57, %v3181_v56 }
 0x3f6   : > { %3654 = vmatprep.subr.bf16.mxu1 %v3840_v5 }
 0x3f7   : > { %v3402_v30 = vpop.f32.mrb[6].mxu0 }
 0x3f8   : > { %v1296_v31 = vadd.f32 %v3402_v30, %v3123_v29  ;;  %v1290_v32 = vpop.f32.mrb[7].mxu0  ;;  %3458 = vmatmul.mubr.msk.f32.vlgmr.msra.gmra.mrb[10].mxu1 %vm692_vm1, %v4049_v15  ;;  %v3161_v30 = vld [vmem:[%s4537_s7 + $0x58] sm:$0xff] }
 0x3f9   : > { %v1291_v34 = vadd.f32 %v3123_v29, %v1290_v32  ;;  %3475 = vmatprep.mubr.msk.f32.mxu1 %vm3841_vm0, %v3842_v12 }
 0x3fb   : > { %v3625_v36 = vpack.c.bf16 %v1296_v31, %v1291_v34  ;;  %v3650_v31 = vpack.c.bf16 %v3161_v30, %v3160_v28 }
 0x3fd   : > { %3627 = vmatpush3.bf16.xpose.msk.msra.mxu0 %vm4065_vm3, %v3625_v36 }
 0x3fe   : > { %3628 = vmatprep.subr.bf16.mxu0 %v3840_v5 }
 0x404   : > { %3419 = vmatmul.mubr.msk.f32.vlgmr.msra.gmra.mrb[8].mxu0 %vm950_vm2, %v1208_v40 }
 0x405   : > { %3631 = vmatpush3.bf16.msk.msra.mxu0 %vm4120_vm8, %v3629_v26  ;;  %3425 = vmatprep.mubr.msk.f32.mxu0 %vm3841_vm0, %v3842_v12  ;;  %v3158_v26 = vld [vmem:[%s4537_s7 + $0x40] sm:$0xff] }
 0x406   : > { %3428 = vmatprep.subr.mxu0 %v3842_v12  ;;  %v3646_v29 = vpack.c.bf16 %v3159_v27, %v3158_v26 }
 0x4c3   : > { %v1700_v41 = vpop.f32.mrb[8].mxu1 }
 0x4c4   : > { %v3437_v42 = vpop.f32.mrb[9].mxu1 }
 0x4cb   : > { %v3459_v0 = vpop.f32.mrb[10].mxu1 }
 0x4cc   : > { %v1872_v1 = vadd.f32 %v3459_v0, %v3155_v63  ;;  %v1866_v2 = vpop.f32.mrb[11].mxu1 }
 0x4cd   : > { %v1867_v3 = vadd.f32 %v3155_v63, %v1866_v2  ;;  %v3177_v63 = vld [vmem:[%s4582_s3 + $0x78] sm:$0xff] }
 0x4ce   : > { %v3184_v2 = vld [vmem:[%s4581_s5 + $0x78] sm:$0xff] }
 0x4cf   : > { %v3655_v4 = vpack.c.bf16 %v1872_v1, %v1867_v3  ;;  %v3183_v1 = vld [vmem:[%s4581_s5 + $0x70] sm:$0xff] }
 0x4d0   : > { %v3672_v3 = vpack.c.bf16 %v3184_v2, %v3183_v1  ;;  %v2837_v1 = vld [vmem:[%s4545_s15] sm:$0xff]  ;;  %v2838_v2 = vld [vmem:[%s4545_s15 + $0x8] sm:$0xff] }
 0x4d1   : > { %3657 = vmatpush3.bf16.xpose.msk.msra.mxu1 %vm4065_vm3, %v3655_v4 }
 0x4d2   : > { %3485 = vmatprep.subr.mxu1 %v3842_v12 }
 0x4d7   : > { %v1462_v43 = vpop.f32.mrb[8].mxu0 }
 0x4d8   : > { %v1466_v44 = vsel %vm1034_vm4, %v1462_v43, -4.2949673e+09  ;;  %v3420_v45 = vpop.f32.mrb[9].mxu0 }
 0x4d9   : > { %v1467_v46 = vsel %vm1036_vm5, %v1466_v44, -inf }
 0x4da   : > { %1468 = vmax.xlane.f32.xlu1 %v1467_v46  ;;  %v3163_v46 = vld [vmem:[%s4538_s8 + $0x2] ss:$0 sm:$0xff] }
 0x567   : > { %v1469_v47 = vpop.xlane.xlu1 %1468 }
 0x568   : > { %v1470_v48 = vsub.f32 %v1466_v44, %v1469_v47 }
 0x56a   : > { %v1471_v49 = vmul.f32 1.442695, %v1470_v48 }
 0x56c   : > { %3760 = vpow2.f32 %v1471_v49 }
 0x576   : > { %v3761_v50 = vpop.eup %3760 }
 0x577   : > { %v1473_v51 = vsel %vm1036_vm5, %v3761_v50, 0.0 }
 0x578   : > { %1474 = vadd.xlane.f32.xlu1 %v1473_v51  ;;  %v3172_v51 = vld [vmem:[%s4539_s9 + $0x10] sm:$0xff] }
 0x605   : > { %v1475_v59 = vpop.xlane.xlu1 %1474 }
 0x606   : > { %3762 = vrcp.f32 %v1475_v59  ;;  %v3174_v59 = vld [vmem:[%s4582_s3 + $0x60] sm:$0xff] }
 0x610   : > { %v3763_v60 = vpop.eup %3762 }
 0x611   : > { %v1477_v61 = vmul.f32 %v3763_v60, %v3761_v50  ;;  %v3175_v60 = vld [vmem:[%s4582_s3 + $0x68] sm:$0xff] }
 0x613   : > { %3137 = vst.msk [vmem:[%s4175_s19 + $0x4] sm:$0xf] %vm1036_vm5, %v1477_v61  ;;  %3426 = vmatmul.mubr.msk.f32.vlgmr.msra.gmra.mrb[10].mxu0 %vm1049_vm9, %v1477_v61  ;;  %v3663_v61 = vpack.c.bf16 %v3175_v60, %v3174_v59  ;;  %v2752_v60 = vld [vmem:[%s4543_s13] sm:$0xff] }
 0x614   : > { %3429 = vmatpush3.msra.mxu0 %v3140_v62  ;;  %3430 = vmatprep.mubr.msk.f32.mxu0 %vm3841_vm0, %v3842_v12  ;;  %v3176_v62 = vld [vmem:[%s4582_s3 + $0x70] sm:$0xff] }
 0x615   : > { %3632 = vmatprep.subr.bf16.mxu0 %v3840_v5  ;;  %v3666_v0 = vpack.c.bf16 %v3177_v63, %v3176_v62  ;;  %v2755_v63 = vld [vmem:[%s4543_s13 + $0x18] sm:$0xff] }
 0x6e6   : > { %v1552_v11 = vpop.f32.mrb[10].mxu0 }
 0x6e7   : > { %v3427_v13 = vpop.f32.mrb[11].mxu0  ;;  %3431 = vmatmul.mubr.msk.f32.vlgmr.msra.gmra.mrb[12].mxu0 %vm950_vm2, %v1552_v11 }
 0x6e8   : > { %3634 = vmatpush3.bf16.msra.mxu0 %v3633_v8  ;;  %3446 = vmatprep.mubr.msk.f32.mxu0 %vm3841_vm0, %v3842_v12 }
 0x6e9   : > { %3635 = vmatprep.subr.bf16.mxu0 %v3840_v5 }
 0x6ec   : > { %3637 = vmatpush3.bf16.msra.mxu0 %v3636_v17 }
 0x6ed   : > { %3647 = vmatprep.subr.bf16.mxu0 %v3646_v29 }
 0x6ef   : > { %3447 = vmatmul.mubr.msk.f32.vlgmr.msra.gmra.mrb[14].mxu0 %vm692_vm1, %v4051_v16 }
 0x6f0   : > { %3468 = vmatprep.mubr.msk.f32.mxu0 %vm692_vm1, %v4095_v33  ;;  %3649 = vmatpush3.bf16.msra.mxu0 %v3646_v29 }
 0x6f1   : > { %3651 = vmatprep.subr.bf16.mxu0 %v3650_v31 }
 0x6f4   : > { %3653 = vmatpush3.bf16.msra.mxu0 %v3650_v31 }
 0x6f5   : > { %3658 = vmatprep.subr.bf16.mxu0 %v3840_v5 }
 0x6f7   : > { %3469 = vmatmul.mubr.msk.f32.vlgmr.msra.gmra.mrb[16].mxu0 %vm692_vm1, %v4099_v35 }
 0x6f8   : > { %3482 = vmatprep.mubr.msk.f32.mxu0 %vm3841_vm0, %v3842_v12 }
 0x7ba   : > { %v1627_v18 = vpop.f32.mrb[12].mxu0 }
 0x7bb   : > { %v4268_v19 = vadd.f32 %v1700_v41, %v1627_v18  ;;  %v3432_v20 = vpop.f32.mrb[13].mxu0 }
 0x7c2   : > { %v1783_v22 = vpop.f32.mrb[14].mxu0 }
 0x7c3   : > { %v1784_v23 = vadd.f32 %v3148_v21, %v1783_v22  ;;  %v3448_v25 = vpop.f32.mrb[15].mxu0  ;;  %v3189_v21 = vld [vmem:[%s4537_s7 + $0x60] sm:$0xff]  ;;  %v3191_v22 = vld [vmem:[%s4537_s7 + $0x70] sm:$0xff] }
 0x7c4   : > { %v3192_v25 = vld [vmem:[%s4537_s7 + $0x78] sm:$0xff] }
 0x7c5   : > { %3476 = vmatmul.mubr.msk.f32.vlgmr.msra.gmra.mrb[12].mxu1 %vm950_vm2, %v1784_v23  ;;  %v3676_v23 = vpack.c.bf16 %v3190_v24, %v3189_v21  ;;  %v3680_v26 = vpack.c.bf16 %v3192_v25, %v3191_v22  ;;  %v2844_v21 = vld [vmem:[%s4545_s15 + $0x38] sm:$0xff]  ;;  %v3208_v22 = vld [vmem:[%s4544_s14] ss:$0 sm:$0xff] }
 0x7c6   : > { %3487 = vmatprep.mubr.msk.f32.mxu1 %vm3841_vm0, %v3842_v12  ;;  %3486 = vmatpush3.msra.mxu1 %v3172_v51 }
 0x7c7   : > { %3669 = vmatprep.subr.bf16.mxu1 %v3668_v58 }
 0x7ca   : > { %v3470_v45 = vpop.f32.mrb[16].mxu0 }
 0x7cb   : > { %v1954_v47 = vpop.f32.mrb[17].mxu0  ;;  %v1960_v48 = vadd.f32 %v3470_v45, %v3163_v46 }
 0x7cc   : > { %v1955_v49 = vadd.f32 %v3163_v46, %v1954_v47 }
 0x7ce   : > { %v3659_v50 = vpack.c.bf16 %v1960_v48, %v1955_v49  ;;  %v3205_v49 = vld [vmem:[%s4540_s10] ss:$0 sm:$0xff] }
 0x7d0   : > { %3661 = vmatpush3.bf16.msk.msra.mxu0 %vm4120_vm8, %v3659_v50 }
 0x7d1   : > { %3662 = vmatprep.subr.bf16.mxu0 %v3840_v5 }
 0x898   : > { %v2038_v32 = vpop.f32.mrb[12].mxu1 }
 0x899   : > { %v2042_v34 = vsel %vm1034_vm4, %v2038_v32, -4.2949673e+09  ;;  %v3477_v36 = vpop.f32.mrb[13].mxu1 }
 0x89a   : > { %v2043_v39 = vsel %vm1036_vm5, %v2042_v34, -inf }
 0x89b   : > { %2044 = vmax.xlane.f32.xlu0 %v2043_v39 }
 0x928   : > { %v2045_v40 = vpop.xlane.xlu0 %2044 }
 0x929   : > { %v2046_v41 = vsub.f32 %v2042_v34, %v2045_v40  ;;  %v3194_v40 = vld [vmem:[%s4538_s8 + $0x3] ss:$0 sm:$0xff] }
 0x92b   : > { %v2047_v42 = vmul.f32 1.442695, %v2046_v41 }
 0x92d   : > { %3764 = vpow2.f32 %v2047_v42 }
 0x937   : > { %v3765_v43 = vpop.eup %3764 }
 0x938   : > { %v2049_v44 = vsel %vm1036_vm5, %v3765_v43, 0.0 }
 0x939   : > { %2050 = vadd.xlane.f32.xlu1 %v2049_v44 }
 0x9c6   : > { %v2051_v52 = vpop.xlane.xlu1 %2050 }
 0x9c7   : > { %3766 = vrcp.f32 %v2051_v52 }
 0x9d1   : > { %v3767_v53 = vpop.eup %3766 }
 0x9d2   : > { %v2053_v55 = vmul.f32 %v3767_v53, %v3765_v43  ;;  %v3203_v43 = vld [vmem:[%s4539_s9 + $0x18] sm:$0xff] }
 0x9d4   : > { %3169 = vst.msk [vmem:[%s4175_s19 + $0x8] sm:$0xf] %vm1036_vm5, %v2053_v55  ;;  %3483 = vmatmul.mubr.msk.f32.vlgmr.msra.gmra.mrb[18].mxu0 %vm1049_vm9, %v2053_v55 }
 0x9d5   : > { %3498 = vmatprep.mubr.msk.f32.mxu0 %vm3841_vm0, %v3842_v12  ;;  %3664 = vmatpush3.bf16.msra.mxu0 %v3663_v61  ;;  %v2753_v61 = vld [vmem:[%s4543_s13 + $0x8] sm:$0xff] }
 0x9d6   : > { %3665 = vmatprep.subr.bf16.mxu0 %v3840_v5  ;;  %v3693_v62 = vpack.c.bf16 %v2753_v61, %v2752_v60 }
 0x9d9   : > { %3667 = vmatpush3.bf16.msra.mxu0 %v3666_v0 }
 0x9da   : > { %3677 = vmatprep.subr.bf16.mxu0 %v3676_v23 }
 0x9dc   : > { %3499 = vmatmul.mubr.msk.f32.vlgmr.msra.gmra.mrb[20].mxu0 %vm692_vm1, %v4051_v16 }
 0x9dd   : > { %3520 = vmatprep.mubr.msk.f32.mxu0 %vm692_vm1, %v4095_v33  ;;  %3679 = vmatpush3.bf16.msra.mxu0 %v3676_v23 }
 0x9de   : > { %3681 = vmatprep.subr.bf16.mxu0 %v3680_v26 }
 0x9e1   : > { %3683 = vmatpush3.bf16.msra.mxu0 %v3680_v26 }
 0x9e2   : > { %3688 = vmatprep.subr.bf16.mxu0 %v3840_v5 }
 0x9e4   : > { %3521 = vmatmul.mubr.msk.f32.vlgmr.msra.gmra.mrb[22].mxu0 %vm692_vm1, %v4099_v35 }
 0x9e5   : > { %3534 = vmatprep.mubr.msk.f32.mxu0 %vm3841_vm0, %v3842_v12 }
 0xaa7   : > { %v2128_v4 = vpop.f32.mrb[18].mxu0 }
 0xaa8   : > { %v3484_v6 = vpop.f32.mrb[19].mxu0  ;;  %3488 = vmatmul.mubr.msk.f32.vlgmr.msra.gmra.mrb[14].mxu1 %vm950_vm2, %v2128_v4  ;;  %v3699_v4 = vpack.c.bf16 %v2838_v2, %v2837_v1 }
 0xaa9   : > { %3671 = vmatpush3.bf16.msra.mxu1 %v3668_v58  ;;  %3509 = vmatprep.mubr.msk.f32.mxu1 %vm692_vm1, %v4045_v14  ;;  %v3186_v14 = vld [vmem:[%s4536_s6 + $0x3] ss:$0 sm:$0xff]  ;;  %v2840_v6 = vld [vmem:[%s4545_s15 + $0x18] sm:$0xff] }
 0xaaa   : > { %3673 = vmatprep.subr.bf16.mxu1 %v3672_v3 }
 0xaad   : > { %3675 = vmatpush3.bf16.msra.mxu1 %v3672_v3  ;;  %v2839_v3 = vld [vmem:[%s4545_s15 + $0x10] sm:$0xff] }
 0xaae   : > { %3684 = vmatprep.subr.bf16.mxu1 %v3840_v5 }
 0xaaf   : > { %v2287_v33 = vpop.f32.mrb[20].mxu0 }
 0xab0   : > { %3510 = vmatmul.mubr.msk.f32.vlgmr.msra.gmra.mrb[16].mxu1 %vm692_vm1, %v4049_v15  ;;  %v3500_v7 = vpop.f32.mrb[21].mxu0  ;;  %v3179_v15 = vld [vmem:[%s4588_s28 + $0x3] ss:$0 sm:$0xff] }
 0xab1   : > { %3527 = vmatprep.mubr.msk.f32.mxu1 %vm3841_vm0, %v3842_v12  ;;  %v2841_v7 = vld [vmem:[%s4545_s15 + $0x20] sm:$0xff] }
 0xab7   : > { %v3522_v35 = vpop.f32.mrb[22].mxu0 }
 0xab8   : > { %v2458_v37 = vpop.f32.mrb[23].mxu0  ;;  %v2464_v38 = vadd.f32 %v3522_v35, %v3194_v40 }
 0xab9   : > { %v2459_v41 = vadd.f32 %v3194_v40, %v2458_v37 }
 0xabb   : > { %v3689_v42 = vpack.c.bf16 %v2464_v38, %v2459_v41 }
 0xabd   : > { %3691 = vmatpush3.bf16.msk.msra.mxu0 %vm4120_vm8, %v3689_v42 }
 0xabe   : > { %3692 = vmatprep.subr.bf16.mxu0 %v3840_v5 }
 0xb7b   : > { %v2203_v8 = vpop.f32.mrb[14].mxu1 }
 0xb7c   : > { %v4350_v9 = vadd.f32 %v2203_v8, %v4268_v19  ;;  %v3489_v10 = vpop.f32.mrb[15].mxu1  ;;  %v2288_v19 = vadd.f32 %v3179_v15, %v2287_v33  ;;  %v3702_v33 = vpack.c.bf16 %v2840_v6, %v2839_v3  ;;  %v2842_v8 = vld [vmem:[%s4545_s15 + $0x28] sm:$0xff] }
 0xb83   : > { %v3511_v11 = vpop.f32.mrb[16].mxu1 }
 0xb84   : > { %v2376_v13 = vadd.f32 %v3511_v11, %v3186_v14  ;;  %v2370_v17 = vpop.f32.mrb[17].mxu1 }
 0xb85   : > { %v2371_v18 = vadd.f32 %v3186_v14, %v2370_v17  ;;  %v3206_v17 = vld [vmem:[%s4541_s11] ss:$0 sm:$0xff] }
 0xb87   : > { %v3685_v20 = vpack.c.bf16 %v2376_v13, %v2371_v18 }
 0xb89   : > { %3687 = vmatpush3.bf16.xpose.msk.msra.mxu1 %vm4065_vm3, %v3685_v20  ;;  %v3207_v20 = vld [vmem:[%s4542_s12] ss:$0 sm:$0xff] }
 0xb8a   : > { %3537 = vmatprep.subr.mxu1 %v3842_v12 }
 0xb90   : > { %3528 = vmatmul.mubr.msk.f32.vlgmr.msra.gmra.mrb[18].mxu1 %vm950_vm2, %v2288_v19 }
 0xb91   : > { %3539 = vmatprep.mubr.msk.f32.mxu1 %vm3841_vm0, %v3842_v12  ;;  %3538 = vmatpush3.msra.mxu1 %v3203_v43 }
 0xb92   : > { %3698 = vmatprep.subr.bf16.mxu1 %v3840_v5 }
 0xc63   : > { %v2542_v27 = vpop.f32.mrb[18].mxu1 }
 0xc64   : > { %v2546_v28 = vsel %vm1034_vm4, %v2542_v27, -4.2949673e+09  ;;  %v3529_v29 = vpop.f32.mrb[19].mxu1 }
 0xc65   : > { %v2547_v30 = vsel %vm1036_vm5, %v2546_v28, -inf }
 0xc66   : > { %2548 = vmax.xlane.f32.xlu0 %v2547_v30 }
 0xcf3   : > { %v2549_v31 = vpop.xlane.xlu0 %2548 }
 0xcf4   : > { %v2550_v32 = vsub.f32 %v2546_v28, %v2549_v31  ;;  %v3210_v28 = vld [vmem:[%s4546_s16] ss:$0 sm:$0xff] }
 0xcf6   : > { %v2551_v34 = vmul.f32 1.442695, %v2550_v32 }
 0xcf8   : > { %3768 = vpow2.f32 %v2551_v34 }
 0xd02   : > { %v3769_v36 = vpop.eup %3768 }
 0xd03   : > { %v2553_v39 = vsel %vm1036_vm5, %v3769_v36, 0.0 }
 0xd04   : > { %2554 = vadd.xlane.f32.xlu1 %v2553_v39 }
 0xd91   : > { %v2555_v44 = vpop.xlane.xlu1 %2554 }
 0xd92   : > { %3770 = vrcp.f32 %v2555_v44 }
 0xd9c   : > { %v3771_v45 = vpop.eup %3770 }
 0xd9d   : > { %v2557_v46 = vmul.f32 %v3771_v45, %v3769_v36 }
 0xd9f   : > { %3200 = vst.msk [vmem:[%s4175_s19 + $0xc] sm:$0xf] %vm1036_vm5, %v2557_v46  ;;  %3535 = vmatmul.mubr.msk.f32.vlgmr.msra.gmra.mrb[24].mxu0 %vm1049_vm9, %v2557_v46  ;;  %s3780_s19 = sshll.u32 %s3844_s2, 4  ;;  %s3781_s19 = int_to_ptr.vmem [resolvable:$false] %s3780_s19 }
 0xda0   : > { %3550 = vmatprep.mubr.msk.f32.mxu0 %vm3841_vm0, %v3842_v12  ;;  %3694 = vmatpush3.bf16.msra.mxu0 %v3693_v62  ;;  %s3782_s24 = scalar_lea.vmem %s3781_s19, 512  ;;  %p3783_p0 = scmp.lt.s32.totalorder %s4473_s18, %s3781_s19 }
 0xda1   : > { %3695 = vmatprep.subr.bf16.mxu0 %v3840_v5  ;;  %p3784_p1 = scmp.lt.s32.totalorder %s3782_s24, %s3776_s1 }
 0xda3   : > { %p3785_p2 = por %p3784_p1, %p3783_p0 }
 0xda5   : > { %p3786_p3 = pnand %p3785_p2, %p3779_p13 }
 0xe72   : > { %v2632_v54 = vpop.f32.mrb[24].mxu0 }
 0xe73   : > { %v3536_v47 = vpop.f32.mrb[25].mxu0  ;;  %3540 = vmatmul.mubr.msk.f32.vlgmr.msra.gmra.mrb[20].mxu1 %vm950_vm2, %v2632_v54 }
 0xe74   : > { %3569 = vmatprep.mubr.msk.f32.mxu1 %vm3841_vm0, %v3842_v12  ;;  %3700 = vmatpush3.bf16.msra.mxu1 %v3699_v4 }
 0xe75   : > { %3701 = vmatprep.subr.bf16.mxu1 %v3840_v5 }
 0xe78   : > { %3703 = vmatpush3.bf16.msra.mxu1 %v3702_v33 }
 0xe79   : > { %3704 = vmatprep.subr.bf16.mxu1 %v3840_v5 }
 0xf46   : > { %v2707_v48 = vpop.f32.mrb[20].mxu1 }
 0xf47   : > { %v2711_v50 = vadd.f32 %v2707_v48, %v4350_v9  ;;  %v3541_v51 = vpop.f32.mrb[21].mxu1  ;;  %v3705_v9 = vpack.c.bf16 %v2842_v8, %v2841_v7 }
 0xf49   : > { %v2719_v52 = vadd.f32 %v3205_v49, %v2711_v50  ;;  %3706 = vmatpush3.bf16.msra.mxu1 %v3705_v9 }
 0xf4a   : > { %3707 = vmatprep.subr.bf16.mxu1 %v3840_v5  ;;  %v2843_v5 = vld [vmem:[%s4545_s15 + $0x30] sm:$0xff] }
 0xf4b   : > { %v2720_v53 = vadd.f32 %v2719_v52, %v4051_v16  ;;  %v2754_v16 = vld [vmem:[%s4543_s13 + $0x10] sm:$0xff]  ;;  %v3708_v24 = vpack.c.bf16 %v2844_v21, %v2843_v5 }
 0xf4c   : > { %v3696_v0 = vpack.c.bf16 %v2755_v63, %v2754_v16 }
 0xf4d   : > { %v2722_v55 = vsel %vm2721_vm10, %v2720_v53, 0.0  ;;  %3709 = vmatpush3.bf16.msra.mxu1 %v3708_v24 }
 0xf4e   : > { %2723 = vadd.xlane.f32.xlu0 %v2722_v55  ;;  %3697 = vmatpush3.bf16.msra.mxu0 %v3696_v0 }
 0xfdb   : > { %v2724_v56 = vpop.xlane.xlu0 %2723 }
 0xfdc   : > { %v2726_v57 = vmul.f32 0.03125, %v2724_v56 }
 0xfde   : > { %v2727_v58 = vsub.f32 %v2720_v53, %v2726_v57 }
 0xfe0   : > { %v2728_v59 = vmul.f32 %v2727_v58, %v2727_v58 }
 0xfe2   : > { %v2729_v12 = vsel %vm2721_vm10, %v2728_v59, 0.0 }
 0xfe3   : > { %2730 = vadd.xlane.f32.xlu1 %v2729_v12 }
0x1070   : > { %v2731_v10 = vpop.xlane.xlu1 %2730 }
0x1071   : > { %v2732_v14 = vmul.f32 0.03125, %v2731_v10 }
0x1073   : > { %v2733_v11 = vadd.f32 1e-05, %v2732_v14 }
0x1075   : > { %3772 = vrsqrt.f32 %v2733_v11 }
0x107f   : > { %v3773_v13 = vpop.eup %3772 }
0x1080   : > { %v2735_v18 = vmul.f32 %v3773_v13, %v2727_v58 }
0x1082   : > { %v2743_v15 = vmul.f32 %v3206_v17, %v2735_v18 }
0x1084   : > { %v2751_v19 = vadd.f32 %v3207_v20, %v2743_v15 }
0x1086   : > { %3551 = vmatmul.mubr.msk.f32.vlgmr.msra.gmra.mrb[26].mxu0 %vm692_vm1, %v2751_v19 }
0x1159   : > { %v2832_v23 = vpop.f32.mrb[26].mxu0 }
0x115a   : > { %v2833_v25 = vadd.f32 %v3208_v22, %v2832_v23  ;;  %v3552_v26 = vpop.f32.mrb[27].mxu0 }
0x115c   : > { %v2836_v27 = vmax.f32 %v2833_v25, 0.0 }
0x115e   : > { %3570 = vmatmul.mubr.msk.f32.vlgmr.msra.gmra.mrb[22].mxu1 %vm2852_vm11, %v2836_v27 }
0x1231   : > { %v2922_v29 = vpop.f32.mrb[22].mxu1 }
0x1232   : > { %v2923_v30 = vadd.f32 %v3210_v28, %v2922_v29  ;;  %v3571_v31 = vpop.f32.mrb[23].mxu1 }
0x1234   : > { %v2926_v32 = vadd.f32 %v2923_v30, %v2751_v19 }
0x1236   : > { %v2927_v34 = vsel %vm2721_vm10, %v2926_v32, 0.0 }
0x1237   : > { %2928 = vadd.xlane.f32.xlu0 %v2927_v34 }
0x12c4   : > { %v2929_v36 = vpop.xlane.xlu0 %2928 }
0x12c5   : > { %v2930_v39 = vmul.f32 0.03125, %v2929_v36 }
0x12c7   : > { %v2931_v35 = vsub.f32 %v2926_v32, %v2930_v39 }
0x12c9   : > { %v2932_v40 = vmul.f32 %v2931_v35, %v2931_v35 }
0x12cb   : > { %v2933_v37 = vsel %vm2721_vm10, %v2932_v40, 0.0 }
0x12cc   : > { %2934 = vadd.xlane.f32.xlu1 %v2933_v37 }
0x12cd   : > { %3789 = shalt.err (!%p3786_p3)
}
0x12ce   : > { %s3790_s0 = scalar_lea.hbm %s4471_s26, 256  ;;  %s3794_s17 = scalar_lea.hbm %s4593_s30, 512 }
0x12cf   : > { %p3791_p4 = scmp.ne.s32.totalorder %s4471_s26, %s3790_s0  ;;  %p3795_p9 = scmp.lt.u32.totalorder %s4471_s26, %s4593_s30 }
0x12d0   : > { %p3796_p10 = scmp.lt.u32.totalorder %s3794_s17, %s3790_s0  ;;  %p3798_p12 = scmp.lt.u32.totalorder %s3790_s0, %s4471_s26 }
0x12d1   : > { %p3792_p7 = pnand %p3791_p4, %p3991_p5 }
0x12d2   : > { %p3797_p11 = por %p3796_p10, %p3795_p9 }
0x12d3   : > { %p3793_p8 = pneg %p3792_p7 }
0x12d4   : > { %p3799_p13 = por %p3798_p12, %p3797_p11 }
0x12d6   : > { %p3800_p0 = pnand %p3799_p13, %p3793_p8 }
0x12d8   : > { %3803 = shalt.err (!%p3800_p0)
}
0x12d9   : > { %s3845_s1 = smov 64   ;;  %s3846_s2 = smov 128  }
0x12da   : > { %s3847_s19 = smov 4   ;;  %s4594_s21 = sld [smem:[#allocation17_spill]] }
0x12db   : > { %3710 = dma.vmem_to_hbm [thread:$0]  (%p3991_p5), %s4473_s18, 256, %s4471_s26, %s4477_s27, %s3845_s1, %s3846_s2, %s3847_s19  }
0x12dc   : > { %s4595_s20 = sld [smem:[#allocation18_spill]]  ;;  %s4596_s29 = sshll.u32 %s4022_s25, 2 }
0x12dd   : > { %s4597_s4 = sld [smem:[#allocation19_spill]] }
0x12e0   : > { %v3212_v44 = vld [vmem:[%s4594_s21] ss:$0 sm:$0xff] }
0x12e2   : > { %v3213_v46 = vld [vmem:[%s4595_s20] ss:$0 sm:$0xff] }
0x12e3   : > { %s675_s18 = scalar_lea.vmem %s4597_s4, %s4596_s29 }
0x1359   : > { %v2935_v38 = vpop.xlane.xlu1 %2934 }
0x135a   : > { %v2936_v41 = vmul.f32 0.03125, %v2935_v38 }
0x135c   : > { %v2937_v42 = vadd.f32 1e-05, %v2936_v41 }
0x135e   : > { %3774 = vrsqrt.f32 %v2937_v42 }
0x1368   : > { %v3775_v43 = vpop.eup %3774 }
0x1369   : > { %v2939_v45 = vmul.f32 %v3775_v43, %v2931_v35 }
0x136b   : > { %v2947_v54 = vmul.f32 %v3212_v44, %v2939_v45 }
0x136d   : > { %v2955_v47 = vadd.f32 %v3213_v46, %v2947_v54 }
0x136f   : > { %2956 = vst.msk [vmem:[%s675_s18] sm:$0xf] %vm2721_vm10, %v2955_v47 }
0x1370 PF: > { %s4598_s26 = sld [smem:[#allocation7_spill]]  ;;  %s4599_s27 = sld [smem:[#allocation5_spill]] }
0x1376   : > { %p3716_p5 = scmp.ge.s32.totalorder %s4598_s26, 2  ;;  %s2999_s2 = sand.u32 1, %s4599_s27  }
0x1377   : > { %s3000_s19 = scalar_lea.sflag [#allocation3], %s2999_s2 }
0x1378   : > { %p3713_p1 = pnand %p3716_p5, %p3995_p6 }
0x137a   : > { %3821 = dma.done.wait (!%p3713_p1), %s3000_s19, 256  }
0x137b   : > { %3823 = vsyncadd (!%p3713_p1), %s3000_s19, 4294967040  ;;  %s4601_s24 = sld [smem:[#allocation8_spill]]  ;;  %s4602_s25 = sld [smem:[#allocation6_spill]] }
0x137c   : > { %s4603_s23 = sld [smem:[#allocation9_spill]]  ;;  %s4604_s1 = smov %s3830_s22 }
0x1381   : > { %p31_p2 = scmp.ge.s32.totalorder %s4601_s24, 4   ;;  %s4605_s22 = smov %s4602_s25 }
0x1383   :  { %33 = sbr.rel (!%p31_p2) target bundleno = 14 (0xe), region = 173 }
0x138a   :  { %3005 = vsyncpa [#allocation3], 1 }
0x138b   :  { %3007 = vsyncpa [#allocation3 + $0x1], 1 }

</bundles_post_ra>
